<compile_context>
chip_gen: v6e
topology: v6e:2x2x1
jax: 0.10.0
libtpu: 0.0.40
codegen_flags: <defaults>
</compile_context>

<pallas_src>
import functools

import jax
import jax.numpy as jnp
from jax import lax
from jax.experimental import pallas as pl
from jax.experimental.pallas import tpu as pltpu


# ----------------------------------------------------------------------------
# Pallas kernel: encoder RNN + feature-map embedding + decoder loop with
# attention, fully resident in VMEM (gridless).
# ----------------------------------------------------------------------------
def encdec_kernel(
    x_ref,                       # (T*B, D)   flat time-major input, row = t*B + b
    wxh_ref, whh_ref, bh_ref,    # (D, F), (F, F), (1, F)   encoder RNN
    wfe_ref, bfe_ref,            # (F, S), (1, S)           ftMapEmbedding
    wse_ref, bse_ref,            # (S, S), (1, S)           stateEmbedding
    wc_ref, wp_ref, ws_ref, bd_ref,   # (F, S), (Vp, S), (S, S), (1, S)  decoder cell
    wo_ref, bo_ref,              # (S, Vp), (1, Vp)         output projection (lane-padded)
    out_ref,                     # (L, B, Vp) time-major output (lane-dense stores)
    fm_ref,                      # scratch (T*B, F)   feature map
    xp_ref,                      # scratch (T*B, F)   hoisted encoder input projection
):
    L, B, Vp = out_ref.shape
    TB, _ = x_ref.shape
    T = TB // B
    F = whh_ref.shape[0]
    S = ws_ref.shape[0]
    f32 = jnp.float32

    # Hoist loop-invariant weight loads.
    whh = whh_ref[...]
    wc = wc_ref[...]
    wp = wp_ref[...]
    ws = ws_ref[...]
    bd = bd_ref[...]
    wo = wo_ref[...]
    bo = bo_ref[...]

    # ------------------------- Encoder (tanh RNN) ---------------------------
    # Input projection hoisted off the recurrence: ONE (T*B,D)@(D,F) dot.
    xp_ref[...] = (
        jnp.dot(x_ref[...], wxh_ref[...], preferred_element_type=f32) + bh_ref[...]
    )

    # Serialized step is now only a 32-deep dot + add + tanh.
    def enc_step(t, h):
        xp_t = xp_ref[pl.ds(t * B, B), :]                            # (B, F)
        h = jnp.tanh(xp_t + jnp.dot(h, whh, preferred_element_type=f32))
        fm_ref[pl.ds(t * B, B), :] = h
        return h

    h0 = jnp.zeros((B, F), f32)                                      # enc.init_hidden
    lax.fori_loop(0, T, enc_step, h0, unroll=True)

    # ---------------- Hoisted ftMapEmbedding (single matmul) ----------------
    fm2 = fm_ref[...]                                                # (T*B, F)
    emf2 = jnp.dot(fm2, wfe_ref[...], preferred_element_type=f32) + bfe_ref[...]
    emf_t = jnp.transpose(emf2)                                      # (S, T*B), once

    # Fold stateEmbedding + batch-block mask into the score matrix (once):
    #   scores = (dec_state @ wse + bse) @ emf_t  ==  dec_state @ (wse @ emf_t)
    #            + (bse @ emf_t)
    # Column c = t*B + b' is valid for batch row b iff b' == b; invalid columns
    # get an additive -1e30 so exp() underflows to exact 0.
    row_b = lax.broadcasted_iota(jnp.int32, (B, TB), 0)
    col = lax.broadcasted_iota(jnp.int32, (B, TB), 1)
    add_mask = jnp.where((col % B) == row_b, jnp.float32(0.0), jnp.float32(-1e30))
    score_w = jnp.dot(wse_ref[...], emf_t, preferred_element_type=f32)          # (S, T*B)
    score_b = jnp.dot(bse_ref[...], emf_t, preferred_element_type=f32) + add_mask  # (B, T*B)

    # ------------------------- Decoder loop ---------------------------------
    def dec_step(i, carry):
        dec_pred, dec_state = carry                                  # (B, Vp), (B, S)

        # Carry-only partial of the decoder cell: depends only on the previous
        # step's carry, so it can issue immediately and hide under the
        # scores -> softmax -> context chain.
        ps = (
            jnp.dot(dec_pred, wp, preferred_element_type=f32)
            + jnp.dot(dec_state, ws, preferred_element_type=f32)
            + bd
        )                                                            # (B, S)

        # Attention ('gen') with stateEmbedding + mask pre-folded.
        s = jnp.dot(dec_state, score_w, preferred_element_type=f32) + score_b   # (B, T*B)
        s = s - jnp.max(s, axis=-1, keepdims=True)
        e = jnp.exp(s)                                               # masked cols -> 0
        attn = e * pl.reciprocal(jnp.sum(e, axis=-1, keepdims=True), approx=False)

        # Context from the (un-embedded) feature map: one (B,T*B)@(T*B,F) dot.
        context = jnp.dot(attn, fm2, preferred_element_type=f32)                # (B, F)

        # Decoder cell: only the context dot sits on the serialized path.
        new_state = jnp.tanh(ps + jnp.dot(context, wc, preferred_element_type=f32))  # (B, S)

        # Output projection + vocab softmax (lane-padded: pad cols have -1e30
        # bias and zero weights, so they come out exactly 0).
        logits = jnp.dot(new_state, wo, preferred_element_type=f32) + bo        # (B, Vp)
        logits = logits - jnp.max(logits, axis=-1, keepdims=True)
        el = jnp.exp(logits)
        new_pred = el * pl.reciprocal(jnp.sum(el, axis=-1, keepdims=True), approx=False)

        out_ref[i] = new_pred                                        # lane-dense store
        return (new_pred, new_state)

    pred0 = jnp.zeros((B, Vp), f32)                                  # dec.init_pred (padded)
    state0 = jnp.zeros((B, S), f32)                                  # dec.init_state
    lax.fori_loop(0, L, dec_step, (pred0, state0), unroll=True)


# ----------------------------------------------------------------------------
# Wrapper
# ----------------------------------------------------------------------------
@functools.partial(jax.jit, static_argnames=("output_sec_length",))
def encoder_decoder_forward(x, params, output_sec_length=25):
    """x: (B, 1, T, D) float32 (PyTorch NCHW-style). Returns (B, L, V)."""
    B, _, T, D = x.shape
    F = params["whh"].shape[0]
    S = params["ws"].shape[0]
    V = params["wo"].shape[1]
    L = output_sec_length
    Vp = 128 * pl.cdiv(V, 128)          # lane-dense padded vocab width

    # Flat time-major input: row t*B + b.
    x_flat = jnp.transpose(x[:, 0], (1, 0, 2)).reshape(T * B, D).astype(jnp.float32)

    # Pad the vocab dimension to a full 128-lane width (exact: zero weights and
    # -1e30 bias on pad columns -> softmax puts exactly 0 there; zero wp rows
    # mean the padded dec_pred columns contribute nothing).
    wo_p = jnp.pad(params["wo"], ((0, 0), (0, Vp - V)))
    bo_p = jnp.pad(params["bo"], ((0, 0), (0, Vp - V)), constant_values=-1e30)
    wp_p = jnp.pad(params["wp"], ((0, Vp - V), (0, 0)))

    vmem = pltpu.MemorySpace.VMEM
    out_tbv = pl.pallas_call(
        encdec_kernel,
        out_shape=jax.ShapeDtypeStruct((L, B, Vp), jnp.float32),
        in_specs=[pl.BlockSpec(memory_space=vmem)] * 14,
        out_specs=pl.BlockSpec(memory_space=vmem),
        scratch_shapes=[
            pltpu.VMEM((T * B, F), jnp.float32),   # feature map
            pltpu.VMEM((T * B, F), jnp.float32),   # hoisted encoder input projection
        ],
    )(
        x_flat,
        params["wxh"], params["whh"], params["bh"],
        params["wfe"], params["bfe"],
        params["wse"], params["bse"],
        params["wc"], wp_p, params["ws"], params["bd"],
        wo_p, bo_p,
    )
    return jnp.transpose(out_tbv, (1, 0, 2))[:, :, :V]                # (B, L, V)


# ----------------------------------------------------------------------------
# Pure-JAX reference (same math, un-fused / un-padded) for verification.
# ----------------------------------------------------------------------------
def reference_forward(x, p, output_sec_length=25):
    B, _, T, D = x.shape
    xs = x[:, 0].astype(jnp.float32)                                # (B, T, D)
    F = p["whh"].shape[0]
    S = p["ws"].shape[0]
    V = p["wo"].shape[1]

    h = jnp.zeros((B, F), jnp.float32)
    fm = []
    for t in range(T):
        h = jnp.tanh(xs[:, t] @ p["wxh"] + h @ p["whh"] + p["bh"])
        fm.append(h)
    fm = jnp.stack(fm, axis=1)                                      # (B, T, F)
    emf = fm @ p["wfe"] + p["bfe"]                                  # (B, T, S)

    dec_pred = jnp.zeros((B, V), jnp.float32)
    dec_state = jnp.zeros((B, S), jnp.float32)
    outs = []
    for _ in range(output_sec_length):
        es = dec_state @ p["wse"] + p["bse"]                        # (B, S)
        scores = jnp.sum(emf * es[:, None, :], axis=-1)             # (B, T)
        attn = jax.nn.softmax(scores, axis=-1)
        context = jnp.sum(attn[:, :, None] * fm, axis=1)            # (B, F)
        dec_state = jnp.tanh(
            context @ p["wc"] + dec_pred @ p["wp"] + dec_state @ p["ws"] + p["bd"]
        )
        dec_pred = jax.nn.softmax(dec_state @ p["wo"] + p["bo"], axis=-1)
        outs.append(dec_pred)
    return jnp.stack(outs, axis=1)                                  # (B, L, V)


# ----------------------------------------------------------------------------
# Deterministic parameter construction
# ----------------------------------------------------------------------------
def make_params(key, D, F, S, V):
    ks = jax.random.split(key, 10)

    def w(k, shape, fan_in):
        return (jax.random.normal(k, shape, jnp.float32) / jnp.sqrt(fan_in)).astype(jnp.float32)

    return {
        # Encoder RNN
        "wxh": w(ks[0], (D, F), D),
        "whh": w(ks[1], (F, F), F),
        "bh": jnp.zeros((1, F), jnp.float32),
        # ftMapEmbedding: Linear(F, S)
        "wfe": w(ks[2], (F, S), F),
        "bfe": 0.01 * jnp.ones((1, S), jnp.float32),
        # stateEmbedding: Linear(S, S)
        "wse": w(ks[3], (S, S), S),
        "bse": 0.01 * jnp.ones((1, S), jnp.float32),
        # Decoder cell
        "wc": w(ks[4], (F, S), F),
        "wp": w(ks[5], (V, S), V),
        "ws": w(ks[6], (S, S), S),
        "bd": jnp.zeros((1, S), jnp.float32),
        # Output projection: Linear(S, V)
        "wo": w(ks[7], (S, V), S),
        "bo": jnp.zeros((1, V), jnp.float32),
    }


if __name__ == "__main__":
    # Small shapes implied by the forward: input_image (B, 1, T, D).
    B, T, D = 2, 8, 16          # batch, input_sec_length, input_dimension
    F, S, V = 32, 32, 64        # feature_map_dim, dec_state_size, output_vocab_size
    L = 25                      # output_sec_length (module default)

    key = jax.random.PRNGKey(0)
    kx, kp = jax.random.split(key)
    x = jax.random.normal(kx, (B, 1, T, D), jnp.float32)
    params = make_params(kp, D, F, S, V)

    out = encoder_decoder_forward(x, params, output_sec_length=L)
    out = jax.block_until_ready(out)

    ref = reference_forward(x, params, output_sec_length=L)
    assert out.shape == (B, L, V), out.shape
    # Tolerance slightly relaxed vs 1e-5: the algebraic foldings (hoisted input
    # projection, wse folded into score_w, split decoder dots) reassociate the
    # f32 sums relative to the reference.
    max_diff = float(jnp.max(jnp.abs(out - ref)))
    assert jnp.allclose(out, ref, atol=1e-4, rtol=1e-4), max_diff

    print("KERNEL_OK")
</pallas_src>

<mosaic_0001>
module attributes {stable_mosaic.version = 11 : i64} {
  func.func @encdec_kernel(%arg0: memref<16x16xf32, #tpu.memory_space<vmem>>, %arg1: memref<16x32xf32, #tpu.memory_space<vmem>>, %arg2: memref<32x32xf32, #tpu.memory_space<vmem>>, %arg3: memref<1x32xf32, #tpu.memory_space<vmem>>, %arg4: memref<32x32xf32, #tpu.memory_space<vmem>>, %arg5: memref<1x32xf32, #tpu.memory_space<vmem>>, %arg6: memref<32x32xf32, #tpu.memory_space<vmem>>, %arg7: memref<1x32xf32, #tpu.memory_space<vmem>>, %arg8: memref<32x32xf32, #tpu.memory_space<vmem>>, %arg9: memref<128x32xf32, #tpu.memory_space<vmem>>, %arg10: memref<32x32xf32, #tpu.memory_space<vmem>>, %arg11: memref<1x32xf32, #tpu.memory_space<vmem>>, %arg12: memref<32x128xf32, #tpu.memory_space<vmem>>, %arg13: memref<1x128xf32, #tpu.memory_space<vmem>>, %arg14: memref<25x2x128xf32, #tpu.memory_space<vmem>>, %arg15: memref<16x32xf32, #tpu.memory_space<vmem>>, %arg16: memref<16x32xf32, #tpu.memory_space<vmem>>) attributes {dimension_semantics = [], scalar_prefetch = 0 : i64, scratch_operands = 2 : i64, tpu.core_type = #tpu.core_type<tc>} {
    %c0 = arith.constant 0 : index
    %c0_0 = arith.constant 0 : index
    %0 = vector.load %arg2[%c0, %c0_0] : memref<32x32xf32, #tpu.memory_space<vmem>>, vector<32x32xf32>
    %c0_1 = arith.constant 0 : index
    %c0_2 = arith.constant 0 : index
    %1 = vector.load %arg8[%c0_1, %c0_2] : memref<32x32xf32, #tpu.memory_space<vmem>>, vector<32x32xf32>
    %c0_3 = arith.constant 0 : index
    %c0_4 = arith.constant 0 : index
    %2 = vector.load %arg9[%c0_3, %c0_4] : memref<128x32xf32, #tpu.memory_space<vmem>>, vector<128x32xf32>
    %c0_5 = arith.constant 0 : index
    %c0_6 = arith.constant 0 : index
    %3 = vector.load %arg10[%c0_5, %c0_6] : memref<32x32xf32, #tpu.memory_space<vmem>>, vector<32x32xf32>
    %c0_7 = arith.constant 0 : index
    %c0_8 = arith.constant 0 : index
    %4 = vector.load %arg11[%c0_7, %c0_8] : memref<1x32xf32, #tpu.memory_space<vmem>>, vector<1x32xf32>
    %c0_9 = arith.constant 0 : index
    %c0_10 = arith.constant 0 : index
    %5 = vector.load %arg12[%c0_9, %c0_10] : memref<32x128xf32, #tpu.memory_space<vmem>>, vector<32x128xf32>
    %c0_11 = arith.constant 0 : index
    %c0_12 = arith.constant 0 : index
    %6 = vector.load %arg13[%c0_11, %c0_12] : memref<1x128xf32, #tpu.memory_space<vmem>>, vector<1x128xf32>
    %c0_13 = arith.constant 0 : index
    %c0_14 = arith.constant 0 : index
    %7 = vector.load %arg0[%c0_13, %c0_14] : memref<16x16xf32, #tpu.memory_space<vmem>>, vector<16x16xf32>
    %c0_15 = arith.constant 0 : index
    %c0_16 = arith.constant 0 : index
    %8 = vector.load %arg1[%c0_15, %c0_16] : memref<16x32xf32, #tpu.memory_space<vmem>>, vector<16x32xf32>
    %cst = arith.constant dense<0.000000e+00> : vector<16x32xf32>
    %9 = tpu.matmul %7, %8, %cst {dimension_numbers = #tpu.dot_dimension_numbers<[1], [0], [0], [1], [0, 0, 1, 1], [], []>} : vector<16x16xf32>, vector<16x32xf32>, vector<16x32xf32> -> vector<16x32xf32>
    %c0_17 = arith.constant 0 : index
    %c0_18 = arith.constant 0 : index
    %10 = vector.load %arg3[%c0_17, %c0_18] : memref<1x32xf32, #tpu.memory_space<vmem>>, vector<1x32xf32>
    %11 = vector.broadcast %10 : vector<1x32xf32> to vector<16x32xf32>
    %12 = arith.addf %9, %11 : vector<16x32xf32>
    %c0_19 = arith.constant 0 : index
    %c0_20 = arith.constant 0 : index
    %13 = vector.load %arg16[%c0_19, %c0_20] : memref<16x32xf32, #tpu.memory_space<vmem>>, vector<16x32xf32>
    tpu.vector_store %arg16[%c0_19, %c0_20], %12 {strides = array<i32>} : memref<16x32xf32, #tpu.memory_space<vmem>>, vector<16x32xf32>,
    %cst_21 = arith.constant 0.000000e+00 : f32
    %14 = vector.broadcast %cst_21 : f32 to vector<2x32xf32>
    %c0_i32 = arith.constant 0 : i32
    %c2_i32 = arith.constant 2 : i32
    %15 = arith.muli %c0_i32, %c2_i32 : i32
    %16 = arith.index_cast %15 : i32 to index
    %c0_22 = arith.constant 0 : index
    %17 = vector.load %arg16[%16, %c0_22] : memref<16x32xf32, #tpu.memory_space<vmem>>, vector<2x32xf32>
    %cst_23 = arith.constant dense<0.000000e+00> : vector<2x32xf32>
    %18 = tpu.matmul %14, %0, %cst_23 {dimension_numbers = #tpu.dot_dimension_numbers<[1], [0], [0], [1], [0, 0, 1, 1], [], []>} : vector<2x32xf32>, vector<32x32xf32>, vector<2x32xf32> -> vector<2x32xf32>
    %19 = arith.addf %17, %18 : vector<2x32xf32>
    %20 = math.tanh %19 : vector<2x32xf32>
    %c2_i32_24 = arith.constant 2 : i32
    %21 = arith.muli %c0_i32, %c2_i32_24 : i32
    %22 = arith.index_cast %21 : i32 to index
    %c0_25 = arith.constant 0 : index
    %23 = vector.load %arg15[%22, %c0_25] : memref<16x32xf32, #tpu.memory_space<vmem>>, vector<2x32xf32>
    tpu.vector_store %arg15[%22, %c0_25], %20 {strides = array<i32>} : memref<16x32xf32, #tpu.memory_space<vmem>>, vector<2x32xf32>,
    %c1_i32 = arith.constant 1 : i32
    %c2_i32_26 = arith.constant 2 : i32
    %24 = arith.muli %c1_i32, %c2_i32_26 : i32
    %25 = arith.index_cast %24 : i32 to index
    %c0_27 = arith.constant 0 : index
    %26 = vector.load %arg16[%25, %c0_27] : memref<16x32xf32, #tpu.memory_space<vmem>>, vector<2x32xf32>
    %cst_28 = arith.constant dense<0.000000e+00> : vector<2x32xf32>
    %27 = tpu.matmul %20, %0, %cst_28 {dimension_numbers = #tpu.dot_dimension_numbers<[1], [0], [0], [1], [0, 0, 1, 1], [], []>} : vector<2x32xf32>, vector<32x32xf32>, vector<2x32xf32> -> vector<2x32xf32>
    %28 = arith.addf %26, %27 : vector<2x32xf32>
    %29 = math.tanh %28 : vector<2x32xf32>
    %c2_i32_29 = arith.constant 2 : i32
    %30 = arith.muli %c1_i32, %c2_i32_29 : i32
    %31 = arith.index_cast %30 : i32 to index
    %c0_30 = arith.constant 0 : index
    %32 = vector.load %arg15[%31, %c0_30] : memref<16x32xf32, #tpu.memory_space<vmem>>, vector<2x32xf32>
    tpu.vector_store %arg15[%31, %c0_30], %29 {strides = array<i32>} : memref<16x32xf32, #tpu.memory_space<vmem>>, vector<2x32xf32>,
    %c2_i32_31 = arith.constant 2 : i32
    %c2_i32_32 = arith.constant 2 : i32
    %33 = arith.muli %c2_i32_31, %c2_i32_32 : i32
    %34 = arith.index_cast %33 : i32 to index
    %c0_33 = arith.constant 0 : index
    %35 = vector.load %arg16[%34, %c0_33] : memref<16x32xf32, #tpu.memory_space<vmem>>, vector<2x32xf32>
    %cst_34 = arith.constant dense<0.000000e+00> : vector<2x32xf32>
    %36 = tpu.matmul %29, %0, %cst_34 {dimension_numbers = #tpu.dot_dimension_numbers<[1], [0], [0], [1], [0, 0, 1, 1], [], []>} : vector<2x32xf32>, vector<32x32xf32>, vector<2x32xf32> -> vector<2x32xf32>
    %37 = arith.addf %35, %36 : vector<2x32xf32>
    %38 = math.tanh %37 : vector<2x32xf32>
    %c2_i32_35 = arith.constant 2 : i32
    %39 = arith.muli %c2_i32_31, %c2_i32_35 : i32
    %40 = arith.index_cast %39 : i32 to index
    %c0_36 = arith.constant 0 : index
    %41 = vector.load %arg15[%40, %c0_36] : memref<16x32xf32, #tpu.memory_space<vmem>>, vector<2x32xf32>
    tpu.vector_store %arg15[%40, %c0_36], %38 {strides = array<i32>} : memref<16x32xf32, #tpu.memory_space<vmem>>, vector<2x32xf32>,
    %c3_i32 = arith.constant 3 : i32
    %c2_i32_37 = arith.constant 2 : i32
    %42 = arith.muli %c3_i32, %c2_i32_37 : i32
    %43 = arith.index_cast %42 : i32 to index
    %c0_38 = arith.constant 0 : index
    %44 = vector.load %arg16[%43, %c0_38] : memref<16x32xf32, #tpu.memory_space<vmem>>, vector<2x32xf32>
    %cst_39 = arith.constant dense<0.000000e+00> : vector<2x32xf32>
    %45 = tpu.matmul %38, %0, %cst_39 {dimension_numbers = #tpu.dot_dimension_numbers<[1], [0], [0], [1], [0, 0, 1, 1], [], []>} : vector<2x32xf32>, vector<32x32xf32>, vector<2x32xf32> -> vector<2x32xf32>
    %46 = arith.addf %44, %45 : vector<2x32xf32>
    %47 = math.tanh %46 : vector<2x32xf32>
    %c2_i32_40 = arith.constant 2 : i32
    %48 = arith.muli %c3_i32, %c2_i32_40 : i32
    %49 = arith.index_cast %48 : i32 to index
    %c0_41 = arith.constant 0 : index
    %50 = vector.load %arg15[%49, %c0_41] : memref<16x32xf32, #tpu.memory_space<vmem>>, vector<2x32xf32>
    tpu.vector_store %arg15[%49, %c0_41], %47 {strides = array<i32>} : memref<16x32xf32, #tpu.memory_space<vmem>>, vector<2x32xf32>,
    %c4_i32 = arith.constant 4 : i32
    %c2_i32_42 = arith.constant 2 : i32
    %51 = arith.muli %c4_i32, %c2_i32_42 : i32
    %52 = arith.index_cast %51 : i32 to index
    %c0_43 = arith.constant 0 : index
    %53 = vector.load %arg16[%52, %c0_43] : memref<16x32xf32, #tpu.memory_space<vmem>>, vector<2x32xf32>
    %cst_44 = arith.constant dense<0.000000e+00> : vector<2x32xf32>
    %54 = tpu.matmul %47, %0, %cst_44 {dimension_numbers = #tpu.dot_dimension_numbers<[1], [0], [0], [1], [0, 0, 1, 1], [], []>} : vector<2x32xf32>, vector<32x32xf32>, vector<2x32xf32> -> vector<2x32xf32>
    %55 = arith.addf %53, %54 : vector<2x32xf32>
    %56 = math.tanh %55 : vector<2x32xf32>
    %c2_i32_45 = arith.constant 2 : i32
    %57 = arith.muli %c4_i32, %c2_i32_45 : i32
    %58 = arith.index_cast %57 : i32 to index
    %c0_46 = arith.constant 0 : index
    %59 = vector.load %arg15[%58, %c0_46] : memref<16x32xf32, #tpu.memory_space<vmem>>, vector<2x32xf32>
    tpu.vector_store %arg15[%58, %c0_46], %56 {strides = array<i32>} : memref<16x32xf32, #tpu.memory_space<vmem>>, vector<2x32xf32>,
    %c5_i32 = arith.constant 5 : i32
    %c2_i32_47 = arith.constant 2 : i32
    %60 = arith.muli %c5_i32, %c2_i32_47 : i32
    %61 = arith.index_cast %60 : i32 to index
    %c0_48 = arith.constant 0 : index
    %62 = vector.load %arg16[%61, %c0_48] : memref<16x32xf32, #tpu.memory_space<vmem>>, vector<2x32xf32>
    %cst_49 = arith.constant dense<0.000000e+00> : vector<2x32xf32>
    %63 = tpu.matmul %56, %0, %cst_49 {dimension_numbers = #tpu.dot_dimension_numbers<[1], [0], [0], [1], [0, 0, 1, 1], [], []>} : vector<2x32xf32>, vector<32x32xf32>, vector<2x32xf32> -> vector<2x32xf32>
    %64 = arith.addf %62, %63 : vector<2x32xf32>
    %65 = math.tanh %64 : vector<2x32xf32>
    %c2_i32_50 = arith.constant 2 : i32
    %66 = arith.muli %c5_i32, %c2_i32_50 : i32
    %67 = arith.index_cast %66 : i32 to index
    %c0_51 = arith.constant 0 : index
    %68 = vector.load %arg15[%67, %c0_51] : memref<16x32xf32, #tpu.memory_space<vmem>>, vector<2x32xf32>
    tpu.vector_store %arg15[%67, %c0_51], %65 {strides = array<i32>} : memref<16x32xf32, #tpu.memory_space<vmem>>, vector<2x32xf32>,
    %c6_i32 = arith.constant 6 : i32
    %c2_i32_52 = arith.constant 2 : i32
    %69 = arith.muli %c6_i32, %c2_i32_52 : i32
    %70 = arith.index_cast %69 : i32 to index
    %c0_53 = arith.constant 0 : index
    %71 = vector.load %arg16[%70, %c0_53] : memref<16x32xf32, #tpu.memory_space<vmem>>, vector<2x32xf32>
    %cst_54 = arith.constant dense<0.000000e+00> : vector<2x32xf32>
    %72 = tpu.matmul %65, %0, %cst_54 {dimension_numbers = #tpu.dot_dimension_numbers<[1], [0], [0], [1], [0, 0, 1, 1], [], []>} : vector<2x32xf32>, vector<32x32xf32>, vector<2x32xf32> -> vector<2x32xf32>
    %73 = arith.addf %71, %72 : vector<2x32xf32>
    %74 = math.tanh %73 : vector<2x32xf32>
    %c2_i32_55 = arith.constant 2 : i32
    %75 = arith.muli %c6_i32, %c2_i32_55 : i32
    %76 = arith.index_cast %75 : i32 to index
    %c0_56 = arith.constant 0 : index
    %77 = vector.load %arg15[%76, %c0_56] : memref<16x32xf32, #tpu.memory_space<vmem>>, vector<2x32xf32>
    tpu.vector_store %arg15[%76, %c0_56], %74 {strides = array<i32>} : memref<16x32xf32, #tpu.memory_space<vmem>>, vector<2x32xf32>,
    %c7_i32 = arith.constant 7 : i32
    %c2_i32_57 = arith.constant 2 : i32
    %78 = arith.muli %c7_i32, %c2_i32_57 : i32
    %79 = arith.index_cast %78 : i32 to index
    %c0_58 = arith.constant 0 : index
    %80 = vector.load %arg16[%79, %c0_58] : memref<16x32xf32, #tpu.memory_space<vmem>>, vector<2x32xf32>
    %cst_59 = arith.constant dense<0.000000e+00> : vector<2x32xf32>
    %81 = tpu.matmul %74, %0, %cst_59 {dimension_numbers = #tpu.dot_dimension_numbers<[1], [0], [0], [1], [0, 0, 1, 1], [], []>} : vector<2x32xf32>, vector<32x32xf32>, vector<2x32xf32> -> vector<2x32xf32>
    %82 = arith.addf %80, %81 : vector<2x32xf32>
    %83 = math.tanh %82 : vector<2x32xf32>
    %c2_i32_60 = arith.constant 2 : i32
    %84 = arith.muli %c7_i32, %c2_i32_60 : i32
    %85 = arith.index_cast %84 : i32 to index
    %c0_61 = arith.constant 0 : index
    %86 = vector.load %arg15[%85, %c0_61] : memref<16x32xf32, #tpu.memory_space<vmem>>, vector<2x32xf32>
    tpu.vector_store %arg15[%85, %c0_61], %83 {strides = array<i32>} : memref<16x32xf32, #tpu.memory_space<vmem>>, vector<2x32xf32>,
    %c8_i32 = arith.constant 8 : i32
    %c0_62 = arith.constant 0 : index
    %c0_63 = arith.constant 0 : index
    %87 = vector.load %arg15[%c0_62, %c0_63] : memref<16x32xf32, #tpu.memory_space<vmem>>, vector<16x32xf32>
    %c0_64 = arith.constant 0 : index
    %c0_65 = arith.constant 0 : index
    %88 = vector.load %arg4[%c0_64, %c0_65] : memref<32x32xf32, #tpu.memory_space<vmem>>, vector<32x32xf32>
    %cst_66 = arith.constant dense<0.000000e+00> : vector<16x32xf32>
    %89 = tpu.matmul %87, %88, %cst_66 {dimension_numbers = #tpu.dot_dimension_numbers<[1], [0], [0], [1], [0, 0, 1, 1], [], []>} : vector<16x32xf32>, vector<32x32xf32>, vector<16x32xf32> -> vector<16x32xf32>
    %c0_67 = arith.constant 0 : index
    %c0_68 = arith.constant 0 : index
    %90 = vector.load %arg5[%c0_67, %c0_68] : memref<1x32xf32, #tpu.memory_space<vmem>>, vector<1x32xf32>
    %91 = vector.broadcast %90 : vector<1x32xf32> to vector<16x32xf32>
    %92 = arith.addf %89, %91 : vector<16x32xf32>
    %93 = tpu.transpose %92, [1, 0] : vector<16x32xf32> -> vector<32x16xf32>
    %94 = tpu.iota {dimensions = array<i32: 0>} : vector<2x16xi32>
    %95 = tpu.iota {dimensions = array<i32: 1>} : vector<2x16xi32>
    %c2_i32_69 = arith.constant 2 : i32
    %c0_i32_70 = arith.constant 0 : i32
    %96 = arith.cmpi eq, %c2_i32_69, %c0_i32_70 : i32
    %c1_i32_71 = arith.constant 1 : i32
    %97 = arith.select %96, %c1_i32_71, %c2_i32_69 : i32
    %98 = vector.broadcast %97 : i32 to vector<2x16xi32>
    %99 = arith.remsi %95, %98 : vector<2x16xi32>
    %c0_i32_72 = arith.constant 0 : i32
    %100 = vector.broadcast %c0_i32_72 : i32 to vector<2x16xi32>
    %101 = arith.cmpi ne, %99, %100 : vector<2x16xi32>
    %c0_i32_73 = arith.constant 0 : i32
    %102 = vector.broadcast %c0_i32_73 : i32 to vector<2x16xi32>
    %103 = arith.cmpi slt, %99, %102 : vector<2x16xi32>
    %c0_i32_74 = arith.constant 0 : i32
    %104 = arith.cmpi slt, %97, %c0_i32_74 : i32
    %105 = vector.broadcast %104 : i1 to vector<2x16xi1>
    %106 = vector.broadcast %105 : vector<2x16xi1> to vector<2x16xi1>
    %107 = arith.xori %103, %106 : vector<2x16xi1>
    %108 = arith.andi %107, %101 : vector<2x16xi1>
    %109 = vector.broadcast %97 : i32 to vector<2x16xi32>
    %110 = arith.addi %99, %109 : vector<2x16xi32>
    %111 = arith.select %108, %110, %99 : vector<2x16xi1>, vector<2x16xi32>
    %112 = arith.cmpi eq, %111, %94 : vector<2x16xi32>
    %cst_75 = arith.constant 0.000000e+00 : f32
    %cst_76 = arith.constant -1.000000e+30 : f32
    %113 = vector.broadcast %cst_75 : f32 to vector<2x16xf32>
    %114 = vector.broadcast %cst_76 : f32 to vector<2x16xf32>
    %115 = arith.select %112, %113, %114 : vector<2x16xi1>, vector<2x16xf32>
    %c0_77 = arith.constant 0 : index
    %c0_78 = arith.constant 0 : index
    %116 = vector.load %arg6[%c0_77, %c0_78] : memref<32x32xf32, #tpu.memory_space<vmem>>, vector<32x32xf32>
    %cst_79 = arith.constant dense<0.000000e+00> : vector<32x16xf32>
    %117 = tpu.matmul %116, %93, %cst_79 {dimension_numbers = #tpu.dot_dimension_numbers<[1], [0], [0], [1], [0, 0, 1, 1], [], []>} : vector<32x32xf32>, vector<32x16xf32>, vector<32x16xf32> -> vector<32x16xf32>
    %c0_80 = arith.constant 0 : index
    %c0_81 = arith.constant 0 : index
    %118 = vector.load %arg7[%c0_80, %c0_81] : memref<1x32xf32, #tpu.memory_space<vmem>>, vector<1x32xf32>
    %cst_82 = arith.constant dense<0.000000e+00> : vector<1x16xf32>
    %119 = tpu.matmul %118, %93, %cst_82 {dimension_numbers = #tpu.dot_dimension_numbers<[1], [0], [0], [1], [0, 0, 1, 1], [], []>} : vector<1x32xf32>, vector<32x16xf32>, vector<1x16xf32> -> vector<1x16xf32>
    %120 = vector.broadcast %119 : vector<1x16xf32> to vector<2x16xf32>
    %121 = arith.addf %120, %115 : vector<2x16xf32>
    %cst_83 = arith.constant 0.000000e+00 : f32
    %122 = vector.broadcast %cst_83 : f32 to vector<2x128xf32>
    %cst_84 = arith.constant 0.000000e+00 : f32
    %123 = vector.broadcast %cst_84 : f32 to vector<2x32xf32>
    %c0_i32_85 = arith.constant 0 : i32
    %cst_86 = arith.constant dense<0.000000e+00> : vector<2x32xf32>
    %124 = tpu.matmul %122, %2, %cst_86 {dimension_numbers = #tpu.dot_dimension_numbers<[1], [0], [0], [1], [0, 0, 1, 1], [], []>} : vector<2x128xf32>, vector<128x32xf32>, vector<2x32xf32> -> vector<2x32xf32>
    %cst_87 = arith.constant dense<0.000000e+00> : vector<2x32xf32>
    %125 = tpu.matmul %123, %3, %cst_87 {dimension_numbers = #tpu.dot_dimension_numbers<[1], [0], [0], [1], [0, 0, 1, 1], [], []>} : vector<2x32xf32>, vector<32x32xf32>, vector<2x32xf32> -> vector<2x32xf32>
    %126 = arith.addf %124, %125 : vector<2x32xf32>
    %127 = vector.broadcast %4 : vector<1x32xf32> to vector<2x32xf32>
    %128 = arith.addf %126, %127 : vector<2x32xf32>
    %cst_88 = arith.constant dense<0.000000e+00> : vector<2x16xf32>
    %129 = tpu.matmul %123, %117, %cst_88 {dimension_numbers = #tpu.dot_dimension_numbers<[1], [0], [0], [1], [0, 0, 1, 1], [], []>} : vector<2x32xf32>, vector<32x16xf32>, vector<2x16xf32> -> vector<2x16xf32>
    %130 = arith.addf %129, %121 : vector<2x16xf32>
    %cst_89 = arith.constant dense<0xFF800000> : vector<2xf32>
    %131 = vector.multi_reduction <maximumf>, %130, %cst_89 [1] : vector<2x16xf32> to vector<2xf32>
    %132 = vector.shape_cast %131 : vector<2xf32> to vector<2x1xf32>
    %133 = vector.broadcast %132 : vector<2x1xf32> to vector<2x16xf32>
    %134 = arith.subf %130, %133 : vector<2x16xf32>
    %135 = math.exp %134 : vector<2x16xf32>
    %cst_90 = arith.constant dense<0.000000e+00> : vector<2xf32>
    %136 = vector.multi_reduction <add>, %135, %cst_90 [1] : vector<2x16xf32> to vector<2xf32>
    %137 = vector.shape_cast %136 : vector<2xf32> to vector<2x1xf32>
    %138 = tpu.reciprocal %137 : vector<2x1xf32> -> vector<2x1xf32>
    %139 = vector.broadcast %138 : vector<2x1xf32> to vector<2x16xf32>
    %140 = arith.mulf %135, %139 : vector<2x16xf32>
    %cst_91 = arith.constant dense<0.000000e+00> : vector<2x32xf32>
    %141 = tpu.matmul %140, %87, %cst_91 {dimension_numbers = #tpu.dot_dimension_numbers<[1], [0], [0], [1], [0, 0, 1, 1], [], []>} : vector<2x16xf32>, vector<16x32xf32>, vector<2x32xf32> -> vector<2x32xf32>
    %cst_92 = arith.constant dense<0.000000e+00> : vector<2x32xf32>
    %142 = tpu.matmul %141, %1, %cst_92 {dimension_numbers = #tpu.dot_dimension_numbers<[1], [0], [0], [1], [0, 0, 1, 1], [], []>} : vector<2x32xf32>, vector<32x32xf32>, vector<2x32xf32> -> vector<2x32xf32>
    %143 = arith.addf %128, %142 : vector<2x32xf32>
    %144 = math.tanh %143 : vector<2x32xf32>
    %cst_93 = arith.constant dense<0.000000e+00> : vector<2x128xf32>
    %145 = tpu.matmul %144, %5, %cst_93 {dimension_numbers = #tpu.dot_dimension_numbers<[1], [0], [0], [1], [0, 0, 1, 1], [], []>} : vector<2x32xf32>, vector<32x128xf32>, vector<2x128xf32> -> vector<2x128xf32>
    %146 = vector.broadcast %6 : vector<1x128xf32> to vector<2x128xf32>
    %147 = arith.addf %145, %146 : vector<2x128xf32>
    %cst_94 = arith.constant dense<0xFF800000> : vector<2xf32>
    %148 = vector.multi_reduction <maximumf>, %147, %cst_94 [1] : vector<2x128xf32> to vector<2xf32>
    %149 = vector.shape_cast %148 : vector<2xf32> to vector<2x1xf32>
    %150 = vector.broadcast %149 : vector<2x1xf32> to vector<2x128xf32>
    %151 = arith.subf %147, %150 : vector<2x128xf32>
    %152 = math.exp %151 : vector<2x128xf32>
    %cst_95 = arith.constant dense<0.000000e+00> : vector<2xf32>
    %153 = vector.multi_reduction <add>, %152, %cst_95 [1] : vector<2x128xf32> to vector<2xf32>
    %154 = vector.shape_cast %153 : vector<2xf32> to vector<2x1xf32>
    %155 = tpu.reciprocal %154 : vector<2x1xf32> -> vector<2x1xf32>
    %156 = vector.broadcast %155 : vector<2x1xf32> to vector<2x128xf32>
    %157 = arith.mulf %152, %156 : vector<2x128xf32>
    %158 = arith.index_cast %c0_i32_85 : i32 to index
    %c0_96 = arith.constant 0 : index
    %c0_97 = arith.constant 0 : index
    %159 = vector.load %arg14[%158, %c0_96, %c0_97] : memref<25x2x128xf32, #tpu.memory_space<vmem>>, vector<1x2x128xf32>
    %160 = vector.shape_cast %159 : vector<1x2x128xf32> to vector<2x128xf32>
    %161 = vector.shape_cast %157 : vector<2x128xf32> to vector<1x2x128xf32>
    tpu.vector_store %arg14[%158, %c0_96, %c0_97], %161 {strides = array<i32>} : memref<25x2x128xf32, #tpu.memory_space<vmem>>, vector<1x2x128xf32>,
    %c1_i32_98 = arith.constant 1 : i32
    %cst_99 = arith.constant dense<0.000000e+00> : vector<2x32xf32>
    %162 = tpu.matmul %157, %2, %cst_99 {dimension_numbers = #tpu.dot_dimension_numbers<[1], [0], [0], [1], [0, 0, 1, 1], [], []>} : vector<2x128xf32>, vector<128x32xf32>, vector<2x32xf32> -> vector<2x32xf32>
    %cst_100 = arith.constant dense<0.000000e+00> : vector<2x32xf32>
    %163 = tpu.matmul %144, %3, %cst_100 {dimension_numbers = #tpu.dot_dimension_numbers<[1], [0], [0], [1], [0, 0, 1, 1], [], []>} : vector<2x32xf32>, vector<32x32xf32>, vector<2x32xf32> -> vector<2x32xf32>
    %164 = arith.addf %162, %163 : vector<2x32xf32>
    %165 = vector.broadcast %4 : vector<1x32xf32> to vector<2x32xf32>
    %166 = arith.addf %164, %165 : vector<2x32xf32>
    %cst_101 = arith.constant dense<0.000000e+00> : vector<2x16xf32>
    %167 = tpu.matmul %144, %117, %cst_101 {dimension_numbers = #tpu.dot_dimension_numbers<[1], [0], [0], [1], [0, 0, 1, 1], [], []>} : vector<2x32xf32>, vector<32x16xf32>, vector<2x16xf32> -> vector<2x16xf32>
    %168 = arith.addf %167, %121 : vector<2x16xf32>
    %cst_102 = arith.constant dense<0xFF800000> : vector<2xf32>
    %169 = vector.multi_reduction <maximumf>, %168, %cst_102 [1] : vector<2x16xf32> to vector<2xf32>
    %170 = vector.shape_cast %169 : vector<2xf32> to vector<2x1xf32>
    %171 = vector.broadcast %170 : vector<2x1xf32> to vector<2x16xf32>
    %172 = arith.subf %168, %171 : vector<2x16xf32>
    %173 = math.exp %172 : vector<2x16xf32>
    %cst_103 = arith.constant dense<0.000000e+00> : vector<2xf32>
    %174 = vector.multi_reduction <add>, %173, %cst_103 [1] : vector<2x16xf32> to vector<2xf32>
    %175 = vector.shape_cast %174 : vector<2xf32> to vector<2x1xf32>
    %176 = tpu.reciprocal %175 : vector<2x1xf32> -> vector<2x1xf32>
    %177 = vector.broadcast %176 : vector<2x1xf32> to vector<2x16xf32>
    %178 = arith.mulf %173, %177 : vector<2x16xf32>
    %cst_104 = arith.constant dense<0.000000e+00> : vector<2x32xf32>
    %179 = tpu.matmul %178, %87, %cst_104 {dimension_numbers = #tpu.dot_dimension_numbers<[1], [0], [0], [1], [0, 0, 1, 1], [], []>} : vector<2x16xf32>, vector<16x32xf32>, vector<2x32xf32> -> vector<2x32xf32>
    %cst_105 = arith.constant dense<0.000000e+00> : vector<2x32xf32>
    %180 = tpu.matmul %179, %1, %cst_105 {dimension_numbers = #tpu.dot_dimension_numbers<[1], [0], [0], [1], [0, 0, 1, 1], [], []>} : vector<2x32xf32>, vector<32x32xf32>, vector<2x32xf32> -> vector<2x32xf32>
    %181 = arith.addf %166, %180 : vector<2x32xf32>
    %182 = math.tanh %181 : vector<2x32xf32>
    %cst_106 = arith.constant dense<0.000000e+00> : vector<2x128xf32>
    %183 = tpu.matmul %182, %5, %cst_106 {dimension_numbers = #tpu.dot_dimension_numbers<[1], [0], [0], [1], [0, 0, 1, 1], [], []>} : vector<2x32xf32>, vector<32x128xf32>, vector<2x128xf32> -> vector<2x128xf32>
    %184 = vector.broadcast %6 : vector<1x128xf32> to vector<2x128xf32>
    %185 = arith.addf %183, %184 : vector<2x128xf32>
    %cst_107 = arith.constant dense<0xFF800000> : vector<2xf32>
    %186 = vector.multi_reduction <maximumf>, %185, %cst_107 [1] : vector<2x128xf32> to vector<2xf32>
    %187 = vector.shape_cast %186 : vector<2xf32> to vector<2x1xf32>
    %188 = vector.broadcast %187 : vector<2x1xf32> to vector<2x128xf32>
    %189 = arith.subf %185, %188 : vector<2x128xf32>
    %190 = math.exp %189 : vector<2x128xf32>
    %cst_108 = arith.constant dense<0.000000e+00> : vector<2xf32>
    %191 = vector.multi_reduction <add>, %190, %cst_108 [1] : vector<2x128xf32> to vector<2xf32>
    %192 = vector.shape_cast %191 : vector<2xf32> to vector<2x1xf32>
    %193 = tpu.reciprocal %192 : vector<2x1xf32> -> vector<2x1xf32>
    %194 = vector.broadcast %193 : vector<2x1xf32> to vector<2x128xf32>
    %195 = arith.mulf %190, %194 : vector<2x128xf32>
    %196 = arith.index_cast %c1_i32_98 : i32 to index
    %c0_109 = arith.constant 0 : index
    %c0_110 = arith.constant 0 : index
    %197 = vector.load %arg14[%196, %c0_109, %c0_110] : memref<25x2x128xf32, #tpu.memory_space<vmem>>, vector<1x2x128xf32>
    %198 = vector.shape_cast %197 : vector<1x2x128xf32> to vector<2x128xf32>
    %199 = vector.shape_cast %195 : vector<2x128xf32> to vector<1x2x128xf32>
    tpu.vector_store %arg14[%196, %c0_109, %c0_110], %199 {strides = array<i32>} : memref<25x2x128xf32, #tpu.memory_space<vmem>>, vector<1x2x128xf32>,
    %c2_i32_111 = arith.constant 2 : i32
    %cst_112 = arith.constant dense<0.000000e+00> : vector<2x32xf32>
    %200 = tpu.matmul %195, %2, %cst_112 {dimension_numbers = #tpu.dot_dimension_numbers<[1], [0], [0], [1], [0, 0, 1, 1], [], []>} : vector<2x128xf32>, vector<128x32xf32>, vector<2x32xf32> -> vector<2x32xf32>
    %cst_113 = arith.constant dense<0.000000e+00> : vector<2x32xf32>
    %201 = tpu.matmul %182, %3, %cst_113 {dimension_numbers = #tpu.dot_dimension_numbers<[1], [0], [0], [1], [0, 0, 1, 1], [], []>} : vector<2x32xf32>, vector<32x32xf32>, vector<2x32xf32> -> vector<2x32xf32>
    %202 = arith.addf %200, %201 : vector<2x32xf32>
    %203 = vector.broadcast %4 : vector<1x32xf32> to vector<2x32xf32>
    %204 = arith.addf %202, %203 : vector<2x32xf32>
    %cst_114 = arith.constant dense<0.000000e+00> : vector<2x16xf32>
    %205 = tpu.matmul %182, %117, %cst_114 {dimension_numbers = #tpu.dot_dimension_numbers<[1], [0], [0], [1], [0, 0, 1, 1], [], []>} : vector<2x32xf32>, vector<32x16xf32>, vector<2x16xf32> -> vector<2x16xf32>
    %206 = arith.addf %205, %121 : vector<2x16xf32>
    %cst_115 = arith.constant dense<0xFF800000> : vector<2xf32>
    %207 = vector.multi_reduction <maximumf>, %206, %cst_115 [1] : vector<2x16xf32> to vector<2xf32>
    %208 = vector.shape_cast %207 : vector<2xf32> to vector<2x1xf32>
    %209 = vector.broadcast %208 : vector<2x1xf32> to vector<2x16xf32>
    %210 = arith.subf %206, %209 : vector<2x16xf32>
    %211 = math.exp %210 : vector<2x16xf32>
    %cst_116 = arith.constant dense<0.000000e+00> : vector<2xf32>
    %212 = vector.multi_reduction <add>, %211, %cst_116 [1] : vector<2x16xf32> to vector<2xf32>
    %213 = vector.shape_cast %212 : vector<2xf32> to vector<2x1xf32>
    %214 = tpu.reciprocal %213 : vector<2x1xf32> -> vector<2x1xf32>
    %215 = vector.broadcast %214 : vector<2x1xf32> to vector<2x16xf32>
    %216 = arith.mulf %211, %215 : vector<2x16xf32>
    %cst_117 = arith.constant dense<0.000000e+00> : vector<2x32xf32>
    %217 = tpu.matmul %216, %87, %cst_117 {dimension_numbers = #tpu.dot_dimension_numbers<[1], [0], [0], [1], [0, 0, 1, 1], [], []>} : vector<2x16xf32>, vector<16x32xf32>, vector<2x32xf32> -> vector<2x32xf32>
    %cst_118 = arith.constant dense<0.000000e+00> : vector<2x32xf32>
    %218 = tpu.matmul %217, %1, %cst_118 {dimension_numbers = #tpu.dot_dimension_numbers<[1], [0], [0], [1], [0, 0, 1, 1], [], []>} : vector<2x32xf32>, vector<32x32xf32>, vector<2x32xf32> -> vector<2x32xf32>
    %219 = arith.addf %204, %218 : vector<2x32xf32>
    %220 = math.tanh %219 : vector<2x32xf32>
    %cst_119 = arith.constant dense<0.000000e+00> : vector<2x128xf32>
    %221 = tpu.matmul %220, %5, %cst_119 {dimension_numbers = #tpu.dot_dimension_numbers<[1], [0], [0], [1], [0, 0, 1, 1], [], []>} : vector<2x32xf32>, vector<32x128xf32>, vector<2x128xf32> -> vector<2x128xf32>
    %222 = vector.broadcast %6 : vector<1x128xf32> to vector<2x128xf32>
    %223 = arith.addf %221, %222 : vector<2x128xf32>
    %cst_120 = arith.constant dense<0xFF800000> : vector<2xf32>
    %224 = vector.multi_reduction <maximumf>, %223, %cst_120 [1] : vector<2x128xf32> to vector<2xf32>
    %225 = vector.shape_cast %224 : vector<2xf32> to vector<2x1xf32>
    %226 = vector.broadcast %225 : vector<2x1xf32> to vector<2x128xf32>
    %227 = arith.subf %223, %226 : vector<2x128xf32>
    %228 = math.exp %227 : vector<2x128xf32>
    %cst_121 = arith.constant dense<0.000000e+00> : vector<2xf32>
    %229 = vector.multi_reduction <add>, %228, %cst_121 [1] : vector<2x128xf32> to vector<2xf32>
    %230 = vector.shape_cast %229 : vector<2xf32> to vector<2x1xf32>
    %231 = tpu.reciprocal %230 : vector<2x1xf32> -> vector<2x1xf32>
    %232 = vector.broadcast %231 : vector<2x1xf32> to vector<2x128xf32>
    %233 = arith.mulf %228, %232 : vector<2x128xf32>
    %234 = arith.index_cast %c2_i32_111 : i32 to index
    %c0_122 = arith.constant 0 : index
    %c0_123 = arith.constant 0 : index
    %235 = vector.load %arg14[%234, %c0_122, %c0_123] : memref<25x2x128xf32, #tpu.memory_space<vmem>>, vector<1x2x128xf32>
    %236 = vector.shape_cast %235 : vector<1x2x128xf32> to vector<2x128xf32>
    %237 = vector.shape_cast %233 : vector<2x128xf32> to vector<1x2x128xf32>
    tpu.vector_store %arg14[%234, %c0_122, %c0_123], %237 {strides = array<i32>} : memref<25x2x128xf32, #tpu.memory_space<vmem>>, vector<1x2x128xf32>,
    %c3_i32_124 = arith.constant 3 : i32
    %cst_125 = arith.constant dense<0.000000e+00> : vector<2x32xf32>
    %238 = tpu.matmul %233, %2, %cst_125 {dimension_numbers = #tpu.dot_dimension_numbers<[1], [0], [0], [1], [0, 0, 1, 1], [], []>} : vector<2x128xf32>, vector<128x32xf32>, vector<2x32xf32> -> vector<2x32xf32>
    %cst_126 = arith.constant dense<0.000000e+00> : vector<2x32xf32>
    %239 = tpu.matmul %220, %3, %cst_126 {dimension_numbers = #tpu.dot_dimension_numbers<[1], [0], [0], [1], [0, 0, 1, 1], [], []>} : vector<2x32xf32>, vector<32x32xf32>, vector<2x32xf32> -> vector<2x32xf32>
    %240 = arith.addf %238, %239 : vector<2x32xf32>
    %241 = vector.broadcast %4 : vector<1x32xf32> to vector<2x32xf32>
    %242 = arith.addf %240, %241 : vector<2x32xf32>
    %cst_127 = arith.constant dense<0.000000e+00> : vector<2x16xf32>
    %243 = tpu.matmul %220, %117, %cst_127 {dimension_numbers = #tpu.dot_dimension_numbers<[1], [0], [0], [1], [0, 0, 1, 1], [], []>} : vector<2x32xf32>, vector<32x16xf32>, vector<2x16xf32> -> vector<2x16xf32>
    %244 = arith.addf %243, %121 : vector<2x16xf32>
    %cst_128 = arith.constant dense<0xFF800000> : vector<2xf32>
    %245 = vector.multi_reduction <maximumf>, %244, %cst_128 [1] : vector<2x16xf32> to vector<2xf32>
    %246 = vector.shape_cast %245 : vector<2xf32> to vector<2x1xf32>
    %247 = vector.broadcast %246 : vector<2x1xf32> to vector<2x16xf32>
    %248 = arith.subf %244, %247 : vector<2x16xf32>
    %249 = math.exp %248 : vector<2x16xf32>
    %cst_129 = arith.constant dense<0.000000e+00> : vector<2xf32>
    %250 = vector.multi_reduction <add>, %249, %cst_129 [1] : vector<2x16xf32> to vector<2xf32>
    %251 = vector.shape_cast %250 : vector<2xf32> to vector<2x1xf32>
    %252 = tpu.reciprocal %251 : vector<2x1xf32> -> vector<2x1xf32>
    %253 = vector.broadcast %252 : vector<2x1xf32> to vector<2x16xf32>
    %254 = arith.mulf %249, %253 : vector<2x16xf32>
    %cst_130 = arith.constant dense<0.000000e+00> : vector<2x32xf32>
    %255 = tpu.matmul %254, %87, %cst_130 {dimension_numbers = #tpu.dot_dimension_numbers<[1], [0], [0], [1], [0, 0, 1, 1], [], []>} : vector<2x16xf32>, vector<16x32xf32>, vector<2x32xf32> -> vector<2x32xf32>
    %cst_131 = arith.constant dense<0.000000e+00> : vector<2x32xf32>
    %256 = tpu.matmul %255, %1, %cst_131 {dimension_numbers = #tpu.dot_dimension_numbers<[1], [0], [0], [1], [0, 0, 1, 1], [], []>} : vector<2x32xf32>, vector<32x32xf32>, vector<2x32xf32> -> vector<2x32xf32>
    %257 = arith.addf %242, %256 : vector<2x32xf32>
    %258 = math.tanh %257 : vector<2x32xf32>
    %cst_132 = arith.constant dense<0.000000e+00> : vector<2x128xf32>
    %259 = tpu.matmul %258, %5, %cst_132 {dimension_numbers = #tpu.dot_dimension_numbers<[1], [0], [0], [1], [0, 0, 1, 1], [], []>} : vector<2x32xf32>, vector<32x128xf32>, vector<2x128xf32> -> vector<2x128xf32>
    %260 = vector.broadcast %6 : vector<1x128xf32> to vector<2x128xf32>
    %261 = arith.addf %259, %260 : vector<2x128xf32>
    %cst_133 = arith.constant dense<0xFF800000> : vector<2xf32>
    %262 = vector.multi_reduction <maximumf>, %261, %cst_133 [1] : vector<2x128xf32> to vector<2xf32>
    %263 = vector.shape_cast %262 : vector<2xf32> to vector<2x1xf32>
    %264 = vector.broadcast %263 : vector<2x1xf32> to vector<2x128xf32>
    %265 = arith.subf %261, %264 : vector<2x128xf32>
    %266 = math.exp %265 : vector<2x128xf32>
    %cst_134 = arith.constant dense<0.000000e+00> : vector<2xf32>
    %267 = vector.multi_reduction <add>, %266, %cst_134 [1] : vector<2x128xf32> to vector<2xf32>
    %268 = vector.shape_cast %267 : vector<2xf32> to vector<2x1xf32>
    %269 = tpu.reciprocal %268 : vector<2x1xf32> -> vector<2x1xf32>
    %270 = vector.broadcast %269 : vector<2x1xf32> to vector<2x128xf32>
    %271 = arith.mulf %266, %270 : vector<2x128xf32>
    %272 = arith.index_cast %c3_i32_124 : i32 to index
    %c0_135 = arith.constant 0 : index
    %c0_136 = arith.constant 0 : index
    %273 = vector.load %arg14[%272, %c0_135, %c0_136] : memref<25x2x128xf32, #tpu.memory_space<vmem>>, vector<1x2x128xf32>
    %274 = vector.shape_cast %273 : vector<1x2x128xf32> to vector<2x128xf32>
    %275 = vector.shape_cast %271 : vector<2x128xf32> to vector<1x2x128xf32>
    tpu.vector_store %arg14[%272, %c0_135, %c0_136], %275 {strides = array<i32>} : memref<25x2x128xf32, #tpu.memory_space<vmem>>, vector<1x2x128xf32>,
    %c4_i32_137 = arith.constant 4 : i32
    %cst_138 = arith.constant dense<0.000000e+00> : vector<2x32xf32>
    %276 = tpu.matmul %271, %2, %cst_138 {dimension_numbers = #tpu.dot_dimension_numbers<[1], [0], [0], [1], [0, 0, 1, 1], [], []>} : vector<2x128xf32>, vector<128x32xf32>, vector<2x32xf32> -> vector<2x32xf32>
    %cst_139 = arith.constant dense<0.000000e+00> : vector<2x32xf32>
    %277 = tpu.matmul %258, %3, %cst_139 {dimension_numbers = #tpu.dot_dimension_numbers<[1], [0], [0], [1], [0, 0, 1, 1], [], []>} : vector<2x32xf32>, vector<32x32xf32>, vector<2x32xf32> -> vector<2x32xf32>
    %278 = arith.addf %276, %277 : vector<2x32xf32>
    %279 = vector.broadcast %4 : vector<1x32xf32> to vector<2x32xf32>
    %280 = arith.addf %278, %279 : vector<2x32xf32>
    %cst_140 = arith.constant dense<0.000000e+00> : vector<2x16xf32>
    %281 = tpu.matmul %258, %117, %cst_140 {dimension_numbers = #tpu.dot_dimension_numbers<[1], [0], [0], [1], [0, 0, 1, 1], [], []>} : vector<2x32xf32>, vector<32x16xf32>, vector<2x16xf32> -> vector<2x16xf32>
    %282 = arith.addf %281, %121 : vector<2x16xf32>
    %cst_141 = arith.constant dense<0xFF800000> : vector<2xf32>
    %283 = vector.multi_reduction <maximumf>, %282, %cst_141 [1] : vector<2x16xf32> to vector<2xf32>
    %284 = vector.shape_cast %283 : vector<2xf32> to vector<2x1xf32>
    %285 = vector.broadcast %284 : vector<2x1xf32> to vector<2x16xf32>
    %286 = arith.subf %282, %285 : vector<2x16xf32>
    %287 = math.exp %286 : vector<2x16xf32>
    %cst_142 = arith.constant dense<0.000000e+00> : vector<2xf32>
    %288 = vector.multi_reduction <add>, %287, %cst_142 [1] : vector<2x16xf32> to vector<2xf32>
    %289 = vector.shape_cast %288 : vector<2xf32> to vector<2x1xf32>
    %290 = tpu.reciprocal %289 : vector<2x1xf32> -> vector<2x1xf32>
    %291 = vector.broadcast %290 : vector<2x1xf32> to vector<2x16xf32>
    %292 = arith.mulf %287, %291 : vector<2x16xf32>
    %cst_143 = arith.constant dense<0.000000e+00> : vector<2x32xf32>
    %293 = tpu.matmul %292, %87, %cst_143 {dimension_numbers = #tpu.dot_dimension_numbers<[1], [0], [0], [1], [0, 0, 1, 1], [], []>} : vector<2x16xf32>, vector<16x32xf32>, vector<2x32xf32> -> vector<2x32xf32>
    %cst_144 = arith.constant dense<0.000000e+00> : vector<2x32xf32>
    %294 = tpu.matmul %293, %1, %cst_144 {dimension_numbers = #tpu.dot_dimension_numbers<[1], [0], [0], [1], [0, 0, 1, 1], [], []>} : vector<2x32xf32>, vector<32x32xf32>, vector<2x32xf32> -> vector<2x32xf32>
    %295 = arith.addf %280, %294 : vector<2x32xf32>
    %296 = math.tanh %295 : vector<2x32xf32>
    %cst_145 = arith.constant dense<0.000000e+00> : vector<2x128xf32>
    %297 = tpu.matmul %296, %5, %cst_145 {dimension_numbers = #tpu.dot_dimension_numbers<[1], [0], [0], [1], [0, 0, 1, 1], [], []>} : vector<2x32xf32>, vector<32x128xf32>, vector<2x128xf32> -> vector<2x128xf32>
    %298 = vector.broadcast %6 : vector<1x128xf32> to vector<2x128xf32>
    %299 = arith.addf %297, %298 : vector<2x128xf32>
    %cst_146 = arith.constant dense<0xFF800000> : vector<2xf32>
    %300 = vector.multi_reduction <maximumf>, %299, %cst_146 [1] : vector<2x128xf32> to vector<2xf32>
    %301 = vector.shape_cast %300 : vector<2xf32> to vector<2x1xf32>
    %302 = vector.broadcast %301 : vector<2x1xf32> to vector<2x128xf32>
    %303 = arith.subf %299, %302 : vector<2x128xf32>
    %304 = math.exp %303 : vector<2x128xf32>
    %cst_147 = arith.constant dense<0.000000e+00> : vector<2xf32>
    %305 = vector.multi_reduction <add>, %304, %cst_147 [1] : vector<2x128xf32> to vector<2xf32>
    %306 = vector.shape_cast %305 : vector<2xf32> to vector<2x1xf32>
    %307 = tpu.reciprocal %306 : vector<2x1xf32> -> vector<2x1xf32>
    %308 = vector.broadcast %307 : vector<2x1xf32> to vector<2x128xf32>
    %309 = arith.mulf %304, %308 : vector<2x128xf32>
    %310 = arith.index_cast %c4_i32_137 : i32 to index
    %c0_148 = arith.constant 0 : index
    %c0_149 = arith.constant 0 : index
    %311 = vector.load %arg14[%310, %c0_148, %c0_149] : memref<25x2x128xf32, #tpu.memory_space<vmem>>, vector<1x2x128xf32>
    %312 = vector.shape_cast %311 : vector<1x2x128xf32> to vector<2x128xf32>
    %313 = vector.shape_cast %309 : vector<2x128xf32> to vector<1x2x128xf32>
    tpu.vector_store %arg14[%310, %c0_148, %c0_149], %313 {strides = array<i32>} : memref<25x2x128xf32, #tpu.memory_space<vmem>>, vector<1x2x128xf32>,
    %c5_i32_150 = arith.constant 5 : i32
    %cst_151 = arith.constant dense<0.000000e+00> : vector<2x32xf32>
    %314 = tpu.matmul %309, %2, %cst_151 {dimension_numbers = #tpu.dot_dimension_numbers<[1], [0], [0], [1], [0, 0, 1, 1], [], []>} : vector<2x128xf32>, vector<128x32xf32>, vector<2x32xf32> -> vector<2x32xf32>
    %cst_152 = arith.constant dense<0.000000e+00> : vector<2x32xf32>
    %315 = tpu.matmul %296, %3, %cst_152 {dimension_numbers = #tpu.dot_dimension_numbers<[1], [0], [0], [1], [0, 0, 1, 1], [], []>} : vector<2x32xf32>, vector<32x32xf32>, vector<2x32xf32> -> vector<2x32xf32>
    %316 = arith.addf %314, %315 : vector<2x32xf32>
    %317 = vector.broadcast %4 : vector<1x32xf32> to vector<2x32xf32>
    %318 = arith.addf %316, %317 : vector<2x32xf32>
    %cst_153 = arith.constant dense<0.000000e+00> : vector<2x16xf32>
    %319 = tpu.matmul %296, %117, %cst_153 {dimension_numbers = #tpu.dot_dimension_numbers<[1], [0], [0], [1], [0, 0, 1, 1], [], []>} : vector<2x32xf32>, vector<32x16xf32>, vector<2x16xf32> -> vector<2x16xf32>
    %320 = arith.addf %319, %121 : vector<2x16xf32>
    %cst_154 = arith.constant dense<0xFF800000> : vector<2xf32>
    %321 = vector.multi_reduction <maximumf>, %320, %cst_154 [1] : vector<2x16xf32> to vector<2xf32>
    %322 = vector.shape_cast %321 : vector<2xf32> to vector<2x1xf32>
    %323 = vector.broadcast %322 : vector<2x1xf32> to vector<2x16xf32>
    %324 = arith.subf %320, %323 : vector<2x16xf32>
    %325 = math.exp %324 : vector<2x16xf32>
    %cst_155 = arith.constant dense<0.000000e+00> : vector<2xf32>
    %326 = vector.multi_reduction <add>, %325, %cst_155 [1] : vector<2x16xf32> to vector<2xf32>
    %327 = vector.shape_cast %326 : vector<2xf32> to vector<2x1xf32>
    %328 = tpu.reciprocal %327 : vector<2x1xf32> -> vector<2x1xf32>
    %329 = vector.broadcast %328 : vector<2x1xf32> to vector<2x16xf32>
    %330 = arith.mulf %325, %329 : vector<2x16xf32>
    %cst_156 = arith.constant dense<0.000000e+00> : vector<2x32xf32>
    %331 = tpu.matmul %330, %87, %cst_156 {dimension_numbers = #tpu.dot_dimension_numbers<[1], [0], [0], [1], [0, 0, 1, 1], [], []>} : vector<2x16xf32>, vector<16x32xf32>, vector<2x32xf32> -> vector<2x32xf32>
    %cst_157 = arith.constant dense<0.000000e+00> : vector<2x32xf32>
    %332 = tpu.matmul %331, %1, %cst_157 {dimension_numbers = #tpu.dot_dimension_numbers<[1], [0], [0], [1], [0, 0, 1, 1], [], []>} : vector<2x32xf32>, vector<32x32xf32>, vector<2x32xf32> -> vector<2x32xf32>
    %333 = arith.addf %318, %332 : vector<2x32xf32>
    %334 = math.tanh %333 : vector<2x32xf32>
    %cst_158 = arith.constant dense<0.000000e+00> : vector<2x128xf32>
    %335 = tpu.matmul %334, %5, %cst_158 {dimension_numbers = #tpu.dot_dimension_numbers<[1], [0], [0], [1], [0, 0, 1, 1], [], []>} : vector<2x32xf32>, vector<32x128xf32>, vector<2x128xf32> -> vector<2x128xf32>
    %336 = vector.broadcast %6 : vector<1x128xf32> to vector<2x128xf32>
    %337 = arith.addf %335, %336 : vector<2x128xf32>
    %cst_159 = arith.constant dense<0xFF800000> : vector<2xf32>
    %338 = vector.multi_reduction <maximumf>, %337, %cst_159 [1] : vector<2x128xf32> to vector<2xf32>
    %339 = vector.shape_cast %338 : vector<2xf32> to vector<2x1xf32>
    %340 = vector.broadcast %339 : vector<2x1xf32> to vector<2x128xf32>
    %341 = arith.subf %337, %340 : vector<2x128xf32>
    %342 = math.exp %341 : vector<2x128xf32>
    %cst_160 = arith.constant dense<0.000000e+00> : vector<2xf32>
    %343 = vector.multi_reduction <add>, %342, %cst_160 [1] : vector<2x128xf32> to vector<2xf32>
    %344 = vector.shape_cast %343 : vector<2xf32> to vector<2x1xf32>
    %345 = tpu.reciprocal %344 : vector<2x1xf32> -> vector<2x1xf32>
    %346 = vector.broadcast %345 : vector<2x1xf32> to vector<2x128xf32>
    %347 = arith.mulf %342, %346 : vector<2x128xf32>
    %348 = arith.index_cast %c5_i32_150 : i32 to index
    %c0_161 = arith.constant 0 : index
    %c0_162 = arith.constant 0 : index
    %349 = vector.load %arg14[%348, %c0_161, %c0_162] : memref<25x2x128xf32, #tpu.memory_space<vmem>>, vector<1x2x128xf32>
    %350 = vector.shape_cast %349 : vector<1x2x128xf32> to vector<2x128xf32>
    %351 = vector.shape_cast %347 : vector<2x128xf32> to vector<1x2x128xf32>
    tpu.vector_store %arg14[%348, %c0_161, %c0_162], %351 {strides = array<i32>} : memref<25x2x128xf32, #tpu.memory_space<vmem>>, vector<1x2x128xf32>,
    %c6_i32_163 = arith.constant 6 : i32
    %cst_164 = arith.constant dense<0.000000e+00> : vector<2x32xf32>
    %352 = tpu.matmul %347, %2, %cst_164 {dimension_numbers = #tpu.dot_dimension_numbers<[1], [0], [0], [1], [0, 0, 1, 1], [], []>} : vector<2x128xf32>, vector<128x32xf32>, vector<2x32xf32> -> vector<2x32xf32>
    %cst_165 = arith.constant dense<0.000000e+00> : vector<2x32xf32>
    %353 = tpu.matmul %334, %3, %cst_165 {dimension_numbers = #tpu.dot_dimension_numbers<[1], [0], [0], [1], [0, 0, 1, 1], [], []>} : vector<2x32xf32>, vector<32x32xf32>, vector<2x32xf32> -> vector<2x32xf32>
    %354 = arith.addf %352, %353 : vector<2x32xf32>
    %355 = vector.broadcast %4 : vector<1x32xf32> to vector<2x32xf32>
    %356 = arith.addf %354, %355 : vector<2x32xf32>
    %cst_166 = arith.constant dense<0.000000e+00> : vector<2x16xf32>
    %357 = tpu.matmul %334, %117, %cst_166 {dimension_numbers = #tpu.dot_dimension_numbers<[1], [0], [0], [1], [0, 0, 1, 1], [], []>} : vector<2x32xf32>, vector<32x16xf32>, vector<2x16xf32> -> vector<2x16xf32>
    %358 = arith.addf %357, %121 : vector<2x16xf32>
    %cst_167 = arith.constant dense<0xFF800000> : vector<2xf32>
    %359 = vector.multi_reduction <maximumf>, %358, %cst_167 [1] : vector<2x16xf32> to vector<2xf32>
    %360 = vector.shape_cast %359 : vector<2xf32> to vector<2x1xf32>
    %361 = vector.broadcast %360 : vector<2x1xf32> to vector<2x16xf32>
    %362 = arith.subf %358, %361 : vector<2x16xf32>
    %363 = math.exp %362 : vector<2x16xf32>
    %cst_168 = arith.constant dense<0.000000e+00> : vector<2xf32>
    %364 = vector.multi_reduction <add>, %363, %cst_168 [1] : vector<2x16xf32> to vector<2xf32>
    %365 = vector.shape_cast %364 : vector<2xf32> to vector<2x1xf32>
    %366 = tpu.reciprocal %365 : vector<2x1xf32> -> vector<2x1xf32>
    %367 = vector.broadcast %366 : vector<2x1xf32> to vector<2x16xf32>
    %368 = arith.mulf %363, %367 : vector<2x16xf32>
    %cst_169 = arith.constant dense<0.000000e+00> : vector<2x32xf32>
    %369 = tpu.matmul %368, %87, %cst_169 {dimension_numbers = #tpu.dot_dimension_numbers<[1], [0], [0], [1], [0, 0, 1, 1], [], []>} : vector<2x16xf32>, vector<16x32xf32>, vector<2x32xf32> -> vector<2x32xf32>
    %cst_170 = arith.constant dense<0.000000e+00> : vector<2x32xf32>
    %370 = tpu.matmul %369, %1, %cst_170 {dimension_numbers = #tpu.dot_dimension_numbers<[1], [0], [0], [1], [0, 0, 1, 1], [], []>} : vector<2x32xf32>, vector<32x32xf32>, vector<2x32xf32> -> vector<2x32xf32>
    %371 = arith.addf %356, %370 : vector<2x32xf32>
    %372 = math.tanh %371 : vector<2x32xf32>
    %cst_171 = arith.constant dense<0.000000e+00> : vector<2x128xf32>
    %373 = tpu.matmul %372, %5, %cst_171 {dimension_numbers = #tpu.dot_dimension_numbers<[1], [0], [0], [1], [0, 0, 1, 1], [], []>} : vector<2x32xf32>, vector<32x128xf32>, vector<2x128xf32> -> vector<2x128xf32>
    %374 = vector.broadcast %6 : vector<1x128xf32> to vector<2x128xf32>
    %375 = arith.addf %373, %374 : vector<2x128xf32>
    %cst_172 = arith.constant dense<0xFF800000> : vector<2xf32>
    %376 = vector.multi_reduction <maximumf>, %375, %cst_172 [1] : vector<2x128xf32> to vector<2xf32>
    %377 = vector.shape_cast %376 : vector<2xf32> to vector<2x1xf32>
    %378 = vector.broadcast %377 : vector<2x1xf32> to vector<2x128xf32>
    %379 = arith.subf %375, %378 : vector<2x128xf32>
    %380 = math.exp %379 : vector<2x128xf32>
    %cst_173 = arith.constant dense<0.000000e+00> : vector<2xf32>
    %381 = vector.multi_reduction <add>, %380, %cst_173 [1] : vector<2x128xf32> to vector<2xf32>
    %382 = vector.shape_cast %381 : vector<2xf32> to vector<2x1xf32>
    %383 = tpu.reciprocal %382 : vector<2x1xf32> -> vector<2x1xf32>
    %384 = vector.broadcast %383 : vector<2x1xf32> to vector<2x128xf32>
    %385 = arith.mulf %380, %384 : vector<2x128xf32>
    %386 = arith.index_cast %c6_i32_163 : i32 to index
    %c0_174 = arith.constant 0 : index
    %c0_175 = arith.constant 0 : index
    %387 = vector.load %arg14[%386, %c0_174, %c0_175] : memref<25x2x128xf32, #tpu.memory_space<vmem>>, vector<1x2x128xf32>
    %388 = vector.shape_cast %387 : vector<1x2x128xf32> to vector<2x128xf32>
    %389 = vector.shape_cast %385 : vector<2x128xf32> to vector<1x2x128xf32>
    tpu.vector_store %arg14[%386, %c0_174, %c0_175], %389 {strides = array<i32>} : memref<25x2x128xf32, #tpu.memory_space<vmem>>, vector<1x2x128xf32>,
    %c7_i32_176 = arith.constant 7 : i32
    %cst_177 = arith.constant dense<0.000000e+00> : vector<2x32xf32>
    %390 = tpu.matmul %385, %2, %cst_177 {dimension_numbers = #tpu.dot_dimension_numbers<[1], [0], [0], [1], [0, 0, 1, 1], [], []>} : vector<2x128xf32>, vector<128x32xf32>, vector<2x32xf32> -> vector<2x32xf32>
    %cst_178 = arith.constant dense<0.000000e+00> : vector<2x32xf32>
    %391 = tpu.matmul %372, %3, %cst_178 {dimension_numbers = #tpu.dot_dimension_numbers<[1], [0], [0], [1], [0, 0, 1, 1], [], []>} : vector<2x32xf32>, vector<32x32xf32>, vector<2x32xf32> -> vector<2x32xf32>
    %392 = arith.addf %390, %391 : vector<2x32xf32>
    %393 = vector.broadcast %4 : vector<1x32xf32> to vector<2x32xf32>
    %394 = arith.addf %392, %393 : vector<2x32xf32>
    %cst_179 = arith.constant dense<0.000000e+00> : vector<2x16xf32>
    %395 = tpu.matmul %372, %117, %cst_179 {dimension_numbers = #tpu.dot_dimension_numbers<[1], [0], [0], [1], [0, 0, 1, 1], [], []>} : vector<2x32xf32>, vector<32x16xf32>, vector<2x16xf32> -> vector<2x16xf32>
    %396 = arith.addf %395, %121 : vector<2x16xf32>
    %cst_180 = arith.constant dense<0xFF800000> : vector<2xf32>
    %397 = vector.multi_reduction <maximumf>, %396, %cst_180 [1] : vector<2x16xf32> to vector<2xf32>
    %398 = vector.shape_cast %397 : vector<2xf32> to vector<2x1xf32>
    %399 = vector.broadcast %398 : vector<2x1xf32> to vector<2x16xf32>
    %400 = arith.subf %396, %399 : vector<2x16xf32>
    %401 = math.exp %400 : vector<2x16xf32>
    %cst_181 = arith.constant dense<0.000000e+00> : vector<2xf32>
    %402 = vector.multi_reduction <add>, %401, %cst_181 [1] : vector<2x16xf32> to vector<2xf32>
    %403 = vector.shape_cast %402 : vector<2xf32> to vector<2x1xf32>
    %404 = tpu.reciprocal %403 : vector<2x1xf32> -> vector<2x1xf32>
    %405 = vector.broadcast %404 : vector<2x1xf32> to vector<2x16xf32>
    %406 = arith.mulf %401, %405 : vector<2x16xf32>
    %cst_182 = arith.constant dense<0.000000e+00> : vector<2x32xf32>
    %407 = tpu.matmul %406, %87, %cst_182 {dimension_numbers = #tpu.dot_dimension_numbers<[1], [0], [0], [1], [0, 0, 1, 1], [], []>} : vector<2x16xf32>, vector<16x32xf32>, vector<2x32xf32> -> vector<2x32xf32>
    %cst_183 = arith.constant dense<0.000000e+00> : vector<2x32xf32>
    %408 = tpu.matmul %407, %1, %cst_183 {dimension_numbers = #tpu.dot_dimension_numbers<[1], [0], [0], [1], [0, 0, 1, 1], [], []>} : vector<2x32xf32>, vector<32x32xf32>, vector<2x32xf32> -> vector<2x32xf32>
    %409 = arith.addf %394, %408 : vector<2x32xf32>
    %410 = math.tanh %409 : vector<2x32xf32>
    %cst_184 = arith.constant dense<0.000000e+00> : vector<2x128xf32>
    %411 = tpu.matmul %410, %5, %cst_184 {dimension_numbers = #tpu.dot_dimension_numbers<[1], [0], [0], [1], [0, 0, 1, 1], [], []>} : vector<2x32xf32>, vector<32x128xf32>, vector<2x128xf32> -> vector<2x128xf32>
    %412 = vector.broadcast %6 : vector<1x128xf32> to vector<2x128xf32>
    %413 = arith.addf %411, %412 : vector<2x128xf32>
    %cst_185 = arith.constant dense<0xFF800000> : vector<2xf32>
    %414 = vector.multi_reduction <maximumf>, %413, %cst_185 [1] : vector<2x128xf32> to vector<2xf32>
    %415 = vector.shape_cast %414 : vector<2xf32> to vector<2x1xf32>
    %416 = vector.broadcast %415 : vector<2x1xf32> to vector<2x128xf32>
    %417 = arith.subf %413, %416 : vector<2x128xf32>
    %418 = math.exp %417 : vector<2x128xf32>
    %cst_186 = arith.constant dense<0.000000e+00> : vector<2xf32>
    %419 = vector.multi_reduction <add>, %418, %cst_186 [1] : vector<2x128xf32> to vector<2xf32>
    %420 = vector.shape_cast %419 : vector<2xf32> to vector<2x1xf32>
    %421 = tpu.reciprocal %420 : vector<2x1xf32> -> vector<2x1xf32>
    %422 = vector.broadcast %421 : vector<2x1xf32> to vector<2x128xf32>
    %423 = arith.mulf %418, %422 : vector<2x128xf32>
    %424 = arith.index_cast %c7_i32_176 : i32 to index
    %c0_187 = arith.constant 0 : index
    %c0_188 = arith.constant 0 : index
    %425 = vector.load %arg14[%424, %c0_187, %c0_188] : memref<25x2x128xf32, #tpu.memory_space<vmem>>, vector<1x2x128xf32>
    %426 = vector.shape_cast %425 : vector<1x2x128xf32> to vector<2x128xf32>
    %427 = vector.shape_cast %423 : vector<2x128xf32> to vector<1x2x128xf32>
    tpu.vector_store %arg14[%424, %c0_187, %c0_188], %427 {strides = array<i32>} : memref<25x2x128xf32, #tpu.memory_space<vmem>>, vector<1x2x128xf32>,
    %c8_i32_189 = arith.constant 8 : i32
    %cst_190 = arith.constant dense<0.000000e+00> : vector<2x32xf32>
    %428 = tpu.matmul %423, %2, %cst_190 {dimension_numbers = #tpu.dot_dimension_numbers<[1], [0], [0], [1], [0, 0, 1, 1], [], []>} : vector<2x128xf32>, vector<128x32xf32>, vector<2x32xf32> -> vector<2x32xf32>
    %cst_191 = arith.constant dense<0.000000e+00> : vector<2x32xf32>
    %429 = tpu.matmul %410, %3, %cst_191 {dimension_numbers = #tpu.dot_dimension_numbers<[1], [0], [0], [1], [0, 0, 1, 1], [], []>} : vector<2x32xf32>, vector<32x32xf32>, vector<2x32xf32> -> vector<2x32xf32>
    %430 = arith.addf %428, %429 : vector<2x32xf32>
    %431 = vector.broadcast %4 : vector<1x32xf32> to vector<2x32xf32>
    %432 = arith.addf %430, %431 : vector<2x32xf32>
    %cst_192 = arith.constant dense<0.000000e+00> : vector<2x16xf32>
    %433 = tpu.matmul %410, %117, %cst_192 {dimension_numbers = #tpu.dot_dimension_numbers<[1], [0], [0], [1], [0, 0, 1, 1], [], []>} : vector<2x32xf32>, vector<32x16xf32>, vector<2x16xf32> -> vector<2x16xf32>
    %434 = arith.addf %433, %121 : vector<2x16xf32>
    %cst_193 = arith.constant dense<0xFF800000> : vector<2xf32>
    %435 = vector.multi_reduction <maximumf>, %434, %cst_193 [1] : vector<2x16xf32> to vector<2xf32>
    %436 = vector.shape_cast %435 : vector<2xf32> to vector<2x1xf32>
    %437 = vector.broadcast %436 : vector<2x1xf32> to vector<2x16xf32>
    %438 = arith.subf %434, %437 : vector<2x16xf32>
    %439 = math.exp %438 : vector<2x16xf32>
    %cst_194 = arith.constant dense<0.000000e+00> : vector<2xf32>
    %440 = vector.multi_reduction <add>, %439, %cst_194 [1] : vector<2x16xf32> to vector<2xf32>
    %441 = vector.shape_cast %440 : vector<2xf32> to vector<2x1xf32>
    %442 = tpu.reciprocal %441 : vector<2x1xf32> -> vector<2x1xf32>
    %443 = vector.broadcast %442 : vector<2x1xf32> to vector<2x16xf32>
    %444 = arith.mulf %439, %443 : vector<2x16xf32>
    %cst_195 = arith.constant dense<0.000000e+00> : vector<2x32xf32>
    %445 = tpu.matmul %444, %87, %cst_195 {dimension_numbers = #tpu.dot_dimension_numbers<[1], [0], [0], [1], [0, 0, 1, 1], [], []>} : vector<2x16xf32>, vector<16x32xf32>, vector<2x32xf32> -> vector<2x32xf32>
    %cst_196 = arith.constant dense<0.000000e+00> : vector<2x32xf32>
    %446 = tpu.matmul %445, %1, %cst_196 {dimension_numbers = #tpu.dot_dimension_numbers<[1], [0], [0], [1], [0, 0, 1, 1], [], []>} : vector<2x32xf32>, vector<32x32xf32>, vector<2x32xf32> -> vector<2x32xf32>
    %447 = arith.addf %432, %446 : vector<2x32xf32>
    %448 = math.tanh %447 : vector<2x32xf32>
    %cst_197 = arith.constant dense<0.000000e+00> : vector<2x128xf32>
    %449 = tpu.matmul %448, %5, %cst_197 {dimension_numbers = #tpu.dot_dimension_numbers<[1], [0], [0], [1], [0, 0, 1, 1], [], []>} : vector<2x32xf32>, vector<32x128xf32>, vector<2x128xf32> -> vector<2x128xf32>
    %450 = vector.broadcast %6 : vector<1x128xf32> to vector<2x128xf32>
    %451 = arith.addf %449, %450 : vector<2x128xf32>
    %cst_198 = arith.constant dense<0xFF800000> : vector<2xf32>
    %452 = vector.multi_reduction <maximumf>, %451, %cst_198 [1] : vector<2x128xf32> to vector<2xf32>
    %453 = vector.shape_cast %452 : vector<2xf32> to vector<2x1xf32>
    %454 = vector.broadcast %453 : vector<2x1xf32> to vector<2x128xf32>
    %455 = arith.subf %451, %454 : vector<2x128xf32>
    %456 = math.exp %455 : vector<2x128xf32>
    %cst_199 = arith.constant dense<0.000000e+00> : vector<2xf32>
    %457 = vector.multi_reduction <add>, %456, %cst_199 [1] : vector<2x128xf32> to vector<2xf32>
    %458 = vector.shape_cast %457 : vector<2xf32> to vector<2x1xf32>
    %459 = tpu.reciprocal %458 : vector<2x1xf32> -> vector<2x1xf32>
    %460 = vector.broadcast %459 : vector<2x1xf32> to vector<2x128xf32>
    %461 = arith.mulf %456, %460 : vector<2x128xf32>
    %462 = arith.index_cast %c8_i32_189 : i32 to index
    %c0_200 = arith.constant 0 : index
    %c0_201 = arith.constant 0 : index
    %463 = vector.load %arg14[%462, %c0_200, %c0_201] : memref<25x2x128xf32, #tpu.memory_space<vmem>>, vector<1x2x128xf32>
    %464 = vector.shape_cast %463 : vector<1x2x128xf32> to vector<2x128xf32>
    %465 = vector.shape_cast %461 : vector<2x128xf32> to vector<1x2x128xf32>
    tpu.vector_store %arg14[%462, %c0_200, %c0_201], %465 {strides = array<i32>} : memref<25x2x128xf32, #tpu.memory_space<vmem>>, vector<1x2x128xf32>,
    %c9_i32 = arith.constant 9 : i32
    %cst_202 = arith.constant dense<0.000000e+00> : vector<2x32xf32>
    %466 = tpu.matmul %461, %2, %cst_202 {dimension_numbers = #tpu.dot_dimension_numbers<[1], [0], [0], [1], [0, 0, 1, 1], [], []>} : vector<2x128xf32>, vector<128x32xf32>, vector<2x32xf32> -> vector<2x32xf32>
    %cst_203 = arith.constant dense<0.000000e+00> : vector<2x32xf32>
    %467 = tpu.matmul %448, %3, %cst_203 {dimension_numbers = #tpu.dot_dimension_numbers<[1], [0], [0], [1], [0, 0, 1, 1], [], []>} : vector<2x32xf32>, vector<32x32xf32>, vector<2x32xf32> -> vector<2x32xf32>
    %468 = arith.addf %466, %467 : vector<2x32xf32>
    %469 = vector.broadcast %4 : vector<1x32xf32> to vector<2x32xf32>
    %470 = arith.addf %468, %469 : vector<2x32xf32>
    %cst_204 = arith.constant dense<0.000000e+00> : vector<2x16xf32>
    %471 = tpu.matmul %448, %117, %cst_204 {dimension_numbers = #tpu.dot_dimension_numbers<[1], [0], [0], [1], [0, 0, 1, 1], [], []>} : vector<2x32xf32>, vector<32x16xf32>, vector<2x16xf32> -> vector<2x16xf32>
    %472 = arith.addf %471, %121 : vector<2x16xf32>
    %cst_205 = arith.constant dense<0xFF800000> : vector<2xf32>
    %473 = vector.multi_reduction <maximumf>, %472, %cst_205 [1] : vector<2x16xf32> to vector<2xf32>
    %474 = vector.shape_cast %473 : vector<2xf32> to vector<2x1xf32>
    %475 = vector.broadcast %474 : vector<2x1xf32> to vector<2x16xf32>
    %476 = arith.subf %472, %475 : vector<2x16xf32>
    %477 = math.exp %476 : vector<2x16xf32>
    %cst_206 = arith.constant dense<0.000000e+00> : vector<2xf32>
    %478 = vector.multi_reduction <add>, %477, %cst_206 [1] : vector<2x16xf32> to vector<2xf32>
    %479 = vector.shape_cast %478 : vector<2xf32> to vector<2x1xf32>
    %480 = tpu.reciprocal %479 : vector<2x1xf32> -> vector<2x1xf32>
    %481 = vector.broadcast %480 : vector<2x1xf32> to vector<2x16xf32>
    %482 = arith.mulf %477, %481 : vector<2x16xf32>
    %cst_207 = arith.constant dense<0.000000e+00> : vector<2x32xf32>
    %483 = tpu.matmul %482, %87, %cst_207 {dimension_numbers = #tpu.dot_dimension_numbers<[1], [0], [0], [1], [0, 0, 1, 1], [], []>} : vector<2x16xf32>, vector<16x32xf32>, vector<2x32xf32> -> vector<2x32xf32>
    %cst_208 = arith.constant dense<0.000000e+00> : vector<2x32xf32>
    %484 = tpu.matmul %483, %1, %cst_208 {dimension_numbers = #tpu.dot_dimension_numbers<[1], [0], [0], [1], [0, 0, 1, 1], [], []>} : vector<2x32xf32>, vector<32x32xf32>, vector<2x32xf32> -> vector<2x32xf32>
    %485 = arith.addf %470, %484 : vector<2x32xf32>
    %486 = math.tanh %485 : vector<2x32xf32>
    %cst_209 = arith.constant dense<0.000000e+00> : vector<2x128xf32>
    %487 = tpu.matmul %486, %5, %cst_209 {dimension_numbers = #tpu.dot_dimension_numbers<[1], [0], [0], [1], [0, 0, 1, 1], [], []>} : vector<2x32xf32>, vector<32x128xf32>, vector<2x128xf32> -> vector<2x128xf32>
    %488 = vector.broadcast %6 : vector<1x128xf32> to vector<2x128xf32>
    %489 = arith.addf %487, %488 : vector<2x128xf32>
    %cst_210 = arith.constant dense<0xFF800000> : vector<2xf32>
    %490 = vector.multi_reduction <maximumf>, %489, %cst_210 [1] : vector<2x128xf32> to vector<2xf32>
    %491 = vector.shape_cast %490 : vector<2xf32> to vector<2x1xf32>
    %492 = vector.broadcast %491 : vector<2x1xf32> to vector<2x128xf32>
    %493 = arith.subf %489, %492 : vector<2x128xf32>
    %494 = math.exp %493 : vector<2x128xf32>
    %cst_211 = arith.constant dense<0.000000e+00> : vector<2xf32>
    %495 = vector.multi_reduction <add>, %494, %cst_211 [1] : vector<2x128xf32> to vector<2xf32>
    %496 = vector.shape_cast %495 : vector<2xf32> to vector<2x1xf32>
    %497 = tpu.reciprocal %496 : vector<2x1xf32> -> vector<2x1xf32>
    %498 = vector.broadcast %497 : vector<2x1xf32> to vector<2x128xf32>
    %499 = arith.mulf %494, %498 : vector<2x128xf32>
    %500 = arith.index_cast %c9_i32 : i32 to index
    %c0_212 = arith.constant 0 : index
    %c0_213 = arith.constant 0 : index
    %501 = vector.load %arg14[%500, %c0_212, %c0_213] : memref<25x2x128xf32, #tpu.memory_space<vmem>>, vector<1x2x128xf32>
    %502 = vector.shape_cast %501 : vector<1x2x128xf32> to vector<2x128xf32>
    %503 = vector.shape_cast %499 : vector<2x128xf32> to vector<1x2x128xf32>
    tpu.vector_store %arg14[%500, %c0_212, %c0_213], %503 {strides = array<i32>} : memref<25x2x128xf32, #tpu.memory_space<vmem>>, vector<1x2x128xf32>,
    %c10_i32 = arith.constant 10 : i32
    %cst_214 = arith.constant dense<0.000000e+00> : vector<2x32xf32>
    %504 = tpu.matmul %499, %2, %cst_214 {dimension_numbers = #tpu.dot_dimension_numbers<[1], [0], [0], [1], [0, 0, 1, 1], [], []>} : vector<2x128xf32>, vector<128x32xf32>, vector<2x32xf32> -> vector<2x32xf32>
    %cst_215 = arith.constant dense<0.000000e+00> : vector<2x32xf32>
    %505 = tpu.matmul %486, %3, %cst_215 {dimension_numbers = #tpu.dot_dimension_numbers<[1], [0], [0], [1], [0, 0, 1, 1], [], []>} : vector<2x32xf32>, vector<32x32xf32>, vector<2x32xf32> -> vector<2x32xf32>
    %506 = arith.addf %504, %505 : vector<2x32xf32>
    %507 = vector.broadcast %4 : vector<1x32xf32> to vector<2x32xf32>
    %508 = arith.addf %506, %507 : vector<2x32xf32>
    %cst_216 = arith.constant dense<0.000000e+00> : vector<2x16xf32>
    %509 = tpu.matmul %486, %117, %cst_216 {dimension_numbers = #tpu.dot_dimension_numbers<[1], [0], [0], [1], [0, 0, 1, 1], [], []>} : vector<2x32xf32>, vector<32x16xf32>, vector<2x16xf32> -> vector<2x16xf32>
    %510 = arith.addf %509, %121 : vector<2x16xf32>
    %cst_217 = arith.constant dense<0xFF800000> : vector<2xf32>
    %511 = vector.multi_reduction <maximumf>, %510, %cst_217 [1] : vector<2x16xf32> to vector<2xf32>
    %512 = vector.shape_cast %511 : vector<2xf32> to vector<2x1xf32>
    %513 = vector.broadcast %512 : vector<2x1xf32> to vector<2x16xf32>
    %514 = arith.subf %510, %513 : vector<2x16xf32>
    %515 = math.exp %514 : vector<2x16xf32>
    %cst_218 = arith.constant dense<0.000000e+00> : vector<2xf32>
    %516 = vector.multi_reduction <add>, %515, %cst_218 [1] : vector<2x16xf32> to vector<2xf32>
    %517 = vector.shape_cast %516 : vector<2xf32> to vector<2x1xf32>
    %518 = tpu.reciprocal %517 : vector<2x1xf32> -> vector<2x1xf32>
    %519 = vector.broadcast %518 : vector<2x1xf32> to vector<2x16xf32>
    %520 = arith.mulf %515, %519 : vector<2x16xf32>
    %cst_219 = arith.constant dense<0.000000e+00> : vector<2x32xf32>
    %521 = tpu.matmul %520, %87, %cst_219 {dimension_numbers = #tpu.dot_dimension_numbers<[1], [0], [0], [1], [0, 0, 1, 1], [], []>} : vector<2x16xf32>, vector<16x32xf32>, vector<2x32xf32> -> vector<2x32xf32>
    %cst_220 = arith.constant dense<0.000000e+00> : vector<2x32xf32>
    %522 = tpu.matmul %521, %1, %cst_220 {dimension_numbers = #tpu.dot_dimension_numbers<[1], [0], [0], [1], [0, 0, 1, 1], [], []>} : vector<2x32xf32>, vector<32x32xf32>, vector<2x32xf32> -> vector<2x32xf32>
    %523 = arith.addf %508, %522 : vector<2x32xf32>
    %524 = math.tanh %523 : vector<2x32xf32>
    %cst_221 = arith.constant dense<0.000000e+00> : vector<2x128xf32>
    %525 = tpu.matmul %524, %5, %cst_221 {dimension_numbers = #tpu.dot_dimension_numbers<[1], [0], [0], [1], [0, 0, 1, 1], [], []>} : vector<2x32xf32>, vector<32x128xf32>, vector<2x128xf32> -> vector<2x128xf32>
    %526 = vector.broadcast %6 : vector<1x128xf32> to vector<2x128xf32>
    %527 = arith.addf %525, %526 : vector<2x128xf32>
    %cst_222 = arith.constant dense<0xFF800000> : vector<2xf32>
    %528 = vector.multi_reduction <maximumf>, %527, %cst_222 [1] : vector<2x128xf32> to vector<2xf32>
    %529 = vector.shape_cast %528 : vector<2xf32> to vector<2x1xf32>
    %530 = vector.broadcast %529 : vector<2x1xf32> to vector<2x128xf32>
    %531 = arith.subf %527, %530 : vector<2x128xf32>
    %532 = math.exp %531 : vector<2x128xf32>
    %cst_223 = arith.constant dense<0.000000e+00> : vector<2xf32>
    %533 = vector.multi_reduction <add>, %532, %cst_223 [1] : vector<2x128xf32> to vector<2xf32>
    %534 = vector.shape_cast %533 : vector<2xf32> to vector<2x1xf32>
    %535 = tpu.reciprocal %534 : vector<2x1xf32> -> vector<2x1xf32>
    %536 = vector.broadcast %535 : vector<2x1xf32> to vector<2x128xf32>
    %537 = arith.mulf %532, %536 : vector<2x128xf32>
    %538 = arith.index_cast %c10_i32 : i32 to index
    %c0_224 = arith.constant 0 : index
    %c0_225 = arith.constant 0 : index
    %539 = vector.load %arg14[%538, %c0_224, %c0_225] : memref<25x2x128xf32, #tpu.memory_space<vmem>>, vector<1x2x128xf32>
    %540 = vector.shape_cast %539 : vector<1x2x128xf32> to vector<2x128xf32>
    %541 = vector.shape_cast %537 : vector<2x128xf32> to vector<1x2x128xf32>
    tpu.vector_store %arg14[%538, %c0_224, %c0_225], %541 {strides = array<i32>} : memref<25x2x128xf32, #tpu.memory_space<vmem>>, vector<1x2x128xf32>,
    %c11_i32 = arith.constant 11 : i32
    %cst_226 = arith.constant dense<0.000000e+00> : vector<2x32xf32>
    %542 = tpu.matmul %537, %2, %cst_226 {dimension_numbers = #tpu.dot_dimension_numbers<[1], [0], [0], [1], [0, 0, 1, 1], [], []>} : vector<2x128xf32>, vector<128x32xf32>, vector<2x32xf32> -> vector<2x32xf32>
    %cst_227 = arith.constant dense<0.000000e+00> : vector<2x32xf32>
    %543 = tpu.matmul %524, %3, %cst_227 {dimension_numbers = #tpu.dot_dimension_numbers<[1], [0], [0], [1], [0, 0, 1, 1], [], []>} : vector<2x32xf32>, vector<32x32xf32>, vector<2x32xf32> -> vector<2x32xf32>
    %544 = arith.addf %542, %543 : vector<2x32xf32>
    %545 = vector.broadcast %4 : vector<1x32xf32> to vector<2x32xf32>
    %546 = arith.addf %544, %545 : vector<2x32xf32>
    %cst_228 = arith.constant dense<0.000000e+00> : vector<2x16xf32>
    %547 = tpu.matmul %524, %117, %cst_228 {dimension_numbers = #tpu.dot_dimension_numbers<[1], [0], [0], [1], [0, 0, 1, 1], [], []>} : vector<2x32xf32>, vector<32x16xf32>, vector<2x16xf32> -> vector<2x16xf32>
    %548 = arith.addf %547, %121 : vector<2x16xf32>
    %cst_229 = arith.constant dense<0xFF800000> : vector<2xf32>
    %549 = vector.multi_reduction <maximumf>, %548, %cst_229 [1] : vector<2x16xf32> to vector<2xf32>
    %550 = vector.shape_cast %549 : vector<2xf32> to vector<2x1xf32>
    %551 = vector.broadcast %550 : vector<2x1xf32> to vector<2x16xf32>
    %552 = arith.subf %548, %551 : vector<2x16xf32>
    %553 = math.exp %552 : vector<2x16xf32>
    %cst_230 = arith.constant dense<0.000000e+00> : vector<2xf32>
    %554 = vector.multi_reduction <add>, %553, %cst_230 [1] : vector<2x16xf32> to vector<2xf32>
    %555 = vector.shape_cast %554 : vector<2xf32> to vector<2x1xf32>
    %556 = tpu.reciprocal %555 : vector<2x1xf32> -> vector<2x1xf32>
    %557 = vector.broadcast %556 : vector<2x1xf32> to vector<2x16xf32>
    %558 = arith.mulf %553, %557 : vector<2x16xf32>
    %cst_231 = arith.constant dense<0.000000e+00> : vector<2x32xf32>
    %559 = tpu.matmul %558, %87, %cst_231 {dimension_numbers = #tpu.dot_dimension_numbers<[1], [0], [0], [1], [0, 0, 1, 1], [], []>} : vector<2x16xf32>, vector<16x32xf32>, vector<2x32xf32> -> vector<2x32xf32>
    %cst_232 = arith.constant dense<0.000000e+00> : vector<2x32xf32>
    %560 = tpu.matmul %559, %1, %cst_232 {dimension_numbers = #tpu.dot_dimension_numbers<[1], [0], [0], [1], [0, 0, 1, 1], [], []>} : vector<2x32xf32>, vector<32x32xf32>, vector<2x32xf32> -> vector<2x32xf32>
    %561 = arith.addf %546, %560 : vector<2x32xf32>
    %562 = math.tanh %561 : vector<2x32xf32>
    %cst_233 = arith.constant dense<0.000000e+00> : vector<2x128xf32>
    %563 = tpu.matmul %562, %5, %cst_233 {dimension_numbers = #tpu.dot_dimension_numbers<[1], [0], [0], [1], [0, 0, 1, 1], [], []>} : vector<2x32xf32>, vector<32x128xf32>, vector<2x128xf32> -> vector<2x128xf32>
    %564 = vector.broadcast %6 : vector<1x128xf32> to vector<2x128xf32>
    %565 = arith.addf %563, %564 : vector<2x128xf32>
    %cst_234 = arith.constant dense<0xFF800000> : vector<2xf32>
    %566 = vector.multi_reduction <maximumf>, %565, %cst_234 [1] : vector<2x128xf32> to vector<2xf32>
    %567 = vector.shape_cast %566 : vector<2xf32> to vector<2x1xf32>
    %568 = vector.broadcast %567 : vector<2x1xf32> to vector<2x128xf32>
    %569 = arith.subf %565, %568 : vector<2x128xf32>
    %570 = math.exp %569 : vector<2x128xf32>
    %cst_235 = arith.constant dense<0.000000e+00> : vector<2xf32>
    %571 = vector.multi_reduction <add>, %570, %cst_235 [1] : vector<2x128xf32> to vector<2xf32>
    %572 = vector.shape_cast %571 : vector<2xf32> to vector<2x1xf32>
    %573 = tpu.reciprocal %572 : vector<2x1xf32> -> vector<2x1xf32>
    %574 = vector.broadcast %573 : vector<2x1xf32> to vector<2x128xf32>
    %575 = arith.mulf %570, %574 : vector<2x128xf32>
    %576 = arith.index_cast %c11_i32 : i32 to index
    %c0_236 = arith.constant 0 : index
    %c0_237 = arith.constant 0 : index
    %577 = vector.load %arg14[%576, %c0_236, %c0_237] : memref<25x2x128xf32, #tpu.memory_space<vmem>>, vector<1x2x128xf32>
    %578 = vector.shape_cast %577 : vector<1x2x128xf32> to vector<2x128xf32>
    %579 = vector.shape_cast %575 : vector<2x128xf32> to vector<1x2x128xf32>
    tpu.vector_store %arg14[%576, %c0_236, %c0_237], %579 {strides = array<i32>} : memref<25x2x128xf32, #tpu.memory_space<vmem>>, vector<1x2x128xf32>,
    %c12_i32 = arith.constant 12 : i32
    %cst_238 = arith.constant dense<0.000000e+00> : vector<2x32xf32>
    %580 = tpu.matmul %575, %2, %cst_238 {dimension_numbers = #tpu.dot_dimension_numbers<[1], [0], [0], [1], [0, 0, 1, 1], [], []>} : vector<2x128xf32>, vector<128x32xf32>, vector<2x32xf32> -> vector<2x32xf32>
    %cst_239 = arith.constant dense<0.000000e+00> : vector<2x32xf32>
    %581 = tpu.matmul %562, %3, %cst_239 {dimension_numbers = #tpu.dot_dimension_numbers<[1], [0], [0], [1], [0, 0, 1, 1], [], []>} : vector<2x32xf32>, vector<32x32xf32>, vector<2x32xf32> -> vector<2x32xf32>
    %582 = arith.addf %580, %581 : vector<2x32xf32>
    %583 = vector.broadcast %4 : vector<1x32xf32> to vector<2x32xf32>
    %584 = arith.addf %582, %583 : vector<2x32xf32>
    %cst_240 = arith.constant dense<0.000000e+00> : vector<2x16xf32>
    %585 = tpu.matmul %562, %117, %cst_240 {dimension_numbers = #tpu.dot_dimension_numbers<[1], [0], [0], [1], [0, 0, 1, 1], [], []>} : vector<2x32xf32>, vector<32x16xf32>, vector<2x16xf32> -> vector<2x16xf32>
    %586 = arith.addf %585, %121 : vector<2x16xf32>
    %cst_241 = arith.constant dense<0xFF800000> : vector<2xf32>
    %587 = vector.multi_reduction <maximumf>, %586, %cst_241 [1] : vector<2x16xf32> to vector<2xf32>
    %588 = vector.shape_cast %587 : vector<2xf32> to vector<2x1xf32>
    %589 = vector.broadcast %588 : vector<2x1xf32> to vector<2x16xf32>
    %590 = arith.subf %586, %589 : vector<2x16xf32>
    %591 = math.exp %590 : vector<2x16xf32>
    %cst_242 = arith.constant dense<0.000000e+00> : vector<2xf32>
    %592 = vector.multi_reduction <add>, %591, %cst_242 [1] : vector<2x16xf32> to vector<2xf32>
    %593 = vector.shape_cast %592 : vector<2xf32> to vector<2x1xf32>
    %594 = tpu.reciprocal %593 : vector<2x1xf32> -> vector<2x1xf32>
    %595 = vector.broadcast %594 : vector<2x1xf32> to vector<2x16xf32>
    %596 = arith.mulf %591, %595 : vector<2x16xf32>
    %cst_243 = arith.constant dense<0.000000e+00> : vector<2x32xf32>
    %597 = tpu.matmul %596, %87, %cst_243 {dimension_numbers = #tpu.dot_dimension_numbers<[1], [0], [0], [1], [0, 0, 1, 1], [], []>} : vector<2x16xf32>, vector<16x32xf32>, vector<2x32xf32> -> vector<2x32xf32>
    %cst_244 = arith.constant dense<0.000000e+00> : vector<2x32xf32>
    %598 = tpu.matmul %597, %1, %cst_244 {dimension_numbers = #tpu.dot_dimension_numbers<[1], [0], [0], [1], [0, 0, 1, 1], [], []>} : vector<2x32xf32>, vector<32x32xf32>, vector<2x32xf32> -> vector<2x32xf32>
    %599 = arith.addf %584, %598 : vector<2x32xf32>
    %600 = math.tanh %599 : vector<2x32xf32>
    %cst_245 = arith.constant dense<0.000000e+00> : vector<2x128xf32>
    %601 = tpu.matmul %600, %5, %cst_245 {dimension_numbers = #tpu.dot_dimension_numbers<[1], [0], [0], [1], [0, 0, 1, 1], [], []>} : vector<2x32xf32>, vector<32x128xf32>, vector<2x128xf32> -> vector<2x128xf32>
    %602 = vector.broadcast %6 : vector<1x128xf32> to vector<2x128xf32>
    %603 = arith.addf %601, %602 : vector<2x128xf32>
    %cst_246 = arith.constant dense<0xFF800000> : vector<2xf32>
    %604 = vector.multi_reduction <maximumf>, %603, %cst_246 [1] : vector<2x128xf32> to vector<2xf32>
    %605 = vector.shape_cast %604 : vector<2xf32> to vector<2x1xf32>
    %606 = vector.broadcast %605 : vector<2x1xf32> to vector<2x128xf32>
    %607 = arith.subf %603, %606 : vector<2x128xf32>
    %608 = math.exp %607 : vector<2x128xf32>
    %cst_247 = arith.constant dense<0.000000e+00> : vector<2xf32>
    %609 = vector.multi_reduction <add>, %608, %cst_247 [1] : vector<2x128xf32> to vector<2xf32>
    %610 = vector.shape_cast %609 : vector<2xf32> to vector<2x1xf32>
    %611 = tpu.reciprocal %610 : vector<2x1xf32> -> vector<2x1xf32>
    %612 = vector.broadcast %611 : vector<2x1xf32> to vector<2x128xf32>
    %613 = arith.mulf %608, %612 : vector<2x128xf32>
    %614 = arith.index_cast %c12_i32 : i32 to index
    %c0_248 = arith.constant 0 : index
    %c0_249 = arith.constant 0 : index
    %615 = vector.load %arg14[%614, %c0_248, %c0_249] : memref<25x2x128xf32, #tpu.memory_space<vmem>>, vector<1x2x128xf32>
    %616 = vector.shape_cast %615 : vector<1x2x128xf32> to vector<2x128xf32>
    %617 = vector.shape_cast %613 : vector<2x128xf32> to vector<1x2x128xf32>
    tpu.vector_store %arg14[%614, %c0_248, %c0_249], %617 {strides = array<i32>} : memref<25x2x128xf32, #tpu.memory_space<vmem>>, vector<1x2x128xf32>,
    %c13_i32 = arith.constant 13 : i32
    %cst_250 = arith.constant dense<0.000000e+00> : vector<2x32xf32>
    %618 = tpu.matmul %613, %2, %cst_250 {dimension_numbers = #tpu.dot_dimension_numbers<[1], [0], [0], [1], [0, 0, 1, 1], [], []>} : vector<2x128xf32>, vector<128x32xf32>, vector<2x32xf32> -> vector<2x32xf32>
    %cst_251 = arith.constant dense<0.000000e+00> : vector<2x32xf32>
    %619 = tpu.matmul %600, %3, %cst_251 {dimension_numbers = #tpu.dot_dimension_numbers<[1], [0], [0], [1], [0, 0, 1, 1], [], []>} : vector<2x32xf32>, vector<32x32xf32>, vector<2x32xf32> -> vector<2x32xf32>
    %620 = arith.addf %618, %619 : vector<2x32xf32>
    %621 = vector.broadcast %4 : vector<1x32xf32> to vector<2x32xf32>
    %622 = arith.addf %620, %621 : vector<2x32xf32>
    %cst_252 = arith.constant dense<0.000000e+00> : vector<2x16xf32>
    %623 = tpu.matmul %600, %117, %cst_252 {dimension_numbers = #tpu.dot_dimension_numbers<[1], [0], [0], [1], [0, 0, 1, 1], [], []>} : vector<2x32xf32>, vector<32x16xf32>, vector<2x16xf32> -> vector<2x16xf32>
    %624 = arith.addf %623, %121 : vector<2x16xf32>
    %cst_253 = arith.constant dense<0xFF800000> : vector<2xf32>
    %625 = vector.multi_reduction <maximumf>, %624, %cst_253 [1] : vector<2x16xf32> to vector<2xf32>
    %626 = vector.shape_cast %625 : vector<2xf32> to vector<2x1xf32>
    %627 = vector.broadcast %626 : vector<2x1xf32> to vector<2x16xf32>
    %628 = arith.subf %624, %627 : vector<2x16xf32>
    %629 = math.exp %628 : vector<2x16xf32>
    %cst_254 = arith.constant dense<0.000000e+00> : vector<2xf32>
    %630 = vector.multi_reduction <add>, %629, %cst_254 [1] : vector<2x16xf32> to vector<2xf32>
    %631 = vector.shape_cast %630 : vector<2xf32> to vector<2x1xf32>
    %632 = tpu.reciprocal %631 : vector<2x1xf32> -> vector<2x1xf32>
    %633 = vector.broadcast %632 : vector<2x1xf32> to vector<2x16xf32>
    %634 = arith.mulf %629, %633 : vector<2x16xf32>
    %cst_255 = arith.constant dense<0.000000e+00> : vector<2x32xf32>
    %635 = tpu.matmul %634, %87, %cst_255 {dimension_numbers = #tpu.dot_dimension_numbers<[1], [0], [0], [1], [0, 0, 1, 1], [], []>} : vector<2x16xf32>, vector<16x32xf32>, vector<2x32xf32> -> vector<2x32xf32>
    %cst_256 = arith.constant dense<0.000000e+00> : vector<2x32xf32>
    %636 = tpu.matmul %635, %1, %cst_256 {dimension_numbers = #tpu.dot_dimension_numbers<[1], [0], [0], [1], [0, 0, 1, 1], [], []>} : vector<2x32xf32>, vector<32x32xf32>, vector<2x32xf32> -> vector<2x32xf32>
    %637 = arith.addf %622, %636 : vector<2x32xf32>
    %638 = math.tanh %637 : vector<2x32xf32>
    %cst_257 = arith.constant dense<0.000000e+00> : vector<2x128xf32>
    %639 = tpu.matmul %638, %5, %cst_257 {dimension_numbers = #tpu.dot_dimension_numbers<[1], [0], [0], [1], [0, 0, 1, 1], [], []>} : vector<2x32xf32>, vector<32x128xf32>, vector<2x128xf32> -> vector<2x128xf32>
    %640 = vector.broadcast %6 : vector<1x128xf32> to vector<2x128xf32>
    %641 = arith.addf %639, %640 : vector<2x128xf32>
    %cst_258 = arith.constant dense<0xFF800000> : vector<2xf32>
    %642 = vector.multi_reduction <maximumf>, %641, %cst_258 [1] : vector<2x128xf32> to vector<2xf32>
    %643 = vector.shape_cast %642 : vector<2xf32> to vector<2x1xf32>
    %644 = vector.broadcast %643 : vector<2x1xf32> to vector<2x128xf32>
    %645 = arith.subf %641, %644 : vector<2x128xf32>
    %646 = math.exp %645 : vector<2x128xf32>
    %cst_259 = arith.constant dense<0.000000e+00> : vector<2xf32>
    %647 = vector.multi_reduction <add>, %646, %cst_259 [1] : vector<2x128xf32> to vector<2xf32>
    %648 = vector.shape_cast %647 : vector<2xf32> to vector<2x1xf32>
    %649 = tpu.reciprocal %648 : vector<2x1xf32> -> vector<2x1xf32>
    %650 = vector.broadcast %649 : vector<2x1xf32> to vector<2x128xf32>
    %651 = arith.mulf %646, %650 : vector<2x128xf32>
    %652 = arith.index_cast %c13_i32 : i32 to index
    %c0_260 = arith.constant 0 : index
    %c0_261 = arith.constant 0 : index
    %653 = vector.load %arg14[%652, %c0_260, %c0_261] : memref<25x2x128xf32, #tpu.memory_space<vmem>>, vector<1x2x128xf32>
    %654 = vector.shape_cast %653 : vector<1x2x128xf32> to vector<2x128xf32>
    %655 = vector.shape_cast %651 : vector<2x128xf32> to vector<1x2x128xf32>
    tpu.vector_store %arg14[%652, %c0_260, %c0_261], %655 {strides = array<i32>} : memref<25x2x128xf32, #tpu.memory_space<vmem>>, vector<1x2x128xf32>,
    %c14_i32 = arith.constant 14 : i32
    %cst_262 = arith.constant dense<0.000000e+00> : vector<2x32xf32>
    %656 = tpu.matmul %651, %2, %cst_262 {dimension_numbers = #tpu.dot_dimension_numbers<[1], [0], [0], [1], [0, 0, 1, 1], [], []>} : vector<2x128xf32>, vector<128x32xf32>, vector<2x32xf32> -> vector<2x32xf32>
    %cst_263 = arith.constant dense<0.000000e+00> : vector<2x32xf32>
    %657 = tpu.matmul %638, %3, %cst_263 {dimension_numbers = #tpu.dot_dimension_numbers<[1], [0], [0], [1], [0, 0, 1, 1], [], []>} : vector<2x32xf32>, vector<32x32xf32>, vector<2x32xf32> -> vector<2x32xf32>
    %658 = arith.addf %656, %657 : vector<2x32xf32>
    %659 = vector.broadcast %4 : vector<1x32xf32> to vector<2x32xf32>
    %660 = arith.addf %658, %659 : vector<2x32xf32>
    %cst_264 = arith.constant dense<0.000000e+00> : vector<2x16xf32>
    %661 = tpu.matmul %638, %117, %cst_264 {dimension_numbers = #tpu.dot_dimension_numbers<[1], [0], [0], [1], [0, 0, 1, 1], [], []>} : vector<2x32xf32>, vector<32x16xf32>, vector<2x16xf32> -> vector<2x16xf32>
    %662 = arith.addf %661, %121 : vector<2x16xf32>
    %cst_265 = arith.constant dense<0xFF800000> : vector<2xf32>
    %663 = vector.multi_reduction <maximumf>, %662, %cst_265 [1] : vector<2x16xf32> to vector<2xf32>
    %664 = vector.shape_cast %663 : vector<2xf32> to vector<2x1xf32>
    %665 = vector.broadcast %664 : vector<2x1xf32> to vector<2x16xf32>
    %666 = arith.subf %662, %665 : vector<2x16xf32>
    %667 = math.exp %666 : vector<2x16xf32>
    %cst_266 = arith.constant dense<0.000000e+00> : vector<2xf32>
    %668 = vector.multi_reduction <add>, %667, %cst_266 [1] : vector<2x16xf32> to vector<2xf32>
    %669 = vector.shape_cast %668 : vector<2xf32> to vector<2x1xf32>
    %670 = tpu.reciprocal %669 : vector<2x1xf32> -> vector<2x1xf32>
    %671 = vector.broadcast %670 : vector<2x1xf32> to vector<2x16xf32>
    %672 = arith.mulf %667, %671 : vector<2x16xf32>
    %cst_267 = arith.constant dense<0.000000e+00> : vector<2x32xf32>
    %673 = tpu.matmul %672, %87, %cst_267 {dimension_numbers = #tpu.dot_dimension_numbers<[1], [0], [0], [1], [0, 0, 1, 1], [], []>} : vector<2x16xf32>, vector<16x32xf32>, vector<2x32xf32> -> vector<2x32xf32>
    %cst_268 = arith.constant dense<0.000000e+00> : vector<2x32xf32>
    %674 = tpu.matmul %673, %1, %cst_268 {dimension_numbers = #tpu.dot_dimension_numbers<[1], [0], [0], [1], [0, 0, 1, 1], [], []>} : vector<2x32xf32>, vector<32x32xf32>, vector<2x32xf32> -> vector<2x32xf32>
    %675 = arith.addf %660, %674 : vector<2x32xf32>
    %676 = math.tanh %675 : vector<2x32xf32>
    %cst_269 = arith.constant dense<0.000000e+00> : vector<2x128xf32>
    %677 = tpu.matmul %676, %5, %cst_269 {dimension_numbers = #tpu.dot_dimension_numbers<[1], [0], [0], [1], [0, 0, 1, 1], [], []>} : vector<2x32xf32>, vector<32x128xf32>, vector<2x128xf32> -> vector<2x128xf32>
    %678 = vector.broadcast %6 : vector<1x128xf32> to vector<2x128xf32>
    %679 = arith.addf %677, %678 : vector<2x128xf32>
    %cst_270 = arith.constant dense<0xFF800000> : vector<2xf32>
    %680 = vector.multi_reduction <maximumf>, %679, %cst_270 [1] : vector<2x128xf32> to vector<2xf32>
    %681 = vector.shape_cast %680 : vector<2xf32> to vector<2x1xf32>
    %682 = vector.broadcast %681 : vector<2x1xf32> to vector<2x128xf32>
    %683 = arith.subf %679, %682 : vector<2x128xf32>
    %684 = math.exp %683 : vector<2x128xf32>
    %cst_271 = arith.constant dense<0.000000e+00> : vector<2xf32>
    %685 = vector.multi_reduction <add>, %684, %cst_271 [1] : vector<2x128xf32> to vector<2xf32>
    %686 = vector.shape_cast %685 : vector<2xf32> to vector<2x1xf32>
    %687 = tpu.reciprocal %686 : vector<2x1xf32> -> vector<2x1xf32>
    %688 = vector.broadcast %687 : vector<2x1xf32> to vector<2x128xf32>
    %689 = arith.mulf %684, %688 : vector<2x128xf32>
    %690 = arith.index_cast %c14_i32 : i32 to index
    %c0_272 = arith.constant 0 : index
    %c0_273 = arith.constant 0 : index
    %691 = vector.load %arg14[%690, %c0_272, %c0_273] : memref<25x2x128xf32, #tpu.memory_space<vmem>>, vector<1x2x128xf32>
    %692 = vector.shape_cast %691 : vector<1x2x128xf32> to vector<2x128xf32>
    %693 = vector.shape_cast %689 : vector<2x128xf32> to vector<1x2x128xf32>
    tpu.vector_store %arg14[%690, %c0_272, %c0_273], %693 {strides = array<i32>} : memref<25x2x128xf32, #tpu.memory_space<vmem>>, vector<1x2x128xf32>,
    %c15_i32 = arith.constant 15 : i32
    %cst_274 = arith.constant dense<0.000000e+00> : vector<2x32xf32>
    %694 = tpu.matmul %689, %2, %cst_274 {dimension_numbers = #tpu.dot_dimension_numbers<[1], [0], [0], [1], [0, 0, 1, 1], [], []>} : vector<2x128xf32>, vector<128x32xf32>, vector<2x32xf32> -> vector<2x32xf32>
    %cst_275 = arith.constant dense<0.000000e+00> : vector<2x32xf32>
    %695 = tpu.matmul %676, %3, %cst_275 {dimension_numbers = #tpu.dot_dimension_numbers<[1], [0], [0], [1], [0, 0, 1, 1], [], []>} : vector<2x32xf32>, vector<32x32xf32>, vector<2x32xf32> -> vector<2x32xf32>
    %696 = arith.addf %694, %695 : vector<2x32xf32>
    %697 = vector.broadcast %4 : vector<1x32xf32> to vector<2x32xf32>
    %698 = arith.addf %696, %697 : vector<2x32xf32>
    %cst_276 = arith.constant dense<0.000000e+00> : vector<2x16xf32>
    %699 = tpu.matmul %676, %117, %cst_276 {dimension_numbers = #tpu.dot_dimension_numbers<[1], [0], [0], [1], [0, 0, 1, 1], [], []>} : vector<2x32xf32>, vector<32x16xf32>, vector<2x16xf32> -> vector<2x16xf32>
    %700 = arith.addf %699, %121 : vector<2x16xf32>
    %cst_277 = arith.constant dense<0xFF800000> : vector<2xf32>
    %701 = vector.multi_reduction <maximumf>, %700, %cst_277 [1] : vector<2x16xf32> to vector<2xf32>
    %702 = vector.shape_cast %701 : vector<2xf32> to vector<2x1xf32>
    %703 = vector.broadcast %702 : vector<2x1xf32> to vector<2x16xf32>
    %704 = arith.subf %700, %703 : vector<2x16xf32>
    %705 = math.exp %704 : vector<2x16xf32>
    %cst_278 = arith.constant dense<0.000000e+00> : vector<2xf32>
    %706 = vector.multi_reduction <add>, %705, %cst_278 [1] : vector<2x16xf32> to vector<2xf32>
    %707 = vector.shape_cast %706 : vector<2xf32> to vector<2x1xf32>
    %708 = tpu.reciprocal %707 : vector<2x1xf32> -> vector<2x1xf32>
    %709 = vector.broadcast %708 : vector<2x1xf32> to vector<2x16xf32>
    %710 = arith.mulf %705, %709 : vector<2x16xf32>
    %cst_279 = arith.constant dense<0.000000e+00> : vector<2x32xf32>
    %711 = tpu.matmul %710, %87, %cst_279 {dimension_numbers = #tpu.dot_dimension_numbers<[1], [0], [0], [1], [0, 0, 1, 1], [], []>} : vector<2x16xf32>, vector<16x32xf32>, vector<2x32xf32> -> vector<2x32xf32>
    %cst_280 = arith.constant dense<0.000000e+00> : vector<2x32xf32>
    %712 = tpu.matmul %711, %1, %cst_280 {dimension_numbers = #tpu.dot_dimension_numbers<[1], [0], [0], [1], [0, 0, 1, 1], [], []>} : vector<2x32xf32>, vector<32x32xf32>, vector<2x32xf32> -> vector<2x32xf32>
    %713 = arith.addf %698, %712 : vector<2x32xf32>
    %714 = math.tanh %713 : vector<2x32xf32>
    %cst_281 = arith.constant dense<0.000000e+00> : vector<2x128xf32>
    %715 = tpu.matmul %714, %5, %cst_281 {dimension_numbers = #tpu.dot_dimension_numbers<[1], [0], [0], [1], [0, 0, 1, 1], [], []>} : vector<2x32xf32>, vector<32x128xf32>, vector<2x128xf32> -> vector<2x128xf32>
    %716 = vector.broadcast %6 : vector<1x128xf32> to vector<2x128xf32>
    %717 = arith.addf %715, %716 : vector<2x128xf32>
    %cst_282 = arith.constant dense<0xFF800000> : vector<2xf32>
    %718 = vector.multi_reduction <maximumf>, %717, %cst_282 [1] : vector<2x128xf32> to vector<2xf32>
    %719 = vector.shape_cast %718 : vector<2xf32> to vector<2x1xf32>
    %720 = vector.broadcast %719 : vector<2x1xf32> to vector<2x128xf32>
    %721 = arith.subf %717, %720 : vector<2x128xf32>
    %722 = math.exp %721 : vector<2x128xf32>
    %cst_283 = arith.constant dense<0.000000e+00> : vector<2xf32>
    %723 = vector.multi_reduction <add>, %722, %cst_283 [1] : vector<2x128xf32> to vector<2xf32>
    %724 = vector.shape_cast %723 : vector<2xf32> to vector<2x1xf32>
    %725 = tpu.reciprocal %724 : vector<2x1xf32> -> vector<2x1xf32>
    %726 = vector.broadcast %725 : vector<2x1xf32> to vector<2x128xf32>
    %727 = arith.mulf %722, %726 : vector<2x128xf32>
    %728 = arith.index_cast %c15_i32 : i32 to index
    %c0_284 = arith.constant 0 : index
    %c0_285 = arith.constant 0 : index
    %729 = vector.load %arg14[%728, %c0_284, %c0_285] : memref<25x2x128xf32, #tpu.memory_space<vmem>>, vector<1x2x128xf32>
    %730 = vector.shape_cast %729 : vector<1x2x128xf32> to vector<2x128xf32>
    %731 = vector.shape_cast %727 : vector<2x128xf32> to vector<1x2x128xf32>
    tpu.vector_store %arg14[%728, %c0_284, %c0_285], %731 {strides = array<i32>} : memref<25x2x128xf32, #tpu.memory_space<vmem>>, vector<1x2x128xf32>,
    %c16_i32 = arith.constant 16 : i32
    %cst_286 = arith.constant dense<0.000000e+00> : vector<2x32xf32>
    %732 = tpu.matmul %727, %2, %cst_286 {dimension_numbers = #tpu.dot_dimension_numbers<[1], [0], [0], [1], [0, 0, 1, 1], [], []>} : vector<2x128xf32>, vector<128x32xf32>, vector<2x32xf32> -> vector<2x32xf32>
    %cst_287 = arith.constant dense<0.000000e+00> : vector<2x32xf32>
    %733 = tpu.matmul %714, %3, %cst_287 {dimension_numbers = #tpu.dot_dimension_numbers<[1], [0], [0], [1], [0, 0, 1, 1], [], []>} : vector<2x32xf32>, vector<32x32xf32>, vector<2x32xf32> -> vector<2x32xf32>
    %734 = arith.addf %732, %733 : vector<2x32xf32>
    %735 = vector.broadcast %4 : vector<1x32xf32> to vector<2x32xf32>
    %736 = arith.addf %734, %735 : vector<2x32xf32>
    %cst_288 = arith.constant dense<0.000000e+00> : vector<2x16xf32>
    %737 = tpu.matmul %714, %117, %cst_288 {dimension_numbers = #tpu.dot_dimension_numbers<[1], [0], [0], [1], [0, 0, 1, 1], [], []>} : vector<2x32xf32>, vector<32x16xf32>, vector<2x16xf32> -> vector<2x16xf32>
    %738 = arith.addf %737, %121 : vector<2x16xf32>
    %cst_289 = arith.constant dense<0xFF800000> : vector<2xf32>
    %739 = vector.multi_reduction <maximumf>, %738, %cst_289 [1] : vector<2x16xf32> to vector<2xf32>
    %740 = vector.shape_cast %739 : vector<2xf32> to vector<2x1xf32>
    %741 = vector.broadcast %740 : vector<2x1xf32> to vector<2x16xf32>
    %742 = arith.subf %738, %741 : vector<2x16xf32>
    %743 = math.exp %742 : vector<2x16xf32>
    %cst_290 = arith.constant dense<0.000000e+00> : vector<2xf32>
    %744 = vector.multi_reduction <add>, %743, %cst_290 [1] : vector<2x16xf32> to vector<2xf32>
    %745 = vector.shape_cast %744 : vector<2xf32> to vector<2x1xf32>
    %746 = tpu.reciprocal %745 : vector<2x1xf32> -> vector<2x1xf32>
    %747 = vector.broadcast %746 : vector<2x1xf32> to vector<2x16xf32>
    %748 = arith.mulf %743, %747 : vector<2x16xf32>
    %cst_291 = arith.constant dense<0.000000e+00> : vector<2x32xf32>
    %749 = tpu.matmul %748, %87, %cst_291 {dimension_numbers = #tpu.dot_dimension_numbers<[1], [0], [0], [1], [0, 0, 1, 1], [], []>} : vector<2x16xf32>, vector<16x32xf32>, vector<2x32xf32> -> vector<2x32xf32>
    %cst_292 = arith.constant dense<0.000000e+00> : vector<2x32xf32>
    %750 = tpu.matmul %749, %1, %cst_292 {dimension_numbers = #tpu.dot_dimension_numbers<[1], [0], [0], [1], [0, 0, 1, 1], [], []>} : vector<2x32xf32>, vector<32x32xf32>, vector<2x32xf32> -> vector<2x32xf32>
    %751 = arith.addf %736, %750 : vector<2x32xf32>
    %752 = math.tanh %751 : vector<2x32xf32>
    %cst_293 = arith.constant dense<0.000000e+00> : vector<2x128xf32>
    %753 = tpu.matmul %752, %5, %cst_293 {dimension_numbers = #tpu.dot_dimension_numbers<[1], [0], [0], [1], [0, 0, 1, 1], [], []>} : vector<2x32xf32>, vector<32x128xf32>, vector<2x128xf32> -> vector<2x128xf32>
    %754 = vector.broadcast %6 : vector<1x128xf32> to vector<2x128xf32>
    %755 = arith.addf %753, %754 : vector<2x128xf32>
    %cst_294 = arith.constant dense<0xFF800000> : vector<2xf32>
    %756 = vector.multi_reduction <maximumf>, %755, %cst_294 [1] : vector<2x128xf32> to vector<2xf32>
    %757 = vector.shape_cast %756 : vector<2xf32> to vector<2x1xf32>
    %758 = vector.broadcast %757 : vector<2x1xf32> to vector<2x128xf32>
    %759 = arith.subf %755, %758 : vector<2x128xf32>
    %760 = math.exp %759 : vector<2x128xf32>
    %cst_295 = arith.constant dense<0.000000e+00> : vector<2xf32>
    %761 = vector.multi_reduction <add>, %760, %cst_295 [1] : vector<2x128xf32> to vector<2xf32>
    %762 = vector.shape_cast %761 : vector<2xf32> to vector<2x1xf32>
    %763 = tpu.reciprocal %762 : vector<2x1xf32> -> vector<2x1xf32>
    %764 = vector.broadcast %763 : vector<2x1xf32> to vector<2x128xf32>
    %765 = arith.mulf %760, %764 : vector<2x128xf32>
    %766 = arith.index_cast %c16_i32 : i32 to index
    %c0_296 = arith.constant 0 : index
    %c0_297 = arith.constant 0 : index
    %767 = vector.load %arg14[%766, %c0_296, %c0_297] : memref<25x2x128xf32, #tpu.memory_space<vmem>>, vector<1x2x128xf32>
    %768 = vector.shape_cast %767 : vector<1x2x128xf32> to vector<2x128xf32>
    %769 = vector.shape_cast %765 : vector<2x128xf32> to vector<1x2x128xf32>
    tpu.vector_store %arg14[%766, %c0_296, %c0_297], %769 {strides = array<i32>} : memref<25x2x128xf32, #tpu.memory_space<vmem>>, vector<1x2x128xf32>,
    %c17_i32 = arith.constant 17 : i32
    %cst_298 = arith.constant dense<0.000000e+00> : vector<2x32xf32>
    %770 = tpu.matmul %765, %2, %cst_298 {dimension_numbers = #tpu.dot_dimension_numbers<[1], [0], [0], [1], [0, 0, 1, 1], [], []>} : vector<2x128xf32>, vector<128x32xf32>, vector<2x32xf32> -> vector<2x32xf32>
    %cst_299 = arith.constant dense<0.000000e+00> : vector<2x32xf32>
    %771 = tpu.matmul %752, %3, %cst_299 {dimension_numbers = #tpu.dot_dimension_numbers<[1], [0], [0], [1], [0, 0, 1, 1], [], []>} : vector<2x32xf32>, vector<32x32xf32>, vector<2x32xf32> -> vector<2x32xf32>
    %772 = arith.addf %770, %771 : vector<2x32xf32>
    %773 = vector.broadcast %4 : vector<1x32xf32> to vector<2x32xf32>
    %774 = arith.addf %772, %773 : vector<2x32xf32>
    %cst_300 = arith.constant dense<0.000000e+00> : vector<2x16xf32>
    %775 = tpu.matmul %752, %117, %cst_300 {dimension_numbers = #tpu.dot_dimension_numbers<[1], [0], [0], [1], [0, 0, 1, 1], [], []>} : vector<2x32xf32>, vector<32x16xf32>, vector<2x16xf32> -> vector<2x16xf32>
    %776 = arith.addf %775, %121 : vector<2x16xf32>
    %cst_301 = arith.constant dense<0xFF800000> : vector<2xf32>
    %777 = vector.multi_reduction <maximumf>, %776, %cst_301 [1] : vector<2x16xf32> to vector<2xf32>
    %778 = vector.shape_cast %777 : vector<2xf32> to vector<2x1xf32>
    %779 = vector.broadcast %778 : vector<2x1xf32> to vector<2x16xf32>
    %780 = arith.subf %776, %779 : vector<2x16xf32>
    %781 = math.exp %780 : vector<2x16xf32>
    %cst_302 = arith.constant dense<0.000000e+00> : vector<2xf32>
    %782 = vector.multi_reduction <add>, %781, %cst_302 [1] : vector<2x16xf32> to vector<2xf32>
    %783 = vector.shape_cast %782 : vector<2xf32> to vector<2x1xf32>
    %784 = tpu.reciprocal %783 : vector<2x1xf32> -> vector<2x1xf32>
    %785 = vector.broadcast %784 : vector<2x1xf32> to vector<2x16xf32>
    %786 = arith.mulf %781, %785 : vector<2x16xf32>
    %cst_303 = arith.constant dense<0.000000e+00> : vector<2x32xf32>
    %787 = tpu.matmul %786, %87, %cst_303 {dimension_numbers = #tpu.dot_dimension_numbers<[1], [0], [0], [1], [0, 0, 1, 1], [], []>} : vector<2x16xf32>, vector<16x32xf32>, vector<2x32xf32> -> vector<2x32xf32>
    %cst_304 = arith.constant dense<0.000000e+00> : vector<2x32xf32>
    %788 = tpu.matmul %787, %1, %cst_304 {dimension_numbers = #tpu.dot_dimension_numbers<[1], [0], [0], [1], [0, 0, 1, 1], [], []>} : vector<2x32xf32>, vector<32x32xf32>, vector<2x32xf32> -> vector<2x32xf32>
    %789 = arith.addf %774, %788 : vector<2x32xf32>
    %790 = math.tanh %789 : vector<2x32xf32>
    %cst_305 = arith.constant dense<0.000000e+00> : vector<2x128xf32>
    %791 = tpu.matmul %790, %5, %cst_305 {dimension_numbers = #tpu.dot_dimension_numbers<[1], [0], [0], [1], [0, 0, 1, 1], [], []>} : vector<2x32xf32>, vector<32x128xf32>, vector<2x128xf32> -> vector<2x128xf32>
    %792 = vector.broadcast %6 : vector<1x128xf32> to vector<2x128xf32>
    %793 = arith.addf %791, %792 : vector<2x128xf32>
    %cst_306 = arith.constant dense<0xFF800000> : vector<2xf32>
    %794 = vector.multi_reduction <maximumf>, %793, %cst_306 [1] : vector<2x128xf32> to vector<2xf32>
    %795 = vector.shape_cast %794 : vector<2xf32> to vector<2x1xf32>
    %796 = vector.broadcast %795 : vector<2x1xf32> to vector<2x128xf32>
    %797 = arith.subf %793, %796 : vector<2x128xf32>
    %798 = math.exp %797 : vector<2x128xf32>
    %cst_307 = arith.constant dense<0.000000e+00> : vector<2xf32>
    %799 = vector.multi_reduction <add>, %798, %cst_307 [1] : vector<2x128xf32> to vector<2xf32>
    %800 = vector.shape_cast %799 : vector<2xf32> to vector<2x1xf32>
    %801 = tpu.reciprocal %800 : vector<2x1xf32> -> vector<2x1xf32>
    %802 = vector.broadcast %801 : vector<2x1xf32> to vector<2x128xf32>
    %803 = arith.mulf %798, %802 : vector<2x128xf32>
    %804 = arith.index_cast %c17_i32 : i32 to index
    %c0_308 = arith.constant 0 : index
    %c0_309 = arith.constant 0 : index
    %805 = vector.load %arg14[%804, %c0_308, %c0_309] : memref<25x2x128xf32, #tpu.memory_space<vmem>>, vector<1x2x128xf32>
    %806 = vector.shape_cast %805 : vector<1x2x128xf32> to vector<2x128xf32>
    %807 = vector.shape_cast %803 : vector<2x128xf32> to vector<1x2x128xf32>
    tpu.vector_store %arg14[%804, %c0_308, %c0_309], %807 {strides = array<i32>} : memref<25x2x128xf32, #tpu.memory_space<vmem>>, vector<1x2x128xf32>,
    %c18_i32 = arith.constant 18 : i32
    %cst_310 = arith.constant dense<0.000000e+00> : vector<2x32xf32>
    %808 = tpu.matmul %803, %2, %cst_310 {dimension_numbers = #tpu.dot_dimension_numbers<[1], [0], [0], [1], [0, 0, 1, 1], [], []>} : vector<2x128xf32>, vector<128x32xf32>, vector<2x32xf32> -> vector<2x32xf32>
    %cst_311 = arith.constant dense<0.000000e+00> : vector<2x32xf32>
    %809 = tpu.matmul %790, %3, %cst_311 {dimension_numbers = #tpu.dot_dimension_numbers<[1], [0], [0], [1], [0, 0, 1, 1], [], []>} : vector<2x32xf32>, vector<32x32xf32>, vector<2x32xf32> -> vector<2x32xf32>
    %810 = arith.addf %808, %809 : vector<2x32xf32>
    %811 = vector.broadcast %4 : vector<1x32xf32> to vector<2x32xf32>
    %812 = arith.addf %810, %811 : vector<2x32xf32>
    %cst_312 = arith.constant dense<0.000000e+00> : vector<2x16xf32>
    %813 = tpu.matmul %790, %117, %cst_312 {dimension_numbers = #tpu.dot_dimension_numbers<[1], [0], [0], [1], [0, 0, 1, 1], [], []>} : vector<2x32xf32>, vector<32x16xf32>, vector<2x16xf32> -> vector<2x16xf32>
    %814 = arith.addf %813, %121 : vector<2x16xf32>
    %cst_313 = arith.constant dense<0xFF800000> : vector<2xf32>
    %815 = vector.multi_reduction <maximumf>, %814, %cst_313 [1] : vector<2x16xf32> to vector<2xf32>
    %816 = vector.shape_cast %815 : vector<2xf32> to vector<2x1xf32>
    %817 = vector.broadcast %816 : vector<2x1xf32> to vector<2x16xf32>
    %818 = arith.subf %814, %817 : vector<2x16xf32>
    %819 = math.exp %818 : vector<2x16xf32>
    %cst_314 = arith.constant dense<0.000000e+00> : vector<2xf32>
    %820 = vector.multi_reduction <add>, %819, %cst_314 [1] : vector<2x16xf32> to vector<2xf32>
    %821 = vector.shape_cast %820 : vector<2xf32> to vector<2x1xf32>
    %822 = tpu.reciprocal %821 : vector<2x1xf32> -> vector<2x1xf32>
    %823 = vector.broadcast %822 : vector<2x1xf32> to vector<2x16xf32>
    %824 = arith.mulf %819, %823 : vector<2x16xf32>
    %cst_315 = arith.constant dense<0.000000e+00> : vector<2x32xf32>
    %825 = tpu.matmul %824, %87, %cst_315 {dimension_numbers = #tpu.dot_dimension_numbers<[1], [0], [0], [1], [0, 0, 1, 1], [], []>} : vector<2x16xf32>, vector<16x32xf32>, vector<2x32xf32> -> vector<2x32xf32>
    %cst_316 = arith.constant dense<0.000000e+00> : vector<2x32xf32>
    %826 = tpu.matmul %825, %1, %cst_316 {dimension_numbers = #tpu.dot_dimension_numbers<[1], [0], [0], [1], [0, 0, 1, 1], [], []>} : vector<2x32xf32>, vector<32x32xf32>, vector<2x32xf32> -> vector<2x32xf32>
    %827 = arith.addf %812, %826 : vector<2x32xf32>
    %828 = math.tanh %827 : vector<2x32xf32>
    %cst_317 = arith.constant dense<0.000000e+00> : vector<2x128xf32>
    %829 = tpu.matmul %828, %5, %cst_317 {dimension_numbers = #tpu.dot_dimension_numbers<[1], [0], [0], [1], [0, 0, 1, 1], [], []>} : vector<2x32xf32>, vector<32x128xf32>, vector<2x128xf32> -> vector<2x128xf32>
    %830 = vector.broadcast %6 : vector<1x128xf32> to vector<2x128xf32>
    %831 = arith.addf %829, %830 : vector<2x128xf32>
    %cst_318 = arith.constant dense<0xFF800000> : vector<2xf32>
    %832 = vector.multi_reduction <maximumf>, %831, %cst_318 [1] : vector<2x128xf32> to vector<2xf32>
    %833 = vector.shape_cast %832 : vector<2xf32> to vector<2x1xf32>
    %834 = vector.broadcast %833 : vector<2x1xf32> to vector<2x128xf32>
    %835 = arith.subf %831, %834 : vector<2x128xf32>
    %836 = math.exp %835 : vector<2x128xf32>
    %cst_319 = arith.constant dense<0.000000e+00> : vector<2xf32>
    %837 = vector.multi_reduction <add>, %836, %cst_319 [1] : vector<2x128xf32> to vector<2xf32>
    %838 = vector.shape_cast %837 : vector<2xf32> to vector<2x1xf32>
    %839 = tpu.reciprocal %838 : vector<2x1xf32> -> vector<2x1xf32>
    %840 = vector.broadcast %839 : vector<2x1xf32> to vector<2x128xf32>
    %841 = arith.mulf %836, %840 : vector<2x128xf32>
    %842 = arith.index_cast %c18_i32 : i32 to index
    %c0_320 = arith.constant 0 : index
    %c0_321 = arith.constant 0 : index
    %843 = vector.load %arg14[%842, %c0_320, %c0_321] : memref<25x2x128xf32, #tpu.memory_space<vmem>>, vector<1x2x128xf32>
    %844 = vector.shape_cast %843 : vector<1x2x128xf32> to vector<2x128xf32>
    %845 = vector.shape_cast %841 : vector<2x128xf32> to vector<1x2x128xf32>
    tpu.vector_store %arg14[%842, %c0_320, %c0_321], %845 {strides = array<i32>} : memref<25x2x128xf32, #tpu.memory_space<vmem>>, vector<1x2x128xf32>,
    %c19_i32 = arith.constant 19 : i32
    %cst_322 = arith.constant dense<0.000000e+00> : vector<2x32xf32>
    %846 = tpu.matmul %841, %2, %cst_322 {dimension_numbers = #tpu.dot_dimension_numbers<[1], [0], [0], [1], [0, 0, 1, 1], [], []>} : vector<2x128xf32>, vector<128x32xf32>, vector<2x32xf32> -> vector<2x32xf32>
    %cst_323 = arith.constant dense<0.000000e+00> : vector<2x32xf32>
    %847 = tpu.matmul %828, %3, %cst_323 {dimension_numbers = #tpu.dot_dimension_numbers<[1], [0], [0], [1], [0, 0, 1, 1], [], []>} : vector<2x32xf32>, vector<32x32xf32>, vector<2x32xf32> -> vector<2x32xf32>
    %848 = arith.addf %846, %847 : vector<2x32xf32>
    %849 = vector.broadcast %4 : vector<1x32xf32> to vector<2x32xf32>
    %850 = arith.addf %848, %849 : vector<2x32xf32>
    %cst_324 = arith.constant dense<0.000000e+00> : vector<2x16xf32>
    %851 = tpu.matmul %828, %117, %cst_324 {dimension_numbers = #tpu.dot_dimension_numbers<[1], [0], [0], [1], [0, 0, 1, 1], [], []>} : vector<2x32xf32>, vector<32x16xf32>, vector<2x16xf32> -> vector<2x16xf32>
    %852 = arith.addf %851, %121 : vector<2x16xf32>
    %cst_325 = arith.constant dense<0xFF800000> : vector<2xf32>
    %853 = vector.multi_reduction <maximumf>, %852, %cst_325 [1] : vector<2x16xf32> to vector<2xf32>
    %854 = vector.shape_cast %853 : vector<2xf32> to vector<2x1xf32>
    %855 = vector.broadcast %854 : vector<2x1xf32> to vector<2x16xf32>
    %856 = arith.subf %852, %855 : vector<2x16xf32>
    %857 = math.exp %856 : vector<2x16xf32>
    %cst_326 = arith.constant dense<0.000000e+00> : vector<2xf32>
    %858 = vector.multi_reduction <add>, %857, %cst_326 [1] : vector<2x16xf32> to vector<2xf32>
    %859 = vector.shape_cast %858 : vector<2xf32> to vector<2x1xf32>
    %860 = tpu.reciprocal %859 : vector<2x1xf32> -> vector<2x1xf32>
    %861 = vector.broadcast %860 : vector<2x1xf32> to vector<2x16xf32>
    %862 = arith.mulf %857, %861 : vector<2x16xf32>
    %cst_327 = arith.constant dense<0.000000e+00> : vector<2x32xf32>
    %863 = tpu.matmul %862, %87, %cst_327 {dimension_numbers = #tpu.dot_dimension_numbers<[1], [0], [0], [1], [0, 0, 1, 1], [], []>} : vector<2x16xf32>, vector<16x32xf32>, vector<2x32xf32> -> vector<2x32xf32>
    %cst_328 = arith.constant dense<0.000000e+00> : vector<2x32xf32>
    %864 = tpu.matmul %863, %1, %cst_328 {dimension_numbers = #tpu.dot_dimension_numbers<[1], [0], [0], [1], [0, 0, 1, 1], [], []>} : vector<2x32xf32>, vector<32x32xf32>, vector<2x32xf32> -> vector<2x32xf32>
    %865 = arith.addf %850, %864 : vector<2x32xf32>
    %866 = math.tanh %865 : vector<2x32xf32>
    %cst_329 = arith.constant dense<0.000000e+00> : vector<2x128xf32>
    %867 = tpu.matmul %866, %5, %cst_329 {dimension_numbers = #tpu.dot_dimension_numbers<[1], [0], [0], [1], [0, 0, 1, 1], [], []>} : vector<2x32xf32>, vector<32x128xf32>, vector<2x128xf32> -> vector<2x128xf32>
    %868 = vector.broadcast %6 : vector<1x128xf32> to vector<2x128xf32>
    %869 = arith.addf %867, %868 : vector<2x128xf32>
    %cst_330 = arith.constant dense<0xFF800000> : vector<2xf32>
    %870 = vector.multi_reduction <maximumf>, %869, %cst_330 [1] : vector<2x128xf32> to vector<2xf32>
    %871 = vector.shape_cast %870 : vector<2xf32> to vector<2x1xf32>
    %872 = vector.broadcast %871 : vector<2x1xf32> to vector<2x128xf32>
    %873 = arith.subf %869, %872 : vector<2x128xf32>
    %874 = math.exp %873 : vector<2x128xf32>
    %cst_331 = arith.constant dense<0.000000e+00> : vector<2xf32>
    %875 = vector.multi_reduction <add>, %874, %cst_331 [1] : vector<2x128xf32> to vector<2xf32>
    %876 = vector.shape_cast %875 : vector<2xf32> to vector<2x1xf32>
    %877 = tpu.reciprocal %876 : vector<2x1xf32> -> vector<2x1xf32>
    %878 = vector.broadcast %877 : vector<2x1xf32> to vector<2x128xf32>
    %879 = arith.mulf %874, %878 : vector<2x128xf32>
    %880 = arith.index_cast %c19_i32 : i32 to index
    %c0_332 = arith.constant 0 : index
    %c0_333 = arith.constant 0 : index
    %881 = vector.load %arg14[%880, %c0_332, %c0_333] : memref<25x2x128xf32, #tpu.memory_space<vmem>>, vector<1x2x128xf32>
    %882 = vector.shape_cast %881 : vector<1x2x128xf32> to vector<2x128xf32>
    %883 = vector.shape_cast %879 : vector<2x128xf32> to vector<1x2x128xf32>
    tpu.vector_store %arg14[%880, %c0_332, %c0_333], %883 {strides = array<i32>} : memref<25x2x128xf32, #tpu.memory_space<vmem>>, vector<1x2x128xf32>,
    %c20_i32 = arith.constant 20 : i32
    %cst_334 = arith.constant dense<0.000000e+00> : vector<2x32xf32>
    %884 = tpu.matmul %879, %2, %cst_334 {dimension_numbers = #tpu.dot_dimension_numbers<[1], [0], [0], [1], [0, 0, 1, 1], [], []>} : vector<2x128xf32>, vector<128x32xf32>, vector<2x32xf32> -> vector<2x32xf32>
    %cst_335 = arith.constant dense<0.000000e+00> : vector<2x32xf32>
    %885 = tpu.matmul %866, %3, %cst_335 {dimension_numbers = #tpu.dot_dimension_numbers<[1], [0], [0], [1], [0, 0, 1, 1], [], []>} : vector<2x32xf32>, vector<32x32xf32>, vector<2x32xf32> -> vector<2x32xf32>
    %886 = arith.addf %884, %885 : vector<2x32xf32>
    %887 = vector.broadcast %4 : vector<1x32xf32> to vector<2x32xf32>
    %888 = arith.addf %886, %887 : vector<2x32xf32>
    %cst_336 = arith.constant dense<0.000000e+00> : vector<2x16xf32>
    %889 = tpu.matmul %866, %117, %cst_336 {dimension_numbers = #tpu.dot_dimension_numbers<[1], [0], [0], [1], [0, 0, 1, 1], [], []>} : vector<2x32xf32>, vector<32x16xf32>, vector<2x16xf32> -> vector<2x16xf32>
    %890 = arith.addf %889, %121 : vector<2x16xf32>
    %cst_337 = arith.constant dense<0xFF800000> : vector<2xf32>
    %891 = vector.multi_reduction <maximumf>, %890, %cst_337 [1] : vector<2x16xf32> to vector<2xf32>
    %892 = vector.shape_cast %891 : vector<2xf32> to vector<2x1xf32>
    %893 = vector.broadcast %892 : vector<2x1xf32> to vector<2x16xf32>
    %894 = arith.subf %890, %893 : vector<2x16xf32>
    %895 = math.exp %894 : vector<2x16xf32>
    %cst_338 = arith.constant dense<0.000000e+00> : vector<2xf32>
    %896 = vector.multi_reduction <add>, %895, %cst_338 [1] : vector<2x16xf32> to vector<2xf32>
    %897 = vector.shape_cast %896 : vector<2xf32> to vector<2x1xf32>
    %898 = tpu.reciprocal %897 : vector<2x1xf32> -> vector<2x1xf32>
    %899 = vector.broadcast %898 : vector<2x1xf32> to vector<2x16xf32>
    %900 = arith.mulf %895, %899 : vector<2x16xf32>
    %cst_339 = arith.constant dense<0.000000e+00> : vector<2x32xf32>
    %901 = tpu.matmul %900, %87, %cst_339 {dimension_numbers = #tpu.dot_dimension_numbers<[1], [0], [0], [1], [0, 0, 1, 1], [], []>} : vector<2x16xf32>, vector<16x32xf32>, vector<2x32xf32> -> vector<2x32xf32>
    %cst_340 = arith.constant dense<0.000000e+00> : vector<2x32xf32>
    %902 = tpu.matmul %901, %1, %cst_340 {dimension_numbers = #tpu.dot_dimension_numbers<[1], [0], [0], [1], [0, 0, 1, 1], [], []>} : vector<2x32xf32>, vector<32x32xf32>, vector<2x32xf32> -> vector<2x32xf32>
    %903 = arith.addf %888, %902 : vector<2x32xf32>
    %904 = math.tanh %903 : vector<2x32xf32>
    %cst_341 = arith.constant dense<0.000000e+00> : vector<2x128xf32>
    %905 = tpu.matmul %904, %5, %cst_341 {dimension_numbers = #tpu.dot_dimension_numbers<[1], [0], [0], [1], [0, 0, 1, 1], [], []>} : vector<2x32xf32>, vector<32x128xf32>, vector<2x128xf32> -> vector<2x128xf32>
    %906 = vector.broadcast %6 : vector<1x128xf32> to vector<2x128xf32>
    %907 = arith.addf %905, %906 : vector<2x128xf32>
    %cst_342 = arith.constant dense<0xFF800000> : vector<2xf32>
    %908 = vector.multi_reduction <maximumf>, %907, %cst_342 [1] : vector<2x128xf32> to vector<2xf32>
    %909 = vector.shape_cast %908 : vector<2xf32> to vector<2x1xf32>
    %910 = vector.broadcast %909 : vector<2x1xf32> to vector<2x128xf32>
    %911 = arith.subf %907, %910 : vector<2x128xf32>
    %912 = math.exp %911 : vector<2x128xf32>
    %cst_343 = arith.constant dense<0.000000e+00> : vector<2xf32>
    %913 = vector.multi_reduction <add>, %912, %cst_343 [1] : vector<2x128xf32> to vector<2xf32>
    %914 = vector.shape_cast %913 : vector<2xf32> to vector<2x1xf32>
    %915 = tpu.reciprocal %914 : vector<2x1xf32> -> vector<2x1xf32>
    %916 = vector.broadcast %915 : vector<2x1xf32> to vector<2x128xf32>
    %917 = arith.mulf %912, %916 : vector<2x128xf32>
    %918 = arith.index_cast %c20_i32 : i32 to index
    %c0_344 = arith.constant 0 : index
    %c0_345 = arith.constant 0 : index
    %919 = vector.load %arg14[%918, %c0_344, %c0_345] : memref<25x2x128xf32, #tpu.memory_space<vmem>>, vector<1x2x128xf32>
    %920 = vector.shape_cast %919 : vector<1x2x128xf32> to vector<2x128xf32>
    %921 = vector.shape_cast %917 : vector<2x128xf32> to vector<1x2x128xf32>
    tpu.vector_store %arg14[%918, %c0_344, %c0_345], %921 {strides = array<i32>} : memref<25x2x128xf32, #tpu.memory_space<vmem>>, vector<1x2x128xf32>,
    %c21_i32 = arith.constant 21 : i32
    %cst_346 = arith.constant dense<0.000000e+00> : vector<2x32xf32>
    %922 = tpu.matmul %917, %2, %cst_346 {dimension_numbers = #tpu.dot_dimension_numbers<[1], [0], [0], [1], [0, 0, 1, 1], [], []>} : vector<2x128xf32>, vector<128x32xf32>, vector<2x32xf32> -> vector<2x32xf32>
    %cst_347 = arith.constant dense<0.000000e+00> : vector<2x32xf32>
    %923 = tpu.matmul %904, %3, %cst_347 {dimension_numbers = #tpu.dot_dimension_numbers<[1], [0], [0], [1], [0, 0, 1, 1], [], []>} : vector<2x32xf32>, vector<32x32xf32>, vector<2x32xf32> -> vector<2x32xf32>
    %924 = arith.addf %922, %923 : vector<2x32xf32>
    %925 = vector.broadcast %4 : vector<1x32xf32> to vector<2x32xf32>
    %926 = arith.addf %924, %925 : vector<2x32xf32>
    %cst_348 = arith.constant dense<0.000000e+00> : vector<2x16xf32>
    %927 = tpu.matmul %904, %117, %cst_348 {dimension_numbers = #tpu.dot_dimension_numbers<[1], [0], [0], [1], [0, 0, 1, 1], [], []>} : vector<2x32xf32>, vector<32x16xf32>, vector<2x16xf32> -> vector<2x16xf32>
    %928 = arith.addf %927, %121 : vector<2x16xf32>
    %cst_349 = arith.constant dense<0xFF800000> : vector<2xf32>
    %929 = vector.multi_reduction <maximumf>, %928, %cst_349 [1] : vector<2x16xf32> to vector<2xf32>
    %930 = vector.shape_cast %929 : vector<2xf32> to vector<2x1xf32>
    %931 = vector.broadcast %930 : vector<2x1xf32> to vector<2x16xf32>
    %932 = arith.subf %928, %931 : vector<2x16xf32>
    %933 = math.exp %932 : vector<2x16xf32>
    %cst_350 = arith.constant dense<0.000000e+00> : vector<2xf32>
    %934 = vector.multi_reduction <add>, %933, %cst_350 [1] : vector<2x16xf32> to vector<2xf32>
    %935 = vector.shape_cast %934 : vector<2xf32> to vector<2x1xf32>
    %936 = tpu.reciprocal %935 : vector<2x1xf32> -> vector<2x1xf32>
    %937 = vector.broadcast %936 : vector<2x1xf32> to vector<2x16xf32>
    %938 = arith.mulf %933, %937 : vector<2x16xf32>
    %cst_351 = arith.constant dense<0.000000e+00> : vector<2x32xf32>
    %939 = tpu.matmul %938, %87, %cst_351 {dimension_numbers = #tpu.dot_dimension_numbers<[1], [0], [0], [1], [0, 0, 1, 1], [], []>} : vector<2x16xf32>, vector<16x32xf32>, vector<2x32xf32> -> vector<2x32xf32>
    %cst_352 = arith.constant dense<0.000000e+00> : vector<2x32xf32>
    %940 = tpu.matmul %939, %1, %cst_352 {dimension_numbers = #tpu.dot_dimension_numbers<[1], [0], [0], [1], [0, 0, 1, 1], [], []>} : vector<2x32xf32>, vector<32x32xf32>, vector<2x32xf32> -> vector<2x32xf32>
    %941 = arith.addf %926, %940 : vector<2x32xf32>
    %942 = math.tanh %941 : vector<2x32xf32>
    %cst_353 = arith.constant dense<0.000000e+00> : vector<2x128xf32>
    %943 = tpu.matmul %942, %5, %cst_353 {dimension_numbers = #tpu.dot_dimension_numbers<[1], [0], [0], [1], [0, 0, 1, 1], [], []>} : vector<2x32xf32>, vector<32x128xf32>, vector<2x128xf32> -> vector<2x128xf32>
    %944 = vector.broadcast %6 : vector<1x128xf32> to vector<2x128xf32>
    %945 = arith.addf %943, %944 : vector<2x128xf32>
    %cst_354 = arith.constant dense<0xFF800000> : vector<2xf32>
    %946 = vector.multi_reduction <maximumf>, %945, %cst_354 [1] : vector<2x128xf32> to vector<2xf32>
    %947 = vector.shape_cast %946 : vector<2xf32> to vector<2x1xf32>
    %948 = vector.broadcast %947 : vector<2x1xf32> to vector<2x128xf32>
    %949 = arith.subf %945, %948 : vector<2x128xf32>
    %950 = math.exp %949 : vector<2x128xf32>
    %cst_355 = arith.constant dense<0.000000e+00> : vector<2xf32>
    %951 = vector.multi_reduction <add>, %950, %cst_355 [1] : vector<2x128xf32> to vector<2xf32>
    %952 = vector.shape_cast %951 : vector<2xf32> to vector<2x1xf32>
    %953 = tpu.reciprocal %952 : vector<2x1xf32> -> vector<2x1xf32>
    %954 = vector.broadcast %953 : vector<2x1xf32> to vector<2x128xf32>
    %955 = arith.mulf %950, %954 : vector<2x128xf32>
    %956 = arith.index_cast %c21_i32 : i32 to index
    %c0_356 = arith.constant 0 : index
    %c0_357 = arith.constant 0 : index
    %957 = vector.load %arg14[%956, %c0_356, %c0_357] : memref<25x2x128xf32, #tpu.memory_space<vmem>>, vector<1x2x128xf32>
    %958 = vector.shape_cast %957 : vector<1x2x128xf32> to vector<2x128xf32>
    %959 = vector.shape_cast %955 : vector<2x128xf32> to vector<1x2x128xf32>
    tpu.vector_store %arg14[%956, %c0_356, %c0_357], %959 {strides = array<i32>} : memref<25x2x128xf32, #tpu.memory_space<vmem>>, vector<1x2x128xf32>,
    %c22_i32 = arith.constant 22 : i32
    %cst_358 = arith.constant dense<0.000000e+00> : vector<2x32xf32>
    %960 = tpu.matmul %955, %2, %cst_358 {dimension_numbers = #tpu.dot_dimension_numbers<[1], [0], [0], [1], [0, 0, 1, 1], [], []>} : vector<2x128xf32>, vector<128x32xf32>, vector<2x32xf32> -> vector<2x32xf32>
    %cst_359 = arith.constant dense<0.000000e+00> : vector<2x32xf32>
    %961 = tpu.matmul %942, %3, %cst_359 {dimension_numbers = #tpu.dot_dimension_numbers<[1], [0], [0], [1], [0, 0, 1, 1], [], []>} : vector<2x32xf32>, vector<32x32xf32>, vector<2x32xf32> -> vector<2x32xf32>
    %962 = arith.addf %960, %961 : vector<2x32xf32>
    %963 = vector.broadcast %4 : vector<1x32xf32> to vector<2x32xf32>
    %964 = arith.addf %962, %963 : vector<2x32xf32>
    %cst_360 = arith.constant dense<0.000000e+00> : vector<2x16xf32>
    %965 = tpu.matmul %942, %117, %cst_360 {dimension_numbers = #tpu.dot_dimension_numbers<[1], [0], [0], [1], [0, 0, 1, 1], [], []>} : vector<2x32xf32>, vector<32x16xf32>, vector<2x16xf32> -> vector<2x16xf32>
    %966 = arith.addf %965, %121 : vector<2x16xf32>
    %cst_361 = arith.constant dense<0xFF800000> : vector<2xf32>
    %967 = vector.multi_reduction <maximumf>, %966, %cst_361 [1] : vector<2x16xf32> to vector<2xf32>
    %968 = vector.shape_cast %967 : vector<2xf32> to vector<2x1xf32>
    %969 = vector.broadcast %968 : vector<2x1xf32> to vector<2x16xf32>
    %970 = arith.subf %966, %969 : vector<2x16xf32>
    %971 = math.exp %970 : vector<2x16xf32>
    %cst_362 = arith.constant dense<0.000000e+00> : vector<2xf32>
    %972 = vector.multi_reduction <add>, %971, %cst_362 [1] : vector<2x16xf32> to vector<2xf32>
    %973 = vector.shape_cast %972 : vector<2xf32> to vector<2x1xf32>
    %974 = tpu.reciprocal %973 : vector<2x1xf32> -> vector<2x1xf32>
    %975 = vector.broadcast %974 : vector<2x1xf32> to vector<2x16xf32>
    %976 = arith.mulf %971, %975 : vector<2x16xf32>
    %cst_363 = arith.constant dense<0.000000e+00> : vector<2x32xf32>
    %977 = tpu.matmul %976, %87, %cst_363 {dimension_numbers = #tpu.dot_dimension_numbers<[1], [0], [0], [1], [0, 0, 1, 1], [], []>} : vector<2x16xf32>, vector<16x32xf32>, vector<2x32xf32> -> vector<2x32xf32>
    %cst_364 = arith.constant dense<0.000000e+00> : vector<2x32xf32>
    %978 = tpu.matmul %977, %1, %cst_364 {dimension_numbers = #tpu.dot_dimension_numbers<[1], [0], [0], [1], [0, 0, 1, 1], [], []>} : vector<2x32xf32>, vector<32x32xf32>, vector<2x32xf32> -> vector<2x32xf32>
    %979 = arith.addf %964, %978 : vector<2x32xf32>
    %980 = math.tanh %979 : vector<2x32xf32>
    %cst_365 = arith.constant dense<0.000000e+00> : vector<2x128xf32>
    %981 = tpu.matmul %980, %5, %cst_365 {dimension_numbers = #tpu.dot_dimension_numbers<[1], [0], [0], [1], [0, 0, 1, 1], [], []>} : vector<2x32xf32>, vector<32x128xf32>, vector<2x128xf32> -> vector<2x128xf32>
    %982 = vector.broadcast %6 : vector<1x128xf32> to vector<2x128xf32>
    %983 = arith.addf %981, %982 : vector<2x128xf32>
    %cst_366 = arith.constant dense<0xFF800000> : vector<2xf32>
    %984 = vector.multi_reduction <maximumf>, %983, %cst_366 [1] : vector<2x128xf32> to vector<2xf32>
    %985 = vector.shape_cast %984 : vector<2xf32> to vector<2x1xf32>
    %986 = vector.broadcast %985 : vector<2x1xf32> to vector<2x128xf32>
    %987 = arith.subf %983, %986 : vector<2x128xf32>
    %988 = math.exp %987 : vector<2x128xf32>
    %cst_367 = arith.constant dense<0.000000e+00> : vector<2xf32>
    %989 = vector.multi_reduction <add>, %988, %cst_367 [1] : vector<2x128xf32> to vector<2xf32>
    %990 = vector.shape_cast %989 : vector<2xf32> to vector<2x1xf32>
    %991 = tpu.reciprocal %990 : vector<2x1xf32> -> vector<2x1xf32>
    %992 = vector.broadcast %991 : vector<2x1xf32> to vector<2x128xf32>
    %993 = arith.mulf %988, %992 : vector<2x128xf32>
    %994 = arith.index_cast %c22_i32 : i32 to index
    %c0_368 = arith.constant 0 : index
    %c0_369 = arith.constant 0 : index
    %995 = vector.load %arg14[%994, %c0_368, %c0_369] : memref<25x2x128xf32, #tpu.memory_space<vmem>>, vector<1x2x128xf32>
    %996 = vector.shape_cast %995 : vector<1x2x128xf32> to vector<2x128xf32>
    %997 = vector.shape_cast %993 : vector<2x128xf32> to vector<1x2x128xf32>
    tpu.vector_store %arg14[%994, %c0_368, %c0_369], %997 {strides = array<i32>} : memref<25x2x128xf32, #tpu.memory_space<vmem>>, vector<1x2x128xf32>,
    %c23_i32 = arith.constant 23 : i32
    %cst_370 = arith.constant dense<0.000000e+00> : vector<2x32xf32>
    %998 = tpu.matmul %993, %2, %cst_370 {dimension_numbers = #tpu.dot_dimension_numbers<[1], [0], [0], [1], [0, 0, 1, 1], [], []>} : vector<2x128xf32>, vector<128x32xf32>, vector<2x32xf32> -> vector<2x32xf32>
    %cst_371 = arith.constant dense<0.000000e+00> : vector<2x32xf32>
    %999 = tpu.matmul %980, %3, %cst_371 {dimension_numbers = #tpu.dot_dimension_numbers<[1], [0], [0], [1], [0, 0, 1, 1], [], []>} : vector<2x32xf32>, vector<32x32xf32>, vector<2x32xf32> -> vector<2x32xf32>
    %1000 = arith.addf %998, %999 : vector<2x32xf32>
    %1001 = vector.broadcast %4 : vector<1x32xf32> to vector<2x32xf32>
    %1002 = arith.addf %1000, %1001 : vector<2x32xf32>
    %cst_372 = arith.constant dense<0.000000e+00> : vector<2x16xf32>
    %1003 = tpu.matmul %980, %117, %cst_372 {dimension_numbers = #tpu.dot_dimension_numbers<[1], [0], [0], [1], [0, 0, 1, 1], [], []>} : vector<2x32xf32>, vector<32x16xf32>, vector<2x16xf32> -> vector<2x16xf32>
    %1004 = arith.addf %1003, %121 : vector<2x16xf32>
    %cst_373 = arith.constant dense<0xFF800000> : vector<2xf32>
    %1005 = vector.multi_reduction <maximumf>, %1004, %cst_373 [1] : vector<2x16xf32> to vector<2xf32>
    %1006 = vector.shape_cast %1005 : vector<2xf32> to vector<2x1xf32>
    %1007 = vector.broadcast %1006 : vector<2x1xf32> to vector<2x16xf32>
    %1008 = arith.subf %1004, %1007 : vector<2x16xf32>
    %1009 = math.exp %1008 : vector<2x16xf32>
    %cst_374 = arith.constant dense<0.000000e+00> : vector<2xf32>
    %1010 = vector.multi_reduction <add>, %1009, %cst_374 [1] : vector<2x16xf32> to vector<2xf32>
    %1011 = vector.shape_cast %1010 : vector<2xf32> to vector<2x1xf32>
    %1012 = tpu.reciprocal %1011 : vector<2x1xf32> -> vector<2x1xf32>
    %1013 = vector.broadcast %1012 : vector<2x1xf32> to vector<2x16xf32>
    %1014 = arith.mulf %1009, %1013 : vector<2x16xf32>
    %cst_375 = arith.constant dense<0.000000e+00> : vector<2x32xf32>
    %1015 = tpu.matmul %1014, %87, %cst_375 {dimension_numbers = #tpu.dot_dimension_numbers<[1], [0], [0], [1], [0, 0, 1, 1], [], []>} : vector<2x16xf32>, vector<16x32xf32>, vector<2x32xf32> -> vector<2x32xf32>
    %cst_376 = arith.constant dense<0.000000e+00> : vector<2x32xf32>
    %1016 = tpu.matmul %1015, %1, %cst_376 {dimension_numbers = #tpu.dot_dimension_numbers<[1], [0], [0], [1], [0, 0, 1, 1], [], []>} : vector<2x32xf32>, vector<32x32xf32>, vector<2x32xf32> -> vector<2x32xf32>
    %1017 = arith.addf %1002, %1016 : vector<2x32xf32>
    %1018 = math.tanh %1017 : vector<2x32xf32>
    %cst_377 = arith.constant dense<0.000000e+00> : vector<2x128xf32>
    %1019 = tpu.matmul %1018, %5, %cst_377 {dimension_numbers = #tpu.dot_dimension_numbers<[1], [0], [0], [1], [0, 0, 1, 1], [], []>} : vector<2x32xf32>, vector<32x128xf32>, vector<2x128xf32> -> vector<2x128xf32>
    %1020 = vector.broadcast %6 : vector<1x128xf32> to vector<2x128xf32>
    %1021 = arith.addf %1019, %1020 : vector<2x128xf32>
    %cst_378 = arith.constant dense<0xFF800000> : vector<2xf32>
    %1022 = vector.multi_reduction <maximumf>, %1021, %cst_378 [1] : vector<2x128xf32> to vector<2xf32>
    %1023 = vector.shape_cast %1022 : vector<2xf32> to vector<2x1xf32>
    %1024 = vector.broadcast %1023 : vector<2x1xf32> to vector<2x128xf32>
    %1025 = arith.subf %1021, %1024 : vector<2x128xf32>
    %1026 = math.exp %1025 : vector<2x128xf32>
    %cst_379 = arith.constant dense<0.000000e+00> : vector<2xf32>
    %1027 = vector.multi_reduction <add>, %1026, %cst_379 [1] : vector<2x128xf32> to vector<2xf32>
    %1028 = vector.shape_cast %1027 : vector<2xf32> to vector<2x1xf32>
    %1029 = tpu.reciprocal %1028 : vector<2x1xf32> -> vector<2x1xf32>
    %1030 = vector.broadcast %1029 : vector<2x1xf32> to vector<2x128xf32>
    %1031 = arith.mulf %1026, %1030 : vector<2x128xf32>
    %1032 = arith.index_cast %c23_i32 : i32 to index
    %c0_380 = arith.constant 0 : index
    %c0_381 = arith.constant 0 : index
    %1033 = vector.load %arg14[%1032, %c0_380, %c0_381] : memref<25x2x128xf32, #tpu.memory_space<vmem>>, vector<1x2x128xf32>
    %1034 = vector.shape_cast %1033 : vector<1x2x128xf32> to vector<2x128xf32>
    %1035 = vector.shape_cast %1031 : vector<2x128xf32> to vector<1x2x128xf32>
    tpu.vector_store %arg14[%1032, %c0_380, %c0_381], %1035 {strides = array<i32>} : memref<25x2x128xf32, #tpu.memory_space<vmem>>, vector<1x2x128xf32>,
    %c24_i32 = arith.constant 24 : i32
    %cst_382 = arith.constant dense<0.000000e+00> : vector<2x32xf32>
    %1036 = tpu.matmul %1031, %2, %cst_382 {dimension_numbers = #tpu.dot_dimension_numbers<[1], [0], [0], [1], [0, 0, 1, 1], [], []>} : vector<2x128xf32>, vector<128x32xf32>, vector<2x32xf32> -> vector<2x32xf32>
    %cst_383 = arith.constant dense<0.000000e+00> : vector<2x32xf32>
    %1037 = tpu.matmul %1018, %3, %cst_383 {dimension_numbers = #tpu.dot_dimension_numbers<[1], [0], [0], [1], [0, 0, 1, 1], [], []>} : vector<2x32xf32>, vector<32x32xf32>, vector<2x32xf32> -> vector<2x32xf32>
    %1038 = arith.addf %1036, %1037 : vector<2x32xf32>
    %1039 = vector.broadcast %4 : vector<1x32xf32> to vector<2x32xf32>
    %1040 = arith.addf %1038, %1039 : vector<2x32xf32>
    %cst_384 = arith.constant dense<0.000000e+00> : vector<2x16xf32>
    %1041 = tpu.matmul %1018, %117, %cst_384 {dimension_numbers = #tpu.dot_dimension_numbers<[1], [0], [0], [1], [0, 0, 1, 1], [], []>} : vector<2x32xf32>, vector<32x16xf32>, vector<2x16xf32> -> vector<2x16xf32>
    %1042 = arith.addf %1041, %121 : vector<2x16xf32>
    %cst_385 = arith.constant dense<0xFF800000> : vector<2xf32>
    %1043 = vector.multi_reduction <maximumf>, %1042, %cst_385 [1] : vector<2x16xf32> to vector<2xf32>
    %1044 = vector.shape_cast %1043 : vector<2xf32> to vector<2x1xf32>
    %1045 = vector.broadcast %1044 : vector<2x1xf32> to vector<2x16xf32>
    %1046 = arith.subf %1042, %1045 : vector<2x16xf32>
    %1047 = math.exp %1046 : vector<2x16xf32>
    %cst_386 = arith.constant dense<0.000000e+00> : vector<2xf32>
    %1048 = vector.multi_reduction <add>, %1047, %cst_386 [1] : vector<2x16xf32> to vector<2xf32>
    %1049 = vector.shape_cast %1048 : vector<2xf32> to vector<2x1xf32>
    %1050 = tpu.reciprocal %1049 : vector<2x1xf32> -> vector<2x1xf32>
    %1051 = vector.broadcast %1050 : vector<2x1xf32> to vector<2x16xf32>
    %1052 = arith.mulf %1047, %1051 : vector<2x16xf32>
    %cst_387 = arith.constant dense<0.000000e+00> : vector<2x32xf32>
    %1053 = tpu.matmul %1052, %87, %cst_387 {dimension_numbers = #tpu.dot_dimension_numbers<[1], [0], [0], [1], [0, 0, 1, 1], [], []>} : vector<2x16xf32>, vector<16x32xf32>, vector<2x32xf32> -> vector<2x32xf32>
    %cst_388 = arith.constant dense<0.000000e+00> : vector<2x32xf32>
    %1054 = tpu.matmul %1053, %1, %cst_388 {dimension_numbers = #tpu.dot_dimension_numbers<[1], [0], [0], [1], [0, 0, 1, 1], [], []>} : vector<2x32xf32>, vector<32x32xf32>, vector<2x32xf32> -> vector<2x32xf32>
    %1055 = arith.addf %1040, %1054 : vector<2x32xf32>
    %1056 = math.tanh %1055 : vector<2x32xf32>
    %cst_389 = arith.constant dense<0.000000e+00> : vector<2x128xf32>
    %1057 = tpu.matmul %1056, %5, %cst_389 {dimension_numbers = #tpu.dot_dimension_numbers<[1], [0], [0], [1], [0, 0, 1, 1], [], []>} : vector<2x32xf32>, vector<32x128xf32>, vector<2x128xf32> -> vector<2x128xf32>
    %1058 = vector.broadcast %6 : vector<1x128xf32> to vector<2x128xf32>
    %1059 = arith.addf %1057, %1058 : vector<2x128xf32>
    %cst_390 = arith.constant dense<0xFF800000> : vector<2xf32>
    %1060 = vector.multi_reduction <maximumf>, %1059, %cst_390 [1] : vector<2x128xf32> to vector<2xf32>
    %1061 = vector.shape_cast %1060 : vector<2xf32> to vector<2x1xf32>
    %1062 = vector.broadcast %1061 : vector<2x1xf32> to vector<2x128xf32>
    %1063 = arith.subf %1059, %1062 : vector<2x128xf32>
    %1064 = math.exp %1063 : vector<2x128xf32>
    %cst_391 = arith.constant dense<0.000000e+00> : vector<2xf32>
    %1065 = vector.multi_reduction <add>, %1064, %cst_391 [1] : vector<2x128xf32> to vector<2xf32>
    %1066 = vector.shape_cast %1065 : vector<2xf32> to vector<2x1xf32>
    %1067 = tpu.reciprocal %1066 : vector<2x1xf32> -> vector<2x1xf32>
    %1068 = vector.broadcast %1067 : vector<2x1xf32> to vector<2x128xf32>
    %1069 = arith.mulf %1064, %1068 : vector<2x128xf32>
    %1070 = arith.index_cast %c24_i32 : i32 to index
    %c0_392 = arith.constant 0 : index
    %c0_393 = arith.constant 0 : index
    %1071 = vector.load %arg14[%1070, %c0_392, %c0_393] : memref<25x2x128xf32, #tpu.memory_space<vmem>>, vector<1x2x128xf32>
    %1072 = vector.shape_cast %1071 : vector<1x2x128xf32> to vector<2x128xf32>
    %1073 = vector.shape_cast %1069 : vector<2x128xf32> to vector<1x2x128xf32>
    tpu.vector_store %arg14[%1070, %c0_392, %c0_393], %1073 {strides = array<i32>} : memref<25x2x128xf32, #tpu.memory_space<vmem>>, vector<1x2x128xf32>,
    %c25_i32 = arith.constant 25 : i32
    return
  }
}

</mosaic_0001>

<bundles_post_ra>
// kernel: encoder_decoder_forward.1
= control target key start
LH: loop header
LB: loop body
LE: loop exit
PB: predicated region body
PF: predicated region fallthrough
CT: control target
= control target key end

     0   :  { %vm93_vm0 = vcmask 130048   ;;  %v16443_v5 = vmov 0.0   ;;  %s19895_s0 = inlined_call_operand.vmem [shape: f32[16,16], index: 0, kind: input, shape index: {}]   ;;  %s19896_s1 = inlined_call_operand.vmem [shape: f32[16,32], index: 1, kind: input, shape index: {}]   ;;  %s19897_s2 = inlined_call_operand.vmem [shape: f32[32,32], index: 2, kind: input, shape index: {}]   ;;  %s19898_s3 = inlined_call_operand.vmem [shape: f32[1,32], index: 3, kind: input, shape index: {}]   ;;  %s19899_s4 = inlined_call_operand.vmem [shape: f32[32,32], index: 4, kind: input, shape index: {}]   ;;  %s19900_s5 = inlined_call_operand.vmem [shape: f32[1,32], index: 5, kind: input, shape index: {}]   ;;  %s19901_s6 = inlined_call_operand.vmem [shape: f32[32,32], index: 6, kind: input, shape index: {}]   ;;  %s19902_s7 = inlined_call_operand.vmem [shape: f32[1,32], index: 7, kind: input, shape index: {}]   ;;  %s19903_s8 = inlined_call_operand.vmem [shape: f32[32,32], index: 8, kind: input, shape index: {}]   ;;  %s19904_s9 = inlined_call_operand.vmem [shape: f32[128,32], index: 9, kind: input, shape index: {}]   ;;  %s19905_s10 = inlined_call_operand.vmem [shape: f32[32,32], index: 10, kind: input, shape index: {}]   ;;  %s19906_s11 = inlined_call_operand.vmem [shape: f32[1,32], index: 11, kind: input, shape index: {}]   ;;  %s19907_s12 = inlined_call_operand.vmem [shape: f32[32,128], index: 12, kind: input, shape index: {}]   ;;  %s19908_s13 = inlined_call_operand.vmem [shape: f32[1,128], index: 13, kind: input, shape index: {}]   ;;  %s19909_s14 = inlined_call_operand.hbm [shape: f32[25,2,128], index: 14, kind: output, shape index: {}]  }
   0x1   :  { %v85_v0 = vld [vmem:[%s19896_s1 + $0x8] sm:$0xff]  ;;  %v84_v1 = vld [vmem:[%s19896_s1] sm:$0xff]  ;;  %v16537_v3 = vld [vmem:[%s19897_s2 + $0x18] sm:$0xff]  ;;  %13735 = vmatprep.subr.mxu1 %v16443_v5 }
   0x2   :  { %v82_v2 = vld [vmem:[%s19895_s0] sm:$0xff]  ;;  %13728 = vmatprep.subr.mxu0 %v85_v0  ;;  %v83_v4 = vld [vmem:[%s19895_s0 + $0x8] sm:$0xff]  ;;  %v16546_v6 = vld [vmem:[%s19897_s2 + $0x10] sm:$0xff] }
   0x3   :  { %13732 = vmatprep.mubr.msk.f32.mxu0 %vm93_vm0, %v82_v2  ;;  %13729 = vmatpush3.msra.mxu0 %v85_v0 }
   0x4   :  { %19 = vsyncpa [#allocation5], 0  ;;  %13730 = vmatprep.subr.mxu0 %v84_v1  ;;  %13736 = vmatpush3.msra.mxu1 %v16537_v3  ;;  %v16553_v7 = vld [vmem:[%s19897_s2 + $0x8] sm:$0xff]  ;;  %v16561_v8 = vld [vmem:[%s19897_s2] sm:$0xff]  ;;  %vm16444_vm1 = vmmov 0   ;;  %vm175_vm2 = vcmask 261120  }
   0x5   :  { %13731 = vmatpush3.msra.mxu0 %v84_v1  ;;  %13737 = vmatprep.subr.mxu1 %v16443_v5  ;;  %v12522_v9 = vld [vmem:[%s19898_s3] ss:$0 sm:$0xff]  ;;  %vm254_vm3 = vcmask 254976   ;;  %v800_v50 = vld [vmem:[%s19899_s4 + $0x18] sm:$0xff]  ;;  %v799_v51 = vld [vmem:[%s19899_s4 + $0x10] sm:$0xff]  ;;  %vm1310_vm5 = vcmask 123904  }
   0x6   :  { %13733 = vmatmul.mubr.msk.f32.vlgmr.msra.gmra.mxu0 %vm93_vm0, %v83_v4  ;;  %13738 = vmatpush3.msra.mxu1 %v16546_v6  ;;  %v798_v52 = vld [vmem:[%s19899_s4 + $0x8] sm:$0xff]  ;;  %v797_v53 = vld [vmem:[%s19899_s4] sm:$0xff]  ;;  %v16706_v4 = vld [vmem:[%s19904_s9 + $0x78] sm:$0xff]  ;;  %vm1549_vm6 = vcmask 1041408   ;;  %s16446_s21 = smov [#allocation4]  }
   0x7   :  { %13739 = vmatprep.subr.mxu1 %v16443_v5  ;;  %13743 = vmatprep.mubr.msk.f32.mxu1 %vm16444_vm1, %v16443_v5  ;;  %v907_v60 = vld [vmem:[%s19901_s6] sm:$0xff]  ;;  %s12511_s22 = sshll.u32 %s16446_s21, 4  ;;  %s12512_s22 = int_to_ptr.vmem [resolvable:$true] %s12511_s22 }
   0x8   :  { %13740 = vmatpush3.msra.mxu1 %v16553_v7  ;;  %13746 = vmatprep.subr.mxu0 %v16443_v5  ;;  %v12532_v61 = vld [vmem:[%s19900_s5] ss:$0 sm:$0xff]  ;;  %p16426_p1 = scmp.lt.s32.totalorder %s12512_s22, %s12512_s22 }
   0x9   :  { %13741 = vmatprep.subr.mxu1 %v16443_v5  ;;  %13747 = vmatpush3.msra.mxu0 %v16537_v3  ;;  %v1014_v2 = vld [vmem:[%s19902_s7] sm:$0x1] }
   0xa   :  { %13742 = vmatpush3.msra.mxu1 %v16561_v8  ;;  %13748 = vmatprep.subr.mxu0 %v16443_v5 }
   0xb   :  { %13744 = vmatmul.mubr.f32.vlgmr.msra.gmra.mxu1 %v16443_v5  ;;  %13749 = vmatpush3.msra.mxu0 %v16546_v6 }
   0xc   :  { %13750 = vmatprep.subr.mxu0 %v16443_v5  ;;  %13754 = vmatprep.mubr.msk.f32.mxu0 %vm16444_vm1, %v16443_v5 }
   0xd   :  { %13751 = vmatpush3.msra.mxu0 %v16553_v7  ;;  %13757 = vmatprep.subr.mxu1 %v16443_v5 }
   0xe   :  { %13752 = vmatprep.subr.mxu0 %v16443_v5  ;;  %13758 = vmatpush3.msra.mxu1 %v16537_v3 }
   0xf   :  { %13753 = vmatpush3.msra.mxu0 %v16561_v8  ;;  %13759 = vmatprep.subr.mxu1 %v16443_v5 }
  0x10   :  { %13760 = vmatpush3.msra.mxu1 %v16546_v6  ;;  %13765 = vmatprep.mubr.msk.f32.mxu1 %vm16444_vm1, %v16443_v5 }
  0x11   :  { %13761 = vmatprep.subr.mxu1 %v16443_v5  ;;  %13768 = vmatprep.subr.mxu0 %v16443_v5 }
  0x12   :  { %13762 = vmatpush3.msra.mxu1 %v16553_v7 }
  0x13   :  { %13763 = vmatprep.subr.mxu1 %v16443_v5 }
  0x14   :  { %13764 = vmatpush3.msra.mxu1 %v16561_v8 }
  0x15   :  { %13779 = vmatprep.subr.mxu1 %v16443_v5 }
  0xc6   :  { %v13734_v10 = vpop.f32.mrf.mxu0 }
  0xc7   :  { %v172_v11 = vadd.f32 %v13734_v10, %v12522_v9  ;;  %v16733_v10 = vld [vmem:[%s19904_s9 + $0x68] sm:$0xff] }
  0xc8   :  { %v166_v12 = vpop.f32.mrf.mxu0 }
  0xc9   :  { %177 = vst.msk [vmem:[#allocation3 + $0x8] sm:$0xff] %vm175_vm2, %v172_v11  ;;  %v167_v13 = vadd.f32 %v12522_v9, %v166_v12  ;;  %v910_v9 = vld [vmem:[%s19901_s6 + $0x18] sm:$0xff]  ;;  %v16740_v11 = vld [vmem:[%s19905_s10 + $0x10] sm:$0xff]  ;;  %v16746_v12 = vld [vmem:[%s19904_s9 + $0x60] sm:$0xff] }
  0xcb   :  { %176 = vst.msk [vmem:[#allocation3] sm:$0xff] %vm175_vm2, %v167_v13  ;;  %v248_v14 = vpop.f32.mrf.mxu1  ;;  %v16755_v13 = vld [vmem:[%s19904_s9 + $0x58] sm:$0xff] }
  0xcd   :  { %v13745_v15 = vpop.f32.mrf.mxu1 }
  0xce   :  { %v16775_v15 = vld [vmem:[%s19904_s9 + $0x48] sm:$0xff] }
  0xd0   :  { %v487_v34 = vld [vmem:[#allocation3 + $0x8] sm:$0x3]  ;;  %v564_v39 = vld [vmem:[#allocation3 + $0xa] sm:$0x3]  ;;  %v641_v45 = vld [vmem:[#allocation3 + $0xc] sm:$0x3] }
  0xd1   :  { %v718_v54 = vld [vmem:[#allocation3 + $0xe] sm:$0x3] }
  0xd2   :  { %v178_v16 = vld [vmem:[#allocation3] sm:$0x3]  ;;  %v256_v19 = vld [vmem:[#allocation3 + $0x2] sm:$0x3]  ;;  %v333_v24 = vld [vmem:[#allocation3 + $0x4] sm:$0x3] }
  0xd3   :  { %v252_v17 = vadd.f32 %v248_v14, %v178_v16  ;;  %v410_v29 = vld [vmem:[#allocation3 + $0x6] sm:$0x3]  ;;  %v16782_v16 = vld [vmem:[%s19904_s9 + $0x40] sm:$0xff] }
  0xd4   :  { %v16764_v14 = vld [vmem:[%s19904_s9 + $0x50] sm:$0xff] }
  0xd5   :  { %16007 = vtanh.f32 %v252_v17  ;;  %v16789_v17 = vld [vmem:[%s19904_s9 + $0x38] sm:$0xff] }
  0xe2   :  { %v16008_v18 = vpop.eup %16007 }
  0xe3   :  { %255 = vst.msk [vmem:[#allocation2] sm:$0x3] %vm254_vm3, %v16008_v18  ;;  %13755 = vmatmul.mubr.msk.f32.vlgmr.msra.gmra.mxu0 %vm175_vm2, %v16008_v18  ;;  %v16796_v18 = vld [vmem:[%s19904_s9 + $0x30] sm:$0xff] }
  0xe4   :  { %13769 = vmatpush3.msra.mxu0 %v16537_v3  ;;  %13776 = vmatprep.mubr.msk.f32.mxu0 %vm16444_vm1, %v16443_v5 }
  0xe5   :  { %13770 = vmatprep.subr.mxu0 %v16443_v5 }
  0xe6   :  { %13771 = vmatpush3.msra.mxu0 %v16546_v6 }
  0xe7   :  { %13772 = vmatprep.subr.mxu0 %v16443_v5 }
  0xe8   :  { %13773 = vmatpush3.msra.mxu0 %v16553_v7 }
  0xe9   :  { %13774 = vmatprep.subr.mxu0 %v16443_v5 }
  0xea   :  { %13775 = vmatpush3.msra.mxu0 %v16561_v8 }
  0xeb   :  { %13790 = vmatprep.subr.mxu0 %v16443_v5 }
 0x1a3   :  { %v326_v20 = vpop.f32.mrf.mxu0 }
 0x1a4   :  { %v330_v21 = vadd.f32 %v326_v20, %v256_v19  ;;  %v16803_v19 = vld [vmem:[%s19904_s9 + $0x28] sm:$0xff]  ;;  %v16810_v20 = vld [vmem:[%s19904_s9 + $0x20] sm:$0xff] }
 0x1a5   :  { %v13756_v22 = vpop.f32.mrf.mxu0 }
 0x1a6   :  { %16009 = vtanh.f32 %v330_v21  ;;  %v16817_v21 = vld [vmem:[%s19904_s9 + $0x18] sm:$0xff]  ;;  %v16826_v22 = vld [vmem:[%s19905_s10 + $0x8] sm:$0xff] }
 0x1b3   :  { %v16010_v23 = vpop.eup %16009 }
 0x1b4   :  { %332 = vst.msk [vmem:[#allocation2 + $0x2] sm:$0x3] %vm254_vm3, %v16010_v23  ;;  %13766 = vmatmul.mubr.msk.f32.vlgmr.msra.gmra.mxu1 %vm175_vm2, %v16010_v23  ;;  %v16831_v23 = vld [vmem:[%s19904_s9 + $0x10] sm:$0xff] }
 0x1b5   :  { %13780 = vmatpush3.msra.mxu1 %v16537_v3  ;;  %13787 = vmatprep.mubr.msk.f32.mxu1 %vm16444_vm1, %v16443_v5 }
 0x1b6   :  { %13781 = vmatprep.subr.mxu1 %v16443_v5 }
 0x1b7   :  { %13782 = vmatpush3.msra.mxu1 %v16546_v6 }
 0x1b8   :  { %13783 = vmatprep.subr.mxu1 %v16443_v5 }
 0x1b9   :  { %13784 = vmatpush3.msra.mxu1 %v16553_v7 }
 0x1ba   :  { %13785 = vmatprep.subr.mxu1 %v16443_v5 }
 0x1bb   :  { %13786 = vmatpush3.msra.mxu1 %v16561_v8 }
 0x1bc   :  { %13801 = vmatprep.subr.mxu1 %v16443_v5 }
 0x274   :  { %v403_v25 = vpop.f32.mrf.mxu1 }
 0x275   :  { %v407_v26 = vadd.f32 %v403_v25, %v333_v24  ;;  %v16840_v24 = vld [vmem:[%s19905_s10] sm:$0xff]  ;;  %v16845_v25 = vld [vmem:[%s19904_s9 + $0x8] sm:$0xff] }
 0x276   :  { %v13767_v27 = vpop.f32.mrf.mxu1 }
 0x277   :  { %16011 = vtanh.f32 %v407_v26  ;;  %v16854_v26 = vld [vmem:[%s19904_s9] sm:$0xff] }
 0x284   :  { %v16012_v28 = vpop.eup %16011 }
 0x285   :  { %409 = vst.msk [vmem:[#allocation2 + $0x4] sm:$0x3] %vm254_vm3, %v16012_v28  ;;  %13777 = vmatmul.mubr.msk.f32.vlgmr.msra.gmra.mxu0 %vm175_vm2, %v16012_v28 }
 0x286   :  { %13791 = vmatpush3.msra.mxu0 %v16537_v3  ;;  %13798 = vmatprep.mubr.msk.f32.mxu0 %vm16444_vm1, %v16443_v5 }
 0x287   :  { %13792 = vmatprep.subr.mxu0 %v16443_v5 }
 0x288   :  { %13793 = vmatpush3.msra.mxu0 %v16546_v6 }
 0x289   :  { %13794 = vmatprep.subr.mxu0 %v16443_v5 }
 0x28a   :  { %13795 = vmatpush3.msra.mxu0 %v16553_v7 }
 0x28b   :  { %13796 = vmatprep.subr.mxu0 %v16443_v5 }
 0x28c   :  { %13797 = vmatpush3.msra.mxu0 %v16561_v8 }
 0x28d   :  { %13812 = vmatprep.subr.mxu0 %v16443_v5 }
 0x345   :  { %v480_v30 = vpop.f32.mrf.mxu0 }
 0x346   :  { %v484_v31 = vadd.f32 %v480_v30, %v410_v29 }
 0x347   :  { %v13778_v32 = vpop.f32.mrf.mxu0 }
 0x348   :  { %16013 = vtanh.f32 %v484_v31 }
 0x355   :  { %v16014_v33 = vpop.eup %16013 }
 0x356   :  { %486 = vst.msk [vmem:[#allocation2 + $0x6] sm:$0x3] %vm254_vm3, %v16014_v33  ;;  %13788 = vmatmul.mubr.msk.f32.vlgmr.msra.gmra.mxu1 %vm175_vm2, %v16014_v33 }
 0x357   :  { %13802 = vmatpush3.msra.mxu1 %v16537_v3  ;;  %13809 = vmatprep.mubr.msk.f32.mxu1 %vm16444_vm1, %v16443_v5 }
 0x358   :  { %13803 = vmatprep.subr.mxu1 %v16443_v5 }
 0x359   :  { %13804 = vmatpush3.msra.mxu1 %v16546_v6 }
 0x35a   :  { %13805 = vmatprep.subr.mxu1 %v16443_v5 }
 0x35b   :  { %13806 = vmatpush3.msra.mxu1 %v16553_v7 }
 0x35c   :  { %13807 = vmatprep.subr.mxu1 %v16443_v5 }
 0x35d   :  { %13808 = vmatpush3.msra.mxu1 %v16561_v8  ;;  %v16654_v44 = vld [vmem:[#allocation2] sm:$0xff] }
 0x35e   :  { %13823 = vmatprep.subr.mxu1 %v800_v50 }
 0x416   :  { %v557_v35 = vpop.f32.mrf.mxu1 }
 0x417   :  { %v561_v36 = vadd.f32 %v557_v35, %v487_v34 }
 0x418   :  { %v13789_v37 = vpop.f32.mrf.mxu1 }
 0x419   :  { %16015 = vtanh.f32 %v561_v36 }
 0x426   :  { %v16016_v38 = vpop.eup %16015 }
 0x427   :  { %563 = vst.msk [vmem:[#allocation2 + $0x8] sm:$0x3] %vm254_vm3, %v16016_v38  ;;  %13799 = vmatmul.mubr.msk.f32.vlgmr.msra.gmra.mxu0 %vm175_vm2, %v16016_v38  ;;  %v889_v38 = vlaneseq }
 0x428   :  { %13813 = vmatpush3.msra.mxu0 %v16537_v3  ;;  %13820 = vmatprep.mubr.msk.f32.mxu0 %vm16444_vm1, %v16443_v5  ;;  %v908_v3 = vld [vmem:[%s19901_s6 + $0x8] sm:$0xff] }
 0x429   :  { %13814 = vmatprep.subr.mxu0 %v16443_v5 }
 0x42a   :  { %13815 = vmatpush3.msra.mxu0 %v16546_v6  ;;  %v909_v6 = vld [vmem:[%s19901_s6 + $0x10] sm:$0xff] }
 0x42b   :  { %13816 = vmatprep.subr.mxu0 %v16443_v5 }
 0x42c   :  { %13817 = vmatpush3.msra.mxu0 %v16553_v7  ;;  %v16716_v7 = vld [vmem:[%s19904_s9 + $0x70] sm:$0xff] }
 0x42d   :  { %13818 = vmatprep.subr.mxu0 %v16443_v5 }
 0x42e   :  { %13819 = vmatpush3.msra.mxu0 %v16561_v8  ;;  %v16721_v8 = vld [vmem:[%s19905_s10 + $0x18] sm:$0xff] }
 0x4e7   :  { %v634_v40 = vpop.f32.mrf.mxu0 }
 0x4e8   :  { %v638_v41 = vadd.f32 %v634_v40, %v564_v39  ;;  %v892_v39 = vand.u32 127, %v889_v38  ;;  %v890_v40 = vshrl.u32 %v889_v38, 7 }
 0x4e9   :  { %v13800_v42 = vpop.f32.mrf.mxu0 }
 0x4ea   :  { %16017 = vtanh.f32 %v638_v41  ;;  %v897_v41 = vand.u32 1, %v892_v39  ;;  %v1090_v42 = vsub.s32 0, %v890_v40 }
 0x4ec   :  { %vm905_vm4 = vcmp.eq.s32.totalorder %v897_v41, %v890_v40 }
 0x4f7   :  { %v16018_v43 = vpop.eup %16017 }
 0x4f8   :  { %640 = vst.msk [vmem:[#allocation2 + $0xa] sm:$0x3] %vm254_vm3, %v16018_v43  ;;  %13810 = vmatmul.mubr.msk.f32.vlgmr.msra.gmra.mxu1 %vm175_vm2, %v16018_v43 }
 0x4f9   :  { %13831 = vmatprep.mubr.msk.f32.mxu1 %vm175_vm2, %v16654_v44  ;;  %13824 = vmatpush3.msra.mxu1 %v800_v50 }
 0x4fa   :  { %13825 = vmatprep.subr.mxu1 %v799_v51 }
 0x4fb   :  { %13826 = vmatpush3.msra.mxu1 %v799_v51 }
 0x4fc   :  { %13827 = vmatprep.subr.mxu1 %v798_v52 }
 0x4fd   :  { %13828 = vmatpush3.msra.mxu1 %v798_v52 }
 0x4fe   :  { %13829 = vmatprep.subr.mxu1 %v797_v53 }
 0x4ff   :  { %13830 = vmatpush3.msra.mxu1 %v797_v53 }
 0x500   :  { %13844 = vmatprep.subr.mxu1 %v16443_v5 }
 0x5b8   :  { %v711_v46 = vpop.f32.mrf.mxu1 }
 0x5b9   :  { %v715_v47 = vadd.f32 %v711_v46, %v641_v45  ;;  %v16445_v45 = vmov -1e+30  }
 0x5ba   :  { %v13811_v48 = vpop.f32.mrf.mxu1  ;;  %v906_v46 = vsel %vm905_vm4, 0.0, %v16445_v45 }
 0x5bb   :  { %16019 = vtanh.f32 %v715_v47 }
 0x5c8   :  { %v16020_v49 = vpop.eup %16019 }
 0x5c9   :  { %717 = vst.msk [vmem:[#allocation2 + $0xc] sm:$0x3] %vm254_vm3, %v16020_v49  ;;  %13821 = vmatmul.mubr.msk.f32.vlgmr.msra.gmra.mxu0 %vm175_vm2, %v16020_v49 }
 0x5ca   :  { %13838 = vmatprep.mubr.msk.f32.mxu0 %vm175_vm2, %v907_v60 }
 0x689   :  { %v788_v55 = vpop.f32.mrf.mxu0 }
 0x68a   :  { %v792_v56 = vadd.f32 %v788_v55, %v718_v54 }
 0x68b   :  { %v13822_v57 = vpop.f32.mrf.mxu0 }
 0x68c   :  { %16021 = vtanh.f32 %v792_v56 }
 0x699   :  { %v16022_v58 = vpop.eup %16021 }
 0x69a   :  { %794 = vst.msk [vmem:[#allocation2 + $0xe] sm:$0x3] %vm254_vm3, %v16022_v58 }
 0x6a1   :  { %v16676_v59 = vld [vmem:[#allocation2 + $0x8] sm:$0xff] }
 0x6a2   :  { %13832 = vmatmul.mubr.msk.f32.vlgmr.msra.gmra.mxu1 %vm175_vm2, %v16676_v59 }
 0x6a3   :  { %13848 = vmatprep.mubr.msk.f32.mxu1 %vm16444_vm1, %v16443_v5 }
 0x762   :  { %v13833_v62 = vpop.f32.mrf.mxu1 }
 0x763   :  { %v886_v63 = vadd.f32 %v13833_v62, %v12532_v61  ;;  %v16933_v62 = vld [vmem:[%s19903_s8 + $0x10] sm:$0xff] }
 0x764   :  { %v880_v0 = vpop.f32.mrf.mxu1 }
 0x765   :  { %v881_v1 = vadd.f32 %v12532_v61, %v880_v0  ;;  %13834 = vmatprep.subr.msk.mxu0 %vm175_vm2, %v886_v63  ;;  %13845 = vmatpush3.xpose.msk.msra.mxu1 %vm175_vm2, %v886_v63  ;;  %v16927_v61 = vld [vmem:[%s19903_s8 + $0x18] sm:$0xff]  ;;  %v16951_v0 = vld [vmem:[%s19903_s8] sm:$0xff] }
 0x766   :  { %13835 = vmatpush3.xpose.msk.msra.mxu0 %vm175_vm2, %v886_v63  ;;  %13846 = vmatprep.subr.mxu1 %v16443_v5  ;;  %v16942_v63 = vld [vmem:[%s19903_s8 + $0x8] sm:$0xff] }
 0x767   :  { %13836 = vmatprep.subr.msk.mxu0 %vm175_vm2, %v881_v1 }
 0x769   :  { %13847 = vmatpush3.xpose.msk.msra.mxu1 %vm175_vm2, %v881_v1 }
 0x76a   :  { %13837 = vmatpush3.xpose.msk.msra.mxu0 %vm175_vm2, %v881_v1  ;;  %13862 = vmatprep.subr.mxu1 %v16443_v5 }
 0x76b   :  { %13851 = vmatprep.subr.mxu0 %v16443_v5 }
 0x76c   :  { %13849 = vmatmul.mubr.msk.f32.vlgmr.msra.gmra.mxu1 %vm175_vm2, %v1014_v2 }
 0x76d   :  { %13839 = vmatmul.mubr.msk.f32.vlgmr.msra.gmra.mxu0 %vm175_vm2, %v908_v3  ;;  %13863 = vmatpush3.msra.mxu1 %v16706_v4  ;;  %v16961_v3 = vld [vmem:[%s19907_s12 + $0x18] sm:$0xff] }
 0x76e   :  { %13841 = vmatprep.mubr.msk.f32.mxu0 %vm175_vm2, %v909_v6  ;;  %13864 = vmatprep.subr.mxu1 %v16443_v5  ;;  %v16966_v6 = vld [vmem:[%s19907_s12 + $0x10] sm:$0xff] }
 0x76f   :  { %13865 = vmatpush3.msra.mxu1 %v16716_v7  ;;  %13852 = vmatpush3.msra.mxu0 %v16721_v8 }
 0x770   :  { %13866 = vmatprep.subr.mxu1 %v16443_v5  ;;  %13853 = vmatprep.subr.mxu0 %v16443_v5 }
 0x771   :  { %13842 = vmatmul.mubr.msk.f32.gmra.mxu0 %vm175_vm2, %v910_v9  ;;  %13867 = vmatpush3.msra.mxu1 %v16733_v10  ;;  %v16973_v9 = vld [vmem:[%s19907_s12 + $0x8] sm:$0xff] }
 0x772   :  { %13868 = vmatprep.subr.mxu1 %v16443_v5  ;;  %13854 = vmatpush3.msra.mxu0 %v16740_v11 }
 0x773   :  { %13869 = vmatpush3.msra.mxu1 %v16746_v12  ;;  %13855 = vmatprep.subr.mxu0 %v16443_v5 }
 0x774   :  { %13870 = vmatprep.subr.mxu1 %v16443_v5  ;;  %13859 = vmatprep.mubr.msk.f32.mxu0 %vm16444_vm1, %v16443_v5 }
 0x775   :  { %13871 = vmatpush3.msra.mxu1 %v16755_v13  ;;  %13894 = vmatprep.mubr.msk.f32.mxu1 %vm16444_vm1, %v16443_v5 }
 0x776   :  { %13872 = vmatprep.subr.mxu1 %v16443_v5  ;;  %13856 = vmatpush3.msra.mxu0 %v16826_v22 }
 0x777   :  { %13873 = vmatpush3.msra.mxu1 %v16764_v14  ;;  %13857 = vmatprep.subr.mxu0 %v16443_v5 }
 0x778   :  { %13874 = vmatprep.subr.mxu1 %v16443_v5  ;;  %13858 = vmatpush3.msra.mxu0 %v16840_v24 }
 0x779   :  { %13875 = vmatpush3.msra.mxu1 %v16775_v15  ;;  %13860 = vmatmul.mubr.f32.vlgmr.msra.gmra.mxu0 %v16443_v5 }
 0x77a   :  { %13876 = vmatprep.subr.mxu1 %v16443_v5  ;;  %13897 = vmatprep.subr.mxu0 %v16443_v5 }
 0x77b   :  { %13877 = vmatpush3.msra.mxu1 %v16782_v16  ;;  %13905 = vmatprep.mubr.msk.f32.mxu0 %vm16444_vm1, %v16443_v5 }
 0x77c   :  { %13878 = vmatprep.subr.mxu1 %v16443_v5 }
 0x77d   :  { %13879 = vmatpush3.msra.mxu1 %v16789_v17 }
 0x77e   :  { %13880 = vmatprep.subr.mxu1 %v16443_v5 }
 0x77f   :  { %13881 = vmatpush3.msra.mxu1 %v16796_v18 }
 0x780   :  { %13882 = vmatprep.subr.mxu1 %v16443_v5 }
 0x781   :  { %13883 = vmatpush3.msra.mxu1 %v16803_v19 }
 0x782   :  { %13884 = vmatprep.subr.mxu1 %v16443_v5 }
 0x783   :  { %13885 = vmatpush3.msra.mxu1 %v16810_v20 }
 0x784   :  { %13886 = vmatprep.subr.mxu1 %v16443_v5 }
 0x785   :  { %13887 = vmatpush3.msra.mxu1 %v16817_v21 }
 0x786   :  { %13888 = vmatprep.subr.mxu1 %v16443_v5 }
 0x787   :  { %13889 = vmatpush3.msra.mxu1 %v16831_v23 }
 0x788   :  { %13890 = vmatprep.subr.mxu1 %v16443_v5 }
 0x789   :  { %13891 = vmatpush3.msra.mxu1 %v16845_v25 }
 0x78a   :  { %13892 = vmatprep.subr.mxu1 %v16443_v5 }
 0x78b   :  { %13893 = vmatpush3.msra.mxu1 %v16854_v26 }
 0x78c   :  { %13895 = vmatmul.mubr.f32.vlgmr.msra.gmra.mxu1 %v16443_v5  ;;  %13948 = vmatprep.subr.mxu1 %v16443_v5 }
 0x78d   :  { %13980 = vmatprep.mubr.msk.f32.mxu1 %vm16444_vm1, %v16443_v5  ;;  %13949 = vmatpush3.msra.mxu1 %v16706_v4 }
 0x78e   :  { %13950 = vmatprep.subr.mxu1 %v16443_v5 }
 0x78f   :  { %13951 = vmatpush3.msra.mxu1 %v16716_v7 }
 0x790   :  { %13952 = vmatprep.subr.mxu1 %v16443_v5 }
 0x791   :  { %13953 = vmatpush3.msra.mxu1 %v16733_v10 }
 0x792   :  { %13954 = vmatprep.subr.mxu1 %v16443_v5 }
 0x793   :  { %13955 = vmatpush3.msra.mxu1 %v16746_v12 }
 0x794   :  { %13956 = vmatprep.subr.mxu1 %v16443_v5 }
 0x795   :  { %13957 = vmatpush3.msra.mxu1 %v16755_v13 }
 0x796   :  { %13958 = vmatprep.subr.mxu1 %v16443_v5 }
 0x797   :  { %13959 = vmatpush3.msra.mxu1 %v16764_v14 }
 0x798   :  { %13960 = vmatprep.subr.mxu1 %v16443_v5 }
 0x799   :  { %13961 = vmatpush3.msra.mxu1 %v16775_v15 }
 0x79a   :  { %13962 = vmatprep.subr.mxu1 %v16443_v5 }
 0x79b   :  { %13963 = vmatpush3.msra.mxu1 %v16782_v16 }
 0x79c   :  { %13964 = vmatprep.subr.mxu1 %v16443_v5 }
 0x79d   :  { %13965 = vmatpush3.msra.mxu1 %v16789_v17 }
 0x79e   :  { %13966 = vmatprep.subr.mxu1 %v16443_v5 }
 0x79f   :  { %13967 = vmatpush3.msra.mxu1 %v16796_v18 }
 0x7a0   :  { %13968 = vmatprep.subr.mxu1 %v16443_v5 }
 0x7a1   :  { %13969 = vmatpush3.msra.mxu1 %v16803_v19 }
 0x7a2   :  { %13970 = vmatprep.subr.mxu1 %v16443_v5 }
 0x7a3   :  { %13971 = vmatpush3.msra.mxu1 %v16810_v20 }
 0x7a4   :  { %13972 = vmatprep.subr.mxu1 %v16443_v5 }
 0x7a5   :  { %13973 = vmatpush3.msra.mxu1 %v16817_v21 }
 0x7a6   :  { %13974 = vmatprep.subr.mxu1 %v16443_v5 }
 0x7a7   :  { %13975 = vmatpush3.msra.mxu1 %v16831_v23 }
 0x7a8   :  { %13976 = vmatprep.subr.mxu1 %v16443_v5 }
 0x7a9   :  { %13977 = vmatpush3.msra.mxu1 %v16845_v25 }
 0x7aa   :  { %13978 = vmatprep.subr.mxu1 %v16443_v5 }
 0x7ab   :  { %13979 = vmatpush3.msra.mxu1 %v16854_v26 }
 0x7ac   :  { %14023 = vmatprep.subr.mxu1 %v16443_v5 }
 0x82c   :  { %v1084_v27 = vpop.f32.mrf.mxu1 }
 0x82d   :  { %v16896_v28 = vpop.f32.mrf.mxu0  ;;  %v1091_v43 = vrot.slane %v1084_v27, %v1090_v42  ;;  %v16980_v27 = vld [vmem:[%s19907_s12] sm:$0xff] }
 0x82e   :  { %v13850_v29 = vpop.f32.mrf.mxu1 }
 0x82f   :  { %v16898_v30 = vpop.f32.mrf.mxu0  ;;  %v16919_v47 = vadd.f32 %v1091_v43, %v906_v46  ;;  %v16989_v29 = vld [vmem:[%s19906_s11] ss:$0 sm:$0xff] }
 0x831   :  { %v16900_v31 = vpop.f32.mrf.mxu0 }
 0x832   :  { %13898 = vmatpush3.msra.mxu0 %v16900_v31 }
 0x833   :  { %v16903_v32 = vpop.f32.mrf.mxu0  ;;  %13899 = vmatprep.subr.mxu0 %v16443_v5 }
 0x834   :  { %13900 = vmatpush3.msra.mxu0 %v16903_v32 }
 0x835   :  { %13901 = vmatprep.subr.mxu0 %v16443_v5 }
 0x836   :  { %13902 = vmatpush3.msra.mxu0 %v16896_v28 }
 0x837   :  { %13903 = vmatprep.subr.mxu0 %v16443_v5 }
 0x838   :  { %13904 = vmatpush3.msra.mxu0 %v16898_v30 }
 0x839   :  { %13906 = vmatmul.mubr.f32.vlgmr.msra.gmra.mxu0 %v16443_v5  ;;  %13908 = vmatprep.subr.mxu0 %v16443_v5  ;;  %v1159_v33 = vpop.f32.mrf.mxu0 }
 0x83a   :  { %13909 = vmatpush3.msra.mxu0 %v16676_v59  ;;  %13912 = vmatprep.mubr.msk.f32.mxu0 %vm16444_vm1, %v16443_v5 }
 0x83b   :  { %13910 = vmatprep.subr.mxu0 %v16443_v5  ;;  %v13861_v34 = vpop.f32.mrf.mxu0 }
 0x83c   :  { %13911 = vmatpush3.msra.mxu0 %v16654_v44 }
 0x83d   :  { %13915 = vmatprep.subr.mxu0 %v16443_v5 }
 0x84c   :  { %v1229_v35 = vpop.f32.mrf.mxu1 }
 0x84d   :  { %v1230_v36 = vadd.f32 %v1229_v35, %v1159_v33 }
 0x84e   :  { %v13896_v37 = vpop.f32.mrf.mxu1 }
 0x84f   :  { %v1239_v33 = vadd.f32 %v16989_v29, %v1230_v36  ;;  %v17024_v36 = vld [vmem:[%s19908_s13] ss:$0 sm:$0xff] }
 0x8f9   :  { %v1306_v48 = vpop.f32.mrf.mxu0 }
 0x8fa   :  { %v1307_v49 = vadd.f32 %v1306_v48, %v16919_v47 }
 0x8fb   :  { %v13907_v50 = vpop.f32.mrf.mxu0 }
 0x8fc   :  { %v1311_v51 = vsel %vm1310_vm5, %v1307_v49, -inf }
 0x8fd   :  { %1312 = vmax.xlane.f32.xlu0 %v1311_v51 }
 0x986   :  { %v1313_v52 = vpop.xlane.xlu0 %1312 }
 0x987   :  { %v1314_v53 = vsub.f32 %v1307_v49, %v1313_v52 }
 0x989   :  { %v1315_v54 = vmul.f32 1.442695, %v1314_v53 }
 0x98b   :  { %16023 = vpow2.f32 %v1315_v54 }
 0x998   :  { %v16024_v55 = vpop.eup %16023 }
 0x999   :  { %v1317_v56 = vsel %vm1310_vm5, %v16024_v55, 0.0 }
 0x99a   :  { %1318 = vadd.xlane.f32.xlu0 %v1317_v56 }
 0xa23   :  { %v1319_v57 = vpop.xlane.xlu0 %1318 }
 0xa24   :  { %16025 = vrcp.f32 %v1319_v57 }
 0xa31   :  { %v16026_v58 = vpop.eup %16025 }
 0xa32   :  { %v1321_v60 = vmul.f32 %v16026_v58, %v16024_v55 }
 0xa34   :  { %13913 = vmatmul.mubr.msk.f32.vlgmr.msra.gmra.mxu0 %vm93_vm0, %v1321_v60 }
 0xa35   :  { %13916 = vmatpush3.msra.mxu0 %v16927_v61  ;;  %13923 = vmatprep.mubr.msk.f32.mxu0 %vm16444_vm1, %v16443_v5 }
 0xa36   :  { %13917 = vmatprep.subr.mxu0 %v16443_v5 }
 0xa37   :  { %13918 = vmatpush3.msra.mxu0 %v16933_v62 }
 0xa38   :  { %13919 = vmatprep.subr.mxu0 %v16443_v5 }
 0xa39   :  { %13920 = vmatpush3.msra.mxu0 %v16942_v63 }
 0xa3a   :  { %13921 = vmatprep.subr.mxu0 %v16443_v5 }
 0xa3b   :  { %13922 = vmatpush3.msra.mxu0 %v16951_v0 }
 0xa3c   :  { %13926 = vmatprep.subr.mxu0 %v16443_v5 }
 0xaf4   :  { %v1391_v1 = vpop.f32.mrf.mxu0 }
 0xaf5   :  { %13924 = vmatmul.mubr.msk.f32.vlgmr.msra.gmra.mxu0 %vm175_vm2, %v1391_v1 }
 0xaf6   :  { %v13914_v2 = vpop.f32.mrf.mxu0  ;;  %13934 = vmatprep.mubr.msk.f32.mxu0 %vm16444_vm1, %v16443_v5  ;;  %13927 = vmatpush3.msra.mxu0 %v16961_v3 }
 0xaf7   :  { %13928 = vmatprep.subr.mxu0 %v16443_v5 }
 0xaf8   :  { %13929 = vmatpush3.msra.mxu0 %v16966_v6 }
 0xaf9   :  { %13930 = vmatprep.subr.mxu0 %v16443_v5 }
 0xafa   :  { %13931 = vmatpush3.msra.mxu0 %v16973_v9 }
 0xafb   :  { %13932 = vmatprep.subr.mxu0 %v16443_v5 }
 0xafc   :  { %13933 = vmatpush3.msra.mxu0 %v16980_v27 }
 0xafd   :  { %13937 = vmatprep.subr.mxu0 %v16443_v5 }
 0xbb5   :  { %v1464_v34 = vpop.f32.mrf.mxu0 }
 0xbb6   :  { %v1468_v35 = vadd.f32 %v1464_v34, %v1239_v33 }
 0xbb7   :  { %v13925_v37 = vpop.f32.mrf.mxu0 }
 0xbb8   :  { %16027 = vtanh.f32 %v1468_v35 }
 0xbc5   :  { %v16028_v38 = vpop.eup %16027 }
 0xbc6   :  { %13935 = vmatmul.mubr.msk.f32.vlgmr.msra.gmra.mxu0 %vm175_vm2, %v16028_v38 }
 0xbc7   :  { %13938 = vmatpush3.msra.mxu0 %v16721_v8  ;;  %13945 = vmatprep.mubr.msk.f32.mxu0 %vm16444_vm1, %v16443_v5 }
 0xbc8   :  { %13939 = vmatprep.subr.mxu0 %v16443_v5 }
 0xbc9   :  { %13940 = vmatpush3.msra.mxu0 %v16740_v11 }
 0xbca   :  { %13941 = vmatprep.subr.mxu0 %v16443_v5 }
 0xbcb   :  { %13942 = vmatpush3.msra.mxu0 %v16826_v22 }
 0xbcc   :  { %13943 = vmatprep.subr.mxu0 %v16443_v5 }
 0xbcd   :  { %13944 = vmatpush3.msra.mxu0 %v16840_v24 }
 0xbce   :  { %13946 = vmatmul.mubr.msk.f32.vlgmr.msra.gmra.mxu0 %vm175_vm2, %v16028_v38  ;;  %13983 = vmatprep.subr.mxu0 %v16443_v5 }
 0xbcf   :  { %13984 = vmatpush3.msra.mxu0 %v16900_v31  ;;  %13991 = vmatprep.mubr.msk.f32.mxu0 %vm16444_vm1, %v16443_v5 }
 0xbd0   :  { %13985 = vmatprep.subr.mxu0 %v16443_v5 }
 0xbd1   :  { %13986 = vmatpush3.msra.mxu0 %v16903_v32 }
 0xbd2   :  { %13987 = vmatprep.subr.mxu0 %v16443_v5 }
 0xbd3   :  { %13988 = vmatpush3.msra.mxu0 %v16896_v28 }
 0xbd4   :  { %13989 = vmatprep.subr.mxu0 %v16443_v5 }
 0xbd5   :  { %13990 = vmatpush3.msra.mxu0 %v16898_v30 }
 0xbd6   :  { %13992 = vmatmul.mubr.msk.f32.vlgmr.msra.gmra.mxu0 %vm175_vm2, %v16028_v38  ;;  %13994 = vmatprep.subr.mxu0 %v16443_v5 }
 0xbd7   :  { %13995 = vmatpush3.msra.mxu0 %v16676_v59  ;;  %13998 = vmatprep.mubr.msk.f32.mxu0 %vm16444_vm1, %v16443_v5 }
 0xbd8   :  { %13996 = vmatprep.subr.mxu0 %v16443_v5 }
 0xbd9   :  { %13997 = vmatpush3.msra.mxu0 %v16654_v44 }
 0xbda   :  { %14001 = vmatprep.subr.mxu0 %v16443_v5 }
 0xc86   :  { %v1545_v39 = vpop.f32.mrf.mxu0 }
 0xc87   :  { %v1546_v40 = vadd.f32 %v17024_v36, %v1545_v39 }
 0xc88   :  { %v13936_v41 = vpop.f32.mrf.mxu0 }
 0xc89   :  { %v1550_v42 = vsel %vm1549_vm6, %v1546_v40, -inf }
 0xc8a   :  { %1551 = vmax.xlane.f32.xlu0 %v1550_v42 }
 0xc8e   :  { %v17028_v43 = vpop.f32.mrf.mxu0 }
 0xc90   :  { %v13947_v45 = vpop.f32.mrf.mxu0 }
 0xc96   :  { %v1769_v46 = vpop.f32.mrf.mxu0 }
 0xc97   :  { %v1770_v48 = vadd.f32 %v1769_v46, %v16919_v47 }
 0xc98   :  { %v13993_v49 = vpop.f32.mrf.mxu0 }
 0xc99   :  { %v1773_v50 = vsel %vm1310_vm5, %v1770_v48, -inf }
 0xc9a   :  { %1774 = vmax.xlane.f32.xlu1 %v1773_v50 }
 0xd13   :  { %v1552_v51 = vpop.xlane.xlu0 %1551 }
 0xd14   :  { %v1553_v52 = vsub.f32 %v1546_v40, %v1552_v51 }
 0xd16   :  { %v1554_v55 = vmul.f32 1.442695, %v1553_v52 }
 0xd23   :  { %v1775_v53 = vpop.xlane.xlu1 %1774 }
 0xd24   :  { %v1776_v54 = vsub.f32 %v1770_v48, %v1775_v53 }
 0xd26   :  { %v1777_v56 = vmul.f32 1.442695, %v1776_v54 }
 0xd28   :  { %16029 = vpow2.f32 %v1777_v56 }
 0xd29   :  { %16031 = vpow2.f32 %v1554_v55 }
 0xd35   :  { %v16030_v57 = vpop.eup %16029 }
 0xd36   :  { %v1779_v58 = vsel %vm1310_vm5, %v16030_v57, 0.0  ;;  %v16032_v60 = vpop.eup %16031 }
 0xd37   :  { %1780 = vadd.xlane.f32.xlu1 %v1779_v58  ;;  %v1556_v1 = vsel %vm1549_vm6, %v16032_v60, 0.0 }
 0xd3b   :  { %1557 = vadd.xlane.f32.xlu1 %v1556_v1 }
 0xdc0   :  { %v1781_v2 = vpop.xlane.xlu1 %1780 }
 0xdc1   :  { %16033 = vrcp.f32 %v1781_v2 }
 0xdc4   :  { %v1558_v33 = vpop.xlane.xlu1 %1557 }
 0xdc5   :  { %16035 = vrcp.f32 %v1558_v33 }
 0xdce   :  { %v16034_v34 = vpop.eup %16033 }
 0xdcf   :  { %v1783_v35 = vmul.f32 %v16034_v34, %v16030_v57 }
 0xdd1   :  { %13999 = vmatmul.mubr.msk.f32.vlgmr.msra.gmra.mxu0 %vm93_vm0, %v1783_v35 }
 0xdd2   :  { %v16036_v37 = vpop.eup %16035  ;;  %14002 = vmatpush3.msra.mxu0 %v16927_v61  ;;  %14009 = vmatprep.mubr.msk.f32.mxu0 %vm16444_vm1, %v16443_v5 }
 0xdd3   :  { %v1560_v38 = vmul.f32 %v16036_v37, %v16032_v60  ;;  %14003 = vmatprep.subr.mxu0 %v16443_v5 }
 0xdd4   :  { %14004 = vmatpush3.msra.mxu0 %v16933_v62 }
 0xdd5   :  { %1561 = vst [vmem:[#allocation4] sm:$0x3] %v1560_v38  ;;  %13981 = vmatmul.mubr.f32.vlgmr.msra.gmra.mxu1 %v1560_v38  ;;  %14005 = vmatprep.subr.mxu0 %v16443_v5 }
 0xdd6   :  { %14006 = vmatpush3.msra.mxu0 %v16942_v63  ;;  %14024 = vmatpush3.msra.mxu1 %v16721_v8 }
 0xdd7   :  { %14007 = vmatprep.subr.mxu0 %v16443_v5  ;;  %14025 = vmatprep.subr.mxu1 %v16443_v5 }
 0xdd8   :  { %14008 = vmatpush3.msra.mxu0 %v16951_v0  ;;  %14026 = vmatpush3.msra.mxu1 %v16740_v11 }
 0xdd9   :  { %14012 = vmatprep.subr.mxu0 %v16443_v5  ;;  %14027 = vmatprep.subr.mxu1 %v16443_v5 }
 0xdda   :  { %14028 = vmatpush3.msra.mxu1 %v16826_v22  ;;  %14031 = vmatprep.mubr.msk.f32.mxu1 %vm16444_vm1, %v16443_v5 }
 0xddb   :  { %14029 = vmatprep.subr.mxu1 %v16443_v5 }
 0xddc   :  { %14030 = vmatpush3.msra.mxu1 %v16840_v24 }
 0xddd   :  { %14069 = vmatprep.subr.mxu1 %v16443_v5 }
 0xe91   :  { %v1853_v39 = vpop.f32.mrf.mxu0 }
 0xe92   :  { %14010 = vmatmul.mubr.msk.f32.vlgmr.msra.gmra.mxu0 %vm175_vm2, %v1853_v39 }
 0xe93   :  { %v14000_v40 = vpop.f32.mrf.mxu0  ;;  %14013 = vmatpush3.msra.mxu0 %v16961_v3  ;;  %14020 = vmatprep.mubr.msk.f32.mxu0 %vm16444_vm1, %v16443_v5 }
 0xe94   :  { %14014 = vmatprep.subr.mxu0 %v16443_v5 }
 0xe95   :  { %v1698_v41 = vpop.f32.mrf.mxu1  ;;  %14015 = vmatpush3.msra.mxu0 %v16966_v6 }
 0xe96   :  { %14016 = vmatprep.subr.mxu0 %v16443_v5  ;;  %v1699_v45 = vadd.f32 %v1698_v41, %v17028_v43 }
 0xe97   :  { %v13982_v42 = vpop.f32.mrf.mxu1  ;;  %14017 = vmatpush3.msra.mxu0 %v16973_v9 }
 0xe98   :  { %14018 = vmatprep.subr.mxu0 %v16443_v5  ;;  %v1702_v46 = vadd.f32 %v16989_v29, %v1699_v45 }
 0xe99   :  { %14019 = vmatpush3.msra.mxu0 %v16980_v27 }
 0xe9a   :  { %14034 = vmatprep.subr.mxu0 %v16443_v5 }
 0xf52   :  { %v1926_v48 = vpop.f32.mrf.mxu0 }
 0xf53   :  { %v1930_v49 = vadd.f32 %v1926_v48, %v1702_v46 }
 0xf54   :  { %v14011_v50 = vpop.f32.mrf.mxu0 }
 0xf55   :  { %16037 = vtanh.f32 %v1930_v49 }
 0xf62   :  { %v16038_v51 = vpop.eup %16037 }
 0xf63   :  { %14021 = vmatmul.mubr.msk.f32.vlgmr.msra.gmra.mxu0 %vm175_vm2, %v16038_v51  ;;  %14032 = vmatmul.mubr.msk.f32.vlgmr.msra.gmra.mxu1 %vm175_vm2, %v16038_v51 }
 0xf64   :  { %14070 = vmatpush3.msra.mxu1 %v16900_v31  ;;  %14077 = vmatprep.mubr.msk.f32.mxu1 %vm16444_vm1, %v16443_v5 }
 0xf65   :  { %14071 = vmatprep.subr.mxu1 %v16443_v5  ;;  %14035 = vmatpush3.msra.mxu0 %v16706_v4 }
 0xf66   :  { %14072 = vmatpush3.msra.mxu1 %v16903_v32  ;;  %14036 = vmatprep.subr.mxu0 %v16443_v5 }
 0xf67   :  { %14073 = vmatprep.subr.mxu1 %v16443_v5  ;;  %14037 = vmatpush3.msra.mxu0 %v16716_v7 }
 0xf68   :  { %14074 = vmatpush3.msra.mxu1 %v16896_v28  ;;  %14038 = vmatprep.subr.mxu0 %v16443_v5 }
 0xf69   :  { %14075 = vmatprep.subr.mxu1 %v16443_v5  ;;  %14039 = vmatpush3.msra.mxu0 %v16733_v10 }
 0xf6a   :  { %14076 = vmatpush3.msra.mxu1 %v16898_v30  ;;  %14040 = vmatprep.subr.mxu0 %v16443_v5 }
 0xf6b   :  { %14078 = vmatmul.mubr.msk.f32.vlgmr.msra.gmra.mxu1 %vm175_vm2, %v16038_v51  ;;  %14080 = vmatprep.subr.mxu1 %v16443_v5 }
 0xf6c   :  { %14081 = vmatpush3.msra.mxu1 %v16676_v59  ;;  %14041 = vmatpush3.msra.mxu0 %v16746_v12 }
 0xf6d   :  { %14082 = vmatprep.subr.mxu1 %v16443_v5  ;;  %14042 = vmatprep.subr.mxu0 %v16443_v5 }
 0xf6e   :  { %14083 = vmatpush3.msra.mxu1 %v16654_v44  ;;  %14043 = vmatpush3.msra.mxu0 %v16755_v13 }
 0xf6f   :  { %14044 = vmatprep.subr.mxu0 %v16443_v5  ;;  %14084 = vmatprep.mubr.msk.f32.mxu1 %vm16444_vm1, %v16443_v5 }
 0xf70   :  { %14045 = vmatpush3.msra.mxu0 %v16764_v14  ;;  %14066 = vmatprep.mubr.msk.f32.mxu0 %vm16444_vm1, %v16443_v5 }
 0xf71   :  { %14046 = vmatprep.subr.mxu0 %v16443_v5  ;;  %14087 = vmatprep.subr.mxu1 %v16443_v5 }
 0xf72   :  { %14047 = vmatpush3.msra.mxu0 %v16775_v15 }
 0xf73   :  { %14048 = vmatprep.subr.mxu0 %v16443_v5 }
 0xf74   :  { %14049 = vmatpush3.msra.mxu0 %v16782_v16 }
 0xf75   :  { %14050 = vmatprep.subr.mxu0 %v16443_v5 }
 0xf76   :  { %14051 = vmatpush3.msra.mxu0 %v16789_v17 }
 0xf77   :  { %14052 = vmatprep.subr.mxu0 %v16443_v5 }
 0xf78   :  { %14053 = vmatpush3.msra.mxu0 %v16796_v18 }
 0xf79   :  { %14054 = vmatprep.subr.mxu0 %v16443_v5 }
 0xf7a   :  { %14055 = vmatpush3.msra.mxu0 %v16803_v19 }
 0xf7b   :  { %14056 = vmatprep.subr.mxu0 %v16443_v5 }
 0xf7c   :  { %14057 = vmatpush3.msra.mxu0 %v16810_v20 }
 0xf7d   :  { %14058 = vmatprep.subr.mxu0 %v16443_v5 }
 0xf7e   :  { %14059 = vmatpush3.msra.mxu0 %v16817_v21 }
 0xf7f   :  { %14060 = vmatprep.subr.mxu0 %v16443_v5 }
 0xf80   :  { %14061 = vmatpush3.msra.mxu0 %v16831_v23 }
 0xf81   :  { %14062 = vmatprep.subr.mxu0 %v16443_v5 }
 0xf82   :  { %14063 = vmatpush3.msra.mxu0 %v16845_v25 }
 0xf83   :  { %14064 = vmatprep.subr.mxu0 %v16443_v5 }
 0xf84   :  { %14065 = vmatpush3.msra.mxu0 %v16854_v26 }
 0xf85   :  { %14109 = vmatprep.subr.mxu0 %v16443_v5 }
0x1023   :  { %v2001_v43 = vpop.f32.mrf.mxu0  ;;  %v17121_v52 = vpop.f32.mrf.mxu1 }
0x1024   :  { %v2002_v58 = vadd.f32 %v17024_v36, %v2001_v43 }
0x1025   :  { %v14022_v53 = vpop.f32.mrf.mxu0  ;;  %v14033_v54 = vpop.f32.mrf.mxu1 }
0x1026   :  { %v2005_v1 = vsel %vm1549_vm6, %v2002_v58, -inf }
0x102b   :  { %v2225_v55 = vpop.f32.mrf.mxu1 }
0x102c   :  { %v2226_v56 = vadd.f32 %v2225_v55, %v16919_v47 }
0x102d   :  { %v14079_v57 = vpop.f32.mrf.mxu1 }
0x102e   :  { %v2229_v60 = vsel %vm1310_vm5, %v2226_v56, -inf }
0x102f   :  { %2230 = vmax.xlane.f32.xlu0 %v2229_v60 }
0x1033   :  { %2006 = vmax.xlane.f32.xlu0 %v2005_v1 }
0x10b8   :  { %v2231_v2 = vpop.xlane.xlu0 %2230 }
0x10b9   :  { %v2232_v33 = vsub.f32 %v2226_v56, %v2231_v2 }
0x10bb   :  { %v2233_v34 = vmul.f32 1.442695, %v2232_v33 }
0x10bc   :  { %v2007_v35 = vpop.xlane.xlu0 %2006 }
0x10bd   :  { %16039 = vpow2.f32 %v2233_v34  ;;  %v2008_v37 = vsub.f32 %v2002_v58, %v2007_v35 }
0x10bf   :  { %v2009_v38 = vmul.f32 1.442695, %v2008_v37 }
0x10c1   :  { %16041 = vpow2.f32 %v2009_v38 }
0x10ca   :  { %v16040_v39 = vpop.eup %16039 }
0x10cb   :  { %v2235_v40 = vsel %vm1310_vm5, %v16040_v39, 0.0 }
0x10cc   :  { %2236 = vadd.xlane.f32.xlu1 %v2235_v40  ;;  %v17235_v40 = vld [vmem:[%s19905_s10 + $0x18] sm:$0xff] }
0x10ce   :  { %v16042_v41 = vpop.eup %16041 }
0x10cf   :  { %v2011_v42 = vsel %vm1549_vm6, %v16042_v41, 0.0 }
0x10d0   :  { %2012 = vadd.xlane.f32.xlu1 %v2011_v42 }
0x1155   :  { %v2237_v45 = vpop.xlane.xlu1 %2236 }
0x1156   :  { %16043 = vrcp.f32 %v2237_v45 }
0x1159   :  { %v2013_v46 = vpop.xlane.xlu1 %2012 }
0x115a   :  { %16045 = vrcp.f32 %v2013_v46 }
0x1163   :  { %v16044_v48 = vpop.eup %16043 }
0x1164   :  { %v2239_v49 = vmul.f32 %v16044_v48, %v16040_v39 }
0x1166   :  { %14085 = vmatmul.mubr.msk.f32.vlgmr.msra.gmra.mxu1 %vm93_vm0, %v2239_v49 }
0x1167   :  { %v16046_v50 = vpop.eup %16045  ;;  %14088 = vmatpush3.msra.mxu1 %v16927_v61  ;;  %14095 = vmatprep.mubr.msk.f32.mxu1 %vm16444_vm1, %v16443_v5 }
0x1168   :  { %v2015_v51 = vmul.f32 %v16046_v50, %v16042_v41  ;;  %14089 = vmatprep.subr.mxu1 %v16443_v5 }
0x1169   :  { %14090 = vmatpush3.msra.mxu1 %v16933_v62 }
0x116a   :  { %2017 = vst [vmem:[#allocation4 + $0x2] sm:$0x3] %v2015_v51  ;;  %14067 = vmatmul.mubr.f32.vlgmr.msra.gmra.mxu0 %v2015_v51  ;;  %14091 = vmatprep.subr.mxu1 %v16443_v5  ;;  %v17272_v51 = vld [vmem:[%s19904_s9 + $0x78] sm:$0xff] }
0x116b   :  { %14092 = vmatpush3.msra.mxu1 %v16942_v63  ;;  %14110 = vmatpush3.msra.mxu0 %v16721_v8 }
0x116c   :  { %14093 = vmatprep.subr.mxu1 %v16443_v5  ;;  %14111 = vmatprep.subr.mxu0 %v16443_v5 }
0x116d   :  { %14094 = vmatpush3.msra.mxu1 %v16951_v0  ;;  %14112 = vmatpush3.msra.mxu0 %v16740_v11 }
0x116e   :  { %14098 = vmatprep.subr.mxu1 %v16443_v5  ;;  %14113 = vmatprep.subr.mxu0 %v16443_v5 }
0x116f   :  { %14114 = vmatpush3.msra.mxu0 %v16826_v22  ;;  %14117 = vmatprep.mubr.msk.f32.mxu0 %vm16444_vm1, %v16443_v5 }
0x1170   :  { %14115 = vmatprep.subr.mxu0 %v16443_v5 }
0x1171   :  { %14116 = vmatpush3.msra.mxu0 %v16840_v24 }
0x1172   :  { %14155 = vmatprep.subr.mxu0 %v16443_v5 }
0x1226   :  { %v2309_v8 = vpop.f32.mrf.mxu1 }
0x1227   :  { %14096 = vmatmul.mubr.msk.f32.vlgmr.msra.gmra.mxu1 %vm175_vm2, %v2309_v8  ;;  %v17281_v8 = vld [vmem:[%s19904_s9 + $0x70] sm:$0xff] }
0x1228   :  { %v14086_v43 = vpop.f32.mrf.mxu1  ;;  %14099 = vmatpush3.msra.mxu1 %v16961_v3  ;;  %14106 = vmatprep.mubr.msk.f32.mxu1 %vm16444_vm1, %v16443_v5 }
0x1229   :  { %14100 = vmatprep.subr.mxu1 %v16443_v5  ;;  %v17290_v43 = vld [vmem:[%s19904_s9 + $0x68] sm:$0xff] }
0x122a   :  { %v2154_v53 = vpop.f32.mrf.mxu0  ;;  %14101 = vmatpush3.msra.mxu1 %v16966_v6 }
0x122b   :  { %14102 = vmatprep.subr.mxu1 %v16443_v5  ;;  %v2155_v55 = vadd.f32 %v2154_v53, %v17121_v52  ;;  %v17297_v53 = vld [vmem:[#allocation2 + $0x8] sm:$0xff] }
0x122c   :  { %v14068_v54 = vpop.f32.mrf.mxu0  ;;  %14103 = vmatpush3.msra.mxu1 %v16973_v9 }
0x122d   :  { %14104 = vmatprep.subr.mxu1 %v16443_v5  ;;  %v2158_v56 = vadd.f32 %v16989_v29, %v2155_v55  ;;  %v17303_v54 = vld [vmem:[%s19904_s9 + $0x60] sm:$0xff] }
0x122e   :  { %14105 = vmatpush3.msra.mxu1 %v16980_v27  ;;  %v17308_v55 = vld [vmem:[#allocation2] sm:$0xff] }
0x122f   :  { %14120 = vmatprep.subr.mxu1 %v16443_v5 }
0x12e7   :  { %v2382_v57 = vpop.f32.mrf.mxu1 }
0x12e8   :  { %v2386_v58 = vadd.f32 %v2382_v57, %v2158_v56  ;;  %v17314_v56 = vld [vmem:[%s19904_s9 + $0x58] sm:$0xff]  ;;  %v17323_v57 = vld [vmem:[%s19904_s9 + $0x50] sm:$0xff] }
0x12e9   :  { %v14097_v60 = vpop.f32.mrf.mxu1 }
0x12ea   :  { %16047 = vtanh.f32 %v2386_v58  ;;  %v17333_v58 = vld [vmem:[%s19904_s9 + $0x48] sm:$0xff]  ;;  %v17340_v60 = vld [vmem:[%s19904_s9 + $0x40] sm:$0xff] }
0x12f7   :  { %v16048_v1 = vpop.eup %16047 }
0x12f8   :  { %14107 = vmatmul.mubr.msk.f32.vlgmr.msra.gmra.mxu1 %vm175_vm2, %v16048_v1  ;;  %14118 = vmatmul.mubr.msk.f32.vlgmr.msra.gmra.mxu0 %vm175_vm2, %v16048_v1 }
0x12f9   :  { %14156 = vmatpush3.msra.mxu0 %v16900_v31  ;;  %14163 = vmatprep.mubr.msk.f32.mxu0 %vm16444_vm1, %v16443_v5 }
0x12fa   :  { %14157 = vmatprep.subr.mxu0 %v16443_v5  ;;  %14121 = vmatpush3.msra.mxu1 %v16706_v4 }
0x12fb   :  { %14158 = vmatpush3.msra.mxu0 %v16903_v32  ;;  %14122 = vmatprep.subr.mxu1 %v16443_v5 }
0x12fc   :  { %14159 = vmatprep.subr.mxu0 %v16443_v5  ;;  %14123 = vmatpush3.msra.mxu1 %v16716_v7 }
0x12fd   :  { %14160 = vmatpush3.msra.mxu0 %v16896_v28  ;;  %14124 = vmatprep.subr.mxu1 %v16443_v5 }
0x12fe   :  { %14161 = vmatprep.subr.mxu0 %v16443_v5  ;;  %14125 = vmatpush3.msra.mxu1 %v16733_v10 }
0x12ff   :  { %14162 = vmatpush3.msra.mxu0 %v16898_v30  ;;  %14126 = vmatprep.subr.mxu1 %v16443_v5 }
0x1300   :  { %14164 = vmatmul.mubr.msk.f32.vlgmr.msra.gmra.mxu0 %vm175_vm2, %v16048_v1  ;;  %14166 = vmatprep.subr.mxu0 %v16443_v5  ;;  %v17347_v1 = vld [vmem:[%s19904_s9 + $0x38] sm:$0xff] }
0x1301   :  { %14167 = vmatpush3.msra.mxu0 %v16676_v59  ;;  %14127 = vmatpush3.msra.mxu1 %v16746_v12 }
0x1302   :  { %14168 = vmatprep.subr.mxu0 %v16443_v5  ;;  %14128 = vmatprep.subr.mxu1 %v16443_v5 }
0x1303   :  { %14169 = vmatpush3.msra.mxu0 %v16654_v44  ;;  %14129 = vmatpush3.msra.mxu1 %v16755_v13 }
0x1304   :  { %14130 = vmatprep.subr.mxu1 %v16443_v5  ;;  %14170 = vmatprep.mubr.msk.f32.mxu0 %vm16444_vm1, %v16443_v5 }
0x1305   :  { %14131 = vmatpush3.msra.mxu1 %v16764_v14  ;;  %14152 = vmatprep.mubr.msk.f32.mxu1 %vm16444_vm1, %v16443_v5 }
0x1306   :  { %14132 = vmatprep.subr.mxu1 %v16443_v5  ;;  %14173 = vmatprep.subr.mxu0 %v16443_v5 }
0x1307   :  { %14133 = vmatpush3.msra.mxu1 %v16775_v15 }
0x1308   :  { %14134 = vmatprep.subr.mxu1 %v16443_v5 }
0x1309   :  { %14135 = vmatpush3.msra.mxu1 %v16782_v16 }
0x130a   :  { %14136 = vmatprep.subr.mxu1 %v16443_v5 }
0x130b   :  { %14137 = vmatpush3.msra.mxu1 %v16789_v17 }
0x130c   :  { %14138 = vmatprep.subr.mxu1 %v16443_v5 }
0x130d   :  { %14139 = vmatpush3.msra.mxu1 %v16796_v18 }
0x130e   :  { %14140 = vmatprep.subr.mxu1 %v16443_v5 }
0x130f   :  { %14141 = vmatpush3.msra.mxu1 %v16803_v19 }
0x1310   :  { %14142 = vmatprep.subr.mxu1 %v16443_v5 }
0x1311   :  { %14143 = vmatpush3.msra.mxu1 %v16810_v20 }
0x1312   :  { %14144 = vmatprep.subr.mxu1 %v16443_v5 }
0x1313   :  { %14145 = vmatpush3.msra.mxu1 %v16817_v21 }
0x1314   :  { %14146 = vmatprep.subr.mxu1 %v16443_v5 }
0x1315   :  { %14147 = vmatpush3.msra.mxu1 %v16831_v23 }
0x1316   :  { %14148 = vmatprep.subr.mxu1 %v16443_v5 }
0x1317   :  { %14149 = vmatpush3.msra.mxu1 %v16845_v25 }
0x1318   :  { %14150 = vmatprep.subr.mxu1 %v16443_v5 }
0x1319   :  { %14151 = vmatpush3.msra.mxu1 %v16854_v26 }
0x131a   :  { %14195 = vmatprep.subr.mxu1 %v16443_v5 }
0x13b8   :  { %v2457_v44 = vpop.f32.mrf.mxu1  ;;  %v17216_v59 = vpop.f32.mrf.mxu0 }
0x13b9   :  { %v2458_v14 = vadd.f32 %v17024_v36, %v2457_v44  ;;  %v17354_v44 = vld [vmem:[%s19904_s9 + $0x30] sm:$0xff] }
0x13ba   :  { %v14108_v4 = vpop.f32.mrf.mxu1  ;;  %v14119_v7 = vpop.f32.mrf.mxu0 }
0x13bb   :  { %v2461_v16 = vsel %vm1549_vm6, %v2458_v14, -inf  ;;  %v17368_v4 = vld [vmem:[%s19904_s9 + $0x20] sm:$0xff]  ;;  %v17375_v7 = vld [vmem:[%s19904_s9 + $0x18] sm:$0xff] }
0x13c0   :  { %v2681_v10 = vpop.f32.mrf.mxu0 }
0x13c1   :  { %v2682_v12 = vadd.f32 %v2681_v10, %v16919_v47  ;;  %v17382_v10 = vld [vmem:[%s19904_s9 + $0x10] sm:$0xff] }
0x13c2   :  { %v14165_v13 = vpop.f32.mrf.mxu0 }
0x13c3   :  { %v2685_v15 = vsel %vm1310_vm5, %v2682_v12, -inf  ;;  %v17396_v13 = vld [vmem:[%s19904_s9] sm:$0xff] }
0x13c4   :  { %2686 = vmax.xlane.f32.xlu0 %v2685_v15 }
0x13c8   :  { %2462 = vmax.xlane.f32.xlu0 %v2461_v16 }
0x144d   :  { %v2687_v17 = vpop.xlane.xlu0 %2686 }
0x144e   :  { %v2688_v18 = vsub.f32 %v2682_v12, %v2687_v17  ;;  %v17389_v12 = vld [vmem:[%s19904_s9 + $0x8] sm:$0xff] }
0x1450   :  { %v2689_v19 = vmul.f32 1.442695, %v2688_v18 }
0x1451   :  { %v2463_v20 = vpop.xlane.xlu0 %2462 }
0x1452   :  { %16049 = vpow2.f32 %v2689_v19  ;;  %v2464_v21 = vsub.f32 %v2458_v14, %v2463_v20 }
0x1454   :  { %v2465_v23 = vmul.f32 1.442695, %v2464_v21 }
0x1456   :  { %16051 = vpow2.f32 %v2465_v23 }
0x145f   :  { %v16050_v25 = vpop.eup %16049 }
0x1460   :  { %v2691_v26 = vsel %vm1310_vm5, %v16050_v25, 0.0 }
0x1461   :  { %2692 = vadd.xlane.f32.xlu1 %v2691_v26 }
0x1463   :  { %v16052_v52 = vpop.eup %16051 }
0x1464   :  { %v2467_v2 = vsel %vm1549_vm6, %v16052_v52, 0.0 }
0x1465   :  { %2468 = vadd.xlane.f32.xlu1 %v2467_v2 }
0x14ea   :  { %v2693_v33 = vpop.xlane.xlu1 %2692 }
0x14eb   :  { %16053 = vrcp.f32 %v2693_v33 }
0x14ee   :  { %v2469_v34 = vpop.xlane.xlu1 %2468 }
0x14ef   :  { %16055 = vrcp.f32 %v2469_v34 }
0x14f8   :  { %v16054_v35 = vpop.eup %16053 }
0x14f9   :  { %v2695_v37 = vmul.f32 %v16054_v35, %v16050_v25 }
0x14fb   :  { %14171 = vmatmul.mubr.msk.f32.vlgmr.msra.gmra.mxu0 %vm93_vm0, %v2695_v37 }
0x14fc   :  { %v16056_v38 = vpop.eup %16055  ;;  %14174 = vmatpush3.msra.mxu0 %v16927_v61  ;;  %14181 = vmatprep.mubr.msk.f32.mxu0 %vm16444_vm1, %v16443_v5 }
0x14fd   :  { %v2471_v39 = vmul.f32 %v16056_v38, %v16052_v52  ;;  %14175 = vmatprep.subr.mxu0 %v16443_v5 }
0x14fe   :  { %14176 = vmatpush3.msra.mxu0 %v16933_v62 }
0x14ff   :  { %2473 = vst [vmem:[#allocation4 + $0x4] sm:$0x3] %v2471_v39  ;;  %14153 = vmatmul.mubr.f32.vlgmr.msra.gmra.mxu1 %v2471_v39  ;;  %14177 = vmatprep.subr.mxu0 %v16443_v5 }
0x1500   :  { %14178 = vmatpush3.msra.mxu0 %v16942_v63  ;;  %14196 = vmatpush3.msra.mxu1 %v17235_v40 }
0x1501   :  { %14179 = vmatprep.subr.mxu0 %v16443_v5  ;;  %14197 = vmatprep.subr.mxu1 %v16443_v5 }
0x1502   :  { %14180 = vmatpush3.msra.mxu0 %v16951_v0  ;;  %14198 = vmatpush3.msra.mxu1 %v16740_v11 }
0x1503   :  { %14184 = vmatprep.subr.mxu0 %v16443_v5  ;;  %14199 = vmatprep.subr.mxu1 %v16443_v5 }
0x1504   :  { %14200 = vmatpush3.msra.mxu1 %v16826_v22  ;;  %14203 = vmatprep.mubr.msk.f32.mxu1 %vm16444_vm1, %v16443_v5 }
0x1505   :  { %14201 = vmatprep.subr.mxu1 %v16443_v5 }
0x1506   :  { %14202 = vmatpush3.msra.mxu1 %v16840_v24 }
0x1507   :  { %14241 = vmatprep.subr.mxu1 %v16443_v5 }
0x15bb   :  { %v2765_v41 = vpop.f32.mrf.mxu0 }
0x15bc   :  { %14182 = vmatmul.mubr.msk.f32.vlgmr.msra.gmra.mxu0 %vm175_vm2, %v2765_v41 }
0x15bd   :  { %v14172_v42 = vpop.f32.mrf.mxu0  ;;  %14185 = vmatpush3.msra.mxu0 %v16961_v3  ;;  %14192 = vmatprep.mubr.msk.f32.mxu0 %vm16444_vm1, %v16443_v5 }
0x15be   :  { %14186 = vmatprep.subr.mxu0 %v16443_v5 }
0x15bf   :  { %v2610_v11 = vpop.f32.mrf.mxu1  ;;  %14187 = vmatpush3.msra.mxu0 %v16966_v6 }
0x15c0   :  { %14188 = vmatprep.subr.mxu0 %v16443_v5  ;;  %v2611_v24 = vadd.f32 %v2610_v11, %v17216_v59  ;;  %v17361_v59 = vld [vmem:[%s19904_s9 + $0x28] sm:$0xff] }
0x15c1   :  { %v14154_v22 = vpop.f32.mrf.mxu1  ;;  %14189 = vmatpush3.msra.mxu0 %v16973_v9 }
0x15c2   :  { %14190 = vmatprep.subr.mxu0 %v16443_v5  ;;  %v2614_v45 = vadd.f32 %v16989_v29, %v2611_v24 }
0x15c3   :  { %14191 = vmatpush3.msra.mxu0 %v16980_v27 }
0x15c4   :  { %14206 = vmatprep.subr.mxu0 %v16443_v5 }
0x167c   :  { %v2838_v46 = vpop.f32.mrf.mxu0 }
0x167d   :  { %v2842_v48 = vadd.f32 %v2838_v46, %v2614_v45 }
0x167e   :  { %v14183_v49 = vpop.f32.mrf.mxu0 }
0x167f   :  { %16057 = vtanh.f32 %v2842_v48 }
0x168c   :  { %v16058_v50 = vpop.eup %16057 }
0x168d   :  { %14193 = vmatmul.mubr.msk.f32.vlgmr.msra.gmra.mxu0 %vm175_vm2, %v16058_v50  ;;  %14204 = vmatmul.mubr.msk.f32.vlgmr.msra.gmra.mxu1 %vm175_vm2, %v16058_v50 }
0x168e   :  { %14242 = vmatpush3.msra.mxu1 %v16900_v31  ;;  %14249 = vmatprep.mubr.msk.f32.mxu1 %vm16444_vm1, %v16443_v5 }
0x168f   :  { %14243 = vmatprep.subr.mxu1 %v16443_v5  ;;  %14207 = vmatpush3.msra.mxu0 %v17272_v51 }
0x1690   :  { %14244 = vmatpush3.msra.mxu1 %v16903_v32  ;;  %14208 = vmatprep.subr.mxu0 %v16443_v5 }
0x1691   :  { %14245 = vmatprep.subr.mxu1 %v16443_v5  ;;  %14209 = vmatpush3.msra.mxu0 %v17281_v8 }
0x1692   :  { %14246 = vmatpush3.msra.mxu1 %v16896_v28  ;;  %14210 = vmatprep.subr.mxu0 %v16443_v5 }
0x1693   :  { %14247 = vmatprep.subr.mxu1 %v16443_v5  ;;  %14211 = vmatpush3.msra.mxu0 %v17290_v43 }
0x1694   :  { %14248 = vmatpush3.msra.mxu1 %v16898_v30  ;;  %14212 = vmatprep.subr.mxu0 %v16443_v5 }
0x1695   :  { %14250 = vmatmul.mubr.msk.f32.vlgmr.msra.gmra.mxu1 %vm175_vm2, %v16058_v50  ;;  %14252 = vmatprep.subr.mxu1 %v16443_v5 }
0x1696   :  { %14253 = vmatpush3.msra.mxu1 %v17297_v53  ;;  %14213 = vmatpush3.msra.mxu0 %v17303_v54 }
0x1697   :  { %14254 = vmatprep.subr.mxu1 %v16443_v5  ;;  %14214 = vmatprep.subr.mxu0 %v16443_v5 }
0x1698   :  { %14255 = vmatpush3.msra.mxu1 %v17308_v55  ;;  %14215 = vmatpush3.msra.mxu0 %v17314_v56 }
0x1699   :  { %14216 = vmatprep.subr.mxu0 %v16443_v5  ;;  %14256 = vmatprep.mubr.msk.f32.mxu1 %vm16444_vm1, %v16443_v5 }
0x169a   :  { %14217 = vmatpush3.msra.mxu0 %v17323_v57  ;;  %14238 = vmatprep.mubr.msk.f32.mxu0 %vm16444_vm1, %v16443_v5 }
0x169b   :  { %14218 = vmatprep.subr.mxu0 %v16443_v5  ;;  %14259 = vmatprep.subr.mxu1 %v16443_v5 }
0x169c   :  { %14219 = vmatpush3.msra.mxu0 %v17333_v58 }
0x169d   :  { %14220 = vmatprep.subr.mxu0 %v16443_v5 }
0x169e   :  { %14221 = vmatpush3.msra.mxu0 %v17340_v60 }
0x169f   :  { %14222 = vmatprep.subr.mxu0 %v16443_v5 }
0x16a0   :  { %14223 = vmatpush3.msra.mxu0 %v17347_v1 }
0x16a1   :  { %14224 = vmatprep.subr.mxu0 %v16443_v5 }
0x16a2   :  { %14225 = vmatpush3.msra.mxu0 %v17354_v44 }
0x16a3   :  { %14226 = vmatprep.subr.mxu0 %v16443_v5 }
0x16a4   :  { %14227 = vmatpush3.msra.mxu0 %v17361_v59 }
0x16a5   :  { %14228 = vmatprep.subr.mxu0 %v16443_v5 }
0x16a6   :  { %14229 = vmatpush3.msra.mxu0 %v17368_v4 }
0x16a7   :  { %14230 = vmatprep.subr.mxu0 %v16443_v5 }
0x16a8   :  { %14231 = vmatpush3.msra.mxu0 %v17375_v7 }
0x16a9   :  { %14232 = vmatprep.subr.mxu0 %v16443_v5 }
0x16aa   :  { %14233 = vmatpush3.msra.mxu0 %v17382_v10 }
0x16ab   :  { %14234 = vmatprep.subr.mxu0 %v16443_v5 }
0x16ac   :  { %14235 = vmatpush3.msra.mxu0 %v17389_v12 }
0x16ad   :  { %14236 = vmatprep.subr.mxu0 %v16443_v5 }
0x16ae   :  { %14237 = vmatpush3.msra.mxu0 %v17396_v13 }
0x16af   :  { %14281 = vmatprep.subr.mxu0 %v16443_v5 }
0x174d   :  { %v2913_v14 = vpop.f32.mrf.mxu0  ;;  %v17400_v15 = vpop.f32.mrf.mxu1 }
0x174e   :  { %v2914_v21 = vadd.f32 %v17024_v36, %v2913_v14 }
0x174f   :  { %v14194_v16 = vpop.f32.mrf.mxu0  ;;  %v14205_v17 = vpop.f32.mrf.mxu1 }
0x1750   :  { %v2917_v25 = vsel %vm1549_vm6, %v2914_v21, -inf }
0x1755   :  { %v3137_v18 = vpop.f32.mrf.mxu1 }
0x1756   :  { %v3138_v19 = vadd.f32 %v3137_v18, %v16919_v47 }
0x1757   :  { %v14251_v20 = vpop.f32.mrf.mxu1 }
0x1758   :  { %v3141_v23 = vsel %vm1310_vm5, %v3138_v19, -inf }
0x1759   :  { %3142 = vmax.xlane.f32.xlu0 %v3141_v23 }
0x175d   :  { %2918 = vmax.xlane.f32.xlu0 %v2917_v25 }
0x17e2   :  { %v3143_v26 = vpop.xlane.xlu0 %3142 }
0x17e3   :  { %v3144_v52 = vsub.f32 %v3138_v19, %v3143_v26 }
0x17e5   :  { %v3145_v2 = vmul.f32 1.442695, %v3144_v52 }
0x17e6   :  { %v2919_v33 = vpop.xlane.xlu0 %2918 }
0x17e7   :  { %16059 = vpow2.f32 %v3145_v2  ;;  %v2920_v34 = vsub.f32 %v2914_v21, %v2919_v33  ;;  %v17516_v21 = vld [vmem:[%s19908_s13] ss:$0 sm:$0xff] }
0x17e9   :  { %v2921_v35 = vmul.f32 1.442695, %v2920_v34 }
0x17eb   :  { %16061 = vpow2.f32 %v2921_v35 }
0x17f4   :  { %v16060_v37 = vpop.eup %16059 }
0x17f5   :  { %v3147_v38 = vsel %vm1310_vm5, %v16060_v37, 0.0 }
0x17f6   :  { %3148 = vadd.xlane.f32.xlu1 %v3147_v38 }
0x17f8   :  { %v16062_v39 = vpop.eup %16061 }
0x17f9   :  { %v2923_v36 = vsel %vm1549_vm6, %v16062_v39, 0.0 }
0x17fa   :  { %2924 = vadd.xlane.f32.xlu1 %v2923_v36 }
0x187f   :  { %v3149_v41 = vpop.xlane.xlu1 %3148 }
0x1880   :  { %16063 = vrcp.f32 %v3149_v41 }
0x1883   :  { %v2925_v42 = vpop.xlane.xlu1 %2924 }
0x1884   :  { %16065 = vrcp.f32 %v2925_v42 }
0x188d   :  { %v16064_v11 = vpop.eup %16063 }
0x188e   :  { %v3151_v22 = vmul.f32 %v16064_v11, %v16060_v37 }
0x1890   :  { %14257 = vmatmul.mubr.msk.f32.vlgmr.msra.gmra.mxu1 %vm93_vm0, %v3151_v22 }
0x1891   :  { %v16066_v24 = vpop.eup %16065  ;;  %14260 = vmatpush3.msra.mxu1 %v16927_v61  ;;  %14267 = vmatprep.mubr.msk.f32.mxu1 %vm16444_vm1, %v16443_v5  ;;  %v17423_v61 = vld [vmem:[%s19905_s10 + $0x10] sm:$0xff] }
0x1892   :  { %v2927_v45 = vmul.f32 %v16066_v24, %v16062_v39  ;;  %14261 = vmatprep.subr.mxu1 %v16443_v5 }
0x1893   :  { %14262 = vmatpush3.msra.mxu1 %v16933_v62  ;;  %v17431_v62 = vld [vmem:[%s19905_s10 + $0x8] sm:$0xff] }
0x1894   :  { %2929 = vst [vmem:[#allocation4 + $0x6] sm:$0x3] %v2927_v45  ;;  %14239 = vmatmul.mubr.f32.vlgmr.msra.gmra.mxu0 %v2927_v45  ;;  %14263 = vmatprep.subr.mxu1 %v16443_v5 }
0x1895   :  { %14264 = vmatpush3.msra.mxu1 %v16942_v63  ;;  %14282 = vmatpush3.msra.mxu0 %v17235_v40  ;;  %v17440_v63 = vld [vmem:[%s19905_s10] sm:$0xff] }
0x1896   :  { %14265 = vmatprep.subr.mxu1 %v16443_v5  ;;  %14283 = vmatprep.subr.mxu0 %v16443_v5 }
0x1897   :  { %14266 = vmatpush3.msra.mxu1 %v16951_v0  ;;  %14284 = vmatpush3.msra.mxu0 %v17423_v61 }
0x1898   :  { %14270 = vmatprep.subr.mxu1 %v16443_v5  ;;  %14285 = vmatprep.subr.mxu0 %v16443_v5 }
0x1899   :  { %14286 = vmatpush3.msra.mxu0 %v17431_v62  ;;  %14289 = vmatprep.mubr.msk.f32.mxu0 %vm16444_vm1, %v16443_v5 }
0x189a   :  { %14287 = vmatprep.subr.mxu0 %v16443_v5 }
0x189b   :  { %14288 = vmatpush3.msra.mxu0 %v17440_v63 }
0x189c   :  { %14327 = vmatprep.subr.mxu0 %v16443_v5 }
0x1950   :  { %v3221_v0 = vpop.f32.mrf.mxu1 }
0x1951   :  { %14268 = vmatmul.mubr.msk.f32.vlgmr.msra.gmra.mxu1 %vm175_vm2, %v3221_v0  ;;  %v17527_v0 = vld [vmem:[%s19903_s8 + $0x18] sm:$0xff] }
0x1952   :  { %v14258_v46 = vpop.f32.mrf.mxu1  ;;  %14271 = vmatpush3.msra.mxu1 %v16961_v3  ;;  %14278 = vmatprep.mubr.msk.f32.mxu1 %vm16444_vm1, %v16443_v5 }
0x1953   :  { %14272 = vmatprep.subr.mxu1 %v16443_v5 }
0x1954   :  { %v3066_v48 = vpop.f32.mrf.mxu0  ;;  %14273 = vmatpush3.msra.mxu1 %v16966_v6 }
0x1955   :  { %14274 = vmatprep.subr.mxu1 %v16443_v5  ;;  %v3067_v3 = vadd.f32 %v3066_v48, %v17400_v15  ;;  %v17536_v48 = vld [vmem:[%s19903_s8 + $0x10] sm:$0xff] }
0x1956   :  { %v14240_v49 = vpop.f32.mrf.mxu0  ;;  %14275 = vmatpush3.msra.mxu1 %v16973_v9 }
0x1957   :  { %14276 = vmatprep.subr.mxu1 %v16443_v5  ;;  %v3070_v50 = vadd.f32 %v16989_v29, %v3067_v3  ;;  %v17543_v49 = vld [vmem:[%s19903_s8 + $0x8] sm:$0xff]  ;;  %v17552_v3 = vld [vmem:[%s19903_s8] sm:$0xff] }
0x1958   :  { %14277 = vmatpush3.msra.mxu1 %v16980_v27 }
0x1959   :  { %14292 = vmatprep.subr.mxu1 %v16443_v5 }
0x1a11   :  { %v3294_v14 = vpop.f32.mrf.mxu1 }
0x1a12   :  { %v3298_v16 = vadd.f32 %v3294_v14, %v3070_v50 }
0x1a13   :  { %v14269_v17 = vpop.f32.mrf.mxu1 }
0x1a14   :  { %16067 = vtanh.f32 %v3298_v16  ;;  %v17568_v16 = vld [vmem:[%s19907_s12 + $0x18] sm:$0xff] }
0x1a21   :  { %v16068_v6 = vpop.eup %16067 }
0x1a22   :  { %14279 = vmatmul.mubr.msk.f32.vlgmr.msra.gmra.mxu1 %vm175_vm2, %v16068_v6  ;;  %14290 = vmatmul.mubr.msk.f32.vlgmr.msra.gmra.mxu0 %vm175_vm2, %v16068_v6 }
0x1a23   :  { %14328 = vmatpush3.msra.mxu0 %v16900_v31  ;;  %14335 = vmatprep.mubr.msk.f32.mxu0 %vm16444_vm1, %v16443_v5 }
0x1a24   :  { %14329 = vmatprep.subr.mxu0 %v16443_v5  ;;  %14293 = vmatpush3.msra.mxu1 %v17272_v51 }
0x1a25   :  { %14330 = vmatpush3.msra.mxu0 %v16903_v32  ;;  %14294 = vmatprep.subr.mxu1 %v16443_v5 }
0x1a26   :  { %14331 = vmatprep.subr.mxu0 %v16443_v5  ;;  %14295 = vmatpush3.msra.mxu1 %v17281_v8 }
0x1a27   :  { %14332 = vmatpush3.msra.mxu0 %v16896_v28  ;;  %14296 = vmatprep.subr.mxu1 %v16443_v5 }
0x1a28   :  { %14333 = vmatprep.subr.mxu0 %v16443_v5  ;;  %14297 = vmatpush3.msra.mxu1 %v17290_v43 }
0x1a29   :  { %14334 = vmatpush3.msra.mxu0 %v16898_v30  ;;  %14298 = vmatprep.subr.mxu1 %v16443_v5 }
0x1a2a   :  { %14336 = vmatmul.mubr.msk.f32.vlgmr.msra.gmra.mxu0 %vm175_vm2, %v16068_v6  ;;  %14338 = vmatprep.subr.mxu0 %v16443_v5  ;;  %v17577_v6 = vld [vmem:[%s19907_s12 + $0x10] sm:$0xff] }
0x1a2b   :  { %14339 = vmatpush3.msra.mxu0 %v17297_v53  ;;  %14299 = vmatpush3.msra.mxu1 %v17303_v54 }
0x1a2c   :  { %14340 = vmatprep.subr.mxu0 %v16443_v5  ;;  %14300 = vmatprep.subr.mxu1 %v16443_v5 }
0x1a2d   :  { %14341 = vmatpush3.msra.mxu0 %v17308_v55  ;;  %14301 = vmatpush3.msra.mxu1 %v17314_v56 }
0x1a2e   :  { %14302 = vmatprep.subr.mxu1 %v16443_v5  ;;  %14342 = vmatprep.mubr.msk.f32.mxu0 %vm16444_vm1, %v16443_v5 }
0x1a2f   :  { %14303 = vmatpush3.msra.mxu1 %v17323_v57  ;;  %14324 = vmatprep.mubr.msk.f32.mxu1 %vm16444_vm1, %v16443_v5 }
0x1a30   :  { %14304 = vmatprep.subr.mxu1 %v16443_v5  ;;  %14345 = vmatprep.subr.mxu0 %v16443_v5 }
0x1a31   :  { %14305 = vmatpush3.msra.mxu1 %v17333_v58 }
0x1a32   :  { %14306 = vmatprep.subr.mxu1 %v16443_v5 }
0x1a33   :  { %14307 = vmatpush3.msra.mxu1 %v17340_v60 }
0x1a34   :  { %14308 = vmatprep.subr.mxu1 %v16443_v5 }
0x1a35   :  { %14309 = vmatpush3.msra.mxu1 %v17347_v1 }
0x1a36   :  { %14310 = vmatprep.subr.mxu1 %v16443_v5 }
0x1a37   :  { %14311 = vmatpush3.msra.mxu1 %v17354_v44 }
0x1a38   :  { %14312 = vmatprep.subr.mxu1 %v16443_v5 }
0x1a39   :  { %14313 = vmatpush3.msra.mxu1 %v17361_v59 }
0x1a3a   :  { %14314 = vmatprep.subr.mxu1 %v16443_v5 }
0x1a3b   :  { %14315 = vmatpush3.msra.mxu1 %v17368_v4 }
0x1a3c   :  { %14316 = vmatprep.subr.mxu1 %v16443_v5 }
0x1a3d   :  { %14317 = vmatpush3.msra.mxu1 %v17375_v7 }
0x1a3e   :  { %14318 = vmatprep.subr.mxu1 %v16443_v5 }
0x1a3f   :  { %14319 = vmatpush3.msra.mxu1 %v17382_v10 }
0x1a40   :  { %14320 = vmatprep.subr.mxu1 %v16443_v5 }
0x1a41   :  { %14321 = vmatpush3.msra.mxu1 %v17389_v12 }
0x1a42   :  { %14322 = vmatprep.subr.mxu1 %v16443_v5 }
0x1a43   :  { %14323 = vmatpush3.msra.mxu1 %v17396_v13 }
0x1a44   :  { %14367 = vmatprep.subr.mxu1 %v16443_v5 }
0x1ae2   :  { %v3369_v9 = vpop.f32.mrf.mxu1  ;;  %v17510_v27 = vpop.f32.mrf.mxu0 }
0x1ae3   :  { %v3370_v23 = vadd.f32 %v17516_v21, %v3369_v9 }
0x1ae4   :  { %v14280_v29 = vpop.f32.mrf.mxu1  ;;  %v14291_v15 = vpop.f32.mrf.mxu0 }
0x1ae5   :  { %v3373_v26 = vsel %vm1549_vm6, %v3370_v23, -inf  ;;  %v17584_v29 = vld [vmem:[%s19907_s12 + $0x8] sm:$0xff]  ;;  %v17591_v15 = vld [vmem:[%s19907_s12] sm:$0xff] }
0x1aea   :  { %v3593_v18 = vpop.f32.mrf.mxu0 }
0x1aeb   :  { %v3594_v19 = vadd.f32 %v3593_v18, %v16919_v47 }
0x1aec   :  { %v14337_v20 = vpop.f32.mrf.mxu0 }
0x1aed   :  { %v3597_v25 = vsel %vm1310_vm5, %v3594_v19, -inf }
0x1aee   :  { %3598 = vmax.xlane.f32.xlu0 %v3597_v25 }
0x1af2   :  { %3374 = vmax.xlane.f32.xlu0 %v3373_v26 }
0x1b77   :  { %v3599_v52 = vpop.xlane.xlu0 %3598 }
0x1b78   :  { %v3600_v2 = vsub.f32 %v3594_v19, %v3599_v52  ;;  %v17599_v19 = vld [vmem:[%s19906_s11] ss:$0 sm:$0xff] }
0x1b7a   :  { %v3601_v33 = vmul.f32 1.442695, %v3600_v2 }
0x1b7b   :  { %v3375_v34 = vpop.xlane.xlu0 %3374 }
0x1b7c   :  { %16069 = vpow2.f32 %v3601_v33  ;;  %v3376_v35 = vsub.f32 %v3370_v23, %v3375_v34 }
0x1b7e   :  { %v3377_v37 = vmul.f32 1.442695, %v3376_v35 }
0x1b80   :  { %16071 = vpow2.f32 %v3377_v37 }
0x1b89   :  { %v16070_v38 = vpop.eup %16069 }
0x1b8a   :  { %v3603_v39 = vsel %vm1310_vm5, %v16070_v38, 0.0 }
0x1b8b   :  { %3604 = vadd.xlane.f32.xlu1 %v3603_v39 }
0x1b8d   :  { %v16072_v36 = vpop.eup %16071 }
0x1b8e   :  { %v3379_v41 = vsel %vm1549_vm6, %v16072_v36, 0.0 }
0x1b8f   :  { %3380 = vadd.xlane.f32.xlu1 %v3379_v41 }
0x1c14   :  { %v3605_v42 = vpop.xlane.xlu1 %3604 }
0x1c15   :  { %16073 = vrcp.f32 %v3605_v42 }
0x1c18   :  { %v3381_v11 = vpop.xlane.xlu1 %3380 }
0x1c19   :  { %16075 = vrcp.f32 %v3381_v11 }
0x1c22   :  { %v16074_v22 = vpop.eup %16073 }
0x1c23   :  { %v3607_v24 = vmul.f32 %v16074_v22, %v16070_v38 }
0x1c25   :  { %14343 = vmatmul.mubr.msk.f32.vlgmr.msra.gmra.mxu0 %vm93_vm0, %v3607_v24 }
0x1c26   :  { %v16076_v45 = vpop.eup %16075  ;;  %14346 = vmatpush3.msra.mxu0 %v17527_v0  ;;  %14353 = vmatprep.mubr.msk.f32.mxu0 %vm16444_vm1, %v16443_v5 }
0x1c27   :  { %v3383_v46 = vmul.f32 %v16076_v45, %v16072_v36  ;;  %14347 = vmatprep.subr.mxu0 %v16443_v5 }
0x1c28   :  { %14348 = vmatpush3.msra.mxu0 %v17536_v48 }
0x1c29   :  { %3385 = vst [vmem:[#allocation4 + $0x8] sm:$0x3] %v3383_v46  ;;  %14325 = vmatmul.mubr.f32.vlgmr.msra.gmra.mxu1 %v3383_v46  ;;  %14349 = vmatprep.subr.mxu0 %v16443_v5 }
0x1c2a   :  { %14350 = vmatpush3.msra.mxu0 %v17543_v49  ;;  %14368 = vmatpush3.msra.mxu1 %v17235_v40 }
0x1c2b   :  { %14351 = vmatprep.subr.mxu0 %v16443_v5  ;;  %14369 = vmatprep.subr.mxu1 %v16443_v5 }
0x1c2c   :  { %14352 = vmatpush3.msra.mxu0 %v17552_v3  ;;  %14370 = vmatpush3.msra.mxu1 %v17423_v61 }
0x1c2d   :  { %14356 = vmatprep.subr.mxu0 %v16443_v5  ;;  %14371 = vmatprep.subr.mxu1 %v16443_v5 }
0x1c2e   :  { %14372 = vmatpush3.msra.mxu1 %v17431_v62  ;;  %14375 = vmatprep.mubr.msk.f32.mxu1 %vm16444_vm1, %v16443_v5 }
0x1c2f   :  { %14373 = vmatprep.subr.mxu1 %v16443_v5 }
0x1c30   :  { %14374 = vmatpush3.msra.mxu1 %v17440_v63 }
0x1c31   :  { %14413 = vmatprep.subr.mxu1 %v16443_v5 }
0x1ce5   :  { %v3677_v50 = vpop.f32.mrf.mxu0 }
0x1ce6   :  { %14354 = vmatmul.mubr.msk.f32.vlgmr.msra.gmra.mxu0 %vm175_vm2, %v3677_v50 }
0x1ce7   :  { %v14344_v14 = vpop.f32.mrf.mxu0  ;;  %14357 = vmatpush3.msra.mxu0 %v17568_v16  ;;  %14364 = vmatprep.mubr.msk.f32.mxu0 %vm16444_vm1, %v16443_v5 }
0x1ce8   :  { %14358 = vmatprep.subr.mxu0 %v16443_v5 }
0x1ce9   :  { %v3522_v17 = vpop.f32.mrf.mxu1  ;;  %14359 = vmatpush3.msra.mxu0 %v17577_v6 }
0x1cea   :  { %14360 = vmatprep.subr.mxu0 %v16443_v5  ;;  %v3523_v18 = vadd.f32 %v3522_v17, %v17510_v27 }
0x1ceb   :  { %v14326_v9 = vpop.f32.mrf.mxu1  ;;  %14361 = vmatpush3.msra.mxu0 %v17584_v29 }
0x1cec   :  { %14362 = vmatprep.subr.mxu0 %v16443_v5  ;;  %v3526_v20 = vadd.f32 %v17599_v19, %v3523_v18 }
0x1ced   :  { %14363 = vmatpush3.msra.mxu0 %v17591_v15 }
0x1cee   :  { %14378 = vmatprep.subr.mxu0 %v16443_v5 }
0x1da6   :  { %v3750_v23 = vpop.f32.mrf.mxu0 }
0x1da7   :  { %v3754_v25 = vadd.f32 %v3750_v23, %v3526_v20 }
0x1da8   :  { %v14355_v26 = vpop.f32.mrf.mxu0 }
0x1da9   :  { %16077 = vtanh.f32 %v3754_v25 }
0x1db6   :  { %v16078_v52 = vpop.eup %16077 }
0x1db7   :  { %14365 = vmatmul.mubr.msk.f32.vlgmr.msra.gmra.mxu0 %vm175_vm2, %v16078_v52  ;;  %14376 = vmatmul.mubr.msk.f32.vlgmr.msra.gmra.mxu1 %vm175_vm2, %v16078_v52 }
0x1db8   :  { %14414 = vmatpush3.msra.mxu1 %v16900_v31  ;;  %14421 = vmatprep.mubr.msk.f32.mxu1 %vm16444_vm1, %v16443_v5 }
0x1db9   :  { %14415 = vmatprep.subr.mxu1 %v16443_v5  ;;  %14379 = vmatpush3.msra.mxu0 %v17272_v51 }
0x1dba   :  { %14416 = vmatpush3.msra.mxu1 %v16903_v32  ;;  %14380 = vmatprep.subr.mxu0 %v16443_v5 }
0x1dbb   :  { %14417 = vmatprep.subr.mxu1 %v16443_v5  ;;  %14381 = vmatpush3.msra.mxu0 %v17281_v8 }
0x1dbc   :  { %14418 = vmatpush3.msra.mxu1 %v16896_v28  ;;  %14382 = vmatprep.subr.mxu0 %v16443_v5 }
0x1dbd   :  { %14419 = vmatprep.subr.mxu1 %v16443_v5  ;;  %14383 = vmatpush3.msra.mxu0 %v17290_v43 }
0x1dbe   :  { %14420 = vmatpush3.msra.mxu1 %v16898_v30  ;;  %14384 = vmatprep.subr.mxu0 %v16443_v5 }
0x1dbf   :  { %14422 = vmatmul.mubr.msk.f32.vlgmr.msra.gmra.mxu1 %vm175_vm2, %v16078_v52  ;;  %14424 = vmatprep.subr.mxu1 %v16443_v5 }
0x1dc0   :  { %14425 = vmatpush3.msra.mxu1 %v17297_v53  ;;  %14385 = vmatpush3.msra.mxu0 %v17303_v54 }
0x1dc1   :  { %14426 = vmatprep.subr.mxu1 %v16443_v5  ;;  %14386 = vmatprep.subr.mxu0 %v16443_v5 }
0x1dc2   :  { %14427 = vmatpush3.msra.mxu1 %v17308_v55  ;;  %14387 = vmatpush3.msra.mxu0 %v17314_v56 }
0x1dc3   :  { %14388 = vmatprep.subr.mxu0 %v16443_v5  ;;  %14428 = vmatprep.mubr.msk.f32.mxu1 %vm16444_vm1, %v16443_v5 }
0x1dc4   :  { %14389 = vmatpush3.msra.mxu0 %v17323_v57  ;;  %14410 = vmatprep.mubr.msk.f32.mxu0 %vm16444_vm1, %v16443_v5 }
0x1dc5   :  { %14390 = vmatprep.subr.mxu0 %v16443_v5  ;;  %14431 = vmatprep.subr.mxu1 %v16443_v5 }
0x1dc6   :  { %14391 = vmatpush3.msra.mxu0 %v17333_v58 }
0x1dc7   :  { %14392 = vmatprep.subr.mxu0 %v16443_v5 }
0x1dc8   :  { %14393 = vmatpush3.msra.mxu0 %v17340_v60 }
0x1dc9   :  { %14394 = vmatprep.subr.mxu0 %v16443_v5 }
0x1dca   :  { %14395 = vmatpush3.msra.mxu0 %v17347_v1 }
0x1dcb   :  { %14396 = vmatprep.subr.mxu0 %v16443_v5 }
0x1dcc   :  { %14397 = vmatpush3.msra.mxu0 %v17354_v44 }
0x1dcd   :  { %14398 = vmatprep.subr.mxu0 %v16443_v5 }
0x1dce   :  { %14399 = vmatpush3.msra.mxu0 %v17361_v59 }
0x1dcf   :  { %14400 = vmatprep.subr.mxu0 %v16443_v5 }
0x1dd0   :  { %14401 = vmatpush3.msra.mxu0 %v17368_v4 }
0x1dd1   :  { %14402 = vmatprep.subr.mxu0 %v16443_v5 }
0x1dd2   :  { %14403 = vmatpush3.msra.mxu0 %v17375_v7 }
0x1dd3   :  { %14404 = vmatprep.subr.mxu0 %v16443_v5 }
0x1dd4   :  { %14405 = vmatpush3.msra.mxu0 %v17382_v10 }
0x1dd5   :  { %14406 = vmatprep.subr.mxu0 %v16443_v5 }
0x1dd6   :  { %14407 = vmatpush3.msra.mxu0 %v17389_v12 }
0x1dd7   :  { %14408 = vmatprep.subr.mxu0 %v16443_v5 }
0x1dd8   :  { %14409 = vmatpush3.msra.mxu0 %v17396_v13 }
0x1dd9   :  { %14453 = vmatprep.subr.mxu0 %v16443_v5 }
0x1e77   :  { %v3825_v27 = vpop.f32.mrf.mxu0  ;;  %v17655_v2 = vpop.f32.mrf.mxu1 }
0x1e78   :  { %v3826_v39 = vadd.f32 %v17516_v21, %v3825_v27 }
0x1e79   :  { %v14366_v33 = vpop.f32.mrf.mxu0  ;;  %v14377_v34 = vpop.f32.mrf.mxu1 }
0x1e7a   :  { %v3829_v41 = vsel %vm1549_vm6, %v3826_v39, -inf }
0x1e7f   :  { %v4049_v35 = vpop.f32.mrf.mxu1 }
0x1e80   :  { %v4050_v37 = vadd.f32 %v4049_v35, %v16919_v47 }
0x1e81   :  { %v14423_v38 = vpop.f32.mrf.mxu1 }
0x1e82   :  { %v4053_v36 = vsel %vm1310_vm5, %v4050_v37, -inf }
0x1e83   :  { %4054 = vmax.xlane.f32.xlu0 %v4053_v36 }
0x1e87   :  { %3830 = vmax.xlane.f32.xlu0 %v3829_v41 }
0x1f0c   :  { %v4055_v42 = vpop.xlane.xlu0 %4054 }
0x1f0d   :  { %v4056_v11 = vsub.f32 %v4050_v37, %v4055_v42 }
0x1f0f   :  { %v4057_v22 = vmul.f32 1.442695, %v4056_v11 }
0x1f10   :  { %v3831_v24 = vpop.xlane.xlu0 %3830 }
0x1f11   :  { %16079 = vpow2.f32 %v4057_v22  ;;  %v3832_v45 = vsub.f32 %v3826_v39, %v3831_v24 }
0x1f13   :  { %v3833_v46 = vmul.f32 1.442695, %v3832_v45 }
0x1f15   :  { %16081 = vpow2.f32 %v3833_v46 }
0x1f1e   :  { %v16080_v50 = vpop.eup %16079 }
0x1f1f   :  { %v4059_v14 = vsel %vm1310_vm5, %v16080_v50, 0.0 }
0x1f20   :  { %4060 = vadd.xlane.f32.xlu1 %v4059_v14 }
0x1f22   :  { %v16082_v17 = vpop.eup %16081 }
0x1f23   :  { %v3835_v9 = vsel %vm1549_vm6, %v16082_v17, 0.0 }
0x1f24   :  { %3836 = vadd.xlane.f32.xlu1 %v3835_v9 }
0x1fa9   :  { %v4061_v18 = vpop.xlane.xlu1 %4060 }
0x1faa   :  { %16083 = vrcp.f32 %v4061_v18 }
0x1fad   :  { %v3837_v20 = vpop.xlane.xlu1 %3836 }
0x1fae   :  { %16085 = vrcp.f32 %v3837_v20 }
0x1fb7   :  { %v16084_v23 = vpop.eup %16083 }
0x1fb8   :  { %v4063_v25 = vmul.f32 %v16084_v23, %v16080_v50 }
0x1fba   :  { %14429 = vmatmul.mubr.msk.f32.vlgmr.msra.gmra.mxu1 %vm93_vm0, %v4063_v25 }
0x1fbb   :  { %v16086_v26 = vpop.eup %16085  ;;  %14432 = vmatpush3.msra.mxu1 %v17527_v0  ;;  %14439 = vmatprep.mubr.msk.f32.mxu1 %vm16444_vm1, %v16443_v5 }
0x1fbc   :  { %v3839_v52 = vmul.f32 %v16086_v26, %v16082_v17  ;;  %14433 = vmatprep.subr.mxu1 %v16443_v5 }
0x1fbd   :  { %14434 = vmatpush3.msra.mxu1 %v17536_v48 }
0x1fbe   :  { %3841 = vst [vmem:[#allocation4 + $0xa] sm:$0x3] %v3839_v52  ;;  %14411 = vmatmul.mubr.f32.vlgmr.msra.gmra.mxu0 %v3839_v52  ;;  %14435 = vmatprep.subr.mxu1 %v16443_v5 }
0x1fbf   :  { %14436 = vmatpush3.msra.mxu1 %v17543_v49  ;;  %14454 = vmatpush3.msra.mxu0 %v17235_v40 }
0x1fc0   :  { %14437 = vmatprep.subr.mxu1 %v16443_v5  ;;  %14455 = vmatprep.subr.mxu0 %v16443_v5 }
0x1fc1   :  { %14438 = vmatpush3.msra.mxu1 %v17552_v3  ;;  %14456 = vmatpush3.msra.mxu0 %v17423_v61 }
0x1fc2   :  { %14442 = vmatprep.subr.mxu1 %v16443_v5  ;;  %14457 = vmatprep.subr.mxu0 %v16443_v5 }
0x1fc3   :  { %14458 = vmatpush3.msra.mxu0 %v17431_v62  ;;  %14461 = vmatprep.mubr.msk.f32.mxu0 %vm16444_vm1, %v16443_v5 }
0x1fc4   :  { %14459 = vmatprep.subr.mxu0 %v16443_v5 }
0x1fc5   :  { %14460 = vmatpush3.msra.mxu0 %v17440_v63 }
0x1fc6   :  { %14499 = vmatprep.subr.mxu0 %v16443_v5 }
0x207a   :  { %v4133_v27 = vpop.f32.mrf.mxu1 }
0x207b   :  { %14440 = vmatmul.mubr.msk.f32.vlgmr.msra.gmra.mxu1 %vm175_vm2, %v4133_v27 }
0x207c   :  { %v14430_v33 = vpop.f32.mrf.mxu1  ;;  %14443 = vmatpush3.msra.mxu1 %v17568_v16  ;;  %14450 = vmatprep.mubr.msk.f32.mxu1 %vm16444_vm1, %v16443_v5 }
0x207d   :  { %14444 = vmatprep.subr.mxu1 %v16443_v5 }
0x207e   :  { %v3978_v34 = vpop.f32.mrf.mxu0  ;;  %14445 = vmatpush3.msra.mxu1 %v17577_v6 }
0x207f   :  { %14446 = vmatprep.subr.mxu1 %v16443_v5  ;;  %v3979_v37 = vadd.f32 %v3978_v34, %v17655_v2 }
0x2080   :  { %v14412_v35 = vpop.f32.mrf.mxu0  ;;  %14447 = vmatpush3.msra.mxu1 %v17584_v29 }
0x2081   :  { %14448 = vmatprep.subr.mxu1 %v16443_v5  ;;  %v3982_v38 = vadd.f32 %v17599_v19, %v3979_v37 }
0x2082   :  { %14449 = vmatpush3.msra.mxu1 %v17591_v15 }
0x2083   :  { %14464 = vmatprep.subr.mxu1 %v16443_v5 }
0x213b   :  { %v4206_v39 = vpop.f32.mrf.mxu1 }
0x213c   :  { %v4210_v36 = vadd.f32 %v4206_v39, %v3982_v38 }
0x213d   :  { %v14441_v41 = vpop.f32.mrf.mxu1 }
0x213e   :  { %16087 = vtanh.f32 %v4210_v36 }
0x214b   :  { %v16088_v42 = vpop.eup %16087 }
0x214c   :  { %14451 = vmatmul.mubr.msk.f32.vlgmr.msra.gmra.mxu1 %vm175_vm2, %v16088_v42  ;;  %14462 = vmatmul.mubr.msk.f32.vlgmr.msra.gmra.mxu0 %vm175_vm2, %v16088_v42 }
0x214d   :  { %14500 = vmatpush3.msra.mxu0 %v16900_v31  ;;  %14507 = vmatprep.mubr.msk.f32.mxu0 %vm16444_vm1, %v16443_v5 }
0x214e   :  { %14501 = vmatprep.subr.mxu0 %v16443_v5  ;;  %14465 = vmatpush3.msra.mxu1 %v17272_v51 }
0x214f   :  { %14502 = vmatpush3.msra.mxu0 %v16903_v32  ;;  %14466 = vmatprep.subr.mxu1 %v16443_v5 }
0x2150   :  { %14503 = vmatprep.subr.mxu0 %v16443_v5  ;;  %14467 = vmatpush3.msra.mxu1 %v17281_v8 }
0x2151   :  { %14504 = vmatpush3.msra.mxu0 %v16896_v28  ;;  %14468 = vmatprep.subr.mxu1 %v16443_v5 }
0x2152   :  { %14505 = vmatprep.subr.mxu0 %v16443_v5  ;;  %14469 = vmatpush3.msra.mxu1 %v17290_v43 }
0x2153   :  { %14506 = vmatpush3.msra.mxu0 %v16898_v30  ;;  %14470 = vmatprep.subr.mxu1 %v16443_v5 }
0x2154   :  { %14508 = vmatmul.mubr.msk.f32.vlgmr.msra.gmra.mxu0 %vm175_vm2, %v16088_v42  ;;  %14510 = vmatprep.subr.mxu0 %v16443_v5 }
0x2155   :  { %14511 = vmatpush3.msra.mxu0 %v17297_v53  ;;  %14471 = vmatpush3.msra.mxu1 %v17303_v54 }
0x2156   :  { %14512 = vmatprep.subr.mxu0 %v16443_v5  ;;  %14472 = vmatprep.subr.mxu1 %v16443_v5 }
0x2157   :  { %14513 = vmatpush3.msra.mxu0 %v17308_v55  ;;  %14473 = vmatpush3.msra.mxu1 %v17314_v56 }
0x2158   :  { %14474 = vmatprep.subr.mxu1 %v16443_v5  ;;  %14514 = vmatprep.mubr.msk.f32.mxu0 %vm16444_vm1, %v16443_v5 }
0x2159   :  { %14475 = vmatpush3.msra.mxu1 %v17323_v57  ;;  %14496 = vmatprep.mubr.msk.f32.mxu1 %vm16444_vm1, %v16443_v5 }
0x215a   :  { %14476 = vmatprep.subr.mxu1 %v16443_v5  ;;  %14517 = vmatprep.subr.mxu0 %v16443_v5 }
0x215b   :  { %14477 = vmatpush3.msra.mxu1 %v17333_v58 }
0x215c   :  { %14478 = vmatprep.subr.mxu1 %v16443_v5 }
0x215d   :  { %14479 = vmatpush3.msra.mxu1 %v17340_v60 }
0x215e   :  { %14480 = vmatprep.subr.mxu1 %v16443_v5 }
0x215f   :  { %14481 = vmatpush3.msra.mxu1 %v17347_v1 }
0x2160   :  { %14482 = vmatprep.subr.mxu1 %v16443_v5 }
0x2161   :  { %14483 = vmatpush3.msra.mxu1 %v17354_v44 }
0x2162   :  { %14484 = vmatprep.subr.mxu1 %v16443_v5 }
0x2163   :  { %14485 = vmatpush3.msra.mxu1 %v17361_v59 }
0x2164   :  { %14486 = vmatprep.subr.mxu1 %v16443_v5 }
0x2165   :  { %14487 = vmatpush3.msra.mxu1 %v17368_v4 }
0x2166   :  { %14488 = vmatprep.subr.mxu1 %v16443_v5 }
0x2167   :  { %14489 = vmatpush3.msra.mxu1 %v17375_v7 }
0x2168   :  { %14490 = vmatprep.subr.mxu1 %v16443_v5 }
0x2169   :  { %14491 = vmatpush3.msra.mxu1 %v17382_v10 }
0x216a   :  { %14492 = vmatprep.subr.mxu1 %v16443_v5 }
0x216b   :  { %14493 = vmatpush3.msra.mxu1 %v17389_v12 }
0x216c   :  { %14494 = vmatprep.subr.mxu1 %v16443_v5 }
0x216d   :  { %14495 = vmatpush3.msra.mxu1 %v17396_v13 }
0x216e   :  { %14539 = vmatprep.subr.mxu1 %v16443_v5 }
0x220c   :  { %v4281_v2 = vpop.f32.mrf.mxu1  ;;  %v17750_v11 = vpop.f32.mrf.mxu0 }
0x220d   :  { %v4282_v14 = vadd.f32 %v17516_v21, %v4281_v2 }
0x220e   :  { %v14452_v22 = vpop.f32.mrf.mxu1  ;;  %v14463_v24 = vpop.f32.mrf.mxu0 }
0x220f   :  { %v4285_v9 = vsel %vm1549_vm6, %v4282_v14, -inf }
0x2214   :  { %v4505_v45 = vpop.f32.mrf.mxu0 }
0x2215   :  { %v4506_v46 = vadd.f32 %v4505_v45, %v16919_v47 }
0x2216   :  { %v14509_v50 = vpop.f32.mrf.mxu0 }
0x2217   :  { %v4509_v17 = vsel %vm1310_vm5, %v4506_v46, -inf }
0x2218   :  { %4510 = vmax.xlane.f32.xlu0 %v4509_v17 }
0x221c   :  { %4286 = vmax.xlane.f32.xlu0 %v4285_v9 }
0x22a1   :  { %v4511_v18 = vpop.xlane.xlu0 %4510 }
0x22a2   :  { %v4512_v20 = vsub.f32 %v4506_v46, %v4511_v18 }
0x22a4   :  { %v4513_v23 = vmul.f32 1.442695, %v4512_v20 }
0x22a5   :  { %v4287_v25 = vpop.xlane.xlu0 %4286 }
0x22a6   :  { %16089 = vpow2.f32 %v4513_v23  ;;  %v4288_v26 = vsub.f32 %v4282_v14, %v4287_v25 }
0x22a8   :  { %v4289_v52 = vmul.f32 1.442695, %v4288_v26 }
0x22aa   :  { %16091 = vpow2.f32 %v4289_v52 }
0x22b3   :  { %v16090_v27 = vpop.eup %16089 }
0x22b4   :  { %v4515_v33 = vsel %vm1310_vm5, %v16090_v27, 0.0 }
0x22b5   :  { %4516 = vadd.xlane.f32.xlu1 %v4515_v33  ;;  %v17864_v33 = vld [vmem:[%s19905_s10 + $0x18] sm:$0xff] }
0x22b7   :  { %v16092_v34 = vpop.eup %16091 }
0x22b8   :  { %v4291_v35 = vsel %vm1549_vm6, %v16092_v34, 0.0 }
0x22b9   :  { %4292 = vadd.xlane.f32.xlu1 %v4291_v35 }
0x233e   :  { %v4517_v37 = vpop.xlane.xlu1 %4516 }
0x233f   :  { %16093 = vrcp.f32 %v4517_v37 }
0x2342   :  { %v4293_v38 = vpop.xlane.xlu1 %4292 }
0x2343   :  { %16095 = vrcp.f32 %v4293_v38 }
0x234c   :  { %v16094_v39 = vpop.eup %16093 }
0x234d   :  { %v4519_v36 = vmul.f32 %v16094_v39, %v16090_v27 }
0x234f   :  { %14515 = vmatmul.mubr.msk.f32.vlgmr.msra.gmra.mxu0 %vm93_vm0, %v4519_v36 }
0x2350   :  { %v16096_v41 = vpop.eup %16095  ;;  %14518 = vmatpush3.msra.mxu0 %v17527_v0  ;;  %14525 = vmatprep.mubr.msk.f32.mxu0 %vm16444_vm1, %v16443_v5 }
0x2351   :  { %v4295_v42 = vmul.f32 %v16096_v41, %v16092_v34  ;;  %14519 = vmatprep.subr.mxu0 %v16443_v5 }
0x2352   :  { %14520 = vmatpush3.msra.mxu0 %v17536_v48 }
0x2353   :  { %4297 = vst [vmem:[#allocation4 + $0xc] sm:$0x3] %v4295_v42  ;;  %14497 = vmatmul.mubr.f32.vlgmr.msra.gmra.mxu1 %v4295_v42  ;;  %14521 = vmatprep.subr.mxu0 %v16443_v5  ;;  %v17901_v42 = vld [vmem:[%s19904_s9 + $0x78] sm:$0xff] }
0x2354   :  { %14522 = vmatpush3.msra.mxu0 %v17543_v49  ;;  %14540 = vmatpush3.msra.mxu1 %v17235_v40 }
0x2355   :  { %14523 = vmatprep.subr.mxu0 %v16443_v5  ;;  %14541 = vmatprep.subr.mxu1 %v16443_v5 }
0x2356   :  { %14524 = vmatpush3.msra.mxu0 %v17552_v3  ;;  %14542 = vmatpush3.msra.mxu1 %v17423_v61 }
0x2357   :  { %14528 = vmatprep.subr.mxu0 %v16443_v5  ;;  %14543 = vmatprep.subr.mxu1 %v16443_v5 }
0x2358   :  { %14544 = vmatpush3.msra.mxu1 %v17431_v62  ;;  %14547 = vmatprep.mubr.msk.f32.mxu1 %vm16444_vm1, %v16443_v5 }
0x2359   :  { %14545 = vmatprep.subr.mxu1 %v16443_v5 }
0x235a   :  { %14546 = vmatpush3.msra.mxu1 %v17440_v63 }
0x235b   :  { %14585 = vmatprep.subr.mxu1 %v16443_v5 }
0x240f   :  { %v4589_v40 = vpop.f32.mrf.mxu0 }
0x2410   :  { %14526 = vmatmul.mubr.msk.f32.vlgmr.msra.gmra.mxu0 %vm175_vm2, %v4589_v40  ;;  %v17910_v40 = vld [vmem:[%s19904_s9 + $0x70] sm:$0xff] }
0x2411   :  { %v14516_v2 = vpop.f32.mrf.mxu0  ;;  %14529 = vmatpush3.msra.mxu0 %v17568_v16  ;;  %14536 = vmatprep.mubr.msk.f32.mxu0 %vm16444_vm1, %v16443_v5 }
0x2412   :  { %14530 = vmatprep.subr.mxu0 %v16443_v5  ;;  %v17919_v2 = vld [vmem:[%s19904_s9 + $0x68] sm:$0xff] }
0x2413   :  { %v4434_v22 = vpop.f32.mrf.mxu1  ;;  %14531 = vmatpush3.msra.mxu0 %v17577_v6 }
0x2414   :  { %14532 = vmatprep.subr.mxu0 %v16443_v5  ;;  %v4435_v45 = vadd.f32 %v4434_v22, %v17750_v11  ;;  %v17926_v22 = vld [vmem:[#allocation2 + $0x8] sm:$0xff] }
0x2415   :  { %v14498_v24 = vpop.f32.mrf.mxu1  ;;  %14533 = vmatpush3.msra.mxu0 %v17584_v29 }
0x2416   :  { %14534 = vmatprep.subr.mxu0 %v16443_v5  ;;  %v4438_v46 = vadd.f32 %v17599_v19, %v4435_v45  ;;  %v17932_v24 = vld [vmem:[%s19904_s9 + $0x60] sm:$0xff] }
0x2417   :  { %14535 = vmatpush3.msra.mxu0 %v17591_v15  ;;  %v17937_v45 = vld [vmem:[#allocation2] sm:$0xff] }
0x2418   :  { %14550 = vmatprep.subr.mxu0 %v16443_v5 }
0x24d0   :  { %v4662_v50 = vpop.f32.mrf.mxu0 }
0x24d1   :  { %v4666_v14 = vadd.f32 %v4662_v50, %v4438_v46  ;;  %v17943_v46 = vld [vmem:[%s19904_s9 + $0x58] sm:$0xff]  ;;  %v17952_v50 = vld [vmem:[%s19904_s9 + $0x50] sm:$0xff] }
0x24d2   :  { %v14527_v17 = vpop.f32.mrf.mxu0 }
0x24d3   :  { %16097 = vtanh.f32 %v4666_v14  ;;  %v17962_v14 = vld [vmem:[%s19904_s9 + $0x48] sm:$0xff]  ;;  %v17969_v17 = vld [vmem:[%s19904_s9 + $0x40] sm:$0xff] }
0x24e0   :  { %v16098_v9 = vpop.eup %16097 }
0x24e1   :  { %14537 = vmatmul.mubr.msk.f32.vlgmr.msra.gmra.mxu0 %vm175_vm2, %v16098_v9  ;;  %14548 = vmatmul.mubr.msk.f32.vlgmr.msra.gmra.mxu1 %vm175_vm2, %v16098_v9 }
0x24e2   :  { %14586 = vmatpush3.msra.mxu1 %v16900_v31  ;;  %14593 = vmatprep.mubr.msk.f32.mxu1 %vm16444_vm1, %v16443_v5 }
0x24e3   :  { %14587 = vmatprep.subr.mxu1 %v16443_v5  ;;  %14551 = vmatpush3.msra.mxu0 %v17272_v51 }
0x24e4   :  { %14588 = vmatpush3.msra.mxu1 %v16903_v32  ;;  %14552 = vmatprep.subr.mxu0 %v16443_v5 }
0x24e5   :  { %14589 = vmatprep.subr.mxu1 %v16443_v5  ;;  %14553 = vmatpush3.msra.mxu0 %v17281_v8 }
0x24e6   :  { %14590 = vmatpush3.msra.mxu1 %v16896_v28  ;;  %14554 = vmatprep.subr.mxu0 %v16443_v5 }
0x24e7   :  { %14591 = vmatprep.subr.mxu1 %v16443_v5  ;;  %14555 = vmatpush3.msra.mxu0 %v17290_v43 }
0x24e8   :  { %14592 = vmatpush3.msra.mxu1 %v16898_v30  ;;  %14556 = vmatprep.subr.mxu0 %v16443_v5 }
0x24e9   :  { %14594 = vmatmul.mubr.msk.f32.vlgmr.msra.gmra.mxu1 %vm175_vm2, %v16098_v9  ;;  %14596 = vmatprep.subr.mxu1 %v16443_v5  ;;  %v17976_v9 = vld [vmem:[%s19904_s9 + $0x38] sm:$0xff] }
0x24ea   :  { %14597 = vmatpush3.msra.mxu1 %v17297_v53  ;;  %14557 = vmatpush3.msra.mxu0 %v17303_v54 }
0x24eb   :  { %14598 = vmatprep.subr.mxu1 %v16443_v5  ;;  %14558 = vmatprep.subr.mxu0 %v16443_v5 }
0x24ec   :  { %14599 = vmatpush3.msra.mxu1 %v17308_v55  ;;  %14559 = vmatpush3.msra.mxu0 %v17314_v56 }
0x24ed   :  { %14560 = vmatprep.subr.mxu0 %v16443_v5  ;;  %14600 = vmatprep.mubr.msk.f32.mxu1 %vm16444_vm1, %v16443_v5 }
0x24ee   :  { %14561 = vmatpush3.msra.mxu0 %v17323_v57  ;;  %14582 = vmatprep.mubr.msk.f32.mxu0 %vm16444_vm1, %v16443_v5 }
0x24ef   :  { %14562 = vmatprep.subr.mxu0 %v16443_v5  ;;  %14603 = vmatprep.subr.mxu1 %v16443_v5 }
0x24f0   :  { %14563 = vmatpush3.msra.mxu0 %v17333_v58 }
0x24f1   :  { %14564 = vmatprep.subr.mxu0 %v16443_v5 }
0x24f2   :  { %14565 = vmatpush3.msra.mxu0 %v17340_v60 }
0x24f3   :  { %14566 = vmatprep.subr.mxu0 %v16443_v5 }
0x24f4   :  { %14567 = vmatpush3.msra.mxu0 %v17347_v1 }
0x24f5   :  { %14568 = vmatprep.subr.mxu0 %v16443_v5 }
0x24f6   :  { %14569 = vmatpush3.msra.mxu0 %v17354_v44 }
0x24f7   :  { %14570 = vmatprep.subr.mxu0 %v16443_v5 }
0x24f8   :  { %14571 = vmatpush3.msra.mxu0 %v17361_v59 }
0x24f9   :  { %14572 = vmatprep.subr.mxu0 %v16443_v5 }
0x24fa   :  { %14573 = vmatpush3.msra.mxu0 %v17368_v4 }
0x24fb   :  { %14574 = vmatprep.subr.mxu0 %v16443_v5 }
0x24fc   :  { %14575 = vmatpush3.msra.mxu0 %v17375_v7 }
0x24fd   :  { %14576 = vmatprep.subr.mxu0 %v16443_v5 }
0x24fe   :  { %14577 = vmatpush3.msra.mxu0 %v17382_v10 }
0x24ff   :  { %14578 = vmatprep.subr.mxu0 %v16443_v5 }
0x2500   :  { %14579 = vmatpush3.msra.mxu0 %v17389_v12 }
0x2501   :  { %14580 = vmatprep.subr.mxu0 %v16443_v5 }
0x2502   :  { %14581 = vmatpush3.msra.mxu0 %v17396_v13 }
0x2503   :  { %14625 = vmatprep.subr.mxu0 %v16443_v5 }
0x25a1   :  { %v4737_v51 = vpop.f32.mrf.mxu0  ;;  %v17845_v8 = vpop.f32.mrf.mxu1 }
0x25a2   :  { %v4738_v57 = vadd.f32 %v17516_v21, %v4737_v51  ;;  %v17983_v51 = vld [vmem:[%s19904_s9 + $0x30] sm:$0xff] }
0x25a3   :  { %v14538_v43 = vpop.f32.mrf.mxu0  ;;  %v14549_v53 = vpop.f32.mrf.mxu1 }
0x25a4   :  { %v4741_v60 = vsel %vm1549_vm6, %v4738_v57, -inf  ;;  %v17997_v43 = vld [vmem:[%s19904_s9 + $0x20] sm:$0xff]  ;;  %v18004_v53 = vld [vmem:[%s19904_s9 + $0x18] sm:$0xff] }
0x25a9   :  { %v4961_v54 = vpop.f32.mrf.mxu1 }
0x25aa   :  { %v4962_v55 = vadd.f32 %v4961_v54, %v16919_v47  ;;  %v18011_v54 = vld [vmem:[%s19904_s9 + $0x10] sm:$0xff] }
0x25ab   :  { %v14595_v56 = vpop.f32.mrf.mxu1 }
0x25ac   :  { %v4965_v58 = vsel %vm1310_vm5, %v4962_v55, -inf  ;;  %v18025_v56 = vld [vmem:[%s19904_s9] sm:$0xff] }
0x25ad   :  { %4966 = vmax.xlane.f32.xlu0 %v4965_v58 }
0x25b1   :  { %4742 = vmax.xlane.f32.xlu0 %v4741_v60 }
0x2636   :  { %v4967_v1 = vpop.xlane.xlu0 %4966 }
0x2637   :  { %v4968_v44 = vsub.f32 %v4962_v55, %v4967_v1  ;;  %v18018_v55 = vld [vmem:[%s19904_s9 + $0x8] sm:$0xff] }
0x2639   :  { %v4969_v59 = vmul.f32 1.442695, %v4968_v44 }
0x263a   :  { %v4743_v4 = vpop.xlane.xlu0 %4742 }
0x263b   :  { %16099 = vpow2.f32 %v4969_v59  ;;  %v4744_v7 = vsub.f32 %v4738_v57, %v4743_v4 }
0x263d   :  { %v4745_v10 = vmul.f32 1.442695, %v4744_v7 }
0x263f   :  { %16101 = vpow2.f32 %v4745_v10 }
0x2648   :  { %v16100_v12 = vpop.eup %16099 }
0x2649   :  { %v4971_v13 = vsel %vm1310_vm5, %v16100_v12, 0.0 }
0x264a   :  { %4972 = vadd.xlane.f32.xlu1 %v4971_v13 }
0x264c   :  { %v16102_v11 = vpop.eup %16101 }
0x264d   :  { %v4747_v18 = vsel %vm1549_vm6, %v16102_v11, 0.0 }
0x264e   :  { %4748 = vadd.xlane.f32.xlu1 %v4747_v18 }
0x26d3   :  { %v4973_v20 = vpop.xlane.xlu1 %4972 }
0x26d4   :  { %16103 = vrcp.f32 %v4973_v20 }
0x26d7   :  { %v4749_v23 = vpop.xlane.xlu1 %4748 }
0x26d8   :  { %16105 = vrcp.f32 %v4749_v23 }
0x26e1   :  { %v16104_v25 = vpop.eup %16103 }
0x26e2   :  { %v4975_v26 = vmul.f32 %v16104_v25, %v16100_v12 }
0x26e4   :  { %14601 = vmatmul.mubr.msk.f32.vlgmr.msra.gmra.mxu1 %vm93_vm0, %v4975_v26 }
0x26e5   :  { %v16106_v52 = vpop.eup %16105  ;;  %14604 = vmatpush3.msra.mxu1 %v17527_v0  ;;  %14611 = vmatprep.mubr.msk.f32.mxu1 %vm16444_vm1, %v16443_v5 }
0x26e6   :  { %v4751_v27 = vmul.f32 %v16106_v52, %v16102_v11  ;;  %14605 = vmatprep.subr.mxu1 %v16443_v5 }
0x26e7   :  { %14606 = vmatpush3.msra.mxu1 %v17536_v48 }
0x26e8   :  { %4753 = vst [vmem:[#allocation4 + $0xe] sm:$0x3] %v4751_v27  ;;  %14583 = vmatmul.mubr.f32.vlgmr.msra.gmra.mxu0 %v4751_v27  ;;  %14607 = vmatprep.subr.mxu1 %v16443_v5 }
0x26e9   :  { %14608 = vmatpush3.msra.mxu1 %v17543_v49  ;;  %14626 = vmatpush3.msra.mxu0 %v17864_v33 }
0x26ea   :  { %14609 = vmatprep.subr.mxu1 %v16443_v5  ;;  %14627 = vmatprep.subr.mxu0 %v16443_v5 }
0x26eb   :  { %14610 = vmatpush3.msra.mxu1 %v17552_v3  ;;  %14628 = vmatpush3.msra.mxu0 %v17423_v61 }
0x26ec   :  { %14614 = vmatprep.subr.mxu1 %v16443_v5  ;;  %14629 = vmatprep.subr.mxu0 %v16443_v5 }
0x26ed   :  { %14630 = vmatpush3.msra.mxu0 %v17431_v62  ;;  %14633 = vmatprep.mubr.msk.f32.mxu0 %vm16444_vm1, %v16443_v5 }
0x26ee   :  { %14631 = vmatprep.subr.mxu0 %v16443_v5 }
0x26ef   :  { %14632 = vmatpush3.msra.mxu0 %v17440_v63 }
0x26f0   :  { %14671 = vmatprep.subr.mxu0 %v16443_v5 }
0x27a4   :  { %v5045_v34 = vpop.f32.mrf.mxu1 }
0x27a5   :  { %14612 = vmatmul.mubr.msk.f32.vlgmr.msra.gmra.mxu1 %vm175_vm2, %v5045_v34 }
0x27a6   :  { %v14602_v35 = vpop.f32.mrf.mxu1  ;;  %14615 = vmatpush3.msra.mxu1 %v17568_v16  ;;  %14622 = vmatprep.mubr.msk.f32.mxu1 %vm16444_vm1, %v16443_v5 }
0x27a7   :  { %14616 = vmatprep.subr.mxu1 %v16443_v5 }
0x27a8   :  { %v4890_v61 = vpop.f32.mrf.mxu0  ;;  %14617 = vmatpush3.msra.mxu1 %v17577_v6 }
0x27a9   :  { %14618 = vmatprep.subr.mxu1 %v16443_v5  ;;  %v4891_v63 = vadd.f32 %v4890_v61, %v17845_v8  ;;  %v17990_v8 = vld [vmem:[%s19904_s9 + $0x28] sm:$0xff] }
0x27aa   :  { %v14584_v62 = vpop.f32.mrf.mxu0  ;;  %14619 = vmatpush3.msra.mxu1 %v17584_v29 }
0x27ab   :  { %14620 = vmatprep.subr.mxu1 %v16443_v5  ;;  %v4894_v37 = vadd.f32 %v17599_v19, %v4891_v63 }
0x27ac   :  { %14621 = vmatpush3.msra.mxu1 %v17591_v15 }
0x27ad   :  { %14636 = vmatprep.subr.mxu1 %v16443_v5 }
0x2865   :  { %v5118_v38 = vpop.f32.mrf.mxu1 }
0x2866   :  { %v5122_v39 = vadd.f32 %v5118_v38, %v4894_v37 }
0x2867   :  { %v14613_v36 = vpop.f32.mrf.mxu1 }
0x2868   :  { %16107 = vtanh.f32 %v5122_v39 }
0x2875   :  { %v16108_v41 = vpop.eup %16107 }
0x2876   :  { %14623 = vmatmul.mubr.msk.f32.vlgmr.msra.gmra.mxu1 %vm175_vm2, %v16108_v41  ;;  %14634 = vmatmul.mubr.msk.f32.vlgmr.msra.gmra.mxu0 %vm175_vm2, %v16108_v41 }
0x2877   :  { %14672 = vmatpush3.msra.mxu0 %v16900_v31  ;;  %14679 = vmatprep.mubr.msk.f32.mxu0 %vm16444_vm1, %v16443_v5 }
0x2878   :  { %14673 = vmatprep.subr.mxu0 %v16443_v5  ;;  %14637 = vmatpush3.msra.mxu1 %v17901_v42 }
0x2879   :  { %14674 = vmatpush3.msra.mxu0 %v16903_v32  ;;  %14638 = vmatprep.subr.mxu1 %v16443_v5 }
0x287a   :  { %14675 = vmatprep.subr.mxu0 %v16443_v5  ;;  %14639 = vmatpush3.msra.mxu1 %v17910_v40 }
0x287b   :  { %14676 = vmatpush3.msra.mxu0 %v16896_v28  ;;  %14640 = vmatprep.subr.mxu1 %v16443_v5 }
0x287c   :  { %14677 = vmatprep.subr.mxu0 %v16443_v5  ;;  %14641 = vmatpush3.msra.mxu1 %v17919_v2 }
0x287d   :  { %14678 = vmatpush3.msra.mxu0 %v16898_v30  ;;  %14642 = vmatprep.subr.mxu1 %v16443_v5 }
0x287e   :  { %14680 = vmatmul.mubr.msk.f32.vlgmr.msra.gmra.mxu0 %vm175_vm2, %v16108_v41  ;;  %14682 = vmatprep.subr.mxu0 %v16443_v5 }
0x287f   :  { %14683 = vmatpush3.msra.mxu0 %v17926_v22  ;;  %14643 = vmatpush3.msra.mxu1 %v17932_v24 }
0x2880   :  { %14684 = vmatprep.subr.mxu0 %v16443_v5  ;;  %14644 = vmatprep.subr.mxu1 %v16443_v5 }
0x2881   :  { %14685 = vmatpush3.msra.mxu0 %v17937_v45  ;;  %14645 = vmatpush3.msra.mxu1 %v17943_v46 }
0x2882   :  { %14646 = vmatprep.subr.mxu1 %v16443_v5  ;;  %14686 = vmatprep.mubr.msk.f32.mxu0 %vm16444_vm1, %v16443_v5 }
0x2883   :  { %14647 = vmatpush3.msra.mxu1 %v17952_v50  ;;  %14668 = vmatprep.mubr.msk.f32.mxu1 %vm16444_vm1, %v16443_v5 }
0x2884   :  { %14648 = vmatprep.subr.mxu1 %v16443_v5  ;;  %14689 = vmatprep.subr.mxu0 %v16443_v5 }
0x2885   :  { %14649 = vmatpush3.msra.mxu1 %v17962_v14 }
0x2886   :  { %14650 = vmatprep.subr.mxu1 %v16443_v5 }
0x2887   :  { %14651 = vmatpush3.msra.mxu1 %v17969_v17 }
0x2888   :  { %14652 = vmatprep.subr.mxu1 %v16443_v5 }
0x2889   :  { %14653 = vmatpush3.msra.mxu1 %v17976_v9 }
0x288a   :  { %14654 = vmatprep.subr.mxu1 %v16443_v5 }
0x288b   :  { %14655 = vmatpush3.msra.mxu1 %v17983_v51 }
0x288c   :  { %14656 = vmatprep.subr.mxu1 %v16443_v5 }
0x288d   :  { %14657 = vmatpush3.msra.mxu1 %v17990_v8 }
0x288e   :  { %14658 = vmatprep.subr.mxu1 %v16443_v5 }
0x288f   :  { %14659 = vmatpush3.msra.mxu1 %v17997_v43 }
0x2890   :  { %14660 = vmatprep.subr.mxu1 %v16443_v5 }
0x2891   :  { %14661 = vmatpush3.msra.mxu1 %v18004_v53 }
0x2892   :  { %14662 = vmatprep.subr.mxu1 %v16443_v5 }
0x2893   :  { %14663 = vmatpush3.msra.mxu1 %v18011_v54 }
0x2894   :  { %14664 = vmatprep.subr.mxu1 %v16443_v5 }
0x2895   :  { %14665 = vmatpush3.msra.mxu1 %v18018_v55 }
0x2896   :  { %14666 = vmatprep.subr.mxu1 %v16443_v5 }
0x2897   :  { %14667 = vmatpush3.msra.mxu1 %v18025_v56 }
0x2898   :  { %14711 = vmatprep.subr.mxu1 %v16443_v5 }
0x2936   :  { %v5193_v57 = vpop.f32.mrf.mxu1  ;;  %v18029_v58 = vpop.f32.mrf.mxu0 }
0x2937   :  { %v5194_v7 = vadd.f32 %v17516_v21, %v5193_v57 }
0x2938   :  { %v14624_v60 = vpop.f32.mrf.mxu1  ;;  %v14635_v1 = vpop.f32.mrf.mxu0 }
0x2939   :  { %v5197_v12 = vsel %vm1549_vm6, %v5194_v7, -inf }
0x293e   :  { %v5417_v44 = vpop.f32.mrf.mxu0 }
0x293f   :  { %v5418_v59 = vadd.f32 %v5417_v44, %v16919_v47 }
0x2940   :  { %v14681_v4 = vpop.f32.mrf.mxu0 }
0x2941   :  { %v5421_v10 = vsel %vm1310_vm5, %v5418_v59, -inf }
0x2942   :  { %5422 = vmax.xlane.f32.xlu0 %v5421_v10 }
0x2946   :  { %5198 = vmax.xlane.f32.xlu0 %v5197_v12 }
0x29cb   :  { %v5423_v13 = vpop.xlane.xlu0 %5422 }
0x29cc   :  { %v5424_v11 = vsub.f32 %v5418_v59, %v5423_v13 }
0x29ce   :  { %v5425_v18 = vmul.f32 1.442695, %v5424_v11 }
0x29cf   :  { %v5199_v20 = vpop.xlane.xlu0 %5198 }
0x29d0   :  { %16109 = vpow2.f32 %v5425_v18  ;;  %v5200_v23 = vsub.f32 %v5194_v7, %v5199_v20  ;;  %v18145_v7 = vld [vmem:[%s19908_s13] ss:$0 sm:$0xff] }
0x29d2   :  { %v5201_v25 = vmul.f32 1.442695, %v5200_v23 }
0x29d4   :  { %16111 = vpow2.f32 %v5201_v25 }
0x29dd   :  { %v16110_v26 = vpop.eup %16109 }
0x29de   :  { %v5427_v52 = vsel %vm1310_vm5, %v16110_v26, 0.0 }
0x29df   :  { %5428 = vadd.xlane.f32.xlu1 %v5427_v52 }
0x29e1   :  { %v16112_v27 = vpop.eup %16111 }
0x29e2   :  { %v5203_v21 = vsel %vm1549_vm6, %v16112_v27, 0.0 }
0x29e3   :  { %5204 = vadd.xlane.f32.xlu1 %v5203_v21 }
0x2a68   :  { %v5429_v34 = vpop.xlane.xlu1 %5428 }
0x2a69   :  { %16113 = vrcp.f32 %v5429_v34 }
0x2a6c   :  { %v5205_v35 = vpop.xlane.xlu1 %5204 }
0x2a6d   :  { %16115 = vrcp.f32 %v5205_v35 }
0x2a76   :  { %v16114_v61 = vpop.eup %16113 }
0x2a77   :  { %v5431_v62 = vmul.f32 %v16114_v61, %v16110_v26 }
0x2a79   :  { %14687 = vmatmul.mubr.msk.f32.vlgmr.msra.gmra.mxu0 %vm93_vm0, %v5431_v62 }
0x2a7a   :  { %v16116_v63 = vpop.eup %16115  ;;  %14690 = vmatpush3.msra.mxu0 %v17527_v0  ;;  %14697 = vmatprep.mubr.msk.f32.mxu0 %vm16444_vm1, %v16443_v5  ;;  %v18052_v0 = vld [vmem:[%s19905_s10 + $0x10] sm:$0xff] }
0x2a7b   :  { %v5207_v37 = vmul.f32 %v16116_v63, %v16112_v27  ;;  %14691 = vmatprep.subr.mxu0 %v16443_v5 }
0x2a7c   :  { %14692 = vmatpush3.msra.mxu0 %v17536_v48  ;;  %v18060_v48 = vld [vmem:[%s19905_s10 + $0x8] sm:$0xff] }
0x2a7d   :  { %5209 = vst [vmem:[#allocation4 + $0x10] sm:$0x3] %v5207_v37  ;;  %14669 = vmatmul.mubr.f32.vlgmr.msra.gmra.mxu1 %v5207_v37  ;;  %14693 = vmatprep.subr.mxu0 %v16443_v5 }
0x2a7e   :  { %14694 = vmatpush3.msra.mxu0 %v17543_v49  ;;  %14712 = vmatpush3.msra.mxu1 %v17864_v33  ;;  %v18069_v49 = vld [vmem:[%s19905_s10] sm:$0xff] }
0x2a7f   :  { %14695 = vmatprep.subr.mxu0 %v16443_v5  ;;  %14713 = vmatprep.subr.mxu1 %v16443_v5 }
0x2a80   :  { %14696 = vmatpush3.msra.mxu0 %v17552_v3  ;;  %14714 = vmatpush3.msra.mxu1 %v18052_v0 }
0x2a81   :  { %14700 = vmatprep.subr.mxu0 %v16443_v5  ;;  %14715 = vmatprep.subr.mxu1 %v16443_v5 }
0x2a82   :  { %14716 = vmatpush3.msra.mxu1 %v18060_v48  ;;  %14719 = vmatprep.mubr.msk.f32.mxu1 %vm16444_vm1, %v16443_v5 }
0x2a83   :  { %14717 = vmatprep.subr.mxu1 %v16443_v5 }
0x2a84   :  { %14718 = vmatpush3.msra.mxu1 %v18069_v49 }
0x2a85   :  { %14757 = vmatprep.subr.mxu1 %v16443_v5 }
0x2b39   :  { %v5501_v3 = vpop.f32.mrf.mxu0 }
0x2b3a   :  { %14698 = vmatmul.mubr.msk.f32.vlgmr.msra.gmra.mxu0 %vm175_vm2, %v5501_v3  ;;  %v18156_v3 = vld [vmem:[%s19903_s8 + $0x18] sm:$0xff] }
0x2b3b   :  { %v14688_v38 = vpop.f32.mrf.mxu0  ;;  %14701 = vmatpush3.msra.mxu0 %v17568_v16  ;;  %14708 = vmatprep.mubr.msk.f32.mxu0 %vm16444_vm1, %v16443_v5 }
0x2b3c   :  { %14702 = vmatprep.subr.mxu0 %v16443_v5 }
0x2b3d   :  { %v5346_v39 = vpop.f32.mrf.mxu1  ;;  %14703 = vmatpush3.msra.mxu0 %v17577_v6 }
0x2b3e   :  { %14704 = vmatprep.subr.mxu0 %v16443_v5  ;;  %v5347_v16 = vadd.f32 %v5346_v39, %v18029_v58  ;;  %v18165_v39 = vld [vmem:[%s19903_s8 + $0x10] sm:$0xff] }
0x2b3f   :  { %v14670_v36 = vpop.f32.mrf.mxu1  ;;  %14705 = vmatpush3.msra.mxu0 %v17584_v29 }
0x2b40   :  { %14706 = vmatprep.subr.mxu0 %v16443_v5  ;;  %v5350_v41 = vadd.f32 %v17599_v19, %v5347_v16  ;;  %v18172_v36 = vld [vmem:[%s19903_s8 + $0x8] sm:$0xff]  ;;  %v18181_v16 = vld [vmem:[%s19903_s8] sm:$0xff] }
0x2b41   :  { %14707 = vmatpush3.msra.mxu0 %v17591_v15 }
0x2b42   :  { %14722 = vmatprep.subr.mxu0 %v16443_v5 }
0x2bfa   :  { %v5574_v57 = vpop.f32.mrf.mxu0 }
0x2bfb   :  { %v5578_v60 = vadd.f32 %v5574_v57, %v5350_v41 }
0x2bfc   :  { %v14699_v1 = vpop.f32.mrf.mxu0 }
0x2bfd   :  { %16117 = vtanh.f32 %v5578_v60  ;;  %v18197_v60 = vld [vmem:[%s19907_s12 + $0x18] sm:$0xff] }
0x2c0a   :  { %v16118_v6 = vpop.eup %16117 }
0x2c0b   :  { %14709 = vmatmul.mubr.msk.f32.vlgmr.msra.gmra.mxu0 %vm175_vm2, %v16118_v6  ;;  %14720 = vmatmul.mubr.msk.f32.vlgmr.msra.gmra.mxu1 %vm175_vm2, %v16118_v6 }
0x2c0c   :  { %14758 = vmatpush3.msra.mxu1 %v16900_v31  ;;  %14765 = vmatprep.mubr.msk.f32.mxu1 %vm16444_vm1, %v16443_v5 }
0x2c0d   :  { %14759 = vmatprep.subr.mxu1 %v16443_v5  ;;  %14723 = vmatpush3.msra.mxu0 %v17901_v42 }
0x2c0e   :  { %14760 = vmatpush3.msra.mxu1 %v16903_v32  ;;  %14724 = vmatprep.subr.mxu0 %v16443_v5 }
0x2c0f   :  { %14761 = vmatprep.subr.mxu1 %v16443_v5  ;;  %14725 = vmatpush3.msra.mxu0 %v17910_v40 }
0x2c10   :  { %14762 = vmatpush3.msra.mxu1 %v16896_v28  ;;  %14726 = vmatprep.subr.mxu0 %v16443_v5 }
0x2c11   :  { %14763 = vmatprep.subr.mxu1 %v16443_v5  ;;  %14727 = vmatpush3.msra.mxu0 %v17919_v2 }
0x2c12   :  { %14764 = vmatpush3.msra.mxu1 %v16898_v30  ;;  %14728 = vmatprep.subr.mxu0 %v16443_v5 }
0x2c13   :  { %14766 = vmatmul.mubr.msk.f32.vlgmr.msra.gmra.mxu1 %vm175_vm2, %v16118_v6  ;;  %14768 = vmatprep.subr.mxu1 %v16443_v5  ;;  %v18206_v6 = vld [vmem:[%s19907_s12 + $0x10] sm:$0xff] }
0x2c14   :  { %14769 = vmatpush3.msra.mxu1 %v17926_v22  ;;  %14729 = vmatpush3.msra.mxu0 %v17932_v24 }
0x2c15   :  { %14770 = vmatprep.subr.mxu1 %v16443_v5  ;;  %14730 = vmatprep.subr.mxu0 %v16443_v5 }
0x2c16   :  { %14771 = vmatpush3.msra.mxu1 %v17937_v45  ;;  %14731 = vmatpush3.msra.mxu0 %v17943_v46 }
0x2c17   :  { %14732 = vmatprep.subr.mxu0 %v16443_v5  ;;  %14772 = vmatprep.mubr.msk.f32.mxu1 %vm16444_vm1, %v16443_v5 }
0x2c18   :  { %14733 = vmatpush3.msra.mxu0 %v17952_v50  ;;  %14754 = vmatprep.mubr.msk.f32.mxu0 %vm16444_vm1, %v16443_v5 }
0x2c19   :  { %14734 = vmatprep.subr.mxu0 %v16443_v5  ;;  %14775 = vmatprep.subr.mxu1 %v16443_v5 }
0x2c1a   :  { %14735 = vmatpush3.msra.mxu0 %v17962_v14 }
0x2c1b   :  { %14736 = vmatprep.subr.mxu0 %v16443_v5 }
0x2c1c   :  { %14737 = vmatpush3.msra.mxu0 %v17969_v17 }
0x2c1d   :  { %14738 = vmatprep.subr.mxu0 %v16443_v5 }
0x2c1e   :  { %14739 = vmatpush3.msra.mxu0 %v17976_v9 }
0x2c1f   :  { %14740 = vmatprep.subr.mxu0 %v16443_v5 }
0x2c20   :  { %14741 = vmatpush3.msra.mxu0 %v17983_v51 }
0x2c21   :  { %14742 = vmatprep.subr.mxu0 %v16443_v5 }
0x2c22   :  { %14743 = vmatpush3.msra.mxu0 %v17990_v8 }
0x2c23   :  { %14744 = vmatprep.subr.mxu0 %v16443_v5 }
0x2c24   :  { %14745 = vmatpush3.msra.mxu0 %v17997_v43 }
0x2c25   :  { %14746 = vmatprep.subr.mxu0 %v16443_v5 }
0x2c26   :  { %14747 = vmatpush3.msra.mxu0 %v18004_v53 }
0x2c27   :  { %14748 = vmatprep.subr.mxu0 %v16443_v5 }
0x2c28   :  { %14749 = vmatpush3.msra.mxu0 %v18011_v54 }
0x2c29   :  { %14750 = vmatprep.subr.mxu0 %v16443_v5 }
0x2c2a   :  { %14751 = vmatpush3.msra.mxu0 %v18018_v55 }
0x2c2b   :  { %14752 = vmatprep.subr.mxu0 %v16443_v5 }
0x2c2c   :  { %14753 = vmatpush3.msra.mxu0 %v18025_v56 }
0x2c2d   :  { %14797 = vmatprep.subr.mxu0 %v16443_v5 }
0x2ccb   :  { %v5649_v29 = vpop.f32.mrf.mxu0  ;;  %v18139_v15 = vpop.f32.mrf.mxu1 }
0x2ccc   :  { %v5650_v10 = vadd.f32 %v18145_v7, %v5649_v29 }
0x2ccd   :  { %v14710_v19 = vpop.f32.mrf.mxu0  ;;  %v14721_v58 = vpop.f32.mrf.mxu1 }
0x2cce   :  { %v5653_v13 = vsel %vm1549_vm6, %v5650_v10, -inf  ;;  %v18213_v19 = vld [vmem:[%s19907_s12 + $0x8] sm:$0xff]  ;;  %v18220_v58 = vld [vmem:[%s19907_s12] sm:$0xff] }
0x2cd3   :  { %v5873_v44 = vpop.f32.mrf.mxu1 }
0x2cd4   :  { %v5874_v59 = vadd.f32 %v5873_v44, %v16919_v47 }
0x2cd5   :  { %v14767_v4 = vpop.f32.mrf.mxu1 }
0x2cd6   :  { %v5877_v12 = vsel %vm1310_vm5, %v5874_v59, -inf }
0x2cd7   :  { %5878 = vmax.xlane.f32.xlu0 %v5877_v12 }
0x2cdb   :  { %5654 = vmax.xlane.f32.xlu0 %v5653_v13 }
0x2d60   :  { %v5879_v11 = vpop.xlane.xlu0 %5878 }
0x2d61   :  { %v5880_v18 = vsub.f32 %v5874_v59, %v5879_v11  ;;  %v18228_v59 = vld [vmem:[%s19906_s11] ss:$0 sm:$0xff] }
0x2d63   :  { %v5881_v20 = vmul.f32 1.442695, %v5880_v18 }
0x2d64   :  { %v5655_v23 = vpop.xlane.xlu0 %5654 }
0x2d65   :  { %16119 = vpow2.f32 %v5881_v20  ;;  %v5656_v25 = vsub.f32 %v5650_v10, %v5655_v23 }
0x2d67   :  { %v5657_v26 = vmul.f32 1.442695, %v5656_v25 }
0x2d69   :  { %16121 = vpow2.f32 %v5657_v26 }
0x2d72   :  { %v16120_v52 = vpop.eup %16119 }
0x2d73   :  { %v5883_v27 = vsel %vm1310_vm5, %v16120_v52, 0.0 }
0x2d74   :  { %5884 = vadd.xlane.f32.xlu1 %v5883_v27 }
0x2d76   :  { %v16122_v21 = vpop.eup %16121 }
0x2d77   :  { %v5659_v34 = vsel %vm1549_vm6, %v16122_v21, 0.0 }
0x2d78   :  { %5660 = vadd.xlane.f32.xlu1 %v5659_v34 }
0x2dfd   :  { %v5885_v35 = vpop.xlane.xlu1 %5884 }
0x2dfe   :  { %16123 = vrcp.f32 %v5885_v35 }
0x2e01   :  { %v5661_v61 = vpop.xlane.xlu1 %5660 }
0x2e02   :  { %16125 = vrcp.f32 %v5661_v61 }
0x2e0b   :  { %v16124_v62 = vpop.eup %16123 }
0x2e0c   :  { %v5887_v63 = vmul.f32 %v16124_v62, %v16120_v52 }
0x2e0e   :  { %14773 = vmatmul.mubr.msk.f32.vlgmr.msra.gmra.mxu1 %vm93_vm0, %v5887_v63 }
0x2e0f   :  { %v16126_v37 = vpop.eup %16125  ;;  %14776 = vmatpush3.msra.mxu1 %v18156_v3  ;;  %14783 = vmatprep.mubr.msk.f32.mxu1 %vm16444_vm1, %v16443_v5 }
0x2e10   :  { %v5663_v38 = vmul.f32 %v16126_v37, %v16122_v21  ;;  %14777 = vmatprep.subr.mxu1 %v16443_v5 }
0x2e11   :  { %14778 = vmatpush3.msra.mxu1 %v18165_v39 }
0x2e12   :  { %5665 = vst [vmem:[#allocation4 + $0x12] sm:$0x3] %v5663_v38  ;;  %14755 = vmatmul.mubr.f32.vlgmr.msra.gmra.mxu0 %v5663_v38  ;;  %14779 = vmatprep.subr.mxu1 %v16443_v5 }
0x2e13   :  { %14780 = vmatpush3.msra.mxu1 %v18172_v36  ;;  %14798 = vmatpush3.msra.mxu0 %v17864_v33 }
0x2e14   :  { %14781 = vmatprep.subr.mxu1 %v16443_v5  ;;  %14799 = vmatprep.subr.mxu0 %v16443_v5 }
0x2e15   :  { %14782 = vmatpush3.msra.mxu1 %v18181_v16  ;;  %14800 = vmatpush3.msra.mxu0 %v18052_v0 }
0x2e16   :  { %14786 = vmatprep.subr.mxu1 %v16443_v5  ;;  %14801 = vmatprep.subr.mxu0 %v16443_v5 }
0x2e17   :  { %14802 = vmatpush3.msra.mxu0 %v18060_v48  ;;  %14805 = vmatprep.mubr.msk.f32.mxu0 %vm16444_vm1, %v16443_v5 }
0x2e18   :  { %14803 = vmatprep.subr.mxu0 %v16443_v5 }
0x2e19   :  { %14804 = vmatpush3.msra.mxu0 %v18069_v49 }
0x2e1a   :  { %14843 = vmatprep.subr.mxu0 %v16443_v5 }
0x2ece   :  { %v5957_v41 = vpop.f32.mrf.mxu1 }
0x2ecf   :  { %14784 = vmatmul.mubr.msk.f32.vlgmr.msra.gmra.mxu1 %vm175_vm2, %v5957_v41 }
0x2ed0   :  { %v14774_v57 = vpop.f32.mrf.mxu1  ;;  %14787 = vmatpush3.msra.mxu1 %v18197_v60  ;;  %14794 = vmatprep.mubr.msk.f32.mxu1 %vm16444_vm1, %v16443_v5 }
0x2ed1   :  { %14788 = vmatprep.subr.mxu1 %v16443_v5 }
0x2ed2   :  { %v5802_v1 = vpop.f32.mrf.mxu0  ;;  %14789 = vmatpush3.msra.mxu1 %v18206_v6 }
0x2ed3   :  { %14790 = vmatprep.subr.mxu1 %v16443_v5  ;;  %v5803_v44 = vadd.f32 %v5802_v1, %v18139_v15 }
0x2ed4   :  { %v14756_v29 = vpop.f32.mrf.mxu0  ;;  %14791 = vmatpush3.msra.mxu1 %v18213_v19 }
0x2ed5   :  { %14792 = vmatprep.subr.mxu1 %v16443_v5  ;;  %v5806_v4 = vadd.f32 %v18228_v59, %v5803_v44 }
0x2ed6   :  { %14793 = vmatpush3.msra.mxu1 %v18220_v58 }
0x2ed7   :  { %14808 = vmatprep.subr.mxu1 %v16443_v5 }
0x2f8f   :  { %v6030_v10 = vpop.f32.mrf.mxu1 }
0x2f90   :  { %v6034_v12 = vadd.f32 %v6030_v10, %v5806_v4 }
0x2f91   :  { %v14785_v13 = vpop.f32.mrf.mxu1 }
0x2f92   :  { %16127 = vtanh.f32 %v6034_v12 }
0x2f9f   :  { %v16128_v11 = vpop.eup %16127 }
0x2fa0   :  { %14795 = vmatmul.mubr.msk.f32.vlgmr.msra.gmra.mxu1 %vm175_vm2, %v16128_v11  ;;  %14806 = vmatmul.mubr.msk.f32.vlgmr.msra.gmra.mxu0 %vm175_vm2, %v16128_v11 }
0x2fa1   :  { %14844 = vmatpush3.msra.mxu0 %v16900_v31  ;;  %14851 = vmatprep.mubr.msk.f32.mxu0 %vm16444_vm1, %v16443_v5 }
0x2fa2   :  { %14845 = vmatprep.subr.mxu0 %v16443_v5  ;;  %14809 = vmatpush3.msra.mxu1 %v17901_v42 }
0x2fa3   :  { %14846 = vmatpush3.msra.mxu0 %v16903_v32  ;;  %14810 = vmatprep.subr.mxu1 %v16443_v5 }
0x2fa4   :  { %14847 = vmatprep.subr.mxu0 %v16443_v5  ;;  %14811 = vmatpush3.msra.mxu1 %v17910_v40 }
0x2fa5   :  { %14848 = vmatpush3.msra.mxu0 %v16896_v28  ;;  %14812 = vmatprep.subr.mxu1 %v16443_v5 }
0x2fa6   :  { %14849 = vmatprep.subr.mxu0 %v16443_v5  ;;  %14813 = vmatpush3.msra.mxu1 %v17919_v2 }
0x2fa7   :  { %14850 = vmatpush3.msra.mxu0 %v16898_v30  ;;  %14814 = vmatprep.subr.mxu1 %v16443_v5 }
0x2fa8   :  { %14852 = vmatmul.mubr.msk.f32.vlgmr.msra.gmra.mxu0 %vm175_vm2, %v16128_v11  ;;  %14854 = vmatprep.subr.mxu0 %v16443_v5 }
0x2fa9   :  { %14855 = vmatpush3.msra.mxu0 %v17926_v22  ;;  %14815 = vmatpush3.msra.mxu1 %v17932_v24 }
0x2faa   :  { %14856 = vmatprep.subr.mxu0 %v16443_v5  ;;  %14816 = vmatprep.subr.mxu1 %v16443_v5 }
0x2fab   :  { %14857 = vmatpush3.msra.mxu0 %v17937_v45  ;;  %14817 = vmatpush3.msra.mxu1 %v17943_v46 }
0x2fac   :  { %14818 = vmatprep.subr.mxu1 %v16443_v5  ;;  %14858 = vmatprep.mubr.msk.f32.mxu0 %vm16444_vm1, %v16443_v5 }
0x2fad   :  { %14819 = vmatpush3.msra.mxu1 %v17952_v50  ;;  %14840 = vmatprep.mubr.msk.f32.mxu1 %vm16444_vm1, %v16443_v5 }
0x2fae   :  { %14820 = vmatprep.subr.mxu1 %v16443_v5  ;;  %14861 = vmatprep.subr.mxu0 %v16443_v5 }
0x2faf   :  { %14821 = vmatpush3.msra.mxu1 %v17962_v14 }
0x2fb0   :  { %14822 = vmatprep.subr.mxu1 %v16443_v5 }
0x2fb1   :  { %14823 = vmatpush3.msra.mxu1 %v17969_v17 }
0x2fb2   :  { %14824 = vmatprep.subr.mxu1 %v16443_v5 }
0x2fb3   :  { %14825 = vmatpush3.msra.mxu1 %v17976_v9 }
0x2fb4   :  { %14826 = vmatprep.subr.mxu1 %v16443_v5 }
0x2fb5   :  { %14827 = vmatpush3.msra.mxu1 %v17983_v51 }
0x2fb6   :  { %14828 = vmatprep.subr.mxu1 %v16443_v5 }
0x2fb7   :  { %14829 = vmatpush3.msra.mxu1 %v17990_v8 }
0x2fb8   :  { %14830 = vmatprep.subr.mxu1 %v16443_v5 }
0x2fb9   :  { %14831 = vmatpush3.msra.mxu1 %v17997_v43 }
0x2fba   :  { %14832 = vmatprep.subr.mxu1 %v16443_v5 }
0x2fbb   :  { %14833 = vmatpush3.msra.mxu1 %v18004_v53 }
0x2fbc   :  { %14834 = vmatprep.subr.mxu1 %v16443_v5 }
0x2fbd   :  { %14835 = vmatpush3.msra.mxu1 %v18011_v54 }
0x2fbe   :  { %14836 = vmatprep.subr.mxu1 %v16443_v5 }
0x2fbf   :  { %14837 = vmatpush3.msra.mxu1 %v18018_v55 }
0x2fc0   :  { %14838 = vmatprep.subr.mxu1 %v16443_v5 }
0x2fc1   :  { %14839 = vmatpush3.msra.mxu1 %v18025_v56 }
0x2fc2   :  { %14883 = vmatprep.subr.mxu1 %v16443_v5 }
0x3060   :  { %v6105_v15 = vpop.f32.mrf.mxu1  ;;  %v18284_v18 = vpop.f32.mrf.mxu0 }
0x3061   :  { %v6106_v27 = vadd.f32 %v18145_v7, %v6105_v15 }
0x3062   :  { %v14796_v20 = vpop.f32.mrf.mxu1  ;;  %v14807_v23 = vpop.f32.mrf.mxu0 }
0x3063   :  { %v6109_v34 = vsel %vm1549_vm6, %v6106_v27, -inf }
0x3068   :  { %v6329_v25 = vpop.f32.mrf.mxu0 }
0x3069   :  { %v6330_v26 = vadd.f32 %v6329_v25, %v16919_v47 }
0x306a   :  { %v14853_v52 = vpop.f32.mrf.mxu0 }
0x306b   :  { %v6333_v21 = vsel %vm1310_vm5, %v6330_v26, -inf }
0x306c   :  { %6334 = vmax.xlane.f32.xlu0 %v6333_v21 }
0x3070   :  { %6110 = vmax.xlane.f32.xlu0 %v6109_v34 }
0x30f5   :  { %v6335_v35 = vpop.xlane.xlu0 %6334 }
0x30f6   :  { %v6336_v61 = vsub.f32 %v6330_v26, %v6335_v35 }
0x30f8   :  { %v6337_v62 = vmul.f32 1.442695, %v6336_v61 }
0x30f9   :  { %v6111_v63 = vpop.xlane.xlu0 %6110 }
0x30fa   :  { %16129 = vpow2.f32 %v6337_v62  ;;  %v6112_v37 = vsub.f32 %v6106_v27, %v6111_v63 }
0x30fc   :  { %v6113_v38 = vmul.f32 1.442695, %v6112_v37 }
0x30fe   :  { %16131 = vpow2.f32 %v6113_v38 }
0x3107   :  { %v16130_v41 = vpop.eup %16129 }
0x3108   :  { %v6339_v57 = vsel %vm1310_vm5, %v16130_v41, 0.0 }
0x3109   :  { %6340 = vadd.xlane.f32.xlu1 %v6339_v57 }
0x310b   :  { %v16132_v1 = vpop.eup %16131 }
0x310c   :  { %v6115_v29 = vsel %vm1549_vm6, %v16132_v1, 0.0 }
0x310d   :  { %6116 = vadd.xlane.f32.xlu1 %v6115_v29 }
0x3192   :  { %v6341_v44 = vpop.xlane.xlu1 %6340 }
0x3193   :  { %16133 = vrcp.f32 %v6341_v44 }
0x3196   :  { %v6117_v4 = vpop.xlane.xlu1 %6116 }
0x3197   :  { %16135 = vrcp.f32 %v6117_v4 }
0x31a0   :  { %v16134_v10 = vpop.eup %16133 }
0x31a1   :  { %v6343_v12 = vmul.f32 %v16134_v10, %v16130_v41 }
0x31a3   :  { %14859 = vmatmul.mubr.msk.f32.vlgmr.msra.gmra.mxu0 %vm93_vm0, %v6343_v12 }
0x31a4   :  { %v16136_v13 = vpop.eup %16135  ;;  %14862 = vmatpush3.msra.mxu0 %v18156_v3  ;;  %14869 = vmatprep.mubr.msk.f32.mxu0 %vm16444_vm1, %v16443_v5 }
0x31a5   :  { %v6119_v11 = vmul.f32 %v16136_v13, %v16132_v1  ;;  %14863 = vmatprep.subr.mxu0 %v16443_v5 }
0x31a6   :  { %14864 = vmatpush3.msra.mxu0 %v18165_v39 }
0x31a7   :  { %6121 = vst [vmem:[#allocation4 + $0x14] sm:$0x3] %v6119_v11  ;;  %14841 = vmatmul.mubr.f32.vlgmr.msra.gmra.mxu1 %v6119_v11  ;;  %14865 = vmatprep.subr.mxu0 %v16443_v5 }
0x31a8   :  { %14866 = vmatpush3.msra.mxu0 %v18172_v36  ;;  %14884 = vmatpush3.msra.mxu1 %v17864_v33 }
0x31a9   :  { %14867 = vmatprep.subr.mxu0 %v16443_v5  ;;  %14885 = vmatprep.subr.mxu1 %v16443_v5 }
0x31aa   :  { %14868 = vmatpush3.msra.mxu0 %v18181_v16  ;;  %14886 = vmatpush3.msra.mxu1 %v18052_v0 }
0x31ab   :  { %14872 = vmatprep.subr.mxu0 %v16443_v5  ;;  %14887 = vmatprep.subr.mxu1 %v16443_v5 }
0x31ac   :  { %14888 = vmatpush3.msra.mxu1 %v18060_v48  ;;  %14891 = vmatprep.mubr.msk.f32.mxu1 %vm16444_vm1, %v16443_v5 }
0x31ad   :  { %14889 = vmatprep.subr.mxu1 %v16443_v5 }
0x31ae   :  { %14890 = vmatpush3.msra.mxu1 %v18069_v49 }
0x31af   :  { %14929 = vmatprep.subr.mxu1 %v16443_v5 }
0x3263   :  { %v6413_v15 = vpop.f32.mrf.mxu0 }
0x3264   :  { %14870 = vmatmul.mubr.msk.f32.vlgmr.msra.gmra.mxu0 %vm175_vm2, %v6413_v15 }
0x3265   :  { %v14860_v20 = vpop.f32.mrf.mxu0  ;;  %14873 = vmatpush3.msra.mxu0 %v18197_v60  ;;  %14880 = vmatprep.mubr.msk.f32.mxu0 %vm16444_vm1, %v16443_v5 }
0x3266   :  { %14874 = vmatprep.subr.mxu0 %v16443_v5 }
0x3267   :  { %v6258_v23 = vpop.f32.mrf.mxu1  ;;  %14875 = vmatpush3.msra.mxu0 %v18206_v6 }
0x3268   :  { %14876 = vmatprep.subr.mxu0 %v16443_v5  ;;  %v6259_v26 = vadd.f32 %v6258_v23, %v18284_v18 }
0x3269   :  { %v14842_v25 = vpop.f32.mrf.mxu1  ;;  %14877 = vmatpush3.msra.mxu0 %v18213_v19 }
0x326a   :  { %14878 = vmatprep.subr.mxu0 %v16443_v5  ;;  %v6262_v52 = vadd.f32 %v18228_v59, %v6259_v26 }
0x326b   :  { %14879 = vmatpush3.msra.mxu0 %v18220_v58 }
0x326c   :  { %14894 = vmatprep.subr.mxu0 %v16443_v5 }
0x3324   :  { %v6486_v27 = vpop.f32.mrf.mxu0 }
0x3325   :  { %v6490_v21 = vadd.f32 %v6486_v27, %v6262_v52 }
0x3326   :  { %v14871_v34 = vpop.f32.mrf.mxu0 }
0x3327   :  { %16137 = vtanh.f32 %v6490_v21 }
0x3334   :  { %v16138_v35 = vpop.eup %16137 }
0x3335   :  { %14881 = vmatmul.mubr.msk.f32.vlgmr.msra.gmra.mxu0 %vm175_vm2, %v16138_v35  ;;  %14892 = vmatmul.mubr.msk.f32.vlgmr.msra.gmra.mxu1 %vm175_vm2, %v16138_v35 }
0x3336   :  { %14930 = vmatpush3.msra.mxu1 %v16900_v31  ;;  %14937 = vmatprep.mubr.msk.f32.mxu1 %vm16444_vm1, %v16443_v5 }
0x3337   :  { %14931 = vmatprep.subr.mxu1 %v16443_v5  ;;  %14895 = vmatpush3.msra.mxu0 %v17901_v42 }
0x3338   :  { %14932 = vmatpush3.msra.mxu1 %v16903_v32  ;;  %14896 = vmatprep.subr.mxu0 %v16443_v5 }
0x3339   :  { %14933 = vmatprep.subr.mxu1 %v16443_v5  ;;  %14897 = vmatpush3.msra.mxu0 %v17910_v40 }
0x333a   :  { %14934 = vmatpush3.msra.mxu1 %v16896_v28  ;;  %14898 = vmatprep.subr.mxu0 %v16443_v5 }
0x333b   :  { %14935 = vmatprep.subr.mxu1 %v16443_v5  ;;  %14899 = vmatpush3.msra.mxu0 %v17919_v2 }
0x333c   :  { %14936 = vmatpush3.msra.mxu1 %v16898_v30  ;;  %14900 = vmatprep.subr.mxu0 %v16443_v5 }
0x333d   :  { %14938 = vmatmul.mubr.msk.f32.vlgmr.msra.gmra.mxu1 %vm175_vm2, %v16138_v35  ;;  %14940 = vmatprep.subr.mxu1 %v16443_v5 }
0x333e   :  { %14941 = vmatpush3.msra.mxu1 %v17926_v22  ;;  %14901 = vmatpush3.msra.mxu0 %v17932_v24 }
0x333f   :  { %14942 = vmatprep.subr.mxu1 %v16443_v5  ;;  %14902 = vmatprep.subr.mxu0 %v16443_v5 }
0x3340   :  { %14943 = vmatpush3.msra.mxu1 %v17937_v45  ;;  %14903 = vmatpush3.msra.mxu0 %v17943_v46 }
0x3341   :  { %14904 = vmatprep.subr.mxu0 %v16443_v5  ;;  %14944 = vmatprep.mubr.msk.f32.mxu1 %vm16444_vm1, %v16443_v5 }
0x3342   :  { %14905 = vmatpush3.msra.mxu0 %v17952_v50  ;;  %14926 = vmatprep.mubr.msk.f32.mxu0 %vm16444_vm1, %v16443_v5 }
0x3343   :  { %14906 = vmatprep.subr.mxu0 %v16443_v5  ;;  %14947 = vmatprep.subr.mxu1 %v16443_v5 }
0x3344   :  { %14907 = vmatpush3.msra.mxu0 %v17962_v14 }
0x3345   :  { %14908 = vmatprep.subr.mxu0 %v16443_v5 }
0x3346   :  { %14909 = vmatpush3.msra.mxu0 %v17969_v17 }
0x3347   :  { %14910 = vmatprep.subr.mxu0 %v16443_v5 }
0x3348   :  { %14911 = vmatpush3.msra.mxu0 %v17976_v9 }
0x3349   :  { %14912 = vmatprep.subr.mxu0 %v16443_v5 }
0x334a   :  { %14913 = vmatpush3.msra.mxu0 %v17983_v51 }
0x334b   :  { %14914 = vmatprep.subr.mxu0 %v16443_v5 }
0x334c   :  { %14915 = vmatpush3.msra.mxu0 %v17990_v8 }
0x334d   :  { %14916 = vmatprep.subr.mxu0 %v16443_v5 }
0x334e   :  { %14917 = vmatpush3.msra.mxu0 %v17997_v43 }
0x334f   :  { %14918 = vmatprep.subr.mxu0 %v16443_v5 }
0x3350   :  { %14919 = vmatpush3.msra.mxu0 %v18004_v53 }
0x3351   :  { %14920 = vmatprep.subr.mxu0 %v16443_v5 }
0x3352   :  { %14921 = vmatpush3.msra.mxu0 %v18011_v54 }
0x3353   :  { %14922 = vmatprep.subr.mxu0 %v16443_v5 }
0x3354   :  { %14923 = vmatpush3.msra.mxu0 %v18018_v55 }
0x3355   :  { %14924 = vmatprep.subr.mxu0 %v16443_v5 }
0x3356   :  { %14925 = vmatpush3.msra.mxu0 %v18025_v56 }
0x3357   :  { %14969 = vmatprep.subr.mxu0 %v16443_v5 }
0x33f5   :  { %v6561_v18 = vpop.f32.mrf.mxu0  ;;  %v18379_v61 = vpop.f32.mrf.mxu1 }
0x33f6   :  { %v6562_v57 = vadd.f32 %v18145_v7, %v6561_v18 }
0x33f7   :  { %v14882_v62 = vpop.f32.mrf.mxu0  ;;  %v14893_v63 = vpop.f32.mrf.mxu1 }
0x33f8   :  { %v6565_v29 = vsel %vm1549_vm6, %v6562_v57, -inf }
0x33fd   :  { %v6785_v37 = vpop.f32.mrf.mxu1 }
0x33fe   :  { %v6786_v38 = vadd.f32 %v6785_v37, %v16919_v47 }
0x33ff   :  { %v14939_v41 = vpop.f32.mrf.mxu1 }
0x3400   :  { %v6789_v1 = vsel %vm1310_vm5, %v6786_v38, -inf }
0x3401   :  { %6790 = vmax.xlane.f32.xlu0 %v6789_v1 }
0x3405   :  { %6566 = vmax.xlane.f32.xlu0 %v6565_v29 }
0x348a   :  { %v6791_v44 = vpop.xlane.xlu0 %6790 }
0x348b   :  { %v6792_v4 = vsub.f32 %v6786_v38, %v6791_v44 }
0x348d   :  { %v6793_v10 = vmul.f32 1.442695, %v6792_v4 }
0x348e   :  { %v6567_v12 = vpop.xlane.xlu0 %6566 }
0x348f   :  { %16139 = vpow2.f32 %v6793_v10  ;;  %v6568_v13 = vsub.f32 %v6562_v57, %v6567_v12 }
0x3491   :  { %v6569_v11 = vmul.f32 1.442695, %v6568_v13 }
0x3493   :  { %16141 = vpow2.f32 %v6569_v11 }
0x349c   :  { %v16140_v15 = vpop.eup %16139 }
0x349d   :  { %v6795_v20 = vsel %vm1310_vm5, %v16140_v15, 0.0 }
0x349e   :  { %6796 = vadd.xlane.f32.xlu1 %v6795_v20  ;;  %v18493_v20 = vld [vmem:[%s19905_s10 + $0x18] sm:$0xff] }
0x34a0   :  { %v16142_v23 = vpop.eup %16141 }
0x34a1   :  { %v6571_v25 = vsel %vm1549_vm6, %v16142_v23, 0.0 }
0x34a2   :  { %6572 = vadd.xlane.f32.xlu1 %v6571_v25 }
0x3527   :  { %v6797_v26 = vpop.xlane.xlu1 %6796 }
0x3528   :  { %16143 = vrcp.f32 %v6797_v26 }
0x352b   :  { %v6573_v52 = vpop.xlane.xlu1 %6572 }
0x352c   :  { %16145 = vrcp.f32 %v6573_v52 }
0x3535   :  { %v16144_v27 = vpop.eup %16143 }
0x3536   :  { %v6799_v21 = vmul.f32 %v16144_v27, %v16140_v15 }
0x3538   :  { %14945 = vmatmul.mubr.msk.f32.vlgmr.msra.gmra.mxu1 %vm93_vm0, %v6799_v21 }
0x3539   :  { %v16146_v34 = vpop.eup %16145  ;;  %14948 = vmatpush3.msra.mxu1 %v18156_v3  ;;  %14955 = vmatprep.mubr.msk.f32.mxu1 %vm16444_vm1, %v16443_v5 }
0x353a   :  { %v6575_v35 = vmul.f32 %v16146_v34, %v16142_v23  ;;  %14949 = vmatprep.subr.mxu1 %v16443_v5 }
0x353b   :  { %14950 = vmatpush3.msra.mxu1 %v18165_v39 }
0x353c   :  { %6577 = vst [vmem:[#allocation4 + $0x16] sm:$0x3] %v6575_v35  ;;  %14927 = vmatmul.mubr.f32.vlgmr.msra.gmra.mxu0 %v6575_v35  ;;  %14951 = vmatprep.subr.mxu1 %v16443_v5  ;;  %v18530_v35 = vld [vmem:[%s19904_s9 + $0x78] sm:$0xff] }
0x353d   :  { %14952 = vmatpush3.msra.mxu1 %v18172_v36  ;;  %14970 = vmatpush3.msra.mxu0 %v17864_v33 }
0x353e   :  { %14953 = vmatprep.subr.mxu1 %v16443_v5  ;;  %14971 = vmatprep.subr.mxu0 %v16443_v5 }
0x353f   :  { %14954 = vmatpush3.msra.mxu1 %v18181_v16  ;;  %14972 = vmatpush3.msra.mxu0 %v18052_v0 }
0x3540   :  { %14958 = vmatprep.subr.mxu1 %v16443_v5  ;;  %14973 = vmatprep.subr.mxu0 %v16443_v5 }
0x3541   :  { %14974 = vmatpush3.msra.mxu0 %v18060_v48  ;;  %14977 = vmatprep.mubr.msk.f32.mxu0 %vm16444_vm1, %v16443_v5 }
0x3542   :  { %14975 = vmatprep.subr.mxu0 %v16443_v5 }
0x3543   :  { %14976 = vmatpush3.msra.mxu0 %v18069_v49 }
0x3544   :  { %15015 = vmatprep.subr.mxu0 %v16443_v5 }
0x35f8   :  { %v6869_v33 = vpop.f32.mrf.mxu1 }
0x35f9   :  { %14956 = vmatmul.mubr.msk.f32.vlgmr.msra.gmra.mxu1 %vm175_vm2, %v6869_v33  ;;  %v18539_v33 = vld [vmem:[%s19904_s9 + $0x70] sm:$0xff] }
0x35fa   :  { %v14946_v18 = vpop.f32.mrf.mxu1  ;;  %14959 = vmatpush3.msra.mxu1 %v18197_v60  ;;  %14966 = vmatprep.mubr.msk.f32.mxu1 %vm16444_vm1, %v16443_v5 }
0x35fb   :  { %14960 = vmatprep.subr.mxu1 %v16443_v5  ;;  %v18548_v18 = vld [vmem:[%s19904_s9 + $0x68] sm:$0xff] }
0x35fc   :  { %v6714_v62 = vpop.f32.mrf.mxu0  ;;  %14961 = vmatpush3.msra.mxu1 %v18206_v6 }
0x35fd   :  { %14962 = vmatprep.subr.mxu1 %v16443_v5  ;;  %v6715_v37 = vadd.f32 %v6714_v62, %v18379_v61  ;;  %v18555_v62 = vld [vmem:[#allocation2 + $0x8] sm:$0xff] }
0x35fe   :  { %v14928_v63 = vpop.f32.mrf.mxu0  ;;  %14963 = vmatpush3.msra.mxu1 %v18213_v19 }
0x35ff   :  { %14964 = vmatprep.subr.mxu1 %v16443_v5  ;;  %v6718_v38 = vadd.f32 %v18228_v59, %v6715_v37  ;;  %v18561_v63 = vld [vmem:[%s19904_s9 + $0x60] sm:$0xff] }
0x3600   :  { %14965 = vmatpush3.msra.mxu1 %v18220_v58  ;;  %v18566_v37 = vld [vmem:[#allocation2] sm:$0xff] }
0x3601   :  { %14980 = vmatprep.subr.mxu1 %v16443_v5 }
0x36b9   :  { %v6942_v41 = vpop.f32.mrf.mxu1 }
0x36ba   :  { %v6946_v57 = vadd.f32 %v6942_v41, %v6718_v38  ;;  %v18572_v38 = vld [vmem:[%s19904_s9 + $0x58] sm:$0xff]  ;;  %v18581_v41 = vld [vmem:[%s19904_s9 + $0x50] sm:$0xff] }
0x36bb   :  { %v14957_v1 = vpop.f32.mrf.mxu1 }
0x36bc   :  { %16147 = vtanh.f32 %v6946_v57  ;;  %v18591_v57 = vld [vmem:[%s19904_s9 + $0x48] sm:$0xff]  ;;  %v18598_v1 = vld [vmem:[%s19904_s9 + $0x40] sm:$0xff] }
0x36c9   :  { %v16148_v29 = vpop.eup %16147 }
0x36ca   :  { %14967 = vmatmul.mubr.msk.f32.vlgmr.msra.gmra.mxu1 %vm175_vm2, %v16148_v29  ;;  %14978 = vmatmul.mubr.msk.f32.vlgmr.msra.gmra.mxu0 %vm175_vm2, %v16148_v29 }
0x36cb   :  { %15016 = vmatpush3.msra.mxu0 %v16900_v31  ;;  %15023 = vmatprep.mubr.msk.f32.mxu0 %vm16444_vm1, %v16443_v5 }
0x36cc   :  { %15017 = vmatprep.subr.mxu0 %v16443_v5  ;;  %14981 = vmatpush3.msra.mxu1 %v17901_v42 }
0x36cd   :  { %15018 = vmatpush3.msra.mxu0 %v16903_v32  ;;  %14982 = vmatprep.subr.mxu1 %v16443_v5 }
0x36ce   :  { %15019 = vmatprep.subr.mxu0 %v16443_v5  ;;  %14983 = vmatpush3.msra.mxu1 %v17910_v40 }
0x36cf   :  { %15020 = vmatpush3.msra.mxu0 %v16896_v28  ;;  %14984 = vmatprep.subr.mxu1 %v16443_v5 }
0x36d0   :  { %15021 = vmatprep.subr.mxu0 %v16443_v5  ;;  %14985 = vmatpush3.msra.mxu1 %v17919_v2 }
0x36d1   :  { %15022 = vmatpush3.msra.mxu0 %v16898_v30  ;;  %14986 = vmatprep.subr.mxu1 %v16443_v5 }
0x36d2   :  { %15024 = vmatmul.mubr.msk.f32.vlgmr.msra.gmra.mxu0 %vm175_vm2, %v16148_v29  ;;  %15026 = vmatprep.subr.mxu0 %v16443_v5  ;;  %v18605_v29 = vld [vmem:[%s19904_s9 + $0x38] sm:$0xff] }
0x36d3   :  { %15027 = vmatpush3.msra.mxu0 %v17926_v22  ;;  %14987 = vmatpush3.msra.mxu1 %v17932_v24 }
0x36d4   :  { %15028 = vmatprep.subr.mxu0 %v16443_v5  ;;  %14988 = vmatprep.subr.mxu1 %v16443_v5 }
0x36d5   :  { %15029 = vmatpush3.msra.mxu0 %v17937_v45  ;;  %14989 = vmatpush3.msra.mxu1 %v17943_v46 }
0x36d6   :  { %14990 = vmatprep.subr.mxu1 %v16443_v5  ;;  %15030 = vmatprep.mubr.msk.f32.mxu0 %vm16444_vm1, %v16443_v5 }
0x36d7   :  { %14991 = vmatpush3.msra.mxu1 %v17952_v50  ;;  %15012 = vmatprep.mubr.msk.f32.mxu1 %vm16444_vm1, %v16443_v5 }
0x36d8   :  { %14992 = vmatprep.subr.mxu1 %v16443_v5  ;;  %15033 = vmatprep.subr.mxu0 %v16443_v5 }
0x36d9   :  { %14993 = vmatpush3.msra.mxu1 %v17962_v14 }
0x36da   :  { %14994 = vmatprep.subr.mxu1 %v16443_v5 }
0x36db   :  { %14995 = vmatpush3.msra.mxu1 %v17969_v17 }
0x36dc   :  { %14996 = vmatprep.subr.mxu1 %v16443_v5 }
0x36dd   :  { %14997 = vmatpush3.msra.mxu1 %v17976_v9 }
0x36de   :  { %14998 = vmatprep.subr.mxu1 %v16443_v5 }
0x36df   :  { %14999 = vmatpush3.msra.mxu1 %v17983_v51 }
0x36e0   :  { %15000 = vmatprep.subr.mxu1 %v16443_v5 }
0x36e1   :  { %15001 = vmatpush3.msra.mxu1 %v17990_v8 }
0x36e2   :  { %15002 = vmatprep.subr.mxu1 %v16443_v5 }
0x36e3   :  { %15003 = vmatpush3.msra.mxu1 %v17997_v43 }
0x36e4   :  { %15004 = vmatprep.subr.mxu1 %v16443_v5 }
0x36e5   :  { %15005 = vmatpush3.msra.mxu1 %v18004_v53 }
0x36e6   :  { %15006 = vmatprep.subr.mxu1 %v16443_v5 }
0x36e7   :  { %15007 = vmatpush3.msra.mxu1 %v18011_v54 }
0x36e8   :  { %15008 = vmatprep.subr.mxu1 %v16443_v5 }
0x36e9   :  { %15009 = vmatpush3.msra.mxu1 %v18018_v55 }
0x36ea   :  { %15010 = vmatprep.subr.mxu1 %v16443_v5 }
0x36eb   :  { %15011 = vmatpush3.msra.mxu1 %v18025_v56 }
0x36ec   :  { %15055 = vmatprep.subr.mxu1 %v16443_v5 }
0x378a   :  { %v7017_v42 = vpop.f32.mrf.mxu1  ;;  %v18474_v40 = vpop.f32.mrf.mxu0 }
0x378b   :  { %v7018_v50 = vadd.f32 %v18145_v7, %v7017_v42  ;;  %v18612_v42 = vld [vmem:[%s19904_s9 + $0x30] sm:$0xff] }
0x378c   :  { %v14968_v2 = vpop.f32.mrf.mxu1  ;;  %v14979_v22 = vpop.f32.mrf.mxu0 }
0x378d   :  { %v7021_v17 = vsel %vm1549_vm6, %v7018_v50, -inf  ;;  %v18626_v2 = vld [vmem:[%s19904_s9 + $0x20] sm:$0xff]  ;;  %v18633_v22 = vld [vmem:[%s19904_s9 + $0x18] sm:$0xff] }
0x3792   :  { %v7241_v24 = vpop.f32.mrf.mxu0 }
0x3793   :  { %v7242_v45 = vadd.f32 %v7241_v24, %v16919_v47  ;;  %v18640_v24 = vld [vmem:[%s19904_s9 + $0x10] sm:$0xff] }
0x3794   :  { %v15025_v46 = vpop.f32.mrf.mxu0 }
0x3795   :  { %v7245_v14 = vsel %vm1310_vm5, %v7242_v45, -inf  ;;  %v18654_v46 = vld [vmem:[%s19904_s9] sm:$0xff] }
0x3796   :  { %7246 = vmax.xlane.f32.xlu0 %v7245_v14 }
0x379a   :  { %7022 = vmax.xlane.f32.xlu0 %v7021_v17 }
0x381f   :  { %v7247_v9 = vpop.xlane.xlu0 %7246 }
0x3820   :  { %v7248_v51 = vsub.f32 %v7242_v45, %v7247_v9  ;;  %v18647_v45 = vld [vmem:[%s19904_s9 + $0x8] sm:$0xff] }
0x3822   :  { %v7249_v8 = vmul.f32 1.442695, %v7248_v51 }
0x3823   :  { %v7023_v43 = vpop.xlane.xlu0 %7022 }
0x3824   :  { %16149 = vpow2.f32 %v7249_v8  ;;  %v7024_v53 = vsub.f32 %v7018_v50, %v7023_v43 }
0x3826   :  { %v7025_v54 = vmul.f32 1.442695, %v7024_v53 }
0x3828   :  { %16151 = vpow2.f32 %v7025_v54 }
0x3831   :  { %v16150_v55 = vpop.eup %16149 }
0x3832   :  { %v7251_v56 = vsel %vm1310_vm5, %v16150_v55, 0.0 }
0x3833   :  { %7252 = vadd.xlane.f32.xlu1 %v7251_v56 }
0x3835   :  { %v16152_v61 = vpop.eup %16151 }
0x3836   :  { %v7027_v44 = vsel %vm1549_vm6, %v16152_v61, 0.0 }
0x3837   :  { %7028 = vadd.xlane.f32.xlu1 %v7027_v44 }
0x38bc   :  { %v7253_v4 = vpop.xlane.xlu1 %7252 }
0x38bd   :  { %16153 = vrcp.f32 %v7253_v4 }
0x38c0   :  { %v7029_v10 = vpop.xlane.xlu1 %7028 }
0x38c1   :  { %16155 = vrcp.f32 %v7029_v10 }
0x38ca   :  { %v16154_v12 = vpop.eup %16153 }
0x38cb   :  { %v7255_v13 = vmul.f32 %v16154_v12, %v16150_v55 }
0x38cd   :  { %15031 = vmatmul.mubr.msk.f32.vlgmr.msra.gmra.mxu0 %vm93_vm0, %v7255_v13 }
0x38ce   :  { %v16156_v11 = vpop.eup %16155  ;;  %15034 = vmatpush3.msra.mxu0 %v18156_v3  ;;  %15041 = vmatprep.mubr.msk.f32.mxu0 %vm16444_vm1, %v16443_v5 }
0x38cf   :  { %v7031_v15 = vmul.f32 %v16156_v11, %v16152_v61  ;;  %15035 = vmatprep.subr.mxu0 %v16443_v5 }
0x38d0   :  { %15036 = vmatpush3.msra.mxu0 %v18165_v39 }
0x38d1   :  { %7033 = vst [vmem:[#allocation4 + $0x18] sm:$0x3] %v7031_v15  ;;  %15013 = vmatmul.mubr.f32.vlgmr.msra.gmra.mxu1 %v7031_v15  ;;  %15037 = vmatprep.subr.mxu0 %v16443_v5 }
0x38d2   :  { %15038 = vmatpush3.msra.mxu0 %v18172_v36  ;;  %15056 = vmatpush3.msra.mxu1 %v18493_v20 }
0x38d3   :  { %15039 = vmatprep.subr.mxu0 %v16443_v5  ;;  %15057 = vmatprep.subr.mxu1 %v16443_v5 }
0x38d4   :  { %15040 = vmatpush3.msra.mxu0 %v18181_v16  ;;  %15058 = vmatpush3.msra.mxu1 %v18052_v0 }
0x38d5   :  { %15044 = vmatprep.subr.mxu0 %v16443_v5  ;;  %15059 = vmatprep.subr.mxu1 %v16443_v5 }
0x38d6   :  { %15060 = vmatpush3.msra.mxu1 %v18060_v48  ;;  %15063 = vmatprep.mubr.msk.f32.mxu1 %vm16444_vm1, %v16443_v5 }
0x38d7   :  { %15061 = vmatprep.subr.mxu1 %v16443_v5 }
0x38d8   :  { %15062 = vmatpush3.msra.mxu1 %v18069_v49 }
0x38d9   :  { %15101 = vmatprep.subr.mxu1 %v16443_v5 }
0x398d   :  { %v7325_v23 = vpop.f32.mrf.mxu0 }
0x398e   :  { %15042 = vmatmul.mubr.msk.f32.vlgmr.msra.gmra.mxu0 %vm175_vm2, %v7325_v23 }
0x398f   :  { %v15032_v25 = vpop.f32.mrf.mxu0  ;;  %15045 = vmatpush3.msra.mxu0 %v18197_v60  ;;  %15052 = vmatprep.mubr.msk.f32.mxu0 %vm16444_vm1, %v16443_v5 }
0x3990   :  { %15046 = vmatprep.subr.mxu0 %v16443_v5 }
0x3991   :  { %v7170_v0 = vpop.f32.mrf.mxu1  ;;  %15047 = vmatpush3.msra.mxu0 %v18206_v6 }
0x3992   :  { %15048 = vmatprep.subr.mxu0 %v16443_v5  ;;  %v7171_v49 = vadd.f32 %v7170_v0, %v18474_v40  ;;  %v18619_v40 = vld [vmem:[%s19904_s9 + $0x28] sm:$0xff] }
0x3993   :  { %v15014_v48 = vpop.f32.mrf.mxu1  ;;  %15049 = vmatpush3.msra.mxu0 %v18213_v19 }
0x3994   :  { %15050 = vmatprep.subr.mxu0 %v16443_v5  ;;  %v7174_v26 = vadd.f32 %v18228_v59, %v7171_v49 }
0x3995   :  { %15051 = vmatpush3.msra.mxu0 %v18220_v58 }
0x3996   :  { %15066 = vmatprep.subr.mxu0 %v16443_v5 }
0x3a4e   :  { %v7398_v52 = vpop.f32.mrf.mxu0 }
0x3a4f   :  { %v7402_v27 = vadd.f32 %v7398_v52, %v7174_v26 }
0x3a50   :  { %v15043_v21 = vpop.f32.mrf.mxu0 }
0x3a51   :  { %16157 = vtanh.f32 %v7402_v27 }
0x3a5e   :  { %v16158_v34 = vpop.eup %16157 }
0x3a5f   :  { %15053 = vmatmul.mubr.msk.f32.vlgmr.msra.gmra.mxu0 %vm175_vm2, %v16158_v34  ;;  %15064 = vmatmul.mubr.msk.f32.vlgmr.msra.gmra.mxu1 %vm175_vm2, %v16158_v34 }
0x3a60   :  { %15102 = vmatpush3.msra.mxu1 %v16900_v31  ;;  %15109 = vmatprep.mubr.msk.f32.mxu1 %vm16444_vm1, %v16443_v5 }
0x3a61   :  { %15103 = vmatprep.subr.mxu1 %v16443_v5  ;;  %15067 = vmatpush3.msra.mxu0 %v18530_v35 }
0x3a62   :  { %15104 = vmatpush3.msra.mxu1 %v16903_v32  ;;  %15068 = vmatprep.subr.mxu0 %v16443_v5 }
0x3a63   :  { %15105 = vmatprep.subr.mxu1 %v16443_v5  ;;  %15069 = vmatpush3.msra.mxu0 %v18539_v33 }
0x3a64   :  { %15106 = vmatpush3.msra.mxu1 %v16896_v28  ;;  %15070 = vmatprep.subr.mxu0 %v16443_v5 }
0x3a65   :  { %15107 = vmatprep.subr.mxu1 %v16443_v5  ;;  %15071 = vmatpush3.msra.mxu0 %v18548_v18 }
0x3a66   :  { %15108 = vmatpush3.msra.mxu1 %v16898_v30  ;;  %15072 = vmatprep.subr.mxu0 %v16443_v5 }
0x3a67   :  { %15110 = vmatmul.mubr.msk.f32.vlgmr.msra.gmra.mxu1 %vm175_vm2, %v16158_v34  ;;  %15112 = vmatprep.subr.mxu1 %v16443_v5 }
0x3a68   :  { %15113 = vmatpush3.msra.mxu1 %v18555_v62  ;;  %15073 = vmatpush3.msra.mxu0 %v18561_v63 }
0x3a69   :  { %15114 = vmatprep.subr.mxu1 %v16443_v5  ;;  %15074 = vmatprep.subr.mxu0 %v16443_v5 }
0x3a6a   :  { %15115 = vmatpush3.msra.mxu1 %v18566_v37  ;;  %15075 = vmatpush3.msra.mxu0 %v18572_v38 }
0x3a6b   :  { %15076 = vmatprep.subr.mxu0 %v16443_v5  ;;  %15116 = vmatprep.mubr.msk.f32.mxu1 %vm16444_vm1, %v16443_v5 }
0x3a6c   :  { %15077 = vmatpush3.msra.mxu0 %v18581_v41  ;;  %15098 = vmatprep.mubr.msk.f32.mxu0 %vm16444_vm1, %v16443_v5 }
0x3a6d   :  { %15078 = vmatprep.subr.mxu0 %v16443_v5  ;;  %15119 = vmatprep.subr.mxu1 %v16443_v5 }
0x3a6e   :  { %15079 = vmatpush3.msra.mxu0 %v18591_v57 }
0x3a6f   :  { %15080 = vmatprep.subr.mxu0 %v16443_v5 }
0x3a70   :  { %15081 = vmatpush3.msra.mxu0 %v18598_v1 }
0x3a71   :  { %15082 = vmatprep.subr.mxu0 %v16443_v5 }
0x3a72   :  { %15083 = vmatpush3.msra.mxu0 %v18605_v29 }
0x3a73   :  { %15084 = vmatprep.subr.mxu0 %v16443_v5 }
0x3a74   :  { %15085 = vmatpush3.msra.mxu0 %v18612_v42 }
0x3a75   :  { %15086 = vmatprep.subr.mxu0 %v16443_v5 }
0x3a76   :  { %15087 = vmatpush3.msra.mxu0 %v18619_v40 }
0x3a77   :  { %15088 = vmatprep.subr.mxu0 %v16443_v5 }
0x3a78   :  { %15089 = vmatpush3.msra.mxu0 %v18626_v2 }
0x3a79   :  { %15090 = vmatprep.subr.mxu0 %v16443_v5 }
0x3a7a   :  { %15091 = vmatpush3.msra.mxu0 %v18633_v22 }
0x3a7b   :  { %15092 = vmatprep.subr.mxu0 %v16443_v5 }
0x3a7c   :  { %15093 = vmatpush3.msra.mxu0 %v18640_v24 }
0x3a7d   :  { %15094 = vmatprep.subr.mxu0 %v16443_v5 }
0x3a7e   :  { %15095 = vmatpush3.msra.mxu0 %v18647_v45 }
0x3a7f   :  { %15096 = vmatprep.subr.mxu0 %v16443_v5 }
0x3a80   :  { %15097 = vmatpush3.msra.mxu0 %v18654_v46 }
0x3a81   :  { %15141 = vmatprep.subr.mxu0 %v16443_v5 }
0x3b1f   :  { %v7473_v50 = vpop.f32.mrf.mxu0  ;;  %v18658_v14 = vpop.f32.mrf.mxu1 }
0x3b20   :  { %v7474_v53 = vadd.f32 %v18145_v7, %v7473_v50 }
0x3b21   :  { %v15054_v17 = vpop.f32.mrf.mxu0  ;;  %v15065_v9 = vpop.f32.mrf.mxu1 }
0x3b22   :  { %v7477_v55 = vsel %vm1549_vm6, %v7474_v53, -inf }
0x3b27   :  { %v7697_v51 = vpop.f32.mrf.mxu1 }
0x3b28   :  { %v7698_v8 = vadd.f32 %v7697_v51, %v16919_v47 }
0x3b29   :  { %v15111_v43 = vpop.f32.mrf.mxu1 }
0x3b2a   :  { %v7701_v54 = vsel %vm1310_vm5, %v7698_v8, -inf }
0x3b2b   :  { %7702 = vmax.xlane.f32.xlu0 %v7701_v54 }
0x3b2f   :  { %7478 = vmax.xlane.f32.xlu0 %v7477_v55 }
0x3bb4   :  { %v7703_v56 = vpop.xlane.xlu0 %7702 }
0x3bb5   :  { %v7704_v61 = vsub.f32 %v7698_v8, %v7703_v56 }
0x3bb7   :  { %v7705_v44 = vmul.f32 1.442695, %v7704_v61 }
0x3bb8   :  { %v7479_v4 = vpop.xlane.xlu0 %7478 }
0x3bb9   :  { %16159 = vpow2.f32 %v7705_v44  ;;  %v7480_v10 = vsub.f32 %v7474_v53, %v7479_v4  ;;  %v18774_v53 = vld [vmem:[%s19908_s13] ss:$0 sm:$0xff] }
0x3bbb   :  { %v7481_v12 = vmul.f32 1.442695, %v7480_v10 }
0x3bbd   :  { %16161 = vpow2.f32 %v7481_v12 }
0x3bc6   :  { %v16160_v13 = vpop.eup %16159 }
0x3bc7   :  { %v7707_v11 = vsel %vm1310_vm5, %v16160_v13, 0.0 }
0x3bc8   :  { %7708 = vadd.xlane.f32.xlu1 %v7707_v11 }
0x3bca   :  { %v16162_v15 = vpop.eup %16161 }
0x3bcb   :  { %v7483_v7 = vsel %vm1549_vm6, %v16162_v15, 0.0 }
0x3bcc   :  { %7484 = vadd.xlane.f32.xlu1 %v7483_v7 }
0x3c51   :  { %v7709_v23 = vpop.xlane.xlu1 %7708 }
0x3c52   :  { %16163 = vrcp.f32 %v7709_v23 }
0x3c55   :  { %v7485_v25 = vpop.xlane.xlu1 %7484 }
0x3c56   :  { %16165 = vrcp.f32 %v7485_v25 }
0x3c5f   :  { %v16164_v0 = vpop.eup %16163 }
0x3c60   :  { %v7711_v48 = vmul.f32 %v16164_v0, %v16160_v13 }
0x3c62   :  { %15117 = vmatmul.mubr.msk.f32.vlgmr.msra.gmra.mxu1 %vm93_vm0, %v7711_v48 }
0x3c63   :  { %v16166_v49 = vpop.eup %16165  ;;  %15120 = vmatpush3.msra.mxu1 %v18156_v3  ;;  %15127 = vmatprep.mubr.msk.f32.mxu1 %vm16444_vm1, %v16443_v5  ;;  %v18681_v3 = vld [vmem:[%s19905_s10 + $0x10] sm:$0xff] }
0x3c64   :  { %v7487_v26 = vmul.f32 %v16166_v49, %v16162_v15  ;;  %15121 = vmatprep.subr.mxu1 %v16443_v5 }
0x3c65   :  { %15122 = vmatpush3.msra.mxu1 %v18165_v39  ;;  %v18689_v39 = vld [vmem:[%s19905_s10 + $0x8] sm:$0xff] }
0x3c66   :  { %7489 = vst [vmem:[#allocation4 + $0x1a] sm:$0x3] %v7487_v26  ;;  %15099 = vmatmul.mubr.f32.vlgmr.msra.gmra.mxu0 %v7487_v26  ;;  %15123 = vmatprep.subr.mxu1 %v16443_v5 }
0x3c67   :  { %15124 = vmatpush3.msra.mxu1 %v18172_v36  ;;  %15142 = vmatpush3.msra.mxu0 %v18493_v20  ;;  %v18698_v36 = vld [vmem:[%s19905_s10] sm:$0xff] }
0x3c68   :  { %15125 = vmatprep.subr.mxu1 %v16443_v5  ;;  %15143 = vmatprep.subr.mxu0 %v16443_v5 }
0x3c69   :  { %15126 = vmatpush3.msra.mxu1 %v18181_v16  ;;  %15144 = vmatpush3.msra.mxu0 %v18681_v3 }
0x3c6a   :  { %15130 = vmatprep.subr.mxu1 %v16443_v5  ;;  %15145 = vmatprep.subr.mxu0 %v16443_v5 }
0x3c6b   :  { %15146 = vmatpush3.msra.mxu0 %v18689_v39  ;;  %15149 = vmatprep.mubr.msk.f32.mxu0 %vm16444_vm1, %v16443_v5 }
0x3c6c   :  { %15147 = vmatprep.subr.mxu0 %v16443_v5 }
0x3c6d   :  { %15148 = vmatpush3.msra.mxu0 %v18698_v36 }
0x3c6e   :  { %15187 = vmatprep.subr.mxu0 %v16443_v5 }
0x3d22   :  { %v7781_v16 = vpop.f32.mrf.mxu1 }
0x3d23   :  { %15128 = vmatmul.mubr.msk.f32.vlgmr.msra.gmra.mxu1 %vm175_vm2, %v7781_v16  ;;  %v18785_v16 = vld [vmem:[%s19903_s8 + $0x18] sm:$0xff] }
0x3d24   :  { %v15118_v52 = vpop.f32.mrf.mxu1  ;;  %15131 = vmatpush3.msra.mxu1 %v18197_v60  ;;  %15138 = vmatprep.mubr.msk.f32.mxu1 %vm16444_vm1, %v16443_v5 }
0x3d25   :  { %15132 = vmatprep.subr.mxu1 %v16443_v5 }
0x3d26   :  { %v7626_v27 = vpop.f32.mrf.mxu0  ;;  %15133 = vmatpush3.msra.mxu1 %v18206_v6 }
0x3d27   :  { %15134 = vmatprep.subr.mxu1 %v16443_v5  ;;  %v7627_v60 = vadd.f32 %v7626_v27, %v18658_v14  ;;  %v18794_v27 = vld [vmem:[%s19903_s8 + $0x10] sm:$0xff] }
0x3d28   :  { %v15100_v21 = vpop.f32.mrf.mxu0  ;;  %15135 = vmatpush3.msra.mxu1 %v18213_v19 }
0x3d29   :  { %15136 = vmatprep.subr.mxu1 %v16443_v5  ;;  %v7630_v34 = vadd.f32 %v18228_v59, %v7627_v60  ;;  %v18801_v21 = vld [vmem:[%s19903_s8 + $0x8] sm:$0xff]  ;;  %v18810_v60 = vld [vmem:[%s19903_s8] sm:$0xff] }
0x3d2a   :  { %15137 = vmatpush3.msra.mxu1 %v18220_v58 }
0x3d2b   :  { %15152 = vmatprep.subr.mxu1 %v16443_v5 }
0x3de3   :  { %v7854_v50 = vpop.f32.mrf.mxu1 }
0x3de4   :  { %v7858_v17 = vadd.f32 %v7854_v50, %v7630_v34 }
0x3de5   :  { %v15129_v9 = vpop.f32.mrf.mxu1 }
0x3de6   :  { %16167 = vtanh.f32 %v7858_v17  ;;  %v18826_v17 = vld [vmem:[%s19907_s12 + $0x18] sm:$0xff] }
0x3df3   :  { %v16168_v6 = vpop.eup %16167 }
0x3df4   :  { %15139 = vmatmul.mubr.msk.f32.vlgmr.msra.gmra.mxu1 %vm175_vm2, %v16168_v6  ;;  %15150 = vmatmul.mubr.msk.f32.vlgmr.msra.gmra.mxu0 %vm175_vm2, %v16168_v6 }
0x3df5   :  { %15188 = vmatpush3.msra.mxu0 %v16900_v31  ;;  %15195 = vmatprep.mubr.msk.f32.mxu0 %vm16444_vm1, %v16443_v5 }
0x3df6   :  { %15189 = vmatprep.subr.mxu0 %v16443_v5  ;;  %15153 = vmatpush3.msra.mxu1 %v18530_v35 }
0x3df7   :  { %15190 = vmatpush3.msra.mxu0 %v16903_v32  ;;  %15154 = vmatprep.subr.mxu1 %v16443_v5 }
0x3df8   :  { %15191 = vmatprep.subr.mxu0 %v16443_v5  ;;  %15155 = vmatpush3.msra.mxu1 %v18539_v33 }
0x3df9   :  { %15192 = vmatpush3.msra.mxu0 %v16896_v28  ;;  %15156 = vmatprep.subr.mxu1 %v16443_v5 }
0x3dfa   :  { %15193 = vmatprep.subr.mxu0 %v16443_v5  ;;  %15157 = vmatpush3.msra.mxu1 %v18548_v18 }
0x3dfb   :  { %15194 = vmatpush3.msra.mxu0 %v16898_v30  ;;  %15158 = vmatprep.subr.mxu1 %v16443_v5 }
0x3dfc   :  { %15196 = vmatmul.mubr.msk.f32.vlgmr.msra.gmra.mxu0 %vm175_vm2, %v16168_v6  ;;  %15198 = vmatprep.subr.mxu0 %v16443_v5  ;;  %v18835_v6 = vld [vmem:[%s19907_s12 + $0x10] sm:$0xff] }
0x3dfd   :  { %15199 = vmatpush3.msra.mxu0 %v18555_v62  ;;  %15159 = vmatpush3.msra.mxu1 %v18561_v63 }
0x3dfe   :  { %15200 = vmatprep.subr.mxu0 %v16443_v5  ;;  %15160 = vmatprep.subr.mxu1 %v16443_v5 }
0x3dff   :  { %15201 = vmatpush3.msra.mxu0 %v18566_v37  ;;  %15161 = vmatpush3.msra.mxu1 %v18572_v38 }
0x3e00   :  { %15162 = vmatprep.subr.mxu1 %v16443_v5  ;;  %15202 = vmatprep.mubr.msk.f32.mxu0 %vm16444_vm1, %v16443_v5 }
0x3e01   :  { %15163 = vmatpush3.msra.mxu1 %v18581_v41  ;;  %15184 = vmatprep.mubr.msk.f32.mxu1 %vm16444_vm1, %v16443_v5 }
0x3e02   :  { %15164 = vmatprep.subr.mxu1 %v16443_v5  ;;  %15205 = vmatprep.subr.mxu0 %v16443_v5 }
0x3e03   :  { %15165 = vmatpush3.msra.mxu1 %v18591_v57 }
0x3e04   :  { %15166 = vmatprep.subr.mxu1 %v16443_v5 }
0x3e05   :  { %15167 = vmatpush3.msra.mxu1 %v18598_v1 }
0x3e06   :  { %15168 = vmatprep.subr.mxu1 %v16443_v5 }
0x3e07   :  { %15169 = vmatpush3.msra.mxu1 %v18605_v29 }
0x3e08   :  { %15170 = vmatprep.subr.mxu1 %v16443_v5 }
0x3e09   :  { %15171 = vmatpush3.msra.mxu1 %v18612_v42 }
0x3e0a   :  { %15172 = vmatprep.subr.mxu1 %v16443_v5 }
0x3e0b   :  { %15173 = vmatpush3.msra.mxu1 %v18619_v40 }
0x3e0c   :  { %15174 = vmatprep.subr.mxu1 %v16443_v5 }
0x3e0d   :  { %15175 = vmatpush3.msra.mxu1 %v18626_v2 }
0x3e0e   :  { %15176 = vmatprep.subr.mxu1 %v16443_v5 }
0x3e0f   :  { %15177 = vmatpush3.msra.mxu1 %v18633_v22 }
0x3e10   :  { %15178 = vmatprep.subr.mxu1 %v16443_v5 }
0x3e11   :  { %15179 = vmatpush3.msra.mxu1 %v18640_v24 }
0x3e12   :  { %15180 = vmatprep.subr.mxu1 %v16443_v5 }
0x3e13   :  { %15181 = vmatpush3.msra.mxu1 %v18647_v45 }
0x3e14   :  { %15182 = vmatprep.subr.mxu1 %v16443_v5 }
0x3e15   :  { %15183 = vmatpush3.msra.mxu1 %v18654_v46 }
0x3e16   :  { %15227 = vmatprep.subr.mxu1 %v16443_v5 }
0x3eb4   :  { %v7929_v19 = vpop.f32.mrf.mxu1  ;;  %v18768_v58 = vpop.f32.mrf.mxu0 }
0x3eb5   :  { %v7930_v54 = vadd.f32 %v18774_v53, %v7929_v19 }
0x3eb6   :  { %v15140_v59 = vpop.f32.mrf.mxu1  ;;  %v15151_v14 = vpop.f32.mrf.mxu0 }
0x3eb7   :  { %v7933_v56 = vsel %vm1549_vm6, %v7930_v54, -inf  ;;  %v18842_v59 = vld [vmem:[%s19907_s12 + $0x8] sm:$0xff]  ;;  %v18849_v14 = vld [vmem:[%s19907_s12] sm:$0xff] }
0x3ebc   :  { %v8153_v51 = vpop.f32.mrf.mxu0 }
0x3ebd   :  { %v8154_v8 = vadd.f32 %v8153_v51, %v16919_v47 }
0x3ebe   :  { %v15197_v43 = vpop.f32.mrf.mxu0 }
0x3ebf   :  { %v8157_v55 = vsel %vm1310_vm5, %v8154_v8, -inf }
0x3ec0   :  { %8158 = vmax.xlane.f32.xlu0 %v8157_v55 }
0x3ec4   :  { %7934 = vmax.xlane.f32.xlu0 %v7933_v56 }
0x3f49   :  { %v8159_v61 = vpop.xlane.xlu0 %8158 }
0x3f4a   :  { %v8160_v44 = vsub.f32 %v8154_v8, %v8159_v61  ;;  %v18857_v8 = vld [vmem:[%s19906_s11] ss:$0 sm:$0xff] }
0x3f4c   :  { %v8161_v4 = vmul.f32 1.442695, %v8160_v44 }
0x3f4d   :  { %v7935_v10 = vpop.xlane.xlu0 %7934 }
0x3f4e   :  { %16169 = vpow2.f32 %v8161_v4  ;;  %v7936_v12 = vsub.f32 %v7930_v54, %v7935_v10 }
0x3f50   :  { %v7937_v13 = vmul.f32 1.442695, %v7936_v12 }
0x3f52   :  { %16171 = vpow2.f32 %v7937_v13 }
0x3f5b   :  { %v16170_v11 = vpop.eup %16169 }
0x3f5c   :  { %v8163_v15 = vsel %vm1310_vm5, %v16170_v11, 0.0 }
0x3f5d   :  { %8164 = vadd.xlane.f32.xlu1 %v8163_v15 }
0x3f5f   :  { %v16172_v7 = vpop.eup %16171 }
0x3f60   :  { %v7939_v23 = vsel %vm1549_vm6, %v16172_v7, 0.0 }
0x3f61   :  { %7940 = vadd.xlane.f32.xlu1 %v7939_v23 }
0x3fe6   :  { %v8165_v25 = vpop.xlane.xlu1 %8164 }
0x3fe7   :  { %16173 = vrcp.f32 %v8165_v25 }
0x3fea   :  { %v7941_v0 = vpop.xlane.xlu1 %7940 }
0x3feb   :  { %16175 = vrcp.f32 %v7941_v0 }
0x3ff4   :  { %v16174_v48 = vpop.eup %16173 }
0x3ff5   :  { %v8167_v49 = vmul.f32 %v16174_v48, %v16170_v11 }
0x3ff7   :  { %15203 = vmatmul.mubr.msk.f32.vlgmr.msra.gmra.mxu0 %vm93_vm0, %v8167_v49 }
0x3ff8   :  { %v16176_v26 = vpop.eup %16175  ;;  %15206 = vmatpush3.msra.mxu0 %v18785_v16  ;;  %15213 = vmatprep.mubr.msk.f32.mxu0 %vm16444_vm1, %v16443_v5 }
0x3ff9   :  { %v7943_v52 = vmul.f32 %v16176_v26, %v16172_v7  ;;  %15207 = vmatprep.subr.mxu0 %v16443_v5 }
0x3ffa   :  { %15208 = vmatpush3.msra.mxu0 %v18794_v27 }
0x3ffb   :  { %7945 = vst [vmem:[#allocation4 + $0x1c] sm:$0x3] %v7943_v52  ;;  %15185 = vmatmul.mubr.f32.vlgmr.msra.gmra.mxu1 %v7943_v52  ;;  %15209 = vmatprep.subr.mxu0 %v16443_v5 }
0x3ffc   :  { %15210 = vmatpush3.msra.mxu0 %v18801_v21  ;;  %15228 = vmatpush3.msra.mxu1 %v18493_v20 }
0x3ffd   :  { %15211 = vmatprep.subr.mxu0 %v16443_v5  ;;  %15229 = vmatprep.subr.mxu1 %v16443_v5 }
0x3ffe   :  { %15212 = vmatpush3.msra.mxu0 %v18810_v60  ;;  %15230 = vmatpush3.msra.mxu1 %v18681_v3 }
0x3fff   :  { %15216 = vmatprep.subr.mxu0 %v16443_v5  ;;  %15231 = vmatprep.subr.mxu1 %v16443_v5 }
0x4000   :  { %15232 = vmatpush3.msra.mxu1 %v18689_v39  ;;  %15235 = vmatprep.mubr.msk.f32.mxu1 %vm16444_vm1, %v16443_v5 }
0x4001   :  { %15233 = vmatprep.subr.mxu1 %v16443_v5 }
0x4002   :  { %15234 = vmatpush3.msra.mxu1 %v18698_v36 }
0x4003   :  { %15273 = vmatprep.subr.mxu1 %v16443_v5 }
0x40b7   :  { %v8237_v34 = vpop.f32.mrf.mxu0 }
0x40b8   :  { %15214 = vmatmul.mubr.msk.f32.vlgmr.msra.gmra.mxu0 %vm175_vm2, %v8237_v34 }
0x40b9   :  { %v15204_v50 = vpop.f32.mrf.mxu0  ;;  %15217 = vmatpush3.msra.mxu0 %v18826_v17  ;;  %15224 = vmatprep.mubr.msk.f32.mxu0 %vm16444_vm1, %v16443_v5 }
0x40ba   :  { %15218 = vmatprep.subr.mxu0 %v16443_v5 }
0x40bb   :  { %v8082_v9 = vpop.f32.mrf.mxu1  ;;  %15219 = vmatpush3.msra.mxu0 %v18835_v6 }
0x40bc   :  { %15220 = vmatprep.subr.mxu0 %v16443_v5  ;;  %v8083_v51 = vadd.f32 %v8082_v9, %v18768_v58 }
0x40bd   :  { %v15186_v19 = vpop.f32.mrf.mxu1  ;;  %15221 = vmatpush3.msra.mxu0 %v18842_v59 }
0x40be   :  { %15222 = vmatprep.subr.mxu0 %v16443_v5  ;;  %v8086_v43 = vadd.f32 %v18857_v8, %v8083_v51 }
0x40bf   :  { %15223 = vmatpush3.msra.mxu0 %v18849_v14 }
0x40c0   :  { %15238 = vmatprep.subr.mxu0 %v16443_v5 }
0x4178   :  { %v8310_v54 = vpop.f32.mrf.mxu0 }
0x4179   :  { %v8314_v55 = vadd.f32 %v8310_v54, %v8086_v43 }
0x417a   :  { %v15215_v56 = vpop.f32.mrf.mxu0 }
0x417b   :  { %16177 = vtanh.f32 %v8314_v55 }
0x4188   :  { %v16178_v61 = vpop.eup %16177 }
0x4189   :  { %15225 = vmatmul.mubr.msk.f32.vlgmr.msra.gmra.mxu0 %vm175_vm2, %v16178_v61  ;;  %15236 = vmatmul.mubr.msk.f32.vlgmr.msra.gmra.mxu1 %vm175_vm2, %v16178_v61 }
0x418a   :  { %15274 = vmatpush3.msra.mxu1 %v16900_v31  ;;  %15281 = vmatprep.mubr.msk.f32.mxu1 %vm16444_vm1, %v16443_v5 }
0x418b   :  { %15275 = vmatprep.subr.mxu1 %v16443_v5  ;;  %15239 = vmatpush3.msra.mxu0 %v18530_v35 }
0x418c   :  { %15276 = vmatpush3.msra.mxu1 %v16903_v32  ;;  %15240 = vmatprep.subr.mxu0 %v16443_v5 }
0x418d   :  { %15277 = vmatprep.subr.mxu1 %v16443_v5  ;;  %15241 = vmatpush3.msra.mxu0 %v18539_v33 }
0x418e   :  { %15278 = vmatpush3.msra.mxu1 %v16896_v28  ;;  %15242 = vmatprep.subr.mxu0 %v16443_v5 }
0x418f   :  { %15279 = vmatprep.subr.mxu1 %v16443_v5  ;;  %15243 = vmatpush3.msra.mxu0 %v18548_v18 }
0x4190   :  { %15280 = vmatpush3.msra.mxu1 %v16898_v30  ;;  %15244 = vmatprep.subr.mxu0 %v16443_v5 }
0x4191   :  { %15282 = vmatmul.mubr.msk.f32.vlgmr.msra.gmra.mxu1 %vm175_vm2, %v16178_v61  ;;  %15284 = vmatprep.subr.mxu1 %v16443_v5 }
0x4192   :  { %15285 = vmatpush3.msra.mxu1 %v18555_v62  ;;  %15245 = vmatpush3.msra.mxu0 %v18561_v63 }
0x4193   :  { %15286 = vmatprep.subr.mxu1 %v16443_v5  ;;  %15246 = vmatprep.subr.mxu0 %v16443_v5 }
0x4194   :  { %15287 = vmatpush3.msra.mxu1 %v18566_v37  ;;  %15247 = vmatpush3.msra.mxu0 %v18572_v38 }
0x4195   :  { %15248 = vmatprep.subr.mxu0 %v16443_v5  ;;  %15288 = vmatprep.mubr.msk.f32.mxu1 %vm16444_vm1, %v16443_v5 }
0x4196   :  { %15249 = vmatpush3.msra.mxu0 %v18581_v41  ;;  %15270 = vmatprep.mubr.msk.f32.mxu0 %vm16444_vm1, %v16443_v5 }
0x4197   :  { %15250 = vmatprep.subr.mxu0 %v16443_v5  ;;  %15291 = vmatprep.subr.mxu1 %v16443_v5 }
0x4198   :  { %15251 = vmatpush3.msra.mxu0 %v18591_v57 }
0x4199   :  { %15252 = vmatprep.subr.mxu0 %v16443_v5 }
0x419a   :  { %15253 = vmatpush3.msra.mxu0 %v18598_v1 }
0x419b   :  { %15254 = vmatprep.subr.mxu0 %v16443_v5 }
0x419c   :  { %15255 = vmatpush3.msra.mxu0 %v18605_v29 }
0x419d   :  { %15256 = vmatprep.subr.mxu0 %v16443_v5 }
0x419e   :  { %15257 = vmatpush3.msra.mxu0 %v18612_v42 }
0x419f   :  { %15258 = vmatprep.subr.mxu0 %v16443_v5 }
0x41a0   :  { %15259 = vmatpush3.msra.mxu0 %v18619_v40 }
0x41a1   :  { %15260 = vmatprep.subr.mxu0 %v16443_v5 }
0x41a2   :  { %15261 = vmatpush3.msra.mxu0 %v18626_v2 }
0x41a3   :  { %15262 = vmatprep.subr.mxu0 %v16443_v5 }
0x41a4   :  { %15263 = vmatpush3.msra.mxu0 %v18633_v22 }
0x41a5   :  { %15264 = vmatprep.subr.mxu0 %v16443_v5 }
0x41a6   :  { %15265 = vmatpush3.msra.mxu0 %v18640_v24 }
0x41a7   :  { %15266 = vmatprep.subr.mxu0 %v16443_v5 }
0x41a8   :  { %15267 = vmatpush3.msra.mxu0 %v18647_v45 }
0x41a9   :  { %15268 = vmatprep.subr.mxu0 %v16443_v5 }
0x41aa   :  { %15269 = vmatpush3.msra.mxu0 %v18654_v46 }
0x41ab   :  { %15313 = vmatprep.subr.mxu0 %v16443_v5 }
0x4249   :  { %v8385_v58 = vpop.f32.mrf.mxu0  ;;  %v18913_v44 = vpop.f32.mrf.mxu1 }
0x424a   :  { %v8386_v15 = vadd.f32 %v18774_v53, %v8385_v58 }
0x424b   :  { %v15226_v4 = vpop.f32.mrf.mxu0  ;;  %v15237_v10 = vpop.f32.mrf.mxu1 }
0x424c   :  { %v8389_v23 = vsel %vm1549_vm6, %v8386_v15, -inf }
0x4251   :  { %v8609_v12 = vpop.f32.mrf.mxu1 }
0x4252   :  { %v8610_v13 = vadd.f32 %v8609_v12, %v16919_v47 }
0x4253   :  { %v15283_v11 = vpop.f32.mrf.mxu1 }
0x4254   :  { %v8613_v7 = vsel %vm1310_vm5, %v8610_v13, -inf }
0x4255   :  { %8614 = vmax.xlane.f32.xlu0 %v8613_v7 }
0x4259   :  { %8390 = vmax.xlane.f32.xlu0 %v8389_v23 }
0x42de   :  { %v8615_v25 = vpop.xlane.xlu0 %8614 }
0x42df   :  { %v8616_v0 = vsub.f32 %v8610_v13, %v8615_v25 }
0x42e1   :  { %v8617_v48 = vmul.f32 1.442695, %v8616_v0 }
0x42e2   :  { %v8391_v49 = vpop.xlane.xlu0 %8390 }
0x42e3   :  { %16179 = vpow2.f32 %v8617_v48  ;;  %v8392_v26 = vsub.f32 %v8386_v15, %v8391_v49 }
0x42e5   :  { %v8393_v52 = vmul.f32 1.442695, %v8392_v26 }
0x42e7   :  { %16181 = vpow2.f32 %v8393_v52 }
0x42f0   :  { %v16180_v34 = vpop.eup %16179 }
0x42f1   :  { %v8619_v50 = vsel %vm1310_vm5, %v16180_v34, 0.0 }
0x42f2   :  { %8620 = vadd.xlane.f32.xlu1 %v8619_v50 }
0x42f4   :  { %v16182_v9 = vpop.eup %16181 }
0x42f5   :  { %v8395_v19 = vsel %vm1549_vm6, %v16182_v9, 0.0 }
0x42f6   :  { %8396 = vadd.xlane.f32.xlu1 %v8395_v19 }
0x437b   :  { %v8621_v51 = vpop.xlane.xlu1 %8620 }
0x437c   :  { %16183 = vrcp.f32 %v8621_v51 }
0x437f   :  { %v8397_v43 = vpop.xlane.xlu1 %8396 }
0x4380   :  { %16185 = vrcp.f32 %v8397_v43 }
0x4389   :  { %v16184_v54 = vpop.eup %16183 }
0x438a   :  { %v8623_v55 = vmul.f32 %v16184_v54, %v16180_v34 }
0x438c   :  { %15289 = vmatmul.mubr.msk.f32.vlgmr.msra.gmra.mxu1 %vm93_vm0, %v8623_v55 }
0x438d   :  { %v16186_v56 = vpop.eup %16185  ;;  %15292 = vmatpush3.msra.mxu1 %v18785_v16  ;;  %15299 = vmatprep.mubr.msk.f32.mxu1 %vm16444_vm1, %v16443_v5 }
0x438e   :  { %v8399_v61 = vmul.f32 %v16186_v56, %v16182_v9  ;;  %15293 = vmatprep.subr.mxu1 %v16443_v5 }
0x438f   :  { %15294 = vmatpush3.msra.mxu1 %v18794_v27 }
0x4390   :  { %8401 = vst [vmem:[#allocation4 + $0x1e] sm:$0x3] %v8399_v61  ;;  %15271 = vmatmul.mubr.f32.vlgmr.msra.gmra.mxu0 %v8399_v61  ;;  %15295 = vmatprep.subr.mxu1 %v16443_v5 }
0x4391   :  { %15296 = vmatpush3.msra.mxu1 %v18801_v21  ;;  %15314 = vmatpush3.msra.mxu0 %v18493_v20 }
0x4392   :  { %15297 = vmatprep.subr.mxu1 %v16443_v5  ;;  %15315 = vmatprep.subr.mxu0 %v16443_v5 }
0x4393   :  { %15298 = vmatpush3.msra.mxu1 %v18810_v60  ;;  %15316 = vmatpush3.msra.mxu0 %v18681_v3 }
0x4394   :  { %15302 = vmatprep.subr.mxu1 %v16443_v5  ;;  %15317 = vmatprep.subr.mxu0 %v16443_v5 }
0x4395   :  { %15318 = vmatpush3.msra.mxu0 %v18689_v39  ;;  %15321 = vmatprep.mubr.msk.f32.mxu0 %vm16444_vm1, %v16443_v5 }
0x4396   :  { %15319 = vmatprep.subr.mxu0 %v16443_v5 }
0x4397   :  { %15320 = vmatpush3.msra.mxu0 %v18698_v36 }
0x4398   :  { %15359 = vmatprep.subr.mxu0 %v16443_v5 }
0x444c   :  { %v8693_v58 = vpop.f32.mrf.mxu1 }
0x444d   :  { %15300 = vmatmul.mubr.msk.f32.vlgmr.msra.gmra.mxu1 %vm175_vm2, %v8693_v58 }
0x444e   :  { %v15290_v4 = vpop.f32.mrf.mxu1  ;;  %15303 = vmatpush3.msra.mxu1 %v18826_v17  ;;  %15310 = vmatprep.mubr.msk.f32.mxu1 %vm16444_vm1, %v16443_v5 }
0x444f   :  { %15304 = vmatprep.subr.mxu1 %v16443_v5 }
0x4450   :  { %v8538_v10 = vpop.f32.mrf.mxu0  ;;  %15305 = vmatpush3.msra.mxu1 %v18835_v6 }
0x4451   :  { %15306 = vmatprep.subr.mxu1 %v16443_v5  ;;  %v8539_v13 = vadd.f32 %v8538_v10, %v18913_v44 }
0x4452   :  { %v15272_v12 = vpop.f32.mrf.mxu0  ;;  %15307 = vmatpush3.msra.mxu1 %v18842_v59 }
0x4453   :  { %15308 = vmatprep.subr.mxu1 %v16443_v5  ;;  %v8542_v11 = vadd.f32 %v18857_v8, %v8539_v13 }
0x4454   :  { %15309 = vmatpush3.msra.mxu1 %v18849_v14 }
0x4455   :  { %15324 = vmatprep.subr.mxu1 %v16443_v5 }
0x450d   :  { %v8766_v15 = vpop.f32.mrf.mxu1 }
0x450e   :  { %v8770_v7 = vadd.f32 %v8766_v15, %v8542_v11 }
0x450f   :  { %v15301_v23 = vpop.f32.mrf.mxu1 }
0x4510   :  { %16187 = vtanh.f32 %v8770_v7 }
0x451d   :  { %v16188_v25 = vpop.eup %16187 }
0x451e   :  { %15311 = vmatmul.mubr.msk.f32.vlgmr.msra.gmra.mxu1 %vm175_vm2, %v16188_v25  ;;  %15322 = vmatmul.mubr.msk.f32.vlgmr.msra.gmra.mxu0 %vm175_vm2, %v16188_v25 }
0x451f   :  { %15360 = vmatpush3.msra.mxu0 %v16900_v31  ;;  %15367 = vmatprep.mubr.msk.f32.mxu0 %vm16444_vm1, %v16443_v5 }
0x4520   :  { %15361 = vmatprep.subr.mxu0 %v16443_v5  ;;  %15325 = vmatpush3.msra.mxu1 %v18530_v35 }
0x4521   :  { %15362 = vmatpush3.msra.mxu0 %v16903_v32  ;;  %15326 = vmatprep.subr.mxu1 %v16443_v5 }
0x4522   :  { %15363 = vmatprep.subr.mxu0 %v16443_v5  ;;  %15327 = vmatpush3.msra.mxu1 %v18539_v33 }
0x4523   :  { %15364 = vmatpush3.msra.mxu0 %v16896_v28  ;;  %15328 = vmatprep.subr.mxu1 %v16443_v5 }
0x4524   :  { %15365 = vmatprep.subr.mxu0 %v16443_v5  ;;  %15329 = vmatpush3.msra.mxu1 %v18548_v18 }
0x4525   :  { %15366 = vmatpush3.msra.mxu0 %v16898_v30  ;;  %15330 = vmatprep.subr.mxu1 %v16443_v5 }
0x4526   :  { %15368 = vmatmul.mubr.msk.f32.vlgmr.msra.gmra.mxu0 %vm175_vm2, %v16188_v25  ;;  %15370 = vmatprep.subr.mxu0 %v16443_v5 }
0x4527   :  { %15371 = vmatpush3.msra.mxu0 %v18555_v62  ;;  %15331 = vmatpush3.msra.mxu1 %v18561_v63 }
0x4528   :  { %15372 = vmatprep.subr.mxu0 %v16443_v5  ;;  %15332 = vmatprep.subr.mxu1 %v16443_v5 }
0x4529   :  { %15373 = vmatpush3.msra.mxu0 %v18566_v37  ;;  %15333 = vmatpush3.msra.mxu1 %v18572_v38 }
0x452a   :  { %15334 = vmatprep.subr.mxu1 %v16443_v5  ;;  %15374 = vmatprep.mubr.msk.f32.mxu0 %vm16444_vm1, %v16443_v5 }
0x452b   :  { %15335 = vmatpush3.msra.mxu1 %v18581_v41  ;;  %15356 = vmatprep.mubr.msk.f32.mxu1 %vm16444_vm1, %v16443_v5 }
0x452c   :  { %15336 = vmatprep.subr.mxu1 %v16443_v5  ;;  %15377 = vmatprep.subr.mxu0 %v16443_v5 }
0x452d   :  { %15337 = vmatpush3.msra.mxu1 %v18591_v57 }
0x452e   :  { %15338 = vmatprep.subr.mxu1 %v16443_v5 }
0x452f   :  { %15339 = vmatpush3.msra.mxu1 %v18598_v1 }
0x4530   :  { %15340 = vmatprep.subr.mxu1 %v16443_v5 }
0x4531   :  { %15341 = vmatpush3.msra.mxu1 %v18605_v29 }
0x4532   :  { %15342 = vmatprep.subr.mxu1 %v16443_v5 }
0x4533   :  { %15343 = vmatpush3.msra.mxu1 %v18612_v42 }
0x4534   :  { %15344 = vmatprep.subr.mxu1 %v16443_v5 }
0x4535   :  { %15345 = vmatpush3.msra.mxu1 %v18619_v40 }
0x4536   :  { %15346 = vmatprep.subr.mxu1 %v16443_v5 }
0x4537   :  { %15347 = vmatpush3.msra.mxu1 %v18626_v2 }
0x4538   :  { %15348 = vmatprep.subr.mxu1 %v16443_v5 }
0x4539   :  { %15349 = vmatpush3.msra.mxu1 %v18633_v22 }
0x453a   :  { %15350 = vmatprep.subr.mxu1 %v16443_v5 }
0x453b   :  { %15351 = vmatpush3.msra.mxu1 %v18640_v24 }
0x453c   :  { %15352 = vmatprep.subr.mxu1 %v16443_v5 }
0x453d   :  { %15353 = vmatpush3.msra.mxu1 %v18647_v45 }
0x453e   :  { %15354 = vmatprep.subr.mxu1 %v16443_v5 }
0x453f   :  { %15355 = vmatpush3.msra.mxu1 %v18654_v46 }
0x4540   :  { %15399 = vmatprep.subr.mxu1 %v16443_v5 }
0x45de   :  { %v8841_v44 = vpop.f32.mrf.mxu1  ;;  %v19008_v0 = vpop.f32.mrf.mxu0 }
0x45df   :  { %v8842_v50 = vadd.f32 %v18774_v53, %v8841_v44 }
0x45e0   :  { %v15312_v48 = vpop.f32.mrf.mxu1  ;;  %v15323_v49 = vpop.f32.mrf.mxu0 }
0x45e1   :  { %v8845_v19 = vsel %vm1549_vm6, %v8842_v50, -inf }
0x45e6   :  { %v9065_v26 = vpop.f32.mrf.mxu0 }
0x45e7   :  { %v9066_v52 = vadd.f32 %v9065_v26, %v16919_v47 }
0x45e8   :  { %v15369_v34 = vpop.f32.mrf.mxu0 }
0x45e9   :  { %v9069_v9 = vsel %vm1310_vm5, %v9066_v52, -inf }
0x45ea   :  { %9070 = vmax.xlane.f32.xlu0 %v9069_v9 }
0x45ee   :  { %8846 = vmax.xlane.f32.xlu0 %v8845_v19 }
0x4673   :  { %v9071_v51 = vpop.xlane.xlu0 %9070 }
0x4674   :  { %v9072_v43 = vsub.f32 %v9066_v52, %v9071_v51 }
0x4676   :  { %v9073_v54 = vmul.f32 1.442695, %v9072_v43 }
0x4677   :  { %v8847_v55 = vpop.xlane.xlu0 %8846 }
0x4678   :  { %16189 = vpow2.f32 %v9073_v54  ;;  %v8848_v56 = vsub.f32 %v8842_v50, %v8847_v55 }
0x467a   :  { %v8849_v61 = vmul.f32 1.442695, %v8848_v56 }
0x467c   :  { %16191 = vpow2.f32 %v8849_v61 }
0x4685   :  { %v16190_v58 = vpop.eup %16189 }
0x4686   :  { %v9075_v4 = vsel %vm1310_vm5, %v16190_v58, 0.0 }
0x4687   :  { %9076 = vadd.xlane.f32.xlu1 %v9075_v4  ;;  %v19122_v4 = vld [vmem:[%s19905_s10 + $0x18] sm:$0xff] }
0x4689   :  { %v16192_v10 = vpop.eup %16191 }
0x468a   :  { %v8851_v12 = vsel %vm1549_vm6, %v16192_v10, 0.0 }
0x468b   :  { %8852 = vadd.xlane.f32.xlu1 %v8851_v12 }
0x4710   :  { %v9077_v13 = vpop.xlane.xlu1 %9076 }
0x4711   :  { %16193 = vrcp.f32 %v9077_v13 }
0x4714   :  { %v8853_v11 = vpop.xlane.xlu1 %8852 }
0x4715   :  { %16195 = vrcp.f32 %v8853_v11 }
0x471e   :  { %v16194_v15 = vpop.eup %16193 }
0x471f   :  { %v9079_v7 = vmul.f32 %v16194_v15, %v16190_v58 }
0x4721   :  { %15375 = vmatmul.mubr.msk.f32.vlgmr.msra.gmra.mxu0 %vm93_vm0, %v9079_v7 }
0x4722   :  { %v16196_v23 = vpop.eup %16195  ;;  %15378 = vmatpush3.msra.mxu0 %v18785_v16  ;;  %15385 = vmatprep.mubr.msk.f32.mxu0 %vm16444_vm1, %v16443_v5 }
0x4723   :  { %v8855_v25 = vmul.f32 %v16196_v23, %v16192_v10  ;;  %15379 = vmatprep.subr.mxu0 %v16443_v5 }
0x4724   :  { %15380 = vmatpush3.msra.mxu0 %v18794_v27 }
0x4725   :  { %8857 = vst [vmem:[#allocation4 + $0x20] sm:$0x3] %v8855_v25  ;;  %15357 = vmatmul.mubr.f32.vlgmr.msra.gmra.mxu1 %v8855_v25  ;;  %15381 = vmatprep.subr.mxu0 %v16443_v5  ;;  %v19159_v25 = vld [vmem:[%s19904_s9 + $0x78] sm:$0xff] }
0x4726   :  { %15382 = vmatpush3.msra.mxu0 %v18801_v21  ;;  %15400 = vmatpush3.msra.mxu1 %v18493_v20 }
0x4727   :  { %15383 = vmatprep.subr.mxu0 %v16443_v5  ;;  %15401 = vmatprep.subr.mxu1 %v16443_v5 }
0x4728   :  { %15384 = vmatpush3.msra.mxu0 %v18810_v60  ;;  %15402 = vmatpush3.msra.mxu1 %v18681_v3 }
0x4729   :  { %15388 = vmatprep.subr.mxu0 %v16443_v5  ;;  %15403 = vmatprep.subr.mxu1 %v16443_v5 }
0x472a   :  { %15404 = vmatpush3.msra.mxu1 %v18689_v39  ;;  %15407 = vmatprep.mubr.msk.f32.mxu1 %vm16444_vm1, %v16443_v5 }
0x472b   :  { %15405 = vmatprep.subr.mxu1 %v16443_v5 }
0x472c   :  { %15406 = vmatpush3.msra.mxu1 %v18698_v36 }
0x472d   :  { %15445 = vmatprep.subr.mxu1 %v16443_v5 }
0x47e1   :  { %v9149_v20 = vpop.f32.mrf.mxu0 }
0x47e2   :  { %15386 = vmatmul.mubr.msk.f32.vlgmr.msra.gmra.mxu0 %vm175_vm2, %v9149_v20  ;;  %v19168_v20 = vld [vmem:[%s19904_s9 + $0x70] sm:$0xff] }
0x47e3   :  { %v15376_v44 = vpop.f32.mrf.mxu0  ;;  %15389 = vmatpush3.msra.mxu0 %v18826_v17  ;;  %15396 = vmatprep.mubr.msk.f32.mxu0 %vm16444_vm1, %v16443_v5 }
0x47e4   :  { %15390 = vmatprep.subr.mxu0 %v16443_v5  ;;  %v19177_v44 = vld [vmem:[%s19904_s9 + $0x68] sm:$0xff] }
0x47e5   :  { %v8994_v48 = vpop.f32.mrf.mxu1  ;;  %15391 = vmatpush3.msra.mxu0 %v18835_v6 }
0x47e6   :  { %15392 = vmatprep.subr.mxu0 %v16443_v5  ;;  %v8995_v26 = vadd.f32 %v8994_v48, %v19008_v0  ;;  %v19184_v48 = vld [vmem:[#allocation2 + $0x8] sm:$0xff] }
0x47e7   :  { %v15358_v49 = vpop.f32.mrf.mxu1  ;;  %15393 = vmatpush3.msra.mxu0 %v18842_v59 }
0x47e8   :  { %15394 = vmatprep.subr.mxu0 %v16443_v5  ;;  %v8998_v52 = vadd.f32 %v18857_v8, %v8995_v26  ;;  %v19190_v49 = vld [vmem:[%s19904_s9 + $0x60] sm:$0xff] }
0x47e9   :  { %15395 = vmatpush3.msra.mxu0 %v18849_v14  ;;  %v19195_v26 = vld [vmem:[#allocation2] sm:$0xff] }
0x47ea   :  { %15410 = vmatprep.subr.mxu0 %v16443_v5 }
0x48a2   :  { %v9222_v34 = vpop.f32.mrf.mxu0 }
0x48a3   :  { %v9226_v50 = vadd.f32 %v9222_v34, %v8998_v52  ;;  %v19201_v52 = vld [vmem:[%s19904_s9 + $0x58] sm:$0xff]  ;;  %v19210_v34 = vld [vmem:[%s19904_s9 + $0x50] sm:$0xff] }
0x48a4   :  { %v15387_v9 = vpop.f32.mrf.mxu0 }
0x48a5   :  { %16197 = vtanh.f32 %v9226_v50  ;;  %v19220_v50 = vld [vmem:[%s19904_s9 + $0x48] sm:$0xff]  ;;  %v19227_v9 = vld [vmem:[%s19904_s9 + $0x40] sm:$0xff] }
0x48b2   :  { %v16198_v19 = vpop.eup %16197 }
0x48b3   :  { %15397 = vmatmul.mubr.msk.f32.vlgmr.msra.gmra.mxu0 %vm175_vm2, %v16198_v19  ;;  %15408 = vmatmul.mubr.msk.f32.vlgmr.msra.gmra.mxu1 %vm175_vm2, %v16198_v19 }
0x48b4   :  { %15446 = vmatpush3.msra.mxu1 %v16900_v31  ;;  %15453 = vmatprep.mubr.msk.f32.mxu1 %vm16444_vm1, %v16443_v5 }
0x48b5   :  { %15447 = vmatprep.subr.mxu1 %v16443_v5  ;;  %15411 = vmatpush3.msra.mxu0 %v18530_v35 }
0x48b6   :  { %15448 = vmatpush3.msra.mxu1 %v16903_v32  ;;  %15412 = vmatprep.subr.mxu0 %v16443_v5 }
0x48b7   :  { %15449 = vmatprep.subr.mxu1 %v16443_v5  ;;  %15413 = vmatpush3.msra.mxu0 %v18539_v33 }
0x48b8   :  { %15450 = vmatpush3.msra.mxu1 %v16896_v28  ;;  %15414 = vmatprep.subr.mxu0 %v16443_v5 }
0x48b9   :  { %15451 = vmatprep.subr.mxu1 %v16443_v5  ;;  %15415 = vmatpush3.msra.mxu0 %v18548_v18 }
0x48ba   :  { %15452 = vmatpush3.msra.mxu1 %v16898_v30  ;;  %15416 = vmatprep.subr.mxu0 %v16443_v5 }
0x48bb   :  { %15454 = vmatmul.mubr.msk.f32.vlgmr.msra.gmra.mxu1 %vm175_vm2, %v16198_v19  ;;  %15456 = vmatprep.subr.mxu1 %v16443_v5  ;;  %v19234_v19 = vld [vmem:[%s19904_s9 + $0x38] sm:$0xff] }
0x48bc   :  { %15457 = vmatpush3.msra.mxu1 %v18555_v62  ;;  %15417 = vmatpush3.msra.mxu0 %v18561_v63 }
0x48bd   :  { %15458 = vmatprep.subr.mxu1 %v16443_v5  ;;  %15418 = vmatprep.subr.mxu0 %v16443_v5 }
0x48be   :  { %15459 = vmatpush3.msra.mxu1 %v18566_v37  ;;  %15419 = vmatpush3.msra.mxu0 %v18572_v38 }
0x48bf   :  { %15420 = vmatprep.subr.mxu0 %v16443_v5  ;;  %15460 = vmatprep.mubr.msk.f32.mxu1 %vm16444_vm1, %v16443_v5 }
0x48c0   :  { %15421 = vmatpush3.msra.mxu0 %v18581_v41  ;;  %15442 = vmatprep.mubr.msk.f32.mxu0 %vm16444_vm1, %v16443_v5 }
0x48c1   :  { %15422 = vmatprep.subr.mxu0 %v16443_v5  ;;  %15463 = vmatprep.subr.mxu1 %v16443_v5 }
0x48c2   :  { %15423 = vmatpush3.msra.mxu0 %v18591_v57 }
0x48c3   :  { %15424 = vmatprep.subr.mxu0 %v16443_v5 }
0x48c4   :  { %15425 = vmatpush3.msra.mxu0 %v18598_v1 }
0x48c5   :  { %15426 = vmatprep.subr.mxu0 %v16443_v5 }
0x48c6   :  { %15427 = vmatpush3.msra.mxu0 %v18605_v29 }
0x48c7   :  { %15428 = vmatprep.subr.mxu0 %v16443_v5 }
0x48c8   :  { %15429 = vmatpush3.msra.mxu0 %v18612_v42 }
0x48c9   :  { %15430 = vmatprep.subr.mxu0 %v16443_v5 }
0x48ca   :  { %15431 = vmatpush3.msra.mxu0 %v18619_v40 }
0x48cb   :  { %15432 = vmatprep.subr.mxu0 %v16443_v5 }
0x48cc   :  { %15433 = vmatpush3.msra.mxu0 %v18626_v2 }
0x48cd   :  { %15434 = vmatprep.subr.mxu0 %v16443_v5 }
0x48ce   :  { %15435 = vmatpush3.msra.mxu0 %v18633_v22 }
0x48cf   :  { %15436 = vmatprep.subr.mxu0 %v16443_v5 }
0x48d0   :  { %15437 = vmatpush3.msra.mxu0 %v18640_v24 }
0x48d1   :  { %15438 = vmatprep.subr.mxu0 %v16443_v5 }
0x48d2   :  { %15439 = vmatpush3.msra.mxu0 %v18647_v45 }
0x48d3   :  { %15440 = vmatprep.subr.mxu0 %v16443_v5 }
0x48d4   :  { %15441 = vmatpush3.msra.mxu0 %v18654_v46 }
0x48d5   :  { %15485 = vmatprep.subr.mxu0 %v16443_v5 }
0x4973   :  { %v9297_v35 = vpop.f32.mrf.mxu0  ;;  %v19103_v33 = vpop.f32.mrf.mxu1 }
0x4974   :  { %v9298_v41 = vadd.f32 %v18774_v53, %v9297_v35  ;;  %v19241_v35 = vld [vmem:[%s19904_s9 + $0x30] sm:$0xff] }
0x4975   :  { %v15398_v18 = vpop.f32.mrf.mxu0  ;;  %v15409_v62 = vpop.f32.mrf.mxu1 }
0x4976   :  { %v9301_v1 = vsel %vm1549_vm6, %v9298_v41, -inf  ;;  %v19255_v18 = vld [vmem:[%s19904_s9 + $0x20] sm:$0xff]  ;;  %v19262_v62 = vld [vmem:[%s19904_s9 + $0x18] sm:$0xff] }
0x497b   :  { %v9521_v63 = vpop.f32.mrf.mxu1 }
0x497c   :  { %v9522_v37 = vadd.f32 %v9521_v63, %v16919_v47  ;;  %v19269_v63 = vld [vmem:[%s19904_s9 + $0x10] sm:$0xff] }
0x497d   :  { %v15455_v38 = vpop.f32.mrf.mxu1 }
0x497e   :  { %v9525_v57 = vsel %vm1310_vm5, %v9522_v37, -inf  ;;  %v19283_v38 = vld [vmem:[%s19904_s9] sm:$0xff] }
0x497f   :  { %9526 = vmax.xlane.f32.xlu0 %v9525_v57 }
0x4983   :  { %9302 = vmax.xlane.f32.xlu0 %v9301_v1 }
0x4a08   :  { %v9527_v29 = vpop.xlane.xlu0 %9526 }
0x4a09   :  { %v9528_v42 = vsub.f32 %v9522_v37, %v9527_v29  ;;  %v19276_v37 = vld [vmem:[%s19904_s9 + $0x8] sm:$0xff] }
0x4a0b   :  { %v9529_v40 = vmul.f32 1.442695, %v9528_v42 }
0x4a0c   :  { %v9303_v2 = vpop.xlane.xlu0 %9302 }
0x4a0d   :  { %16199 = vpow2.f32 %v9529_v40  ;;  %v9304_v22 = vsub.f32 %v9298_v41, %v9303_v2 }
0x4a0f   :  { %v9305_v24 = vmul.f32 1.442695, %v9304_v22 }
0x4a11   :  { %16201 = vpow2.f32 %v9305_v24 }
0x4a1a   :  { %v16200_v45 = vpop.eup %16199 }
0x4a1b   :  { %v9531_v46 = vsel %vm1310_vm5, %v16200_v45, 0.0 }
0x4a1c   :  { %9532 = vadd.xlane.f32.xlu1 %v9531_v46 }
0x4a1e   :  { %v16202_v0 = vpop.eup %16201 }
0x4a1f   :  { %v9307_v51 = vsel %vm1549_vm6, %v16202_v0, 0.0 }
0x4a20   :  { %9308 = vadd.xlane.f32.xlu1 %v9307_v51 }
0x4aa5   :  { %v9533_v43 = vpop.xlane.xlu1 %9532 }
0x4aa6   :  { %16203 = vrcp.f32 %v9533_v43 }
0x4aa9   :  { %v9309_v54 = vpop.xlane.xlu1 %9308 }
0x4aaa   :  { %16205 = vrcp.f32 %v9309_v54 }
0x4ab3   :  { %v16204_v55 = vpop.eup %16203 }
0x4ab4   :  { %v9535_v56 = vmul.f32 %v16204_v55, %v16200_v45 }
0x4ab6   :  { %15461 = vmatmul.mubr.msk.f32.vlgmr.msra.gmra.mxu1 %vm93_vm0, %v9535_v56 }
0x4ab7   :  { %v16206_v61 = vpop.eup %16205  ;;  %15464 = vmatpush3.msra.mxu1 %v18785_v16  ;;  %15471 = vmatprep.mubr.msk.f32.mxu1 %vm16444_vm1, %v16443_v5 }
0x4ab8   :  { %v9311_v58 = vmul.f32 %v16206_v61, %v16202_v0  ;;  %15465 = vmatprep.subr.mxu1 %v16443_v5 }
0x4ab9   :  { %15466 = vmatpush3.msra.mxu1 %v18794_v27 }
0x4aba   :  { %9313 = vst [vmem:[#allocation4 + $0x22] sm:$0x3] %v9311_v58  ;;  %15443 = vmatmul.mubr.f32.vlgmr.msra.gmra.mxu0 %v9311_v58  ;;  %15467 = vmatprep.subr.mxu1 %v16443_v5 }
0x4abb   :  { %15468 = vmatpush3.msra.mxu1 %v18801_v21  ;;  %15486 = vmatpush3.msra.mxu0 %v19122_v4 }
0x4abc   :  { %15469 = vmatprep.subr.mxu1 %v16443_v5  ;;  %15487 = vmatprep.subr.mxu0 %v16443_v5 }
0x4abd   :  { %15470 = vmatpush3.msra.mxu1 %v18810_v60  ;;  %15488 = vmatpush3.msra.mxu0 %v18681_v3 }
0x4abe   :  { %15474 = vmatprep.subr.mxu1 %v16443_v5  ;;  %15489 = vmatprep.subr.mxu0 %v16443_v5 }
0x4abf   :  { %15490 = vmatpush3.msra.mxu0 %v18689_v39  ;;  %15493 = vmatprep.mubr.msk.f32.mxu0 %vm16444_vm1, %v16443_v5 }
0x4ac0   :  { %15491 = vmatprep.subr.mxu0 %v16443_v5 }
0x4ac1   :  { %15492 = vmatpush3.msra.mxu0 %v18698_v36 }
0x4ac2   :  { %15531 = vmatprep.subr.mxu0 %v16443_v5 }
0x4b76   :  { %v9605_v10 = vpop.f32.mrf.mxu1 }
0x4b77   :  { %15472 = vmatmul.mubr.msk.f32.vlgmr.msra.gmra.mxu1 %vm175_vm2, %v9605_v10 }
0x4b78   :  { %v15462_v12 = vpop.f32.mrf.mxu1  ;;  %15475 = vmatpush3.msra.mxu1 %v18826_v17  ;;  %15482 = vmatprep.mubr.msk.f32.mxu1 %vm16444_vm1, %v16443_v5 }
0x4b79   :  { %15476 = vmatprep.subr.mxu1 %v16443_v5 }
0x4b7a   :  { %v9450_v3 = vpop.f32.mrf.mxu0  ;;  %15477 = vmatpush3.msra.mxu1 %v18835_v6 }
0x4b7b   :  { %15478 = vmatprep.subr.mxu1 %v16443_v5  ;;  %v9451_v36 = vadd.f32 %v9450_v3, %v19103_v33  ;;  %v19248_v33 = vld [vmem:[%s19904_s9 + $0x28] sm:$0xff] }
0x4b7c   :  { %v15444_v39 = vpop.f32.mrf.mxu0  ;;  %15479 = vmatpush3.msra.mxu1 %v18842_v59 }
0x4b7d   :  { %15480 = vmatprep.subr.mxu1 %v16443_v5  ;;  %v9454_v13 = vadd.f32 %v18857_v8, %v9451_v36 }
0x4b7e   :  { %15481 = vmatpush3.msra.mxu1 %v18849_v14 }
0x4b7f   :  { %15496 = vmatprep.subr.mxu1 %v16443_v5 }
0x4c37   :  { %v9678_v11 = vpop.f32.mrf.mxu1 }
0x4c38   :  { %v9682_v15 = vadd.f32 %v9678_v11, %v9454_v13 }
0x4c39   :  { %v15473_v7 = vpop.f32.mrf.mxu1 }
0x4c3a   :  { %16207 = vtanh.f32 %v9682_v15 }
0x4c47   :  { %v16208_v23 = vpop.eup %16207 }
0x4c48   :  { %15483 = vmatmul.mubr.msk.f32.vlgmr.msra.gmra.mxu1 %vm175_vm2, %v16208_v23  ;;  %15494 = vmatmul.mubr.msk.f32.vlgmr.msra.gmra.mxu0 %vm175_vm2, %v16208_v23 }
0x4c49   :  { %15532 = vmatpush3.msra.mxu0 %v16900_v31  ;;  %15539 = vmatprep.mubr.msk.f32.mxu0 %vm16444_vm1, %v16443_v5 }
0x4c4a   :  { %15533 = vmatprep.subr.mxu0 %v16443_v5  ;;  %15497 = vmatpush3.msra.mxu1 %v19159_v25 }
0x4c4b   :  { %15534 = vmatpush3.msra.mxu0 %v16903_v32  ;;  %15498 = vmatprep.subr.mxu1 %v16443_v5 }
0x4c4c   :  { %15535 = vmatprep.subr.mxu0 %v16443_v5  ;;  %15499 = vmatpush3.msra.mxu1 %v19168_v20 }
0x4c4d   :  { %15536 = vmatpush3.msra.mxu0 %v16896_v28  ;;  %15500 = vmatprep.subr.mxu1 %v16443_v5 }
0x4c4e   :  { %15537 = vmatprep.subr.mxu0 %v16443_v5  ;;  %15501 = vmatpush3.msra.mxu1 %v19177_v44 }
0x4c4f   :  { %15538 = vmatpush3.msra.mxu0 %v16898_v30  ;;  %15502 = vmatprep.subr.mxu1 %v16443_v5 }
0x4c50   :  { %15540 = vmatmul.mubr.msk.f32.vlgmr.msra.gmra.mxu0 %vm175_vm2, %v16208_v23  ;;  %15542 = vmatprep.subr.mxu0 %v16443_v5 }
0x4c51   :  { %15543 = vmatpush3.msra.mxu0 %v19184_v48  ;;  %15503 = vmatpush3.msra.mxu1 %v19190_v49 }
0x4c52   :  { %15544 = vmatprep.subr.mxu0 %v16443_v5  ;;  %15504 = vmatprep.subr.mxu1 %v16443_v5 }
0x4c53   :  { %15545 = vmatpush3.msra.mxu0 %v19195_v26  ;;  %15505 = vmatpush3.msra.mxu1 %v19201_v52 }
0x4c54   :  { %15506 = vmatprep.subr.mxu1 %v16443_v5  ;;  %15546 = vmatprep.mubr.msk.f32.mxu0 %vm16444_vm1, %v16443_v5 }
0x4c55   :  { %15507 = vmatpush3.msra.mxu1 %v19210_v34  ;;  %15528 = vmatprep.mubr.msk.f32.mxu1 %vm16444_vm1, %v16443_v5 }
0x4c56   :  { %15508 = vmatprep.subr.mxu1 %v16443_v5  ;;  %15549 = vmatprep.subr.mxu0 %v16443_v5 }
0x4c57   :  { %15509 = vmatpush3.msra.mxu1 %v19220_v50 }
0x4c58   :  { %15510 = vmatprep.subr.mxu1 %v16443_v5 }
0x4c59   :  { %15511 = vmatpush3.msra.mxu1 %v19227_v9 }
0x4c5a   :  { %15512 = vmatprep.subr.mxu1 %v16443_v5 }
0x4c5b   :  { %15513 = vmatpush3.msra.mxu1 %v19234_v19 }
0x4c5c   :  { %15514 = vmatprep.subr.mxu1 %v16443_v5 }
0x4c5d   :  { %15515 = vmatpush3.msra.mxu1 %v19241_v35 }
0x4c5e   :  { %15516 = vmatprep.subr.mxu1 %v16443_v5 }
0x4c5f   :  { %15517 = vmatpush3.msra.mxu1 %v19248_v33 }
0x4c60   :  { %15518 = vmatprep.subr.mxu1 %v16443_v5 }
0x4c61   :  { %15519 = vmatpush3.msra.mxu1 %v19255_v18 }
0x4c62   :  { %15520 = vmatprep.subr.mxu1 %v16443_v5 }
0x4c63   :  { %15521 = vmatpush3.msra.mxu1 %v19262_v62 }
0x4c64   :  { %15522 = vmatprep.subr.mxu1 %v16443_v5 }
0x4c65   :  { %15523 = vmatpush3.msra.mxu1 %v19269_v63 }
0x4c66   :  { %15524 = vmatprep.subr.mxu1 %v16443_v5 }
0x4c67   :  { %15525 = vmatpush3.msra.mxu1 %v19276_v37 }
0x4c68   :  { %15526 = vmatprep.subr.mxu1 %v16443_v5 }
0x4c69   :  { %15527 = vmatpush3.msra.mxu1 %v19283_v38 }
0x4c6a   :  { %15571 = vmatprep.subr.mxu1 %v16443_v5 }
0x4d08   :  { %v9753_v41 = vpop.f32.mrf.mxu1  ;;  %v19287_v57 = vpop.f32.mrf.mxu0 }
0x4d09   :  { %v9754_v22 = vadd.f32 %v18774_v53, %v9753_v41 }
0x4d0a   :  { %v15484_v1 = vpop.f32.mrf.mxu1  ;;  %v15495_v29 = vpop.f32.mrf.mxu0 }
0x4d0b   :  { %v9757_v45 = vsel %vm1549_vm6, %v9754_v22, -inf }
0x4d10   :  { %v9977_v42 = vpop.f32.mrf.mxu0 }
0x4d11   :  { %v9978_v40 = vadd.f32 %v9977_v42, %v16919_v47 }
0x4d12   :  { %v15541_v2 = vpop.f32.mrf.mxu0 }
0x4d13   :  { %v9981_v24 = vsel %vm1310_vm5, %v9978_v40, -inf }
0x4d14   :  { %9982 = vmax.xlane.f32.xlu0 %v9981_v24 }
0x4d18   :  { %9758 = vmax.xlane.f32.xlu0 %v9757_v45 }
0x4d9d   :  { %v9983_v46 = vpop.xlane.xlu0 %9982 }
0x4d9e   :  { %v9984_v0 = vsub.f32 %v9978_v40, %v9983_v46 }
0x4da0   :  { %v9985_v51 = vmul.f32 1.442695, %v9984_v0 }
0x4da1   :  { %v9759_v43 = vpop.xlane.xlu0 %9758 }
0x4da2   :  { %16209 = vpow2.f32 %v9985_v51  ;;  %v9760_v54 = vsub.f32 %v9754_v22, %v9759_v43  ;;  %v19403_v22 = vld [vmem:[%s19908_s13] ss:$0 sm:$0xff] }
0x4da4   :  { %v9761_v55 = vmul.f32 1.442695, %v9760_v54 }
0x4da6   :  { %16211 = vpow2.f32 %v9761_v55 }
0x4daf   :  { %v16210_v56 = vpop.eup %16209 }
0x4db0   :  { %v9987_v61 = vsel %vm1310_vm5, %v16210_v56, 0.0 }
0x4db1   :  { %9988 = vadd.xlane.f32.xlu1 %v9987_v61 }
0x4db3   :  { %v16212_v58 = vpop.eup %16211 }
0x4db4   :  { %v9763_v53 = vsel %vm1549_vm6, %v16212_v58, 0.0 }
0x4db5   :  { %9764 = vadd.xlane.f32.xlu1 %v9763_v53 }
0x4e3a   :  { %v9989_v10 = vpop.xlane.xlu1 %9988 }
0x4e3b   :  { %16213 = vrcp.f32 %v9989_v10 }
0x4e3e   :  { %v9765_v12 = vpop.xlane.xlu1 %9764 }
0x4e3f   :  { %16215 = vrcp.f32 %v9765_v12 }
0x4e48   :  { %v16214_v3 = vpop.eup %16213 }
0x4e49   :  { %v9991_v39 = vmul.f32 %v16214_v3, %v16210_v56 }
0x4e4b   :  { %15547 = vmatmul.mubr.msk.f32.vlgmr.msra.gmra.mxu0 %vm93_vm0, %v9991_v39 }
0x4e4c   :  { %v16216_v36 = vpop.eup %16215  ;;  %15550 = vmatpush3.msra.mxu0 %v18785_v16  ;;  %15557 = vmatprep.mubr.msk.f32.mxu0 %vm16444_vm1, %v16443_v5  ;;  %v19310_v16 = vld [vmem:[%s19905_s10 + $0x10] sm:$0xff] }
0x4e4d   :  { %v9767_v13 = vmul.f32 %v16216_v36, %v16212_v58  ;;  %15551 = vmatprep.subr.mxu0 %v16443_v5 }
0x4e4e   :  { %15552 = vmatpush3.msra.mxu0 %v18794_v27  ;;  %v19318_v27 = vld [vmem:[%s19905_s10 + $0x8] sm:$0xff] }
0x4e4f   :  { %9769 = vst [vmem:[#allocation4 + $0x24] sm:$0x3] %v9767_v13  ;;  %15529 = vmatmul.mubr.f32.vlgmr.msra.gmra.mxu1 %v9767_v13  ;;  %15553 = vmatprep.subr.mxu0 %v16443_v5 }
0x4e50   :  { %15554 = vmatpush3.msra.mxu0 %v18801_v21  ;;  %15572 = vmatpush3.msra.mxu1 %v19122_v4  ;;  %v19327_v21 = vld [vmem:[%s19905_s10] sm:$0xff] }
0x4e51   :  { %15555 = vmatprep.subr.mxu0 %v16443_v5  ;;  %15573 = vmatprep.subr.mxu1 %v16443_v5 }
0x4e52   :  { %15556 = vmatpush3.msra.mxu0 %v18810_v60  ;;  %15574 = vmatpush3.msra.mxu1 %v19310_v16 }
0x4e53   :  { %15560 = vmatprep.subr.mxu0 %v16443_v5  ;;  %15575 = vmatprep.subr.mxu1 %v16443_v5 }
0x4e54   :  { %15576 = vmatpush3.msra.mxu1 %v19318_v27  ;;  %15579 = vmatprep.mubr.msk.f32.mxu1 %vm16444_vm1, %v16443_v5 }
0x4e55   :  { %15577 = vmatprep.subr.mxu1 %v16443_v5 }
0x4e56   :  { %15578 = vmatpush3.msra.mxu1 %v19327_v21 }
0x4e57   :  { %15617 = vmatprep.subr.mxu1 %v16443_v5 }
0x4f0b   :  { %v10061_v60 = vpop.f32.mrf.mxu0 }
0x4f0c   :  { %15558 = vmatmul.mubr.msk.f32.vlgmr.msra.gmra.mxu0 %vm175_vm2, %v10061_v60  ;;  %v19414_v60 = vld [vmem:[%s19903_s8 + $0x18] sm:$0xff] }
0x4f0d   :  { %v15548_v11 = vpop.f32.mrf.mxu0  ;;  %15561 = vmatpush3.msra.mxu0 %v18826_v17  ;;  %15568 = vmatprep.mubr.msk.f32.mxu0 %vm16444_vm1, %v16443_v5 }
0x4f0e   :  { %15562 = vmatprep.subr.mxu0 %v16443_v5 }
0x4f0f   :  { %v9906_v15 = vpop.f32.mrf.mxu1  ;;  %15563 = vmatpush3.msra.mxu0 %v18835_v6 }
0x4f10   :  { %15564 = vmatprep.subr.mxu0 %v16443_v5  ;;  %v9907_v17 = vadd.f32 %v9906_v15, %v19287_v57  ;;  %v19423_v15 = vld [vmem:[%s19903_s8 + $0x10] sm:$0xff] }
0x4f11   :  { %v15530_v7 = vpop.f32.mrf.mxu1  ;;  %15565 = vmatpush3.msra.mxu0 %v18842_v59 }
0x4f12   :  { %15566 = vmatprep.subr.mxu0 %v16443_v5  ;;  %v9910_v23 = vadd.f32 %v18857_v8, %v9907_v17  ;;  %v19430_v7 = vld [vmem:[%s19903_s8 + $0x8] sm:$0xff]  ;;  %v19439_v17 = vld [vmem:[%s19903_s8] sm:$0xff] }
0x4f13   :  { %15567 = vmatpush3.msra.mxu0 %v18849_v14 }
0x4f14   :  { %15582 = vmatprep.subr.mxu0 %v16443_v5 }
0x4fcc   :  { %v10134_v41 = vpop.f32.mrf.mxu0 }
0x4fcd   :  { %v10138_v1 = vadd.f32 %v10134_v41, %v9910_v23 }
0x4fce   :  { %v15559_v29 = vpop.f32.mrf.mxu0 }
0x4fcf   :  { %16217 = vtanh.f32 %v10138_v1  ;;  %v19455_v1 = vld [vmem:[%s19907_s12 + $0x18] sm:$0xff] }
0x4fdc   :  { %v16218_v6 = vpop.eup %16217 }
0x4fdd   :  { %15569 = vmatmul.mubr.msk.f32.vlgmr.msra.gmra.mxu0 %vm175_vm2, %v16218_v6  ;;  %15580 = vmatmul.mubr.msk.f32.vlgmr.msra.gmra.mxu1 %vm175_vm2, %v16218_v6 }
0x4fde   :  { %15618 = vmatpush3.msra.mxu1 %v16900_v31  ;;  %15625 = vmatprep.mubr.msk.f32.mxu1 %vm16444_vm1, %v16443_v5 }
0x4fdf   :  { %15619 = vmatprep.subr.mxu1 %v16443_v5  ;;  %15583 = vmatpush3.msra.mxu0 %v19159_v25 }
0x4fe0   :  { %15620 = vmatpush3.msra.mxu1 %v16903_v32  ;;  %15584 = vmatprep.subr.mxu0 %v16443_v5 }
0x4fe1   :  { %15621 = vmatprep.subr.mxu1 %v16443_v5  ;;  %15585 = vmatpush3.msra.mxu0 %v19168_v20 }
0x4fe2   :  { %15622 = vmatpush3.msra.mxu1 %v16896_v28  ;;  %15586 = vmatprep.subr.mxu0 %v16443_v5 }
0x4fe3   :  { %15623 = vmatprep.subr.mxu1 %v16443_v5  ;;  %15587 = vmatpush3.msra.mxu0 %v19177_v44 }
0x4fe4   :  { %15624 = vmatpush3.msra.mxu1 %v16898_v30  ;;  %15588 = vmatprep.subr.mxu0 %v16443_v5 }
0x4fe5   :  { %15626 = vmatmul.mubr.msk.f32.vlgmr.msra.gmra.mxu1 %vm175_vm2, %v16218_v6  ;;  %15628 = vmatprep.subr.mxu1 %v16443_v5  ;;  %v19464_v6 = vld [vmem:[%s19907_s12 + $0x10] sm:$0xff] }
0x4fe6   :  { %15629 = vmatpush3.msra.mxu1 %v19184_v48  ;;  %15589 = vmatpush3.msra.mxu0 %v19190_v49 }
0x4fe7   :  { %15630 = vmatprep.subr.mxu1 %v16443_v5  ;;  %15590 = vmatprep.subr.mxu0 %v16443_v5 }
0x4fe8   :  { %15631 = vmatpush3.msra.mxu1 %v19195_v26  ;;  %15591 = vmatpush3.msra.mxu0 %v19201_v52 }
0x4fe9   :  { %15592 = vmatprep.subr.mxu0 %v16443_v5  ;;  %15632 = vmatprep.mubr.msk.f32.mxu1 %vm16444_vm1, %v16443_v5 }
0x4fea   :  { %15593 = vmatpush3.msra.mxu0 %v19210_v34  ;;  %15614 = vmatprep.mubr.msk.f32.mxu0 %vm16444_vm1, %v16443_v5 }
0x4feb   :  { %15594 = vmatprep.subr.mxu0 %v16443_v5  ;;  %15635 = vmatprep.subr.mxu1 %v16443_v5 }
0x4fec   :  { %15595 = vmatpush3.msra.mxu0 %v19220_v50 }
0x4fed   :  { %15596 = vmatprep.subr.mxu0 %v16443_v5 }
0x4fee   :  { %15597 = vmatpush3.msra.mxu0 %v19227_v9 }
0x4fef   :  { %15598 = vmatprep.subr.mxu0 %v16443_v5 }
0x4ff0   :  { %15599 = vmatpush3.msra.mxu0 %v19234_v19 }
0x4ff1   :  { %15600 = vmatprep.subr.mxu0 %v16443_v5 }
0x4ff2   :  { %15601 = vmatpush3.msra.mxu0 %v19241_v35 }
0x4ff3   :  { %15602 = vmatprep.subr.mxu0 %v16443_v5 }
0x4ff4   :  { %15603 = vmatpush3.msra.mxu0 %v19248_v33 }
0x4ff5   :  { %15604 = vmatprep.subr.mxu0 %v16443_v5 }
0x4ff6   :  { %15605 = vmatpush3.msra.mxu0 %v19255_v18 }
0x4ff7   :  { %15606 = vmatprep.subr.mxu0 %v16443_v5 }
0x4ff8   :  { %15607 = vmatpush3.msra.mxu0 %v19262_v62 }
0x4ff9   :  { %15608 = vmatprep.subr.mxu0 %v16443_v5 }
0x4ffa   :  { %15609 = vmatpush3.msra.mxu0 %v19269_v63 }
0x4ffb   :  { %15610 = vmatprep.subr.mxu0 %v16443_v5 }
0x4ffc   :  { %15611 = vmatpush3.msra.mxu0 %v19276_v37 }
0x4ffd   :  { %15612 = vmatprep.subr.mxu0 %v16443_v5 }
0x4ffe   :  { %15613 = vmatpush3.msra.mxu0 %v19283_v38 }
0x4fff   :  { %15657 = vmatprep.subr.mxu0 %v16443_v5 }
0x509d   :  { %v10209_v59 = vpop.f32.mrf.mxu0  ;;  %v19397_v14 = vpop.f32.mrf.mxu1 }
0x509e   :  { %v10210_v24 = vadd.f32 %v19403_v22, %v10209_v59 }
0x509f   :  { %v15570_v8 = vpop.f32.mrf.mxu0  ;;  %v15581_v57 = vpop.f32.mrf.mxu1 }
0x50a0   :  { %v10213_v46 = vsel %vm1549_vm6, %v10210_v24, -inf  ;;  %v19471_v8 = vld [vmem:[%s19907_s12 + $0x8] sm:$0xff]  ;;  %v19478_v57 = vld [vmem:[%s19907_s12] sm:$0xff] }
0x50a5   :  { %v10433_v42 = vpop.f32.mrf.mxu1 }
0x50a6   :  { %v10434_v40 = vadd.f32 %v10433_v42, %v16919_v47 }
0x50a7   :  { %v15627_v2 = vpop.f32.mrf.mxu1 }
0x50a8   :  { %v10437_v45 = vsel %vm1310_vm5, %v10434_v40, -inf }
0x50a9   :  { %10438 = vmax.xlane.f32.xlu0 %v10437_v45 }
0x50ad   :  { %10214 = vmax.xlane.f32.xlu0 %v10213_v46 }
0x5132   :  { %v10439_v0 = vpop.xlane.xlu0 %10438 }
0x5133   :  { %v10440_v51 = vsub.f32 %v10434_v40, %v10439_v0  ;;  %v19486_v40 = vld [vmem:[%s19906_s11] ss:$0 sm:$0xff] }
0x5135   :  { %v10441_v43 = vmul.f32 1.442695, %v10440_v51 }
0x5136   :  { %v10215_v54 = vpop.xlane.xlu0 %10214 }
0x5137   :  { %16219 = vpow2.f32 %v10441_v43  ;;  %v10216_v55 = vsub.f32 %v10210_v24, %v10215_v54 }
0x5139   :  { %v10217_v56 = vmul.f32 1.442695, %v10216_v55 }
0x513b   :  { %16221 = vpow2.f32 %v10217_v56 }
0x5144   :  { %v16220_v61 = vpop.eup %16219 }
0x5145   :  { %v10443_v58 = vsel %vm1310_vm5, %v16220_v61, 0.0 }
0x5146   :  { %10444 = vadd.xlane.f32.xlu1 %v10443_v58 }
0x5148   :  { %v16222_v53 = vpop.eup %16221 }
0x5149   :  { %v10219_v10 = vsel %vm1549_vm6, %v16222_v53, 0.0 }
0x514a   :  { %10220 = vadd.xlane.f32.xlu1 %v10219_v10 }
0x51cf   :  { %v10445_v12 = vpop.xlane.xlu1 %10444 }
0x51d0   :  { %16223 = vrcp.f32 %v10445_v12 }
0x51d3   :  { %v10221_v3 = vpop.xlane.xlu1 %10220 }
0x51d4   :  { %16225 = vrcp.f32 %v10221_v3 }
0x51dd   :  { %v16224_v39 = vpop.eup %16223 }
0x51de   :  { %v10447_v36 = vmul.f32 %v16224_v39, %v16220_v61 }
0x51e0   :  { %15633 = vmatmul.mubr.msk.f32.vlgmr.msra.gmra.mxu1 %vm93_vm0, %v10447_v36 }
0x51e1   :  { %v16226_v13 = vpop.eup %16225  ;;  %15636 = vmatpush3.msra.mxu1 %v19414_v60  ;;  %15643 = vmatprep.mubr.msk.f32.mxu1 %vm16444_vm1, %v16443_v5 }
0x51e2   :  { %v10223_v11 = vmul.f32 %v16226_v13, %v16222_v53  ;;  %15637 = vmatprep.subr.mxu1 %v16443_v5 }
0x51e3   :  { %15638 = vmatpush3.msra.mxu1 %v19423_v15 }
0x51e4   :  { %10225 = vst [vmem:[#allocation4 + $0x26] sm:$0x3] %v10223_v11  ;;  %15615 = vmatmul.mubr.f32.vlgmr.msra.gmra.mxu0 %v10223_v11  ;;  %15639 = vmatprep.subr.mxu1 %v16443_v5 }
0x51e5   :  { %15640 = vmatpush3.msra.mxu1 %v19430_v7  ;;  %15658 = vmatpush3.msra.mxu0 %v19122_v4 }
0x51e6   :  { %15641 = vmatprep.subr.mxu1 %v16443_v5  ;;  %15659 = vmatprep.subr.mxu0 %v16443_v5 }
0x51e7   :  { %15642 = vmatpush3.msra.mxu1 %v19439_v17  ;;  %15660 = vmatpush3.msra.mxu0 %v19310_v16 }
0x51e8   :  { %15646 = vmatprep.subr.mxu1 %v16443_v5  ;;  %15661 = vmatprep.subr.mxu0 %v16443_v5 }
0x51e9   :  { %15662 = vmatpush3.msra.mxu0 %v19318_v27  ;;  %15665 = vmatprep.mubr.msk.f32.mxu0 %vm16444_vm1, %v16443_v5 }
0x51ea   :  { %15663 = vmatprep.subr.mxu0 %v16443_v5 }
0x51eb   :  { %15664 = vmatpush3.msra.mxu0 %v19327_v21 }
0x51ec   :  { %15703 = vmatprep.subr.mxu0 %v16443_v5 }
0x52a0   :  { %v10517_v23 = vpop.f32.mrf.mxu1 }
0x52a1   :  { %15644 = vmatmul.mubr.msk.f32.vlgmr.msra.gmra.mxu1 %vm175_vm2, %v10517_v23 }
0x52a2   :  { %v15634_v41 = vpop.f32.mrf.mxu1  ;;  %15647 = vmatpush3.msra.mxu1 %v19455_v1  ;;  %15654 = vmatprep.mubr.msk.f32.mxu1 %vm16444_vm1, %v16443_v5 }
0x52a3   :  { %15648 = vmatprep.subr.mxu1 %v16443_v5 }
0x52a4   :  { %v10362_v29 = vpop.f32.mrf.mxu0  ;;  %15649 = vmatpush3.msra.mxu1 %v19464_v6 }
0x52a5   :  { %15650 = vmatprep.subr.mxu1 %v16443_v5  ;;  %v10363_v42 = vadd.f32 %v10362_v29, %v19397_v14 }
0x52a6   :  { %v15616_v59 = vpop.f32.mrf.mxu0  ;;  %15651 = vmatpush3.msra.mxu1 %v19471_v8 }
0x52a7   :  { %15652 = vmatprep.subr.mxu1 %v16443_v5  ;;  %v10366_v2 = vadd.f32 %v19486_v40, %v10363_v42 }
0x52a8   :  { %15653 = vmatpush3.msra.mxu1 %v19478_v57 }
0x52a9   :  { %15668 = vmatprep.subr.mxu1 %v16443_v5 }
0x5361   :  { %v10590_v24 = vpop.f32.mrf.mxu1 }
0x5362   :  { %v10594_v45 = vadd.f32 %v10590_v24, %v10366_v2 }
0x5363   :  { %v15645_v46 = vpop.f32.mrf.mxu1 }
0x5364   :  { %16227 = vtanh.f32 %v10594_v45 }
0x5371   :  { %v16228_v0 = vpop.eup %16227 }
0x5372   :  { %15655 = vmatmul.mubr.msk.f32.vlgmr.msra.gmra.mxu1 %vm175_vm2, %v16228_v0  ;;  %15666 = vmatmul.mubr.msk.f32.vlgmr.msra.gmra.mxu0 %vm175_vm2, %v16228_v0 }
0x5373   :  { %15704 = vmatpush3.msra.mxu0 %v16900_v31  ;;  %15711 = vmatprep.mubr.msk.f32.mxu0 %vm16444_vm1, %v16443_v5 }
0x5374   :  { %15705 = vmatprep.subr.mxu0 %v16443_v5  ;;  %15669 = vmatpush3.msra.mxu1 %v19159_v25 }
0x5375   :  { %15706 = vmatpush3.msra.mxu0 %v16903_v32  ;;  %15670 = vmatprep.subr.mxu1 %v16443_v5 }
0x5376   :  { %15707 = vmatprep.subr.mxu0 %v16443_v5  ;;  %15671 = vmatpush3.msra.mxu1 %v19168_v20 }
0x5377   :  { %15708 = vmatpush3.msra.mxu0 %v16896_v28  ;;  %15672 = vmatprep.subr.mxu1 %v16443_v5 }
0x5378   :  { %15709 = vmatprep.subr.mxu0 %v16443_v5  ;;  %15673 = vmatpush3.msra.mxu1 %v19177_v44 }
0x5379   :  { %15710 = vmatpush3.msra.mxu0 %v16898_v30  ;;  %15674 = vmatprep.subr.mxu1 %v16443_v5 }
0x537a   :  { %15712 = vmatmul.mubr.msk.f32.vlgmr.msra.gmra.mxu0 %vm175_vm2, %v16228_v0  ;;  %15714 = vmatprep.subr.mxu0 %v16443_v5 }
0x537b   :  { %15715 = vmatpush3.msra.mxu0 %v19184_v48  ;;  %15675 = vmatpush3.msra.mxu1 %v19190_v49 }
0x537c   :  { %15716 = vmatprep.subr.mxu0 %v16443_v5  ;;  %15676 = vmatprep.subr.mxu1 %v16443_v5 }
0x537d   :  { %15717 = vmatpush3.msra.mxu0 %v19195_v26  ;;  %15677 = vmatpush3.msra.mxu1 %v19201_v52 }
0x537e   :  { %15678 = vmatprep.subr.mxu1 %v16443_v5  ;;  %15718 = vmatprep.mubr.msk.f32.mxu0 %vm16444_vm1, %v16443_v5 }
0x537f   :  { %15679 = vmatpush3.msra.mxu1 %v19210_v34  ;;  %15700 = vmatprep.mubr.msk.f32.mxu1 %vm16444_vm1, %v16443_v5 }
0x5380   :  { %15680 = vmatprep.subr.mxu1 %v16443_v5  ;;  %15721 = vmatprep.subr.mxu0 %v16443_v5 }
0x5381   :  { %15681 = vmatpush3.msra.mxu1 %v19220_v50 }
0x5382   :  { %15682 = vmatprep.subr.mxu1 %v16443_v5 }
0x5383   :  { %15683 = vmatpush3.msra.mxu1 %v19227_v9 }
0x5384   :  { %15684 = vmatprep.subr.mxu1 %v16443_v5 }
0x5385   :  { %15685 = vmatpush3.msra.mxu1 %v19234_v19 }
0x5386   :  { %15686 = vmatprep.subr.mxu1 %v16443_v5 }
0x5387   :  { %15687 = vmatpush3.msra.mxu1 %v19241_v35 }
0x5388   :  { %15688 = vmatprep.subr.mxu1 %v16443_v5 }
0x5389   :  { %15689 = vmatpush3.msra.mxu1 %v19248_v33 }
0x538a   :  { %15690 = vmatprep.subr.mxu1 %v16443_v5 }
0x538b   :  { %15691 = vmatpush3.msra.mxu1 %v19255_v18 }
0x538c   :  { %15692 = vmatprep.subr.mxu1 %v16443_v5 }
0x538d   :  { %15693 = vmatpush3.msra.mxu1 %v19262_v62 }
0x538e   :  { %15694 = vmatprep.subr.mxu1 %v16443_v5 }
0x538f   :  { %15695 = vmatpush3.msra.mxu1 %v19269_v63 }
0x5390   :  { %15696 = vmatprep.subr.mxu1 %v16443_v5 }
0x5391   :  { %15697 = vmatpush3.msra.mxu1 %v19276_v37 }
0x5392   :  { %15698 = vmatprep.subr.mxu1 %v16443_v5 }
0x5393   :  { %15699 = vmatpush3.msra.mxu1 %v19283_v38 }
0x5394   :  { %15743 = vmatprep.subr.mxu1 %v16443_v5 }
0x5432   :  { %v10665_v14 = vpop.f32.mrf.mxu1  ;;  %v19542_v51 = vpop.f32.mrf.mxu0 }
0x5433   :  { %v10666_v58 = vadd.f32 %v19403_v22, %v10665_v14 }
0x5434   :  { %v15656_v43 = vpop.f32.mrf.mxu1  ;;  %v15667_v54 = vpop.f32.mrf.mxu0 }
0x5435   :  { %v10669_v10 = vsel %vm1549_vm6, %v10666_v58, -inf }
0x543a   :  { %v10889_v55 = vpop.f32.mrf.mxu0 }
0x543b   :  { %v10890_v56 = vadd.f32 %v10889_v55, %v16919_v47 }
0x543c   :  { %v15713_v61 = vpop.f32.mrf.mxu0 }
0x543d   :  { %v10893_v53 = vsel %vm1310_vm5, %v10890_v56, -inf }
0x543e   :  { %10894 = vmax.xlane.f32.xlu0 %v10893_v53 }
0x5442   :  { %10670 = vmax.xlane.f32.xlu0 %v10669_v10 }
0x54c7   :  { %v10895_v12 = vpop.xlane.xlu0 %10894 }
0x54c8   :  { %v10896_v3 = vsub.f32 %v10890_v56, %v10895_v12 }
0x54ca   :  { %v10897_v39 = vmul.f32 1.442695, %v10896_v3 }
0x54cb   :  { %v10671_v36 = vpop.xlane.xlu0 %10670 }
0x54cc   :  { %16229 = vpow2.f32 %v10897_v39  ;;  %v10672_v13 = vsub.f32 %v10666_v58, %v10671_v36 }
0x54ce   :  { %v10673_v11 = vmul.f32 1.442695, %v10672_v13 }
0x54d0   :  { %16231 = vpow2.f32 %v10673_v11 }
0x54d9   :  { %v16230_v23 = vpop.eup %16229 }
0x54da   :  { %v10899_v41 = vsel %vm1310_vm5, %v16230_v23, 0.0 }
0x54db   :  { %10900 = vadd.xlane.f32.xlu1 %v10899_v41 }
0x54dd   :  { %v16232_v29 = vpop.eup %16231 }
0x54de   :  { %v10675_v59 = vsel %vm1549_vm6, %v16232_v29, 0.0 }
0x54df   :  { %10676 = vadd.xlane.f32.xlu1 %v10675_v59 }
0x5564   :  { %v10901_v42 = vpop.xlane.xlu1 %10900 }
0x5565   :  { %16233 = vrcp.f32 %v10901_v42 }
0x5568   :  { %v10677_v2 = vpop.xlane.xlu1 %10676 }
0x5569   :  { %16235 = vrcp.f32 %v10677_v2 }
0x5572   :  { %v16234_v24 = vpop.eup %16233 }
0x5573   :  { %v10903_v45 = vmul.f32 %v16234_v24, %v16230_v23 }
0x5575   :  { %15719 = vmatmul.mubr.msk.f32.vlgmr.msra.gmra.mxu0 %vm93_vm0, %v10903_v45 }
0x5576   :  { %v16236_v46 = vpop.eup %16235  ;;  %15722 = vmatpush3.msra.mxu0 %v19414_v60  ;;  %15729 = vmatprep.mubr.msk.f32.mxu0 %vm16444_vm1, %v16443_v5 }
0x5577   :  { %v10679_v0 = vmul.f32 %v16236_v46, %v16232_v29  ;;  %15723 = vmatprep.subr.mxu0 %v16443_v5 }
0x5578   :  { %15724 = vmatpush3.msra.mxu0 %v19423_v15 }
0x5579   :  { %10681 = vst [vmem:[#allocation4 + $0x28] sm:$0x3] %v10679_v0  ;;  %15701 = vmatmul.mubr.f32.vlgmr.msra.gmra.mxu1 %v10679_v0  ;;  %15725 = vmatprep.subr.mxu0 %v16443_v5 }
0x557a   :  { %15726 = vmatpush3.msra.mxu0 %v19430_v7  ;;  %15744 = vmatpush3.msra.mxu1 %v19122_v4 }
0x557b   :  { %15727 = vmatprep.subr.mxu0 %v16443_v5  ;;  %15745 = vmatprep.subr.mxu1 %v16443_v5 }
0x557c   :  { %15728 = vmatpush3.msra.mxu0 %v19439_v17  ;;  %15746 = vmatpush3.msra.mxu1 %v19310_v16 }
0x557d   :  { %15732 = vmatprep.subr.mxu0 %v16443_v5  ;;  %15747 = vmatprep.subr.mxu1 %v16443_v5 }
0x557e   :  { %15748 = vmatpush3.msra.mxu1 %v19318_v27  ;;  %15751 = vmatprep.mubr.msk.f32.mxu1 %vm16444_vm1, %v16443_v5 }
0x557f   :  { %15749 = vmatprep.subr.mxu1 %v16443_v5 }
0x5580   :  { %15750 = vmatpush3.msra.mxu1 %v19327_v21 }
0x5581   :  { %15789 = vmatprep.subr.mxu1 %v16443_v5 }
0x5635   :  { %v10973_v14 = vpop.f32.mrf.mxu0 }
0x5636   :  { %15730 = vmatmul.mubr.msk.f32.vlgmr.msra.gmra.mxu0 %vm175_vm2, %v10973_v14 }
0x5637   :  { %v15720_v43 = vpop.f32.mrf.mxu0  ;;  %15733 = vmatpush3.msra.mxu0 %v19455_v1  ;;  %15740 = vmatprep.mubr.msk.f32.mxu0 %vm16444_vm1, %v16443_v5 }
0x5638   :  { %15734 = vmatprep.subr.mxu0 %v16443_v5 }
0x5639   :  { %v10818_v54 = vpop.f32.mrf.mxu1  ;;  %15735 = vmatpush3.msra.mxu0 %v19464_v6 }
0x563a   :  { %15736 = vmatprep.subr.mxu0 %v16443_v5  ;;  %v10819_v56 = vadd.f32 %v10818_v54, %v19542_v51 }
0x563b   :  { %v15702_v55 = vpop.f32.mrf.mxu1  ;;  %15737 = vmatpush3.msra.mxu0 %v19471_v8 }
0x563c   :  { %15738 = vmatprep.subr.mxu0 %v16443_v5  ;;  %v10822_v61 = vadd.f32 %v19486_v40, %v10819_v56 }
0x563d   :  { %15739 = vmatpush3.msra.mxu0 %v19478_v57 }
0x563e   :  { %15754 = vmatprep.subr.mxu0 %v16443_v5 }
0x56f6   :  { %v11046_v58 = vpop.f32.mrf.mxu0 }
0x56f7   :  { %v11050_v53 = vadd.f32 %v11046_v58, %v10822_v61 }
0x56f8   :  { %v15731_v10 = vpop.f32.mrf.mxu0 }
0x56f9   :  { %16237 = vtanh.f32 %v11050_v53 }
0x5706   :  { %v16238_v12 = vpop.eup %16237 }
0x5707   :  { %15741 = vmatmul.mubr.msk.f32.vlgmr.msra.gmra.mxu0 %vm175_vm2, %v16238_v12  ;;  %15752 = vmatmul.mubr.msk.f32.vlgmr.msra.gmra.mxu1 %vm175_vm2, %v16238_v12 }
0x5708   :  { %15790 = vmatpush3.msra.mxu1 %v16900_v31  ;;  %15797 = vmatprep.mubr.msk.f32.mxu1 %vm16444_vm1, %v16443_v5 }
0x5709   :  { %15791 = vmatprep.subr.mxu1 %v16443_v5  ;;  %15755 = vmatpush3.msra.mxu0 %v19159_v25 }
0x570a   :  { %15792 = vmatpush3.msra.mxu1 %v16903_v32  ;;  %15756 = vmatprep.subr.mxu0 %v16443_v5 }
0x570b   :  { %15793 = vmatprep.subr.mxu1 %v16443_v5  ;;  %15757 = vmatpush3.msra.mxu0 %v19168_v20 }
0x570c   :  { %15794 = vmatpush3.msra.mxu1 %v16896_v28  ;;  %15758 = vmatprep.subr.mxu0 %v16443_v5 }
0x570d   :  { %15795 = vmatprep.subr.mxu1 %v16443_v5  ;;  %15759 = vmatpush3.msra.mxu0 %v19177_v44 }
0x570e   :  { %15796 = vmatpush3.msra.mxu1 %v16898_v30  ;;  %15760 = vmatprep.subr.mxu0 %v16443_v5 }
0x570f   :  { %15798 = vmatmul.mubr.msk.f32.vlgmr.msra.gmra.mxu1 %vm175_vm2, %v16238_v12  ;;  %15800 = vmatprep.subr.mxu1 %v16443_v5 }
0x5710   :  { %15801 = vmatpush3.msra.mxu1 %v19184_v48  ;;  %15761 = vmatpush3.msra.mxu0 %v19190_v49 }
0x5711   :  { %15802 = vmatprep.subr.mxu1 %v16443_v5  ;;  %15762 = vmatprep.subr.mxu0 %v16443_v5 }
0x5712   :  { %15803 = vmatpush3.msra.mxu1 %v19195_v26  ;;  %15763 = vmatpush3.msra.mxu0 %v19201_v52 }
0x5713   :  { %15764 = vmatprep.subr.mxu0 %v16443_v5  ;;  %15804 = vmatprep.mubr.msk.f32.mxu1 %vm16444_vm1, %v16443_v5 }
0x5714   :  { %15765 = vmatpush3.msra.mxu0 %v19210_v34  ;;  %15786 = vmatprep.mubr.msk.f32.mxu0 %vm16444_vm1, %v16443_v5 }
0x5715   :  { %15766 = vmatprep.subr.mxu0 %v16443_v5  ;;  %15807 = vmatprep.subr.mxu1 %v16443_v5 }
0x5716   :  { %15767 = vmatpush3.msra.mxu0 %v19220_v50 }
0x5717   :  { %15768 = vmatprep.subr.mxu0 %v16443_v5 }
0x5718   :  { %15769 = vmatpush3.msra.mxu0 %v19227_v9 }
0x5719   :  { %15770 = vmatprep.subr.mxu0 %v16443_v5 }
0x571a   :  { %15771 = vmatpush3.msra.mxu0 %v19234_v19 }
0x571b   :  { %15772 = vmatprep.subr.mxu0 %v16443_v5 }
0x571c   :  { %15773 = vmatpush3.msra.mxu0 %v19241_v35 }
0x571d   :  { %15774 = vmatprep.subr.mxu0 %v16443_v5 }
0x571e   :  { %15775 = vmatpush3.msra.mxu0 %v19248_v33 }
0x571f   :  { %15776 = vmatprep.subr.mxu0 %v16443_v5 }
0x5720   :  { %15777 = vmatpush3.msra.mxu0 %v19255_v18 }
0x5721   :  { %15778 = vmatprep.subr.mxu0 %v16443_v5 }
0x5722   :  { %15779 = vmatpush3.msra.mxu0 %v19262_v62 }
0x5723   :  { %15780 = vmatprep.subr.mxu0 %v16443_v5 }
0x5724   :  { %15781 = vmatpush3.msra.mxu0 %v19269_v63 }
0x5725   :  { %15782 = vmatprep.subr.mxu0 %v16443_v5 }
0x5726   :  { %15783 = vmatpush3.msra.mxu0 %v19276_v37 }
0x5727   :  { %15784 = vmatprep.subr.mxu0 %v16443_v5 }
0x5728   :  { %15785 = vmatpush3.msra.mxu0 %v19283_v38 }
0x5729   :  { %15829 = vmatprep.subr.mxu0 %v16443_v5 }
0x57c7   :  { %v11121_v51 = vpop.f32.mrf.mxu0  ;;  %v19637_v3 = vpop.f32.mrf.mxu1 }
0x57c8   :  { %v11122_v41 = vadd.f32 %v19403_v22, %v11121_v51 }
0x57c9   :  { %v15742_v39 = vpop.f32.mrf.mxu0  ;;  %v15753_v36 = vpop.f32.mrf.mxu1 }
0x57ca   :  { %v11125_v59 = vsel %vm1549_vm6, %v11122_v41, -inf }
0x57cf   :  { %v11345_v13 = vpop.f32.mrf.mxu1 }
0x57d0   :  { %v11346_v11 = vadd.f32 %v11345_v13, %v16919_v47 }
0x57d1   :  { %v15799_v23 = vpop.f32.mrf.mxu1 }
0x57d2   :  { %v11349_v29 = vsel %vm1310_vm5, %v11346_v11, -inf }
0x57d3   :  { %11350 = vmax.xlane.f32.xlu0 %v11349_v29 }
0x57d7   :  { %11126 = vmax.xlane.f32.xlu0 %v11125_v59 }
0x585c   :  { %v11351_v42 = vpop.xlane.xlu0 %11350 }
0x585d   :  { %v11352_v2 = vsub.f32 %v11346_v11, %v11351_v42 }
0x585f   :  { %v11353_v24 = vmul.f32 1.442695, %v11352_v2 }
0x5860   :  { %v11127_v45 = vpop.xlane.xlu0 %11126 }
0x5861   :  { %16239 = vpow2.f32 %v11353_v24  ;;  %v11128_v46 = vsub.f32 %v11122_v41, %v11127_v45 }
0x5863   :  { %v11129_v0 = vmul.f32 1.442695, %v11128_v46 }
0x5865   :  { %16241 = vpow2.f32 %v11129_v0 }
0x586e   :  { %v16240_v14 = vpop.eup %16239 }
0x586f   :  { %v11355_v43 = vsel %vm1310_vm5, %v16240_v14, 0.0 }
0x5870   :  { %11356 = vadd.xlane.f32.xlu1 %v11355_v43  ;;  %v16401_v43 = vld [vmem:[%s19905_s10 + $0x18] sm:$0xff] }
0x5872   :  { %v16242_v54 = vpop.eup %16241 }
0x5873   :  { %v11131_v55 = vsel %vm1549_vm6, %v16242_v54, 0.0 }
0x5874   :  { %11132 = vadd.xlane.f32.xlu1 %v11131_v55 }
0x58f9   :  { %v11357_v56 = vpop.xlane.xlu1 %11356 }
0x58fa   :  { %16243 = vrcp.f32 %v11357_v56 }
0x58fd   :  { %v11133_v61 = vpop.xlane.xlu1 %11132 }
0x58fe   :  { %16245 = vrcp.f32 %v11133_v61 }
0x5907   :  { %v16244_v58 = vpop.eup %16243 }
0x5908   :  { %v11359_v53 = vmul.f32 %v16244_v58, %v16240_v14 }
0x590a   :  { %15805 = vmatmul.mubr.msk.f32.vlgmr.msra.gmra.mxu1 %vm93_vm0, %v11359_v53 }
0x590b   :  { %v16246_v10 = vpop.eup %16245  ;;  %15808 = vmatpush3.msra.mxu1 %v19414_v60  ;;  %15815 = vmatprep.mubr.msk.f32.mxu1 %vm16444_vm1, %v16443_v5 }
0x590c   :  { %v11135_v12 = vmul.f32 %v16246_v10, %v16242_v54  ;;  %15809 = vmatprep.subr.mxu1 %v16443_v5 }
0x590d   :  { %15810 = vmatpush3.msra.mxu1 %v19423_v15 }
0x590e   :  { %11137 = vst [vmem:[#allocation4 + $0x2a] sm:$0x3] %v11135_v12  ;;  %15787 = vmatmul.mubr.f32.vlgmr.msra.gmra.mxu0 %v11135_v12  ;;  %15811 = vmatprep.subr.mxu1 %v16443_v5  ;;  %v16402_v12 = vld [vmem:[%s19904_s9 + $0x78] sm:$0xff] }
0x590f   :  { %15812 = vmatpush3.msra.mxu1 %v19430_v7  ;;  %15830 = vmatpush3.msra.mxu0 %v19122_v4 }
0x5910   :  { %15813 = vmatprep.subr.mxu1 %v16443_v5  ;;  %15831 = vmatprep.subr.mxu0 %v16443_v5 }
0x5911   :  { %15814 = vmatpush3.msra.mxu1 %v19439_v17  ;;  %15832 = vmatpush3.msra.mxu0 %v19310_v16 }
0x5912   :  { %15818 = vmatprep.subr.mxu1 %v16443_v5  ;;  %15833 = vmatprep.subr.mxu0 %v16443_v5 }
0x5913   :  { %15834 = vmatpush3.msra.mxu0 %v19318_v27  ;;  %15837 = vmatprep.mubr.msk.f32.mxu0 %vm16444_vm1, %v16443_v5 }
0x5914   :  { %15835 = vmatprep.subr.mxu0 %v16443_v5 }
0x5915   :  { %15836 = vmatpush3.msra.mxu0 %v19327_v21 }
0x5916   :  { %15875 = vmatprep.subr.mxu0 %v16443_v5 }
0x59ca   :  { %v11429_v4 = vpop.f32.mrf.mxu1 }
0x59cb   :  { %15816 = vmatmul.mubr.msk.f32.vlgmr.msra.gmra.mxu1 %vm175_vm2, %v11429_v4  ;;  %v16404_v4 = vld [vmem:[%s19904_s9 + $0x68] sm:$0xff] }
0x59cc   :  { %v15806_v51 = vpop.f32.mrf.mxu1  ;;  %15819 = vmatpush3.msra.mxu1 %v19455_v1  ;;  %15826 = vmatprep.mubr.msk.f32.mxu1 %vm16444_vm1, %v16443_v5 }
0x59cd   :  { %15820 = vmatprep.subr.mxu1 %v16443_v5  ;;  %v16407_v51 = vld [vmem:[#allocation2] sm:$0xff] }
0x59ce   :  { %v11274_v39 = vpop.f32.mrf.mxu0  ;;  %15821 = vmatpush3.msra.mxu1 %v19464_v6 }
0x59cf   :  { %15822 = vmatprep.subr.mxu1 %v16443_v5  ;;  %v11275_v13 = vadd.f32 %v11274_v39, %v19637_v3  ;;  %v16409_v39 = vld [vmem:[%s19904_s9 + $0x50] sm:$0xff] }
0x59d0   :  { %v15788_v36 = vpop.f32.mrf.mxu0  ;;  %15823 = vmatpush3.msra.mxu1 %v19471_v8 }
0x59d1   :  { %15824 = vmatprep.subr.mxu1 %v16443_v5  ;;  %v11278_v11 = vadd.f32 %v19486_v40, %v11275_v13  ;;  %v16410_v36 = vld [vmem:[%s19904_s9 + $0x48] sm:$0xff]  ;;  %v16411_v13 = vld [vmem:[%s19904_s9 + $0x40] sm:$0xff] }
0x59d2   :  { %15825 = vmatpush3.msra.mxu1 %v19478_v57 }
0x59d3   :  { %15840 = vmatprep.subr.mxu1 %v16443_v5 }
0x5a8b   :  { %v11502_v23 = vpop.f32.mrf.mxu1 }
0x5a8c   :  { %v11506_v41 = vadd.f32 %v11502_v23, %v11278_v11  ;;  %v16412_v11 = vld [vmem:[%s19904_s9 + $0x38] sm:$0xff]  ;;  %v16413_v23 = vld [vmem:[%s19904_s9 + $0x30] sm:$0xff] }
0x5a8d   :  { %v15817_v29 = vpop.f32.mrf.mxu1 }
0x5a8e   :  { %16247 = vtanh.f32 %v11506_v41  ;;  %v16414_v41 = vld [vmem:[%s19904_s9 + $0x28] sm:$0xff]  ;;  %v16415_v29 = vld [vmem:[%s19904_s9 + $0x20] sm:$0xff] }
0x5a9b   :  { %v16248_v59 = vpop.eup %16247 }
0x5a9c   :  { %15827 = vmatmul.mubr.msk.f32.vlgmr.msra.gmra.mxu1 %vm175_vm2, %v16248_v59  ;;  %15838 = vmatmul.mubr.msk.f32.vlgmr.msra.gmra.mxu0 %vm175_vm2, %v16248_v59 }
0x5a9d   :  { %15876 = vmatpush3.msra.mxu0 %v16900_v31  ;;  %15883 = vmatprep.mubr.msk.f32.mxu0 %vm16444_vm1, %v16443_v5 }
0x5a9e   :  { %15877 = vmatprep.subr.mxu0 %v16443_v5  ;;  %15841 = vmatpush3.msra.mxu1 %v19159_v25 }
0x5a9f   :  { %15878 = vmatpush3.msra.mxu0 %v16903_v32  ;;  %15842 = vmatprep.subr.mxu1 %v16443_v5 }
0x5aa0   :  { %15879 = vmatprep.subr.mxu0 %v16443_v5  ;;  %15843 = vmatpush3.msra.mxu1 %v19168_v20 }
0x5aa1   :  { %15880 = vmatpush3.msra.mxu0 %v16896_v28  ;;  %15844 = vmatprep.subr.mxu1 %v16443_v5 }
0x5aa2   :  { %15881 = vmatprep.subr.mxu0 %v16443_v5  ;;  %15845 = vmatpush3.msra.mxu1 %v19177_v44 }
0x5aa3   :  { %15882 = vmatpush3.msra.mxu0 %v16898_v30  ;;  %15846 = vmatprep.subr.mxu1 %v16443_v5 }
0x5aa4   :  { %15884 = vmatmul.mubr.msk.f32.vlgmr.msra.gmra.mxu0 %vm175_vm2, %v16248_v59  ;;  %15886 = vmatprep.subr.mxu0 %v16443_v5  ;;  %v16416_v59 = vld [vmem:[%s19904_s9 + $0x18] sm:$0xff] }
0x5aa5   :  { %15887 = vmatpush3.msra.mxu0 %v19184_v48  ;;  %15847 = vmatpush3.msra.mxu1 %v19190_v49 }
0x5aa6   :  { %15888 = vmatprep.subr.mxu0 %v16443_v5  ;;  %15848 = vmatprep.subr.mxu1 %v16443_v5 }
0x5aa7   :  { %15889 = vmatpush3.msra.mxu0 %v19195_v26  ;;  %15849 = vmatpush3.msra.mxu1 %v19201_v52 }
0x5aa8   :  { %15850 = vmatprep.subr.mxu1 %v16443_v5  ;;  %15890 = vmatprep.mubr.msk.f32.mxu0 %vm16444_vm1, %v16443_v5 }
0x5aa9   :  { %15851 = vmatpush3.msra.mxu1 %v19210_v34  ;;  %15872 = vmatprep.mubr.msk.f32.mxu1 %vm16444_vm1, %v16443_v5 }
0x5aaa   :  { %15852 = vmatprep.subr.mxu1 %v16443_v5  ;;  %15893 = vmatprep.subr.mxu0 %v16443_v5 }
0x5aab   :  { %15853 = vmatpush3.msra.mxu1 %v19220_v50 }
0x5aac   :  { %15854 = vmatprep.subr.mxu1 %v16443_v5 }
0x5aad   :  { %15855 = vmatpush3.msra.mxu1 %v19227_v9 }
0x5aae   :  { %15856 = vmatprep.subr.mxu1 %v16443_v5 }
0x5aaf   :  { %15857 = vmatpush3.msra.mxu1 %v19234_v19 }
0x5ab0   :  { %15858 = vmatprep.subr.mxu1 %v16443_v5 }
0x5ab1   :  { %15859 = vmatpush3.msra.mxu1 %v19241_v35 }
0x5ab2   :  { %15860 = vmatprep.subr.mxu1 %v16443_v5 }
0x5ab3   :  { %15861 = vmatpush3.msra.mxu1 %v19248_v33 }
0x5ab4   :  { %15862 = vmatprep.subr.mxu1 %v16443_v5 }
0x5ab5   :  { %15863 = vmatpush3.msra.mxu1 %v19255_v18 }
0x5ab6   :  { %15864 = vmatprep.subr.mxu1 %v16443_v5 }
0x5ab7   :  { %15865 = vmatpush3.msra.mxu1 %v19262_v62 }
0x5ab8   :  { %15866 = vmatprep.subr.mxu1 %v16443_v5 }
0x5ab9   :  { %15867 = vmatpush3.msra.mxu1 %v19269_v63 }
0x5aba   :  { %15868 = vmatprep.subr.mxu1 %v16443_v5 }
0x5abb   :  { %15869 = vmatpush3.msra.mxu1 %v19276_v37 }
0x5abc   :  { %15870 = vmatprep.subr.mxu1 %v16443_v5 }
0x5abd   :  { %15871 = vmatpush3.msra.mxu1 %v19283_v38 }
0x5abe   :  { %15915 = vmatprep.subr.mxu1 %v16443_v5 }
0x5b5c   :  { %v11577_v25 = vpop.f32.mrf.mxu1  ;;  %v19732_v20 = vpop.f32.mrf.mxu0 }
0x5b5d   :  { %v11578_v34 = vadd.f32 %v19403_v22, %v11577_v25  ;;  %v16417_v25 = vld [vmem:[%s19904_s9 + $0x10] sm:$0xff] }
0x5b5e   :  { %v15828_v44 = vpop.f32.mrf.mxu1  ;;  %v15839_v48 = vpop.f32.mrf.mxu0 }
0x5b5f   :  { %v11581_v9 = vsel %vm1549_vm6, %v11578_v34, -inf  ;;  %v16419_v44 = vld [vmem:[%s19904_s9] sm:$0xff] }
0x5b64   :  { %v11801_v49 = vpop.f32.mrf.mxu0 }
0x5b65   :  { %v11802_v26 = vadd.f32 %v11801_v49, %v16919_v47 }
0x5b66   :  { %v15885_v52 = vpop.f32.mrf.mxu0 }
0x5b67   :  { %v11805_v50 = vsel %vm1310_vm5, %v11802_v26, -inf }
0x5b68   :  { %11806 = vmax.xlane.f32.xlu0 %v11805_v50 }
0x5b6c   :  { %11582 = vmax.xlane.f32.xlu0 %v11581_v9 }
0x5bf1   :  { %v11807_v19 = vpop.xlane.xlu0 %11806 }
0x5bf2   :  { %v11808_v35 = vsub.f32 %v11802_v26, %v11807_v19 }
0x5bf4   :  { %v11809_v33 = vmul.f32 1.442695, %v11808_v35 }
0x5bf5   :  { %v11583_v18 = vpop.xlane.xlu0 %11582 }
0x5bf6   :  { %16249 = vpow2.f32 %v11809_v33  ;;  %v11584_v62 = vsub.f32 %v11578_v34, %v11583_v18 }
0x5bf8   :  { %v11585_v63 = vmul.f32 1.442695, %v11584_v62 }
0x5bfa   :  { %16251 = vpow2.f32 %v11585_v63 }
0x5c03   :  { %v16250_v37 = vpop.eup %16249 }
0x5c04   :  { %v11811_v38 = vsel %vm1310_vm5, %v16250_v37, 0.0 }
0x5c05   :  { %11812 = vadd.xlane.f32.xlu1 %v11811_v38 }
0x5c07   :  { %v16252_v3 = vpop.eup %16251 }
0x5c08   :  { %v11587_v42 = vsel %vm1549_vm6, %v16252_v3, 0.0 }
0x5c09   :  { %11588 = vadd.xlane.f32.xlu1 %v11587_v42 }
0x5c8e   :  { %v11813_v2 = vpop.xlane.xlu1 %11812 }
0x5c8f   :  { %16253 = vrcp.f32 %v11813_v2 }
0x5c92   :  { %v11589_v24 = vpop.xlane.xlu1 %11588 }
0x5c93   :  { %16255 = vrcp.f32 %v11589_v24 }
0x5c9c   :  { %v16254_v45 = vpop.eup %16253 }
0x5c9d   :  { %v11815_v46 = vmul.f32 %v16254_v45, %v16250_v37 }
0x5c9f   :  { %15891 = vmatmul.mubr.msk.f32.vlgmr.msra.gmra.mxu0 %vm93_vm0, %v11815_v46 }
0x5ca0   :  { %v16256_v0 = vpop.eup %16255  ;;  %15894 = vmatpush3.msra.mxu0 %v19414_v60  ;;  %15901 = vmatprep.mubr.msk.f32.mxu0 %vm16444_vm1, %v16443_v5 }
0x5ca1   :  { %v11591_v14 = vmul.f32 %v16256_v0, %v16252_v3  ;;  %15895 = vmatprep.subr.mxu0 %v16443_v5 }
0x5ca2   :  { %15896 = vmatpush3.msra.mxu0 %v19423_v15 }
0x5ca3   :  { %11593 = vst [vmem:[#allocation4 + $0x2c] sm:$0x3] %v11591_v14  ;;  %15873 = vmatmul.mubr.f32.vlgmr.msra.gmra.mxu1 %v11591_v14  ;;  %15897 = vmatprep.subr.mxu0 %v16443_v5 }
0x5ca4   :  { %15898 = vmatpush3.msra.mxu0 %v19430_v7  ;;  %15916 = vmatpush3.msra.mxu1 %v16401_v43 }
0x5ca5   :  { %15899 = vmatprep.subr.mxu0 %v16443_v5  ;;  %15917 = vmatprep.subr.mxu1 %v16443_v5 }
0x5ca6   :  { %15900 = vmatpush3.msra.mxu0 %v19439_v17  ;;  %15918 = vmatpush3.msra.mxu1 %v19310_v16 }
0x5ca7   :  { %15904 = vmatprep.subr.mxu0 %v16443_v5  ;;  %15919 = vmatprep.subr.mxu1 %v16443_v5 }
0x5ca8   :  { %15920 = vmatpush3.msra.mxu1 %v19318_v27  ;;  %15923 = vmatprep.mubr.msk.f32.mxu1 %vm16444_vm1, %v16443_v5 }
0x5ca9   :  { %15921 = vmatprep.subr.mxu1 %v16443_v5 }
0x5caa   :  { %15922 = vmatpush3.msra.mxu1 %v19327_v21 }
0x5cab   :  { %15961 = vmatprep.subr.mxu1 %v16443_v5 }
0x5d5f   :  { %v11885_v54 = vpop.f32.mrf.mxu0 }
0x5d60   :  { %15902 = vmatmul.mubr.msk.f32.vlgmr.msra.gmra.mxu0 %vm175_vm2, %v11885_v54 }
0x5d61   :  { %v15892_v55 = vpop.f32.mrf.mxu0  ;;  %15905 = vmatpush3.msra.mxu0 %v19455_v1  ;;  %15912 = vmatprep.mubr.msk.f32.mxu0 %vm16444_vm1, %v16443_v5 }
0x5d62   :  { %15906 = vmatprep.subr.mxu0 %v16443_v5 }
0x5d63   :  { %v11730_v16 = vpop.f32.mrf.mxu1  ;;  %15907 = vmatpush3.msra.mxu0 %v19464_v6 }
0x5d64   :  { %15908 = vmatprep.subr.mxu0 %v16443_v5  ;;  %v11731_v21 = vadd.f32 %v11730_v16, %v19732_v20  ;;  %v16418_v20 = vld [vmem:[%s19904_s9 + $0x8] sm:$0xff] }
0x5d65   :  { %v15874_v27 = vpop.f32.mrf.mxu1  ;;  %15909 = vmatpush3.msra.mxu0 %v19471_v8 }
0x5d66   :  { %15910 = vmatprep.subr.mxu0 %v16443_v5  ;;  %v11734_v56 = vadd.f32 %v19486_v40, %v11731_v21 }
0x5d67   :  { %15911 = vmatpush3.msra.mxu0 %v19478_v57 }
0x5d68   :  { %15926 = vmatprep.subr.mxu0 %v16443_v5 }
0x5e20   :  { %v11958_v61 = vpop.f32.mrf.mxu0 }
0x5e21   :  { %v11962_v58 = vadd.f32 %v11958_v61, %v11734_v56  ;;  %v16420_v56 = vld [vmem:[%s19908_s13] ss:$0 sm:$0xff]  ;;  %s16421_s13 = scalar_lea.vmem %s12512_s22, 800 }
0x5e22   :  { %v15903_v53 = vpop.f32.mrf.mxu0  ;;  %p16422_p0 = scmp.ne.s32.totalorder %s12512_s22, %s16421_s13  ;;  %p16427_p2 = scmp.lt.s32.totalorder %s16421_s13, %s16421_s13 }
0x5e23   :  { %16257 = vtanh.f32 %v11962_v58 }
0x5e24   :  { %p16428_p3 = por %p16427_p2, %p16426_p1 }
0x5e26   :  { %p16429_p4 = pnand %p16428_p3, %p16422_p0 }
0x5e30   :  { %v16258_v10 = vpop.eup %16257 }
0x5e31   :  { %15913 = vmatmul.mubr.msk.f32.vlgmr.msra.gmra.mxu0 %vm175_vm2, %v16258_v10  ;;  %15924 = vmatmul.mubr.msk.f32.vlgmr.msra.gmra.mxu1 %vm175_vm2, %v16258_v10 }
0x5e32   :  { %15962 = vmatpush3.msra.mxu1 %v16900_v31  ;;  %15969 = vmatprep.mubr.msk.f32.mxu1 %vm16444_vm1, %v16443_v5  ;;  %v16403_v31 = vld [vmem:[%s19904_s9 + $0x70] sm:$0xff] }
0x5e33   :  { %15963 = vmatprep.subr.mxu1 %v16443_v5  ;;  %15927 = vmatpush3.msra.mxu0 %v16402_v12 }
0x5e34   :  { %15964 = vmatpush3.msra.mxu1 %v16903_v32  ;;  %15928 = vmatprep.subr.mxu0 %v16443_v5  ;;  %v16405_v32 = vld [vmem:[#allocation2 + $0x8] sm:$0xff] }
0x5e35   :  { %15965 = vmatprep.subr.mxu1 %v16443_v5  ;;  %15929 = vmatpush3.msra.mxu0 %v16403_v31 }
0x5e36   :  { %15966 = vmatpush3.msra.mxu1 %v16896_v28  ;;  %15930 = vmatprep.subr.mxu0 %v16443_v5  ;;  %v16406_v28 = vld [vmem:[%s19904_s9 + $0x60] sm:$0xff] }
0x5e37   :  { %15967 = vmatprep.subr.mxu1 %v16443_v5  ;;  %15931 = vmatpush3.msra.mxu0 %v16404_v4 }
0x5e38   :  { %15968 = vmatpush3.msra.mxu1 %v16898_v30  ;;  %15932 = vmatprep.subr.mxu0 %v16443_v5  ;;  %v16408_v30 = vld [vmem:[%s19904_s9 + $0x58] sm:$0xff] }
0x5e39   :  { %15970 = vmatmul.mubr.msk.f32.vlgmr.msra.gmra.mxu1 %vm175_vm2, %v16258_v10  ;;  %15972 = vmatprep.subr.mxu1 %v16443_v5 }
0x5e3a   :  { %15973 = vmatpush3.msra.mxu1 %v16405_v32  ;;  %15933 = vmatpush3.msra.mxu0 %v16406_v28 }
0x5e3b   :  { %15974 = vmatprep.subr.mxu1 %v16443_v5  ;;  %15934 = vmatprep.subr.mxu0 %v16443_v5 }
0x5e3c   :  { %15975 = vmatpush3.msra.mxu1 %v16407_v51  ;;  %15935 = vmatpush3.msra.mxu0 %v16408_v30 }
0x5e3d   :  { %15936 = vmatprep.subr.mxu0 %v16443_v5  ;;  %15976 = vmatprep.mubr.msk.f32.mxu1 %vm16444_vm1, %v16443_v5 }
0x5e3e   :  { %15937 = vmatpush3.msra.mxu0 %v16409_v39  ;;  %15958 = vmatprep.mubr.msk.f32.mxu0 %vm16444_vm1, %v16443_v5 }
0x5e3f   :  { %15938 = vmatprep.subr.mxu0 %v16443_v5  ;;  %15979 = vmatprep.subr.mxu1 %v16443_v5 }
0x5e40   :  { %15939 = vmatpush3.msra.mxu0 %v16410_v36 }
0x5e41   :  { %15940 = vmatprep.subr.mxu0 %v16443_v5 }
0x5e42   :  { %15941 = vmatpush3.msra.mxu0 %v16411_v13 }
0x5e43   :  { %15942 = vmatprep.subr.mxu0 %v16443_v5 }
0x5e44   :  { %15943 = vmatpush3.msra.mxu0 %v16412_v11 }
0x5e45   :  { %15944 = vmatprep.subr.mxu0 %v16443_v5 }
0x5e46   :  { %15945 = vmatpush3.msra.mxu0 %v16413_v23 }
0x5e47   :  { %15946 = vmatprep.subr.mxu0 %v16443_v5 }
0x5e48   :  { %15947 = vmatpush3.msra.mxu0 %v16414_v41 }
0x5e49   :  { %15948 = vmatprep.subr.mxu0 %v16443_v5 }
0x5e4a   :  { %15949 = vmatpush3.msra.mxu0 %v16415_v29 }
0x5e4b   :  { %15950 = vmatprep.subr.mxu0 %v16443_v5 }
0x5e4c   :  { %15951 = vmatpush3.msra.mxu0 %v16416_v59 }
0x5e4d   :  { %15952 = vmatprep.subr.mxu0 %v16443_v5 }
0x5e4e   :  { %15953 = vmatpush3.msra.mxu0 %v16417_v25 }
0x5e4f   :  { %15954 = vmatprep.subr.mxu0 %v16443_v5 }
0x5e50   :  { %15955 = vmatpush3.msra.mxu0 %v16418_v20 }
0x5e51   :  { %15956 = vmatprep.subr.mxu0 %v16443_v5 }
0x5e52   :  { %15957 = vmatpush3.msra.mxu0 %v16419_v44 }
0x5ef1   :  { %v12033_v48 = vpop.f32.mrf.mxu0  ;;  %v12116_v49 = vpop.f32.mrf.mxu1 }
0x5ef2   :  { %v12034_v19 = vadd.f32 %v19403_v22, %v12033_v48 }
0x5ef3   :  { %v15914_v26 = vpop.f32.mrf.mxu0  ;;  %v15925_v52 = vpop.f32.mrf.mxu1 }
0x5ef4   :  { %v12037_v33 = vsel %vm1549_vm6, %v12034_v19, -inf }
0x5ef9   :  { %v12257_v34 = vpop.f32.mrf.mxu1 }
0x5efa   :  { %v12258_v50 = vadd.f32 %v12257_v34, %v16919_v47 }
0x5efb   :  { %v15971_v9 = vpop.f32.mrf.mxu1 }
0x5efc   :  { %v12261_v35 = vsel %vm1310_vm5, %v12258_v50, -inf }
0x5efd   :  { %12262 = vmax.xlane.f32.xlu0 %v12261_v35 }
0x5f01   :  { %12038 = vmax.xlane.f32.xlu0 %v12037_v33 }
0x5f86   :  { %v12263_v18 = vpop.xlane.xlu0 %12262 }
0x5f87   :  { %v12264_v62 = vsub.f32 %v12258_v50, %v12263_v18 }
0x5f89   :  { %v12265_v63 = vmul.f32 1.442695, %v12264_v62 }
0x5f8a   :  { %v12039_v37 = vpop.xlane.xlu0 %12038 }
0x5f8b   :  { %16259 = vpow2.f32 %v12265_v63  ;;  %v12040_v38 = vsub.f32 %v12034_v19, %v12039_v37 }
0x5f8d   :  { %v12041_v3 = vmul.f32 1.442695, %v12040_v38 }
0x5f8f   :  { %16261 = vpow2.f32 %v12041_v3 }
0x5f98   :  { %v16260_v42 = vpop.eup %16259 }
0x5f99   :  { %v12267_v47 = vsel %vm1310_vm5, %v16260_v42, 0.0 }
0x5f9a   :  { %12268 = vadd.xlane.f32.xlu1 %v12267_v47 }
0x5f9c   :  { %v16262_v2 = vpop.eup %16261 }
0x5f9d   :  { %v12043_v22 = vsel %vm1549_vm6, %v16262_v2, 0.0 }
0x5f9e   :  { %12044 = vadd.xlane.f32.xlu1 %v12043_v22 }
0x6023   :  { %v12269_v24 = vpop.xlane.xlu1 %12268 }
0x6024   :  { %16263 = vrcp.f32 %v12269_v24 }
0x6027   :  { %v12045_v45 = vpop.xlane.xlu1 %12044 }
0x6028   :  { %16265 = vrcp.f32 %v12045_v45 }
0x6031   :  { %v16264_v46 = vpop.eup %16263 }
0x6032   :  { %v12271_v0 = vmul.f32 %v16264_v46, %v16260_v42 }
0x6034   :  { %15977 = vmatmul.mubr.msk.f32.vlgmr.msra.gmra.mxu1 %vm93_vm0, %v12271_v0 }
0x6035   :  { %v16266_v14 = vpop.eup %16265  ;;  %15980 = vmatpush3.msra.mxu1 %v19414_v60  ;;  %15987 = vmatprep.mubr.msk.f32.mxu1 %vm16444_vm1, %v16443_v5 }
0x6036   :  { %v12047_v43 = vmul.f32 %v16266_v14, %v16262_v2  ;;  %15981 = vmatprep.subr.mxu1 %v16443_v5 }
0x6037   :  { %15982 = vmatpush3.msra.mxu1 %v19423_v15 }
0x6038   :  { %12049 = vst [vmem:[#allocation4 + $0x2e] sm:$0x3] %v12047_v43  ;;  %15959 = vmatmul.mubr.f32.vlgmr.msra.gmra.mxu0 %v12047_v43  ;;  %15983 = vmatprep.subr.mxu1 %v16443_v5 }
0x6039   :  { %15984 = vmatpush3.msra.mxu1 %v19430_v7 }
0x603a   :  { %15985 = vmatprep.subr.mxu1 %v16443_v5 }
0x603b   :  { %15986 = vmatpush3.msra.mxu1 %v19439_v17 }
0x603c   :  { %15990 = vmatprep.subr.mxu1 %v16443_v5 }
0x60f4   :  { %v12341_v60 = vpop.f32.mrf.mxu1 }
0x60f5   :  { %15988 = vmatmul.mubr.msk.f32.vlgmr.msra.gmra.mxu1 %vm175_vm2, %v12341_v60 }
0x60f6   :  { %v15978_v54 = vpop.f32.mrf.mxu1  ;;  %15991 = vmatpush3.msra.mxu1 %v19455_v1  ;;  %15998 = vmatprep.mubr.msk.f32.mxu1 %vm16444_vm1, %v16443_v5 }
0x60f7   :  { %15992 = vmatprep.subr.mxu1 %v16443_v5 }
0x60f8   :  { %v12186_v15 = vpop.f32.mrf.mxu0  ;;  %15993 = vmatpush3.msra.mxu1 %v19464_v6 }
0x60f9   :  { %15994 = vmatprep.subr.mxu1 %v16443_v5  ;;  %v12187_v17 = vadd.f32 %v12186_v15, %v12116_v49 }
0x60fa   :  { %v15960_v7 = vpop.f32.mrf.mxu0  ;;  %15995 = vmatpush3.msra.mxu1 %v19471_v8 }
0x60fb   :  { %15996 = vmatprep.subr.mxu1 %v16443_v5  ;;  %v12190_v1 = vadd.f32 %v19486_v40, %v12187_v17 }
0x60fc   :  { %15997 = vmatpush3.msra.mxu1 %v19478_v57 }
0x61b5   :  { %v12414_v55 = vpop.f32.mrf.mxu1 }
0x61b6   :  { %v12418_v16 = vadd.f32 %v12414_v55, %v12190_v1 }
0x61b7   :  { %v15989_v27 = vpop.f32.mrf.mxu1 }
0x61b8   :  { %16267 = vtanh.f32 %v12418_v16 }
0x61c5   :  { %v16268_v21 = vpop.eup %16267 }
0x61c6   :  { %15999 = vmatmul.mubr.msk.f32.vlgmr.msra.gmra.mxu1 %vm175_vm2, %v16268_v21 }
0x6286   :  { %v12489_v6 = vpop.f32.mrf.mxu1 }
0x6287   :  { %v12490_v8 = vadd.f32 %v16420_v56, %v12489_v6 }
0x6288   :  { %v16000_v61 = vpop.f32.mrf.mxu1 }
0x6289   :  { %v12493_v5 = vsel %vm1549_vm6, %v12490_v8, -inf }
0x628a   :  { %12494 = vmax.xlane.f32.xlu0 %v12493_v5 }
0x6313   :  { %v12495_v57 = vpop.xlane.xlu0 %12494 }
0x6314   :  { %v12496_v58 = vsub.f32 %v12490_v8, %v12495_v57 }
0x6316   :  { %v12497_v40 = vmul.f32 1.442695, %v12496_v58 }
0x6318   :  { %16269 = vpow2.f32 %v12497_v40 }
0x6325   :  { %v16270_v53 = vpop.eup %16269 }
0x6326   :  { %v12499_v10 = vsel %vm1549_vm6, %v16270_v53, 0.0 }
0x6327   :  { %12500 = vadd.xlane.f32.xlu1 %v12499_v10 }
0x63b0   :  { %v12501_v12 = vpop.xlane.xlu1 %12500 }
0x63b1   :  { %16271 = vrcp.f32 %v12501_v12 }
0x63be   :  { %v16272_v31 = vpop.eup %16271 }
0x63bf   :  { %v12503_v4 = vmul.f32 %v16272_v31, %v16270_v53 }
0x63c1   :  { %12505 = vst [vmem:[#allocation4 + $0x30] sm:$0x3] %v12503_v4 }
0x63c2   :  { %16432 = shalt.err (!%p16429_p4)
}
0x63c3   :  { %s16447_s1 = smov 32   ;;  %s16448_s5 = smov 2  }
0x63c4   :  { %12517 = dma.vmem_to_hbm [thread:$0]  %s12512_s22, 800, %s19909_s14, [#allocation5], %s16447_s1, %s16447_s1, %s16448_s5  }
0x63c5   :  { %16441 = dma.done.wait [#allocation5], 800  }
0x63c6   :  { %16442 = vsyncadd [#allocation5], 4294966496 }
0x63c7   :  { %12521 = vsyncpa [#allocation5], 1 }

</bundles_post_ra>
